<compile_context>
chip_gen: v5e
topology: v5e:2x2
jax: 0.10.0
libtpu: 0.0.40
codegen_flags: <defaults>
</compile_context>

<pallas_src>
import functools

import jax
import jax.numpy as jnp
from jax.experimental import pallas as pl
from jax.experimental.pallas import tpu as pltpu


# ---------------------------------------------------------------------------
# Fused Inception kernel (one grid step == one image)
# ---------------------------------------------------------------------------

def _taps(K):
    """Tap offsets (dy, dx) relative to the output pixel for a KxK 'same' conv."""
    p = (K - 1) // 2
    return [(dy - p, dx - p) for dy in range(K) for dx in range(K)]


def _inception_kernel(x_ref, w1_ref, b1_ref, w2_ref, b2_ref, w3_ref, b3_ref,
                      w4_ref, b4_ref, o_ref,
                      pat2_ref, pat3_ref, padp_ref,
                      *, H, W, Cin, c1, c2a, c2b, c3a, c3b, c4):
    HW = H * W

    x4 = x_ref[...]                              # (1, H, W, Cin)
    x_img = x4.reshape(H, W, Cin)
    x2d = x4.reshape(HW, Cin)

    # ---- fused 1x1 convs for branches 1 / 2a / 3a: one MXU matmul ----------
    y1 = jnp.dot(x2d, w1_ref[...], preferred_element_type=jnp.float32)
    y1 = jnp.maximum(y1 + b1_ref[...], 0.0)      # (HW, c1 + c2a + c3a)
    p1 = y1[:, :c1]                              # (HW, c1)
    p2a = y1[:, c1:c1 + c2a].reshape(H, W, c2a)  # (H, W, c2a)
    p3a = y1[:, c1 + c2a:c1 + c2a + c3a].reshape(H, W, c3a)

    # ---- branch 2: 3x3 'same' conv via one im2col matmul -------------------
    # Zero padding is folded in by pre-zeroing the patch buffer and storing
    # only the valid crop of each tap.
    pat2_ref[...] = jnp.zeros_like(pat2_ref)
    for t, (oy, ox) in enumerate(_taps(3)):
        ha, hb = max(0, -oy), min(H, H - oy)
        wa, wb = max(0, -ox), min(W, W - ox)
        pat2_ref[ha:hb, wa:wb, t * c2a:(t + 1) * c2a] = (
            p2a[ha + oy:hb + oy, wa + ox:wb + ox, :])
    p2 = jnp.dot(pat2_ref[...].reshape(HW, 9 * c2a), w2_ref[...],
                 preferred_element_type=jnp.float32)
    p2 = jnp.maximum(p2 + b2_ref[...], 0.0)      # (HW, c2b)

    # ---- branch 3: 5x5 'same' conv via one im2col matmul -------------------
    pat3_ref[...] = jnp.zeros_like(pat3_ref)
    for t, (oy, ox) in enumerate(_taps(5)):
        ha, hb = max(0, -oy), min(H, H - oy)
        wa, wb = max(0, -ox), min(W, W - ox)
        pat3_ref[ha:hb, wa:wb, t * c3a:(t + 1) * c3a] = (
            p3a[ha + oy:hb + oy, wa + ox:wb + ox, :])
    p3 = jnp.dot(pat3_ref[...].reshape(HW, 25 * c3a), w3_ref[...],
                 preferred_element_type=jnp.float32)
    p3 = jnp.maximum(p3 + b3_ref[...], 0.0)      # (HW, c3b)

    # ---- branch 4: 3x3 maxpool (stride 1, pad 1) + 1x1 conv -----------------
    padp_ref[...] = jnp.full_like(padp_ref, -jnp.inf)
    padp_ref[1:1 + H, 1:1 + W, :] = x_img
    pooled = x_img                               # center tap, skip -inf init
    for dy in range(3):
        for dx in range(3):
            if dy == 1 and dx == 1:
                continue
            pooled = jnp.maximum(pooled, padp_ref[dy:dy + H, dx:dx + W, :])
    p4 = jnp.dot(pooled.reshape(HW, Cin), w4_ref[...],
                 preferred_element_type=jnp.float32)
    p4 = jnp.maximum(p4 + b4_ref[...], 0.0)      # (HW, c4)

    # ---- concatenated channel-axis output (single output block) ------------
    o_ref[:, :, :, 0:c1] = p1.reshape(1, H, W, c1)
    o_ref[:, :, :, c1:c1 + c2b] = p2.reshape(1, H, W, c2b)
    o_ref[:, :, :, c1 + c2b:c1 + c2b + c3b] = p3.reshape(1, H, W, c3b)
    o_ref[:, :, :, c1 + c2b + c3b:] = p4.reshape(1, H, W, c4)


# ---------------------------------------------------------------------------
# pallas_call wrapper
# ---------------------------------------------------------------------------

def _inception_pallas(x_nhwc, packed, *, c1, c2, c3, c4):
    N, H, W, Cin = x_nhwc.shape
    c2a, c2b = c2
    c3a, c3b = c3
    c_total = c1 + c2b + c3b + c4

    kernel = functools.partial(
        _inception_kernel, H=H, W=W, Cin=Cin,
        c1=c1, c2a=c2a, c2b=c2b, c3a=c3a, c3b=c3b, c4=c4)

    grid_spec = pltpu.PrefetchScalarGridSpec(
        num_scalar_prefetch=0,
        grid=(N,),
        in_specs=[
            pl.BlockSpec((1, H, W, Cin), lambda n: (n, 0, 0, 0)),        # x
            pl.BlockSpec((Cin, c1 + c2a + c3a), lambda n: (0, 0)),       # w1 (fused 1x1)
            pl.BlockSpec((1, c1 + c2a + c3a), lambda n: (0, 0)),         # b1
            pl.BlockSpec((9 * c2a, c2b), lambda n: (0, 0)),              # w2 (im2col 3x3)
            pl.BlockSpec((1, c2b), lambda n: (0, 0)),                    # b2
            pl.BlockSpec((25 * c3a, c3b), lambda n: (0, 0)),             # w3 (im2col 5x5)
            pl.BlockSpec((1, c3b), lambda n: (0, 0)),                    # b3
            pl.BlockSpec((Cin, c4), lambda n: (0, 0)),                   # w4 (1x1)
            pl.BlockSpec((1, c4), lambda n: (0, 0)),                     # b4
        ],
        out_specs=pl.BlockSpec((1, H, W, c_total), lambda n: (n, 0, 0, 0)),
        scratch_shapes=[
            pltpu.VMEM((H, W, 9 * c2a), jnp.float32),    # im2col patches (3x3)
            pltpu.VMEM((H, W, 25 * c3a), jnp.float32),   # im2col patches (5x5)
            pltpu.VMEM((H + 2, W + 2, Cin), jnp.float32),  # -inf padded x (pool)
        ],
    )
    # TODO(synk): at real Inception sizes (e.g. 32x28x28x480) add spatial row
    # tiling sized for v7x's 64 MiB VMEM instead of one-image blocks.
    return pl.pallas_call(
        kernel,
        out_shape=jax.ShapeDtypeStruct((N, H, W, c_total), jnp.float32),
        grid_spec=grid_spec,
        compiler_params=pltpu.CompilerParams(
            dimension_semantics=("parallel",)),
    )(x_nhwc, packed["w1"], packed["b1"], packed["w2"], packed["b2"],
      packed["w3"], packed["b3"], packed["w4"], packed["b4"])


# ---------------------------------------------------------------------------
# Parameters (PyTorch-like layout) and one-time packing into kernel form
# ---------------------------------------------------------------------------

def init_inception_params(key, in_channels, c1, c2, c3, c4):
    """Deterministic init. Conv weights stored as (K, K, Cin, Cout)."""
    def conv_param(k, kh, cin, cout):
        kw_key, b_key = jax.random.split(k)
        w = jax.random.normal(kw_key, (kh, kh, cin, cout), jnp.float32) * 0.1
        b = jax.random.normal(b_key, (cout,), jnp.float32) * 0.01
        return {"w": w, "b": b}

    keys = jax.random.split(key, 6)
    return {
        "p1_1": conv_param(keys[0], 1, in_channels, c1),
        "p2_1": conv_param(keys[1], 1, in_channels, c2[0]),
        "p2_2": conv_param(keys[2], 3, c2[0], c2[1]),
        "p3_1": conv_param(keys[3], 1, in_channels, c3[0]),
        "p3_2": conv_param(keys[4], 5, c3[0], c3[1]),
        "p4_2": conv_param(keys[5], 1, in_channels, c4),
    }


def pack_inception_params(params):
    """One-time repack into kernel-ready matrices (done outside the hot path)."""
    def as_matrix(w):  # (K, K, Cin, Cout) -> (K*K*Cin, Cout); row = (dy*K+dx)*Cin + ci
        return w.reshape(-1, w.shape[-1])

    w1 = jnp.concatenate([as_matrix(params["p1_1"]["w"]),
                          as_matrix(params["p2_1"]["w"]),
                          as_matrix(params["p3_1"]["w"])], axis=1)
    b1 = jnp.concatenate([params["p1_1"]["b"], params["p2_1"]["b"],
                          params["p3_1"]["b"]])[None, :]
    return {
        "w1": w1, "b1": b1,
        "w2": as_matrix(params["p2_2"]["w"]), "b2": params["p2_2"]["b"][None, :],
        "w3": as_matrix(params["p3_2"]["w"]), "b3": params["p3_2"]["b"][None, :],
        "w4": as_matrix(params["p4_2"]["w"]), "b4": params["p4_2"]["b"][None, :],
    }


def make_inception_forward(c1, c2, c3, c4):
    """Returns a jitted forward matching PyTorch Inception.forward (NCHW in/out)."""
    @jax.jit
    def forward(packed, x_nchw):
        x = jnp.transpose(x_nchw, (0, 2, 3, 1)).astype(jnp.float32)  # -> NHWC
        out = _inception_pallas(x, packed, c1=c1, c2=c2, c3=c3, c4=c4)
        return jnp.transpose(out, (0, 3, 1, 2))                      # -> NCHW
    return forward


# ---------------------------------------------------------------------------
# Main
# ---------------------------------------------------------------------------

if __name__ == "__main__":
    key = jax.random.PRNGKey(0)
    k_x, k_p = jax.random.split(key)

    # Small shapes: batch=2, in_channels=4, spatial=16x16
    N, C_in, H, W = 2, 4, 16, 16
    c1, c2, c3, c4 = 4, (4, 8), (2, 4), 4   # output channels = 4+8+4+4 = 20

    x = jax.random.normal(k_x, (N, C_in, H, W), jnp.float32)
    params = init_inception_params(k_p, C_in, c1, c2, c3, c4)
    packed = pack_inception_params(params)

    forward = make_inception_forward(c1, c2, c3, c4)
    out = jax.block_until_ready(forward(packed, x))

    assert out.shape == (N, c1 + c2[1] + c3[1] + c4, H, W), out.shape
    assert out.dtype == jnp.float32
    print("KERNEL_OK")
</pallas_src>

<mosaic_0001>
module attributes {stable_mosaic.version = 11 : i64} {
  func.func @_inception_kernel(%arg0: i32, %arg1: memref<1x16x16x4xf32, #tpu.memory_space<vmem>>, %arg2: memref<4x10xf32, #tpu.memory_space<vmem>>, %arg3: memref<1x10xf32, #tpu.memory_space<vmem>>, %arg4: memref<36x8xf32, #tpu.memory_space<vmem>>, %arg5: memref<1x8xf32, #tpu.memory_space<vmem>>, %arg6: memref<50x4xf32, #tpu.memory_space<vmem>>, %arg7: memref<1x4xf32, #tpu.memory_space<vmem>>, %arg8: memref<4x4xf32, #tpu.memory_space<vmem>>, %arg9: memref<1x4xf32, #tpu.memory_space<vmem>>, %arg10: memref<1x16x16x20xf32, #tpu.memory_space<vmem>>, %arg11: memref<16x16x36xf32, #tpu.memory_space<vmem>>, %arg12: memref<16x16x50xf32, #tpu.memory_space<vmem>>, %arg13: memref<18x18x4xf32, #tpu.memory_space<vmem>>) attributes {dimension_semantics = [#tpu.dimension_semantics<parallel>], iteration_bounds = array<i64: 2>, scalar_prefetch = 0 : i64, scratch_operands = 3 : i64, tpu.core_type = #tpu.core_type<tc>, window_params = [{transform_indices = @transform_0, window_bounds = array<i64: 1, 16, 16, 4>}, {pipeline_mode = #tpu.pipeline_mode<synchronous>, transform_indices = @transform_1, window_bounds = array<i64: 4, 10>}, {pipeline_mode = #tpu.pipeline_mode<synchronous>, transform_indices = @transform_2, window_bounds = array<i64: 1, 10>}, {pipeline_mode = #tpu.pipeline_mode<synchronous>, transform_indices = @transform_3, window_bounds = array<i64: 36, 8>}, {pipeline_mode = #tpu.pipeline_mode<synchronous>, transform_indices = @transform_4, window_bounds = array<i64: 1, 8>}, {pipeline_mode = #tpu.pipeline_mode<synchronous>, transform_indices = @transform_5, window_bounds = array<i64: 50, 4>}, {pipeline_mode = #tpu.pipeline_mode<synchronous>, transform_indices = @transform_6, window_bounds = array<i64: 1, 4>}, {pipeline_mode = #tpu.pipeline_mode<synchronous>, transform_indices = @transform_7, window_bounds = array<i64: 4, 4>}, {pipeline_mode = #tpu.pipeline_mode<synchronous>, transform_indices = @transform_8, window_bounds = array<i64: 1, 4>}, {transform_indices = @transform_9, window_bounds = array<i64: 1, 16, 16, 20>}]} {
    %c0 = arith.constant 0 : index
    %c0_0 = arith.constant 0 : index
    %c0_1 = arith.constant 0 : index
    %c0_2 = arith.constant 0 : index
    %0 = vector.load %arg1[%c0, %c0_0, %c0_1, %c0_2] : memref<1x16x16x4xf32, #tpu.memory_space<vmem>>, vector<1x16x16x4xf32>
    %1 = vector.shape_cast %0 : vector<1x16x16x4xf32> to vector<16x16x4xf32>
    %2 = vector.shape_cast %0 : vector<1x16x16x4xf32> to vector<256x4xf32>
    %c0_3 = arith.constant 0 : index
    %c0_4 = arith.constant 0 : index
    %3 = vector.load %arg2[%c0_3, %c0_4] : memref<4x10xf32, #tpu.memory_space<vmem>>, vector<4x10xf32>
    %cst = arith.constant dense<0.000000e+00> : vector<256x10xf32>
    %4 = tpu.matmul %2, %3, %cst {dimension_numbers = #tpu.dot_dimension_numbers<[1], [0], [0], [1], [0, 0, 1, 1], [], []>} : vector<256x4xf32>, vector<4x10xf32>, vector<256x10xf32> -> vector<256x10xf32>
    %c0_5 = arith.constant 0 : index
    %c0_6 = arith.constant 0 : index
    %5 = vector.load %arg3[%c0_5, %c0_6] : memref<1x10xf32, #tpu.memory_space<vmem>>, vector<1x10xf32>
    %6 = vector.broadcast %5 : vector<1x10xf32> to vector<256x10xf32>
    %7 = arith.addf %4, %6 : vector<256x10xf32>
    %cst_7 = arith.constant 0.000000e+00 : f32
    %8 = vector.broadcast %cst_7 : f32 to vector<256x10xf32>
    %9 = arith.maximumf %7, %8 : vector<256x10xf32>
    %10 = vector.extract_strided_slice %9 {offsets = [0, 0], sizes = [256, 4], strides = [1, 1]} : vector<256x10xf32> to vector<256x4xf32>
    %11 = vector.extract_strided_slice %9 {offsets = [0, 4], sizes = [256, 4], strides = [1, 1]} : vector<256x10xf32> to vector<256x4xf32>
    %12 = vector.shape_cast %11 : vector<256x4xf32> to vector<16x16x4xf32>
    %13 = vector.extract_strided_slice %9 {offsets = [0, 8], sizes = [256, 2], strides = [1, 1]} : vector<256x10xf32> to vector<256x2xf32>
    %14 = vector.shape_cast %13 : vector<256x2xf32> to vector<16x16x2xf32>
    %cst_8 = arith.constant 0.000000e+00 : f32
    %15 = vector.broadcast %cst_8 : f32 to vector<16x16x36xf32>
    %c0_9 = arith.constant 0 : index
    %c0_10 = arith.constant 0 : index
    %c0_11 = arith.constant 0 : index
    %16 = vector.load %arg11[%c0_9, %c0_10, %c0_11] : memref<16x16x36xf32, #tpu.memory_space<vmem>>, vector<16x16x36xf32>
    tpu.vector_store %arg11[%c0_9, %c0_10, %c0_11], %15 {strides = array<i32>} : memref<16x16x36xf32, #tpu.memory_space<vmem>>, vector<16x16x36xf32>,
    %17 = vector.extract_strided_slice %12 {offsets = [0, 0, 0], sizes = [15, 15, 4], strides = [1, 1, 1]} : vector<16x16x4xf32> to vector<15x15x4xf32>
    %c1 = arith.constant 1 : index
    %c1_12 = arith.constant 1 : index
    %c0_13 = arith.constant 0 : index
    %18 = vector.load %arg11[%c1, %c1_12, %c0_13] : memref<16x16x36xf32, #tpu.memory_space<vmem>>, vector<15x15x4xf32>
    tpu.vector_store %arg11[%c1, %c1_12, %c0_13], %17 {strides = array<i32>} : memref<16x16x36xf32, #tpu.memory_space<vmem>>, vector<15x15x4xf32>,
    %19 = vector.extract_strided_slice %12 {offsets = [0, 0, 0], sizes = [15, 16, 4], strides = [1, 1, 1]} : vector<16x16x4xf32> to vector<15x16x4xf32>
    %c1_14 = arith.constant 1 : index
    %c0_15 = arith.constant 0 : index
    %c4 = arith.constant 4 : index
    %20 = vector.load %arg11[%c1_14, %c0_15, %c4] : memref<16x16x36xf32, #tpu.memory_space<vmem>>, vector<15x16x4xf32>
    tpu.vector_store %arg11[%c1_14, %c0_15, %c4], %19 {strides = array<i32>} : memref<16x16x36xf32, #tpu.memory_space<vmem>>, vector<15x16x4xf32>,
    %21 = vector.extract_strided_slice %12 {offsets = [0, 1, 0], sizes = [15, 15, 4], strides = [1, 1, 1]} : vector<16x16x4xf32> to vector<15x15x4xf32>
    %c1_16 = arith.constant 1 : index
    %c0_17 = arith.constant 0 : index
    %c8 = arith.constant 8 : index
    %22 = vector.load %arg11[%c1_16, %c0_17, %c8] : memref<16x16x36xf32, #tpu.memory_space<vmem>>, vector<15x15x4xf32>
    tpu.vector_store %arg11[%c1_16, %c0_17, %c8], %21 {strides = array<i32>} : memref<16x16x36xf32, #tpu.memory_space<vmem>>, vector<15x15x4xf32>,
    %23 = vector.extract_strided_slice %12 {offsets = [0, 0, 0], sizes = [16, 15, 4], strides = [1, 1, 1]} : vector<16x16x4xf32> to vector<16x15x4xf32>
    %c0_18 = arith.constant 0 : index
    %c1_19 = arith.constant 1 : index
    %c12 = arith.constant 12 : index
    %24 = vector.load %arg11[%c0_18, %c1_19, %c12] : memref<16x16x36xf32, #tpu.memory_space<vmem>>, vector<16x15x4xf32>
    tpu.vector_store %arg11[%c0_18, %c1_19, %c12], %23 {strides = array<i32>} : memref<16x16x36xf32, #tpu.memory_space<vmem>>, vector<16x15x4xf32>,
    %c0_20 = arith.constant 0 : index
    %c0_21 = arith.constant 0 : index
    %c16 = arith.constant 16 : index
    %25 = vector.load %arg11[%c0_20, %c0_21, %c16] : memref<16x16x36xf32, #tpu.memory_space<vmem>>, vector<16x16x4xf32>
    tpu.vector_store %arg11[%c0_20, %c0_21, %c16], %12 {strides = array<i32>} : memref<16x16x36xf32, #tpu.memory_space<vmem>>, vector<16x16x4xf32>,
    %26 = vector.extract_strided_slice %12 {offsets = [0, 1, 0], sizes = [16, 15, 4], strides = [1, 1, 1]} : vector<16x16x4xf32> to vector<16x15x4xf32>
    %c0_22 = arith.constant 0 : index
    %c0_23 = arith.constant 0 : index
    %c20 = arith.constant 20 : index
    %27 = vector.load %arg11[%c0_22, %c0_23, %c20] : memref<16x16x36xf32, #tpu.memory_space<vmem>>, vector<16x15x4xf32>
    tpu.vector_store %arg11[%c0_22, %c0_23, %c20], %26 {strides = array<i32>} : memref<16x16x36xf32, #tpu.memory_space<vmem>>, vector<16x15x4xf32>,
    %28 = vector.extract_strided_slice %12 {offsets = [1, 0, 0], sizes = [15, 15, 4], strides = [1, 1, 1]} : vector<16x16x4xf32> to vector<15x15x4xf32>
    %c0_24 = arith.constant 0 : index
    %c1_25 = arith.constant 1 : index
    %c24 = arith.constant 24 : index
    %29 = vector.load %arg11[%c0_24, %c1_25, %c24] : memref<16x16x36xf32, #tpu.memory_space<vmem>>, vector<15x15x4xf32>
    tpu.vector_store %arg11[%c0_24, %c1_25, %c24], %28 {strides = array<i32>} : memref<16x16x36xf32, #tpu.memory_space<vmem>>, vector<15x15x4xf32>,
    %30 = vector.extract_strided_slice %12 {offsets = [1, 0, 0], sizes = [15, 16, 4], strides = [1, 1, 1]} : vector<16x16x4xf32> to vector<15x16x4xf32>
    %c0_26 = arith.constant 0 : index
    %c0_27 = arith.constant 0 : index
    %c28 = arith.constant 28 : index
    %31 = vector.load %arg11[%c0_26, %c0_27, %c28] : memref<16x16x36xf32, #tpu.memory_space<vmem>>, vector<15x16x4xf32>
    tpu.vector_store %arg11[%c0_26, %c0_27, %c28], %30 {strides = array<i32>} : memref<16x16x36xf32, #tpu.memory_space<vmem>>, vector<15x16x4xf32>,
    %32 = vector.extract_strided_slice %12 {offsets = [1, 1, 0], sizes = [15, 15, 4], strides = [1, 1, 1]} : vector<16x16x4xf32> to vector<15x15x4xf32>
    %c0_28 = arith.constant 0 : index
    %c0_29 = arith.constant 0 : index
    %c32 = arith.constant 32 : index
    %33 = vector.load %arg11[%c0_28, %c0_29, %c32] : memref<16x16x36xf32, #tpu.memory_space<vmem>>, vector<15x15x4xf32>
    tpu.vector_store %arg11[%c0_28, %c0_29, %c32], %32 {strides = array<i32>} : memref<16x16x36xf32, #tpu.memory_space<vmem>>, vector<15x15x4xf32>,
    %c0_30 = arith.constant 0 : index
    %c0_31 = arith.constant 0 : index
    %c0_32 = arith.constant 0 : index
    %34 = vector.load %arg11[%c0_30, %c0_31, %c0_32] : memref<16x16x36xf32, #tpu.memory_space<vmem>>, vector<16x16x36xf32>
    %35 = vector.shape_cast %34 : vector<16x16x36xf32> to vector<256x36xf32>
    %c0_33 = arith.constant 0 : index
    %c0_34 = arith.constant 0 : index
    %36 = vector.load %arg4[%c0_33, %c0_34] : memref<36x8xf32, #tpu.memory_space<vmem>>, vector<36x8xf32>
    %cst_35 = arith.constant dense<0.000000e+00> : vector<256x8xf32>
    %37 = tpu.matmul %35, %36, %cst_35 {dimension_numbers = #tpu.dot_dimension_numbers<[1], [0], [0], [1], [0, 0, 1, 1], [], []>} : vector<256x36xf32>, vector<36x8xf32>, vector<256x8xf32> -> vector<256x8xf32>
    %c0_36 = arith.constant 0 : index
    %c0_37 = arith.constant 0 : index
    %38 = vector.load %arg5[%c0_36, %c0_37] : memref<1x8xf32, #tpu.memory_space<vmem>>, vector<1x8xf32>
    %39 = vector.broadcast %38 : vector<1x8xf32> to vector<256x8xf32>
    %40 = arith.addf %37, %39 : vector<256x8xf32>
    %cst_38 = arith.constant 0.000000e+00 : f32
    %41 = vector.broadcast %cst_38 : f32 to vector<256x8xf32>
    %42 = arith.maximumf %40, %41 : vector<256x8xf32>
    %cst_39 = arith.constant 0.000000e+00 : f32
    %43 = vector.broadcast %cst_39 : f32 to vector<16x16x50xf32>
    %c0_40 = arith.constant 0 : index
    %c0_41 = arith.constant 0 : index
    %c0_42 = arith.constant 0 : index
    %44 = vector.load %arg12[%c0_40, %c0_41, %c0_42] : memref<16x16x50xf32, #tpu.memory_space<vmem>>, vector<16x16x50xf32>
    tpu.vector_store %arg12[%c0_40, %c0_41, %c0_42], %43 {strides = array<i32>} : memref<16x16x50xf32, #tpu.memory_space<vmem>>, vector<16x16x50xf32>,
    %45 = vector.extract_strided_slice %14 {offsets = [0, 0, 0], sizes = [14, 14, 2], strides = [1, 1, 1]} : vector<16x16x2xf32> to vector<14x14x2xf32>
    %c2 = arith.constant 2 : index
    %c2_43 = arith.constant 2 : index
    %c0_44 = arith.constant 0 : index
    %46 = vector.load %arg12[%c2, %c2_43, %c0_44] : memref<16x16x50xf32, #tpu.memory_space<vmem>>, vector<14x14x2xf32>
    tpu.vector_store %arg12[%c2, %c2_43, %c0_44], %45 {strides = array<i32>} : memref<16x16x50xf32, #tpu.memory_space<vmem>>, vector<14x14x2xf32>,
    %47 = vector.extract_strided_slice %14 {offsets = [0, 0, 0], sizes = [14, 15, 2], strides = [1, 1, 1]} : vector<16x16x2xf32> to vector<14x15x2xf32>
    %c2_45 = arith.constant 2 : index
    %c1_46 = arith.constant 1 : index
    %c2_47 = arith.constant 2 : index
    %48 = vector.load %arg12[%c2_45, %c1_46, %c2_47] : memref<16x16x50xf32, #tpu.memory_space<vmem>>, vector<14x15x2xf32>
    tpu.vector_store %arg12[%c2_45, %c1_46, %c2_47], %47 {strides = array<i32>} : memref<16x16x50xf32, #tpu.memory_space<vmem>>, vector<14x15x2xf32>,
    %49 = vector.extract_strided_slice %14 {offsets = [0, 0, 0], sizes = [14, 16, 2], strides = [1, 1, 1]} : vector<16x16x2xf32> to vector<14x16x2xf32>
    %c2_48 = arith.constant 2 : index
    %c0_49 = arith.constant 0 : index
    %c4_50 = arith.constant 4 : index
    %50 = vector.load %arg12[%c2_48, %c0_49, %c4_50] : memref<16x16x50xf32, #tpu.memory_space<vmem>>, vector<14x16x2xf32>
    tpu.vector_store %arg12[%c2_48, %c0_49, %c4_50], %49 {strides = array<i32>} : memref<16x16x50xf32, #tpu.memory_space<vmem>>, vector<14x16x2xf32>,
    %51 = vector.extract_strided_slice %14 {offsets = [0, 1, 0], sizes = [14, 15, 2], strides = [1, 1, 1]} : vector<16x16x2xf32> to vector<14x15x2xf32>
    %c2_51 = arith.constant 2 : index
    %c0_52 = arith.constant 0 : index
    %c6 = arith.constant 6 : index
    %52 = vector.load %arg12[%c2_51, %c0_52, %c6] : memref<16x16x50xf32, #tpu.memory_space<vmem>>, vector<14x15x2xf32>
    tpu.vector_store %arg12[%c2_51, %c0_52, %c6], %51 {strides = array<i32>} : memref<16x16x50xf32, #tpu.memory_space<vmem>>, vector<14x15x2xf32>,
    %53 = vector.extract_strided_slice %14 {offsets = [0, 2, 0], sizes = [14, 14, 2], strides = [1, 1, 1]} : vector<16x16x2xf32> to vector<14x14x2xf32>
    %c2_53 = arith.constant 2 : index
    %c0_54 = arith.constant 0 : index
    %c8_55 = arith.constant 8 : index
    %54 = vector.load %arg12[%c2_53, %c0_54, %c8_55] : memref<16x16x50xf32, #tpu.memory_space<vmem>>, vector<14x14x2xf32>
    tpu.vector_store %arg12[%c2_53, %c0_54, %c8_55], %53 {strides = array<i32>} : memref<16x16x50xf32, #tpu.memory_space<vmem>>, vector<14x14x2xf32>,
    %55 = vector.extract_strided_slice %14 {offsets = [0, 0, 0], sizes = [15, 14, 2], strides = [1, 1, 1]} : vector<16x16x2xf32> to vector<15x14x2xf32>
    %c1_56 = arith.constant 1 : index
    %c2_57 = arith.constant 2 : index
    %c10 = arith.constant 10 : index
    %56 = vector.load %arg12[%c1_56, %c2_57, %c10] : memref<16x16x50xf32, #tpu.memory_space<vmem>>, vector<15x14x2xf32>
    tpu.vector_store %arg12[%c1_56, %c2_57, %c10], %55 {strides = array<i32>} : memref<16x16x50xf32, #tpu.memory_space<vmem>>, vector<15x14x2xf32>,
    %57 = vector.extract_strided_slice %14 {offsets = [0, 0, 0], sizes = [15, 15, 2], strides = [1, 1, 1]} : vector<16x16x2xf32> to vector<15x15x2xf32>
    %c1_58 = arith.constant 1 : index
    %c1_59 = arith.constant 1 : index
    %c12_60 = arith.constant 12 : index
    %58 = vector.load %arg12[%c1_58, %c1_59, %c12_60] : memref<16x16x50xf32, #tpu.memory_space<vmem>>, vector<15x15x2xf32>
    tpu.vector_store %arg12[%c1_58, %c1_59, %c12_60], %57 {strides = array<i32>} : memref<16x16x50xf32, #tpu.memory_space<vmem>>, vector<15x15x2xf32>,
    %59 = vector.extract_strided_slice %14 {offsets = [0, 0, 0], sizes = [15, 16, 2], strides = [1, 1, 1]} : vector<16x16x2xf32> to vector<15x16x2xf32>
    %c1_61 = arith.constant 1 : index
    %c0_62 = arith.constant 0 : index
    %c14 = arith.constant 14 : index
    %60 = vector.load %arg12[%c1_61, %c0_62, %c14] : memref<16x16x50xf32, #tpu.memory_space<vmem>>, vector<15x16x2xf32>
    tpu.vector_store %arg12[%c1_61, %c0_62, %c14], %59 {strides = array<i32>} : memref<16x16x50xf32, #tpu.memory_space<vmem>>, vector<15x16x2xf32>,
    %61 = vector.extract_strided_slice %14 {offsets = [0, 1, 0], sizes = [15, 15, 2], strides = [1, 1, 1]} : vector<16x16x2xf32> to vector<15x15x2xf32>
    %c1_63 = arith.constant 1 : index
    %c0_64 = arith.constant 0 : index
    %c16_65 = arith.constant 16 : index
    %62 = vector.load %arg12[%c1_63, %c0_64, %c16_65] : memref<16x16x50xf32, #tpu.memory_space<vmem>>, vector<15x15x2xf32>
    tpu.vector_store %arg12[%c1_63, %c0_64, %c16_65], %61 {strides = array<i32>} : memref<16x16x50xf32, #tpu.memory_space<vmem>>, vector<15x15x2xf32>,
    %63 = vector.extract_strided_slice %14 {offsets = [0, 2, 0], sizes = [15, 14, 2], strides = [1, 1, 1]} : vector<16x16x2xf32> to vector<15x14x2xf32>
    %c1_66 = arith.constant 1 : index
    %c0_67 = arith.constant 0 : index
    %c18 = arith.constant 18 : index
    %64 = vector.load %arg12[%c1_66, %c0_67, %c18] : memref<16x16x50xf32, #tpu.memory_space<vmem>>, vector<15x14x2xf32>
    tpu.vector_store %arg12[%c1_66, %c0_67, %c18], %63 {strides = array<i32>} : memref<16x16x50xf32, #tpu.memory_space<vmem>>, vector<15x14x2xf32>,
    %65 = vector.extract_strided_slice %14 {offsets = [0, 0, 0], sizes = [16, 14, 2], strides = [1, 1, 1]} : vector<16x16x2xf32> to vector<16x14x2xf32>
    %c0_68 = arith.constant 0 : index
    %c2_69 = arith.constant 2 : index
    %c20_70 = arith.constant 20 : index
    %66 = vector.load %arg12[%c0_68, %c2_69, %c20_70] : memref<16x16x50xf32, #tpu.memory_space<vmem>>, vector<16x14x2xf32>
    tpu.vector_store %arg12[%c0_68, %c2_69, %c20_70], %65 {strides = array<i32>} : memref<16x16x50xf32, #tpu.memory_space<vmem>>, vector<16x14x2xf32>,
    %67 = vector.extract_strided_slice %14 {offsets = [0, 0, 0], sizes = [16, 15, 2], strides = [1, 1, 1]} : vector<16x16x2xf32> to vector<16x15x2xf32>
    %c0_71 = arith.constant 0 : index
    %c1_72 = arith.constant 1 : index
    %c22 = arith.constant 22 : index
    %68 = vector.load %arg12[%c0_71, %c1_72, %c22] : memref<16x16x50xf32, #tpu.memory_space<vmem>>, vector<16x15x2xf32>
    tpu.vector_store %arg12[%c0_71, %c1_72, %c22], %67 {strides = array<i32>} : memref<16x16x50xf32, #tpu.memory_space<vmem>>, vector<16x15x2xf32>,
    %c0_73 = arith.constant 0 : index
    %c0_74 = arith.constant 0 : index
    %c24_75 = arith.constant 24 : index
    %69 = vector.load %arg12[%c0_73, %c0_74, %c24_75] : memref<16x16x50xf32, #tpu.memory_space<vmem>>, vector<16x16x2xf32>
    tpu.vector_store %arg12[%c0_73, %c0_74, %c24_75], %14 {strides = array<i32>} : memref<16x16x50xf32, #tpu.memory_space<vmem>>, vector<16x16x2xf32>,
    %70 = vector.extract_strided_slice %14 {offsets = [0, 1, 0], sizes = [16, 15, 2], strides = [1, 1, 1]} : vector<16x16x2xf32> to vector<16x15x2xf32>
    %c0_76 = arith.constant 0 : index
    %c0_77 = arith.constant 0 : index
    %c26 = arith.constant 26 : index
    %71 = vector.load %arg12[%c0_76, %c0_77, %c26] : memref<16x16x50xf32, #tpu.memory_space<vmem>>, vector<16x15x2xf32>
    tpu.vector_store %arg12[%c0_76, %c0_77, %c26], %70 {strides = array<i32>} : memref<16x16x50xf32, #tpu.memory_space<vmem>>, vector<16x15x2xf32>,
    %72 = vector.extract_strided_slice %14 {offsets = [0, 2, 0], sizes = [16, 14, 2], strides = [1, 1, 1]} : vector<16x16x2xf32> to vector<16x14x2xf32>
    %c0_78 = arith.constant 0 : index
    %c0_79 = arith.constant 0 : index
    %c28_80 = arith.constant 28 : index
    %73 = vector.load %arg12[%c0_78, %c0_79, %c28_80] : memref<16x16x50xf32, #tpu.memory_space<vmem>>, vector<16x14x2xf32>
    tpu.vector_store %arg12[%c0_78, %c0_79, %c28_80], %72 {strides = array<i32>} : memref<16x16x50xf32, #tpu.memory_space<vmem>>, vector<16x14x2xf32>,
    %74 = vector.extract_strided_slice %14 {offsets = [1, 0, 0], sizes = [15, 14, 2], strides = [1, 1, 1]} : vector<16x16x2xf32> to vector<15x14x2xf32>
    %c0_81 = arith.constant 0 : index
    %c2_82 = arith.constant 2 : index
    %c30 = arith.constant 30 : index
    %75 = vector.load %arg12[%c0_81, %c2_82, %c30] : memref<16x16x50xf32, #tpu.memory_space<vmem>>, vector<15x14x2xf32>
    tpu.vector_store %arg12[%c0_81, %c2_82, %c30], %74 {strides = array<i32>} : memref<16x16x50xf32, #tpu.memory_space<vmem>>, vector<15x14x2xf32>,
    %76 = vector.extract_strided_slice %14 {offsets = [1, 0, 0], sizes = [15, 15, 2], strides = [1, 1, 1]} : vector<16x16x2xf32> to vector<15x15x2xf32>
    %c0_83 = arith.constant 0 : index
    %c1_84 = arith.constant 1 : index
    %c32_85 = arith.constant 32 : index
    %77 = vector.load %arg12[%c0_83, %c1_84, %c32_85] : memref<16x16x50xf32, #tpu.memory_space<vmem>>, vector<15x15x2xf32>
    tpu.vector_store %arg12[%c0_83, %c1_84, %c32_85], %76 {strides = array<i32>} : memref<16x16x50xf32, #tpu.memory_space<vmem>>, vector<15x15x2xf32>,
    %78 = vector.extract_strided_slice %14 {offsets = [1, 0, 0], sizes = [15, 16, 2], strides = [1, 1, 1]} : vector<16x16x2xf32> to vector<15x16x2xf32>
    %c0_86 = arith.constant 0 : index
    %c0_87 = arith.constant 0 : index
    %c34 = arith.constant 34 : index
    %79 = vector.load %arg12[%c0_86, %c0_87, %c34] : memref<16x16x50xf32, #tpu.memory_space<vmem>>, vector<15x16x2xf32>
    tpu.vector_store %arg12[%c0_86, %c0_87, %c34], %78 {strides = array<i32>} : memref<16x16x50xf32, #tpu.memory_space<vmem>>, vector<15x16x2xf32>,
    %80 = vector.extract_strided_slice %14 {offsets = [1, 1, 0], sizes = [15, 15, 2], strides = [1, 1, 1]} : vector<16x16x2xf32> to vector<15x15x2xf32>
    %c0_88 = arith.constant 0 : index
    %c0_89 = arith.constant 0 : index
    %c36 = arith.constant 36 : index
    %81 = vector.load %arg12[%c0_88, %c0_89, %c36] : memref<16x16x50xf32, #tpu.memory_space<vmem>>, vector<15x15x2xf32>
    tpu.vector_store %arg12[%c0_88, %c0_89, %c36], %80 {strides = array<i32>} : memref<16x16x50xf32, #tpu.memory_space<vmem>>, vector<15x15x2xf32>,
    %82 = vector.extract_strided_slice %14 {offsets = [1, 2, 0], sizes = [15, 14, 2], strides = [1, 1, 1]} : vector<16x16x2xf32> to vector<15x14x2xf32>
    %c0_90 = arith.constant 0 : index
    %c0_91 = arith.constant 0 : index
    %c38 = arith.constant 38 : index
    %83 = vector.load %arg12[%c0_90, %c0_91, %c38] : memref<16x16x50xf32, #tpu.memory_space<vmem>>, vector<15x14x2xf32>
    tpu.vector_store %arg12[%c0_90, %c0_91, %c38], %82 {strides = array<i32>} : memref<16x16x50xf32, #tpu.memory_space<vmem>>, vector<15x14x2xf32>,
    %84 = vector.extract_strided_slice %14 {offsets = [2, 0, 0], sizes = [14, 14, 2], strides = [1, 1, 1]} : vector<16x16x2xf32> to vector<14x14x2xf32>
    %c0_92 = arith.constant 0 : index
    %c2_93 = arith.constant 2 : index
    %c40 = arith.constant 40 : index
    %85 = vector.load %arg12[%c0_92, %c2_93, %c40] : memref<16x16x50xf32, #tpu.memory_space<vmem>>, vector<14x14x2xf32>
    tpu.vector_store %arg12[%c0_92, %c2_93, %c40], %84 {strides = array<i32>} : memref<16x16x50xf32, #tpu.memory_space<vmem>>, vector<14x14x2xf32>,
    %86 = vector.extract_strided_slice %14 {offsets = [2, 0, 0], sizes = [14, 15, 2], strides = [1, 1, 1]} : vector<16x16x2xf32> to vector<14x15x2xf32>
    %c0_94 = arith.constant 0 : index
    %c1_95 = arith.constant 1 : index
    %c42 = arith.constant 42 : index
    %87 = vector.load %arg12[%c0_94, %c1_95, %c42] : memref<16x16x50xf32, #tpu.memory_space<vmem>>, vector<14x15x2xf32>
    tpu.vector_store %arg12[%c0_94, %c1_95, %c42], %86 {strides = array<i32>} : memref<16x16x50xf32, #tpu.memory_space<vmem>>, vector<14x15x2xf32>,
    %88 = vector.extract_strided_slice %14 {offsets = [2, 0, 0], sizes = [14, 16, 2], strides = [1, 1, 1]} : vector<16x16x2xf32> to vector<14x16x2xf32>
    %c0_96 = arith.constant 0 : index
    %c0_97 = arith.constant 0 : index
    %c44 = arith.constant 44 : index
    %89 = vector.load %arg12[%c0_96, %c0_97, %c44] : memref<16x16x50xf32, #tpu.memory_space<vmem>>, vector<14x16x2xf32>
    tpu.vector_store %arg12[%c0_96, %c0_97, %c44], %88 {strides = array<i32>} : memref<16x16x50xf32, #tpu.memory_space<vmem>>, vector<14x16x2xf32>,
    %90 = vector.extract_strided_slice %14 {offsets = [2, 1, 0], sizes = [14, 15, 2], strides = [1, 1, 1]} : vector<16x16x2xf32> to vector<14x15x2xf32>
    %c0_98 = arith.constant 0 : index
    %c0_99 = arith.constant 0 : index
    %c46 = arith.constant 46 : index
    %91 = vector.load %arg12[%c0_98, %c0_99, %c46] : memref<16x16x50xf32, #tpu.memory_space<vmem>>, vector<14x15x2xf32>
    tpu.vector_store %arg12[%c0_98, %c0_99, %c46], %90 {strides = array<i32>} : memref<16x16x50xf32, #tpu.memory_space<vmem>>, vector<14x15x2xf32>,
    %92 = vector.extract_strided_slice %14 {offsets = [2, 2, 0], sizes = [14, 14, 2], strides = [1, 1, 1]} : vector<16x16x2xf32> to vector<14x14x2xf32>
    %c0_100 = arith.constant 0 : index
    %c0_101 = arith.constant 0 : index
    %c48 = arith.constant 48 : index
    %93 = vector.load %arg12[%c0_100, %c0_101, %c48] : memref<16x16x50xf32, #tpu.memory_space<vmem>>, vector<14x14x2xf32>
    tpu.vector_store %arg12[%c0_100, %c0_101, %c48], %92 {strides = array<i32>} : memref<16x16x50xf32, #tpu.memory_space<vmem>>, vector<14x14x2xf32>,
    %c0_102 = arith.constant 0 : index
    %c0_103 = arith.constant 0 : index
    %c0_104 = arith.constant 0 : index
    %94 = vector.load %arg12[%c0_102, %c0_103, %c0_104] : memref<16x16x50xf32, #tpu.memory_space<vmem>>, vector<16x16x50xf32>
    %95 = vector.shape_cast %94 : vector<16x16x50xf32> to vector<256x50xf32>
    %c0_105 = arith.constant 0 : index
    %c0_106 = arith.constant 0 : index
    %96 = vector.load %arg6[%c0_105, %c0_106] : memref<50x4xf32, #tpu.memory_space<vmem>>, vector<50x4xf32>
    %cst_107 = arith.constant dense<0.000000e+00> : vector<256x4xf32>
    %97 = tpu.matmul %95, %96, %cst_107 {dimension_numbers = #tpu.dot_dimension_numbers<[1], [0], [0], [1], [0, 0, 1, 1], [], []>} : vector<256x50xf32>, vector<50x4xf32>, vector<256x4xf32> -> vector<256x4xf32>
    %c0_108 = arith.constant 0 : index
    %c0_109 = arith.constant 0 : index
    %98 = vector.load %arg7[%c0_108, %c0_109] : memref<1x4xf32, #tpu.memory_space<vmem>>, vector<1x4xf32>
    %99 = vector.broadcast %98 : vector<1x4xf32> to vector<256x4xf32>
    %100 = arith.addf %97, %99 : vector<256x4xf32>
    %cst_110 = arith.constant 0.000000e+00 : f32
    %101 = vector.broadcast %cst_110 : f32 to vector<256x4xf32>
    %102 = arith.maximumf %100, %101 : vector<256x4xf32>
    %cst_111 = arith.constant 0xFF800000 : f32
    %103 = vector.broadcast %cst_111 : f32 to vector<18x18x4xf32>
    %c0_112 = arith.constant 0 : index
    %c0_113 = arith.constant 0 : index
    %c0_114 = arith.constant 0 : index
    %104 = vector.load %arg13[%c0_112, %c0_113, %c0_114] : memref<18x18x4xf32, #tpu.memory_space<vmem>>, vector<18x18x4xf32>
    tpu.vector_store %arg13[%c0_112, %c0_113, %c0_114], %103 {strides = array<i32>} : memref<18x18x4xf32, #tpu.memory_space<vmem>>, vector<18x18x4xf32>,
    %c1_115 = arith.constant 1 : index
    %c1_116 = arith.constant 1 : index
    %c0_117 = arith.constant 0 : index
    %105 = vector.load %arg13[%c1_115, %c1_116, %c0_117] : memref<18x18x4xf32, #tpu.memory_space<vmem>>, vector<16x16x4xf32>
    tpu.vector_store %arg13[%c1_115, %c1_116, %c0_117], %1 {strides = array<i32>} : memref<18x18x4xf32, #tpu.memory_space<vmem>>, vector<16x16x4xf32>,
    %c0_118 = arith.constant 0 : index
    %c0_119 = arith.constant 0 : index
    %c0_120 = arith.constant 0 : index
    %106 = vector.load %arg13[%c0_118, %c0_119, %c0_120] : memref<18x18x4xf32, #tpu.memory_space<vmem>>, vector<16x16x4xf32>
    %107 = arith.maximumf %1, %106 : vector<16x16x4xf32>
    %c0_121 = arith.constant 0 : index
    %c1_122 = arith.constant 1 : index
    %c0_123 = arith.constant 0 : index
    %108 = vector.load %arg13[%c0_121, %c1_122, %c0_123] : memref<18x18x4xf32, #tpu.memory_space<vmem>>, vector<16x16x4xf32>
    %109 = arith.maximumf %107, %108 : vector<16x16x4xf32>
    %c0_124 = arith.constant 0 : index
    %c2_125 = arith.constant 2 : index
    %c0_126 = arith.constant 0 : index
    %110 = vector.load %arg13[%c0_124, %c2_125, %c0_126] : memref<18x18x4xf32, #tpu.memory_space<vmem>>, vector<16x16x4xf32>
    %111 = arith.maximumf %109, %110 : vector<16x16x4xf32>
    %c1_127 = arith.constant 1 : index
    %c0_128 = arith.constant 0 : index
    %c0_129 = arith.constant 0 : index
    %112 = vector.load %arg13[%c1_127, %c0_128, %c0_129] : memref<18x18x4xf32, #tpu.memory_space<vmem>>, vector<16x16x4xf32>
    %113 = arith.maximumf %111, %112 : vector<16x16x4xf32>
    %c1_130 = arith.constant 1 : index
    %c2_131 = arith.constant 2 : index
    %c0_132 = arith.constant 0 : index
    %114 = vector.load %arg13[%c1_130, %c2_131, %c0_132] : memref<18x18x4xf32, #tpu.memory_space<vmem>>, vector<16x16x4xf32>
    %115 = arith.maximumf %113, %114 : vector<16x16x4xf32>
    %c2_133 = arith.constant 2 : index
    %c0_134 = arith.constant 0 : index
    %c0_135 = arith.constant 0 : index
    %116 = vector.load %arg13[%c2_133, %c0_134, %c0_135] : memref<18x18x4xf32, #tpu.memory_space<vmem>>, vector<16x16x4xf32>
    %117 = arith.maximumf %115, %116 : vector<16x16x4xf32>
    %c2_136 = arith.constant 2 : index
    %c1_137 = arith.constant 1 : index
    %c0_138 = arith.constant 0 : index
    %118 = vector.load %arg13[%c2_136, %c1_137, %c0_138] : memref<18x18x4xf32, #tpu.memory_space<vmem>>, vector<16x16x4xf32>
    %119 = arith.maximumf %117, %118 : vector<16x16x4xf32>
    %c2_139 = arith.constant 2 : index
    %c2_140 = arith.constant 2 : index
    %c0_141 = arith.constant 0 : index
    %120 = vector.load %arg13[%c2_139, %c2_140, %c0_141] : memref<18x18x4xf32, #tpu.memory_space<vmem>>, vector<16x16x4xf32>
    %121 = arith.maximumf %119, %120 : vector<16x16x4xf32>
    %122 = vector.shape_cast %121 : vector<16x16x4xf32> to vector<256x4xf32>
    %c0_142 = arith.constant 0 : index
    %c0_143 = arith.constant 0 : index
    %123 = vector.load %arg8[%c0_142, %c0_143] : memref<4x4xf32, #tpu.memory_space<vmem>>, vector<4x4xf32>
    %cst_144 = arith.constant dense<0.000000e+00> : vector<256x4xf32>
    %124 = tpu.matmul %122, %123, %cst_144 {dimension_numbers = #tpu.dot_dimension_numbers<[1], [0], [0], [1], [0, 0, 1, 1], [], []>} : vector<256x4xf32>, vector<4x4xf32>, vector<256x4xf32> -> vector<256x4xf32>
    %c0_145 = arith.constant 0 : index
    %c0_146 = arith.constant 0 : index
    %125 = vector.load %arg9[%c0_145, %c0_146] : memref<1x4xf32, #tpu.memory_space<vmem>>, vector<1x4xf32>
    %126 = vector.broadcast %125 : vector<1x4xf32> to vector<256x4xf32>
    %127 = arith.addf %124, %126 : vector<256x4xf32>
    %cst_147 = arith.constant 0.000000e+00 : f32
    %128 = vector.broadcast %cst_147 : f32 to vector<256x4xf32>
    %129 = arith.maximumf %127, %128 : vector<256x4xf32>
    %130 = vector.shape_cast %10 : vector<256x4xf32> to vector<1x16x16x4xf32>
    %c0_148 = arith.constant 0 : index
    %c0_149 = arith.constant 0 : index
    %c0_150 = arith.constant 0 : index
    %c0_151 = arith.constant 0 : index
    %131 = vector.load %arg10[%c0_148, %c0_149, %c0_150, %c0_151] : memref<1x16x16x20xf32, #tpu.memory_space<vmem>>, vector<1x16x16x4xf32>
    tpu.vector_store %arg10[%c0_148, %c0_149, %c0_150, %c0_151], %130 {strides = array<i32>} : memref<1x16x16x20xf32, #tpu.memory_space<vmem>>, vector<1x16x16x4xf32>,
    %132 = vector.shape_cast %42 : vector<256x8xf32> to vector<1x16x16x8xf32>
    %c0_152 = arith.constant 0 : index
    %c0_153 = arith.constant 0 : index
    %c0_154 = arith.constant 0 : index
    %c4_155 = arith.constant 4 : index
    %133 = vector.load %arg10[%c0_152, %c0_153, %c0_154, %c4_155] : memref<1x16x16x20xf32, #tpu.memory_space<vmem>>, vector<1x16x16x8xf32>
    tpu.vector_store %arg10[%c0_152, %c0_153, %c0_154, %c4_155], %132 {strides = array<i32>} : memref<1x16x16x20xf32, #tpu.memory_space<vmem>>, vector<1x16x16x8xf32>,
    %134 = vector.shape_cast %102 : vector<256x4xf32> to vector<1x16x16x4xf32>
    %c0_156 = arith.constant 0 : index
    %c0_157 = arith.constant 0 : index
    %c0_158 = arith.constant 0 : index
    %c12_159 = arith.constant 12 : index
    %135 = vector.load %arg10[%c0_156, %c0_157, %c0_158, %c12_159] : memref<1x16x16x20xf32, #tpu.memory_space<vmem>>, vector<1x16x16x4xf32>
    tpu.vector_store %arg10[%c0_156, %c0_157, %c0_158, %c12_159], %134 {strides = array<i32>} : memref<1x16x16x20xf32, #tpu.memory_space<vmem>>, vector<1x16x16x4xf32>,
    %136 = vector.shape_cast %129 : vector<256x4xf32> to vector<1x16x16x4xf32>
    %c0_160 = arith.constant 0 : index
    %c0_161 = arith.constant 0 : index
    %c0_162 = arith.constant 0 : index
    %c16_163 = arith.constant 16 : index
    %137 = vector.load %arg10[%c0_160, %c0_161, %c0_162, %c16_163] : memref<1x16x16x20xf32, #tpu.memory_space<vmem>>, vector<1x16x16x4xf32>
    tpu.vector_store %arg10[%c0_160, %c0_161, %c0_162, %c16_163], %136 {strides = array<i32>} : memref<1x16x16x20xf32, #tpu.memory_space<vmem>>, vector<1x16x16x4xf32>,
    return
  }
  func.func @transform_0(%arg0: i32) -> (i32, i32, i32, i32) {
    %c0_i32 = arith.constant 0 : i32
    %c0_i32_0 = arith.constant 0 : i32
    %c0_i32_1 = arith.constant 0 : i32
    %c0_i32_2 = arith.constant 0 : i32
    return %arg0, %c0_i32, %c0_i32_0, %c0_i32_1 : i32, i32, i32, i32
  }
  func.func @transform_1(%arg0: i32) -> (i32, i32) {
    %c0_i32 = arith.constant 0 : i32
    %c0_i32_0 = arith.constant 0 : i32
    %c0_i32_1 = arith.constant 0 : i32
    return %c0_i32, %c0_i32_0 : i32, i32
  }
  func.func @transform_2(%arg0: i32) -> (i32, i32) {
    %c0_i32 = arith.constant 0 : i32
    %c0_i32_0 = arith.constant 0 : i32
    %c0_i32_1 = arith.constant 0 : i32
    return %c0_i32, %c0_i32_0 : i32, i32
  }
  func.func @transform_3(%arg0: i32) -> (i32, i32) {
    %c0_i32 = arith.constant 0 : i32
    %c0_i32_0 = arith.constant 0 : i32
    %c0_i32_1 = arith.constant 0 : i32
    return %c0_i32, %c0_i32_0 : i32, i32
  }
  func.func @transform_4(%arg0: i32) -> (i32, i32) {
    %c0_i32 = arith.constant 0 : i32
    %c0_i32_0 = arith.constant 0 : i32
    %c0_i32_1 = arith.constant 0 : i32
    return %c0_i32, %c0_i32_0 : i32, i32
  }
  func.func @transform_5(%arg0: i32) -> (i32, i32) {
    %c0_i32 = arith.constant 0 : i32
    %c0_i32_0 = arith.constant 0 : i32
    %c0_i32_1 = arith.constant 0 : i32
    return %c0_i32, %c0_i32_0 : i32, i32
  }
  func.func @transform_6(%arg0: i32) -> (i32, i32) {
    %c0_i32 = arith.constant 0 : i32
    %c0_i32_0 = arith.constant 0 : i32
    %c0_i32_1 = arith.constant 0 : i32
    return %c0_i32, %c0_i32_0 : i32, i32
  }
  func.func @transform_7(%arg0: i32) -> (i32, i32) {
    %c0_i32 = arith.constant 0 : i32
    %c0_i32_0 = arith.constant 0 : i32
    %c0_i32_1 = arith.constant 0 : i32
    return %c0_i32, %c0_i32_0 : i32, i32
  }
  func.func @transform_8(%arg0: i32) -> (i32, i32) {
    %c0_i32 = arith.constant 0 : i32
    %c0_i32_0 = arith.constant 0 : i32
    %c0_i32_1 = arith.constant 0 : i32
    return %c0_i32, %c0_i32_0 : i32, i32
  }
  func.func @transform_9(%arg0: i32) -> (i32, i32, i32, i32) {
    %c0_i32 = arith.constant 0 : i32
    %c0_i32_0 = arith.constant 0 : i32
    %c0_i32_1 = arith.constant 0 : i32
    %c0_i32_2 = arith.constant 0 : i32
    return %arg0, %c0_i32, %c0_i32_0, %c0_i32_1 : i32, i32, i32, i32
  }
}

</mosaic_0001>

<bundles_post_ra>
// kernel: forward.1
= control target key start
LH: loop header
LB: loop body
LE: loop exit
PB: predicated region body
PF: predicated region fallthrough
CT: control target
= control target key end

     0   :  { %14 = vsyncpa [#allocation6], 0  ;;  %s11298_s0 = inlined_call_operand.vmem [shape: f32[2,16,16,4], index: 0, kind: input, shape index: {}]   ;;  %s11299_s1 = inlined_call_operand.vmem [shape: f32[4,10], index: 1, kind: input, shape index: {}]   ;;  %s11300_s2 = inlined_call_operand.vmem [shape: f32[1,10], index: 2, kind: input, shape index: {}]   ;;  %s11301_s3 = inlined_call_operand.vmem [shape: f32[36,8], index: 3, kind: input, shape index: {}]   ;;  %s11302_s4 = inlined_call_operand.vmem [shape: f32[1,8], index: 4, kind: input, shape index: {}]   ;;  %s11303_s5 = inlined_call_operand.vmem [shape: f32[50,4], index: 5, kind: input, shape index: {}]   ;;  %s11304_s6 = inlined_call_operand.vmem [shape: f32[1,4], index: 6, kind: input, shape index: {}]   ;;  %s11305_s7 = inlined_call_operand.vmem [shape: f32[4,4], index: 7, kind: input, shape index: {}]   ;;  %s11306_s8 = inlined_call_operand.vmem [shape: f32[1,4], index: 8, kind: input, shape index: {}]   ;;  %s11307_s9 = inlined_call_operand.hbm [shape: f32[2,16,16,20], index: 9, kind: output, shape index: {}]  }
   0x1   :  { %16 = vsyncpa [#allocation6 + $0x1], 0  ;;  %s6311_s30 = smov 0   ;;  %s6313_s10 = smov 0  }
   0x2   :  { %s6315_s11 = smov 0   ;;  %s6317_s12 = smov 0  }
   0x3 LB: > { %s6332_s13 = sadd.s32 4294967295, %s6232_s12   ;;  %s5952_s14 = sadd.s32 4294967294, %s6232_s12   ;;  %s6232_s12 = sphi %s6317_s12, %s12056_s12   ;;  %s6228_s11 = sphi %s6315_s11, %s12055_s11   ;;  %s6224_s10 = sphi %s6313_s10, %s12054_s10   ;;  %s6220_s30 = sphi %s6311_s30, %s12053_s30  }
   0x4   : > { %s6336_s15 = sadd.s32 1, %s6232_s12   ;;  %s223_s16 = sadd.s32 1, %s6228_s11 }
   0x5   : > { %s220_s17 = ssub.s32 %s6232_s12, %s6336_s15  ;;  %p233_p0 = scmp.ne.s32.totalorder %s6228_s11, %s6224_s10 }
   0x6   : > { %p221_p1 = scmp.eq.s32.totalorder %s220_s17, 0  ;;  %p234_p2 = scmp.eq.s32.totalorder %s6332_s13, 1 }
   0x7   : > { %p239_p3 = scmp.ne.s32.totalorder %s6224_s10, %s6220_s30  ;;  %p240_p4 = scmp.eq.s32.totalorder %s5952_s14, 1 }
   0x8   : > { %s6347_s18 = scalar_select %p221_p1, %s6228_s11, %s223_s16  }
   0x9   : > { %p6349_p5 = por %p234_p2, %p233_p0  ;;  %p6353_p6 = por %p240_p4, %p239_p3 }
   0xa   : > { %p5955_p7 = scmp.ge.s32.totalorder %s6232_s12, 1  ;;  %p290_p8 = scmp.lt.s32.totalorder %s6232_s12, 3 }
   0xc   : > { %p291_p9 = pnand %p5955_p7, %p290_p8 }
   0xe   : > { %294 = sbr.rel (%p291_p9) target bundleno = 2615 (0xa37), region = 56 }
  0x13   : > { %v363_v0 = vld [vmem:[%s11299_s1] sm:$0xf]  ;;  %vm465_vm0 = vcmask 1043456   ;;  %p326_p10 = scmp.lt.s32.totalorder %s6332_s13, 1  ;;  %vm368_vm1 = vcmask 31744   ;;  %v6234_v1 = vmov -inf  }
  0x14   : > { %5959 = vmatpush.msk.msra.mxu0 %vm465_vm0, %v363_v0  ;;  %4511 = vst.msk [vmem:[#allocation4] sm:$0xff] %vm368_vm1, %v6234_v1  ;;  %vm4513_vm2 = vcmask 25600   ;;  %s11515_s28 = sand.u32 1, %s6224_s10   ;;  %v6566_v14 = vld [vmem:[%s11300_s2] ss:$0 sm:$0xff]  ;;  %s6235_s17 = smov 16  }
  0x15   : > { %s327_s23 = scalar_select %p326_p10, %s6332_s13, 1  ;;  %4512 = vst.msk [vmem:[#allocation4 + $0x8] sm:$0xff] %vm368_vm1, %v6234_v1  ;;  %vm1993_vm3 = vcmask 408576   ;;  %v6240_v45 = vmov 0.0   ;;  %vm2858_vm4 = vcmask 179360   ;;  %vm614_vm5 = vcmask 293888  }
  0x16   : > { %4515 = vst.msk [vmem:[#allocation4 + $0x18] sm:$0xff] %vm368_vm1, %v6234_v1  ;;  %s5956_s16 = sshll.u32 %s11515_s28, 8  ;;  %s6236_s21 = smov 12   ;;  %vm799_vm6 = vcmask 64544   ;;  %vm920_vm7 = vcmask 97345   ;;  %vm1052_vm8 = vcmask 129120  }
  0x17   : > { %s6096_s24 = sshll.u32 %s327_s23, 8  ;;  %4516 = vst.msk [vmem:[#allocation4 + $0x20] sm:$0xff] %vm368_vm1, %v6234_v1  ;;  %s6584_s22 = scalar_lea.vmem [#allocation5], %s5956_s16  ;;  %vm1050_vm9 = vcmask 130144   ;;  %vm1180_vm10 = vcmask 162944   ;;  %vm1309_vm11 = vcmask 195745  }
  0x18   : > { %s6376_s27 = scalar_lea.vmem %s11298_s0, %s6096_s24  ;;  %4518 = vst.msk [vmem:[#allocation4 + $0x30] sm:$0xff] %vm368_vm1, %v6234_v1  ;;  %s6237_s23 = smov 124   ;;  %vm769_vm12 = vcmask 30720   ;;  %vm922_vm13 = vcmask 97344   ;;  %vm2860_vm14 = vcmask 177312   ;;  %vm1311_vm15 = vcmask 195744  }
  0x19   : > { %v6381_v2 = vld [vmem:[%s6376_s27] sm:$0xff]  ;;  %4519 = vst.msk [vmem:[#allocation4 + $0x38] sm:$0xff] %vm368_vm1, %v6234_v1  ;;  %v6400_v3 = vld [vmem:[%s6376_s27 + $0x8] sm:$0xff]  ;;  %v6421_v4 = vld [vmem:[%s6376_s27 + $0x10] sm:$0xff]  ;;  %s6238_s24 = smov 4   ;;  %s11514_s25 = smov 8  }
  0x1a   : > { %11559 = vst [vmem:[#allocation8_spill] sm:$0xff] %v6381_v2  ;;  %5960 = vmatmul.msk.f32.vlgmr.msra.gmra.mxu0 %vm368_vm1, %v6381_v2  ;;  %v6442_v5 = vld [vmem:[%s6376_s27 + $0x18] sm:$0xff]  ;;  %v6463_v6 = vld [vmem:[%s6376_s27 + $0x20] sm:$0xff]  ;;  %v6484_v7 = vld [vmem:[%s6376_s27 + $0x28] sm:$0xff]  ;;  %s6241_s29 = smov 20   ;;  %s6242_s14 = smov 24  }
  0x1b   : > { %4567 = vst.msk [vmem:[#allocation4 + $0x19] sm:$0xff] %vm368_vm1, %v6381_v2  ;;  %v6505_v8 = vld [vmem:[%s6376_s27 + $0x30] sm:$0xff]  ;;  %v6526_v9 = vld [vmem:[%s6376_s27 + $0x38] sm:$0xff]  ;;  %v6533_v10 = vld [vmem:[%s6376_s27 + $0x40] sm:$0xff]  ;;  %s6243_s16 = smov 28   ;;  %s6245_s28 = smov 122  }
  0x1c   : > { %4521 = vst.msk [vmem:[#allocation4 + $0x48] sm:$0xff] %vm368_vm1, %v6234_v1  ;;  %v6540_v11 = vld [vmem:[%s6376_s27 + $0x48] sm:$0xff]  ;;  %v6549_v12 = vld [vmem:[%s6376_s27 + $0x50] sm:$0xff]  ;;  %v6556_v13 = vld [vmem:[%s6376_s27 + $0x58] sm:$0xff]  ;;  %s6248_s26 = smov 6  }
  0x1d   : > { %4522 = vst.msk [vmem:[#allocation4 + $0x50] sm:$0xff] %vm368_vm1, %v6234_v1  ;;  %v6569_v15 = vld [vmem:[%s6376_s27 + $0x60] sm:$0xff]  ;;  %v6592_v19 = vld [vmem:[%s6376_s27 + $0x68] sm:$0xff]  ;;  %v6611_v23 = vld [vmem:[%s6376_s27 + $0x70] sm:$0xff] }
  0x1e   : > { %4524 = vst.msk [vmem:[#allocation4 + $0x60] sm:$0xff] %vm368_vm1, %v6234_v1  ;;  %v6654_v33 = vld [vmem:[%s6376_s27 + $0x78] sm:$0xff]  ;;  %v6673_v37 = vld [vmem:[%s6376_s27 + $0x80] sm:$0xff]  ;;  %v6692_v41 = vld [vmem:[%s6376_s27 + $0x88] sm:$0xff] }
  0x1f   : > { %4525 = vst.msk [vmem:[#allocation4 + $0x68] sm:$0xff] %vm368_vm1, %v6234_v1  ;;  %v6757_v46 = vld [vmem:[%s6376_s27 + $0x90] sm:$0xff]  ;;  %v6792_v48 = vld [vmem:[%s6376_s27 + $0x98] sm:$0xff]  ;;  %v6846_v53 = vld [vmem:[%s6376_s27 + $0xa0] sm:$0xff] }
  0x20   : > { %4527 = vst.msk [vmem:[#allocation4 + $0x78] sm:$0xff] %vm368_vm1, %v6234_v1  ;;  %v6879_v56 = vld [vmem:[%s6376_s27 + $0xa8] sm:$0xff]  ;;  %v6915_v63 = vld [vmem:[%s6376_s27 + $0xb0] sm:$0xff] }
  0x21   : > { %11560 = vst [vmem:[#allocation9_spill] sm:$0xff] %v6400_v3 }
  0x22   : > { %4528 = vst.msk [vmem:[#allocation4 + $0x80] sm:$0xff] %vm368_vm1, %v6234_v1  ;;  %5961 = vmatmul.msk.f32.gmra.mxu0 %vm368_vm1, %v6400_v3 }
  0x23   : > { %4530 = vst.msk [vmem:[#allocation4 + $0x90] sm:$0xff] %vm368_vm1, %v6234_v1 }
  0x24   : > { %4531 = vst.msk [vmem:[#allocation4 + $0x98] sm:$0xff] %vm368_vm1, %v6234_v1 }
  0x25   : > { %4533 = vst.msk [vmem:[#allocation4 + $0xa8] sm:$0xff] %vm368_vm1, %v6234_v1 }
  0x26   : > { %4534 = vst.msk [vmem:[#allocation4 + $0xb0] sm:$0xff] %vm368_vm1, %v6234_v1 }
  0x27   : > { %4536 = vst.msk [vmem:[#allocation4 + $0xc0] sm:$0xff] %vm368_vm1, %v6234_v1 }
  0x28   : > { %4537 = vst.msk [vmem:[#allocation4 + $0xc8] sm:$0xff] %vm368_vm1, %v6234_v1 }
  0x29   : > { %4539 = vst.msk [vmem:[#allocation4 + $0xd8] sm:$0xff] %vm368_vm1, %v6234_v1 }
  0x2a   : > { %11561 = vst [vmem:[#allocation10_spill] sm:$0xff] %v6421_v4  ;;  %5962 = vmatmul.msk.f32.gmra.mxu0 %vm368_vm1, %v6421_v4 }
  0x2b   : > { %4540 = vst.msk [vmem:[#allocation4 + $0xe0] sm:$0xff] %vm368_vm1, %v6234_v1 }
  0x2c   : > { %4542 = vst.msk [vmem:[#allocation4 + $0xf0] sm:$0xff] %vm368_vm1, %v6234_v1 }
  0x2d   : > { %4543 = vst.msk [vmem:[#allocation4 + $0xf8] sm:$0xff] %vm368_vm1, %v6234_v1 }
  0x2e   : > { %4545 = vst.msk [vmem:[#allocation4 + $0x108] sm:$0xff] %vm368_vm1, %v6234_v1 }
  0x2f   : > { %4546 = vst.msk [vmem:[#allocation4 + $0x110] sm:$0xff] %vm368_vm1, %v6234_v1 }
  0x30   : > { %4548 = vst.msk [vmem:[#allocation4 + $0x120] sm:$0xff] %vm368_vm1, %v6234_v1 }
  0x31   : > { %4549 = vst.msk [vmem:[#allocation4 + $0x128] sm:$0xff] %vm368_vm1, %v6234_v1 }
  0x32   : > { %4551 = vst.msk [vmem:[#allocation4 + $0x138] sm:$0xff] %vm368_vm1, %v6234_v1  ;;  %5963 = vmatmul.msk.f32.gmra.mxu0 %vm368_vm1, %v6442_v5 }
  0x33   : > { %11562 = vst [vmem:[#allocation11_spill] sm:$0xff] %v6442_v5 }
  0x34   : > { %4552 = vst.msk [vmem:[#allocation4 + $0x140] sm:$0xff] %vm368_vm1, %v6234_v1 }
  0x35   : > { %4554 = vst.msk [vmem:[#allocation4 + $0x150] sm:$0xff] %vm368_vm1, %v6234_v1 }
  0x36   : > { %4555 = vst.msk [vmem:[#allocation4 + $0x158] sm:$0xff] %vm368_vm1, %v6234_v1 }
  0x37   : > { %4557 = vst.msk [vmem:[#allocation4 + $0x168] sm:$0xff] %vm368_vm1, %v6234_v1 }
  0x38   : > { %4558 = vst.msk [vmem:[#allocation4 + $0x170] sm:$0xff] %vm368_vm1, %v6234_v1 }
  0x39   : > { %4560 = vst.msk [vmem:[#allocation4 + $0x180] sm:$0xff] %vm368_vm1, %v6234_v1 }
  0x3a   : > { %4561 = vst.msk [vmem:[#allocation4 + $0x188] sm:$0xff] %vm368_vm1, %v6234_v1  ;;  %5964 = vmatmul.msk.f32.gmra.mxu0 %vm368_vm1, %v6463_v6 }
  0x3b   : > { %4563 = vst.msk [vmem:[#allocation4 + $0x198] sm:$0xff] %vm368_vm1, %v6234_v1 }
  0x3c   : > { %11563 = vst [vmem:[#allocation12_spill] sm:$0xff] %v6463_v6 }
  0x3d   : > { %4564 = vst.msk [vmem:[#allocation4 + $0x1a0] sm:$0xff] %vm368_vm1, %v6234_v1 }
  0x3e   : > { %4514 = vst.msk [vmem:[#allocation4 + $0x10] sm:$0x3] %vm4513_vm2, %v6234_v1 }
  0x3f   : > { %4517 = vst.msk [vmem:[#allocation4 + $0x28] sm:$0x3] %vm4513_vm2, %v6234_v1 }
  0x40   : > { %4568 = vst.msk [vmem:[#allocation4 + $0x21] sm:$0xff] %vm368_vm1, %v6400_v3 }
  0x41   : > { %4520 = vst.msk [vmem:[#allocation4 + $0x40] sm:$0x3] %vm4513_vm2, %v6234_v1 }
  0x42   : > { %4523 = vst.msk [vmem:[#allocation4 + $0x58] sm:$0x3] %vm4513_vm2, %v6234_v1  ;;  %5965 = vmatmul.msk.f32.gmra.mxu0 %vm368_vm1, %v6484_v7 }
  0x43   : > { %4526 = vst.msk [vmem:[#allocation4 + $0x70] sm:$0x3] %vm4513_vm2, %v6234_v1 }
  0x44   : > { %4529 = vst.msk [vmem:[#allocation4 + $0x88] sm:$0x3] %vm4513_vm2, %v6234_v1 }
  0x45   : > { %11564 = vst [vmem:[#allocation13_spill] sm:$0xff] %v6484_v7 }
  0x46   : > { %4532 = vst.msk [vmem:[#allocation4 + $0xa0] sm:$0x3] %vm4513_vm2, %v6234_v1 }
  0x47   : > { %4535 = vst.msk [vmem:[#allocation4 + $0xb8] sm:$0x3] %vm4513_vm2, %v6234_v1 }
  0x48   : > { %4538 = vst.msk [vmem:[#allocation4 + $0xd0] sm:$0x3] %vm4513_vm2, %v6234_v1 }
  0x49   : > { %4541 = vst.msk [vmem:[#allocation4 + $0xe8] sm:$0x3] %vm4513_vm2, %v6234_v1 }
  0x4a   : > { %4544 = vst.msk [vmem:[#allocation4 + $0x100] sm:$0x3] %vm4513_vm2, %v6234_v1  ;;  %5966 = vmatmul.msk.f32.gmra.mxu0 %vm368_vm1, %v6505_v8 }
  0x4b   : > { %4547 = vst.msk [vmem:[#allocation4 + $0x118] sm:$0x3] %vm4513_vm2, %v6234_v1 }
  0x4c   : > { %4550 = vst.msk [vmem:[#allocation4 + $0x130] sm:$0x3] %vm4513_vm2, %v6234_v1 }
  0x4d   : > { %4553 = vst.msk [vmem:[#allocation4 + $0x148] sm:$0x3] %vm4513_vm2, %v6234_v1 }
  0x4e   : > { %11565 = vst [vmem:[#allocation14_spill] sm:$0xff] %v6505_v8 }
  0x4f   : > { %4556 = vst.msk [vmem:[#allocation4 + $0x160] sm:$0x3] %vm4513_vm2, %v6234_v1 }
  0x50   : > { %4559 = vst.msk [vmem:[#allocation4 + $0x178] sm:$0x3] %vm4513_vm2, %v6234_v1 }
  0x51   : > { %4562 = vst.msk [vmem:[#allocation4 + $0x190] sm:$0x3] %vm4513_vm2, %v6234_v1 }
  0x52   : > { %4565 = vst.msk [vmem:[#allocation4 + $0x1a8] sm:$0x3] %vm4513_vm2, %v6234_v1  ;;  %5967 = vmatmul.msk.f32.gmra.mxu0 %vm368_vm1, %v6526_v9  ;;  %vm1433_vm2 = vcmask 228544  }
  0x53   : > { %4569 = vst.msk [vmem:[#allocation4 + $0x31] sm:$0xff] %vm368_vm1, %v6421_v4  ;;  %v7289_v4 = vld [vmem:[%s6376_s27 + $0xf0] sm:$0xff] }
  0x54   : > { %4570 = vst.msk [vmem:[#allocation4 + $0x39] sm:$0xff] %vm368_vm1, %v6442_v5 }
  0x55   : > { %4571 = vst.msk [vmem:[#allocation4 + $0x49] sm:$0xff] %vm368_vm1, %v6463_v6 }
  0x56   : > { %4572 = vst.msk [vmem:[#allocation4 + $0x51] sm:$0xff] %vm368_vm1, %v6484_v7 }
  0x57   : > { %11566 = vst [vmem:[#allocation15_spill] sm:$0xff] %v6526_v9 }
  0x58   : > { %4573 = vst.msk [vmem:[#allocation4 + $0x61] sm:$0xff] %vm368_vm1, %v6505_v8 }
  0x59   : > { %4574 = vst.msk [vmem:[#allocation4 + $0x69] sm:$0xff] %vm368_vm1, %v6526_v9 }
  0x5a   : > { %11567 = vst [vmem:[#allocation16_spill] sm:$0xff] %v6533_v10  ;;  %5968 = vmatmul.msk.f32.gmra.mxu0 %vm368_vm1, %v6533_v10 }
  0x5b   : > { %4575 = vst.msk [vmem:[#allocation4 + $0x79] sm:$0xff] %vm368_vm1, %v6533_v10 }
  0x5c   : > { %11568 = vst [vmem:[#allocation17_spill] sm:$0xff] %v6540_v11 }
  0x5d   : > { %4576 = vst.msk [vmem:[#allocation4 + $0x81] sm:$0xff] %vm368_vm1, %v6540_v11 }
  0x5e   : > { %11569 = vst [vmem:[#allocation18_spill] sm:$0xff] %v6549_v12 }
  0x5f   : > { %4577 = vst.msk [vmem:[#allocation4 + $0x91] sm:$0xff] %vm368_vm1, %v6549_v12 }
  0x60   : > { %11570 = vst [vmem:[#allocation19_spill] sm:$0xff] %v6556_v13 }
  0x61   : > { %4578 = vst.msk [vmem:[#allocation4 + $0x99] sm:$0xff] %vm368_vm1, %v6556_v13 }
  0x62   : > { %5969 = vmatmul.msk.f32.gmra.mxu0 %vm368_vm1, %v6540_v11  ;;  %11571 = vst [vmem:[#allocation20_spill] sm:$0xff] %v6569_v15 }
  0x63   : > { %4579 = vst.msk [vmem:[#allocation4 + $0xa9] sm:$0xff] %vm368_vm1, %v6569_v15 }
  0x64   : > { %11572 = vst [vmem:[#allocation21_spill] sm:$0xff] %v6592_v19 }
  0x65   : > { %4580 = vst.msk [vmem:[#allocation4 + $0xb1] sm:$0xff] %vm368_vm1, %v6592_v19 }
  0x66   : > { %11573 = vst [vmem:[#allocation22_spill] sm:$0xff] %v6611_v23 }
  0x67   : > { %4581 = vst.msk [vmem:[#allocation4 + $0xc1] sm:$0xff] %vm368_vm1, %v6611_v23 }
  0x68   : > { %11574 = vst [vmem:[#allocation23_spill] sm:$0xff] %v6654_v33 }
  0x69   : > { %4582 = vst.msk [vmem:[#allocation4 + $0xc9] sm:$0xff] %vm368_vm1, %v6654_v33 }
  0x6a   : > { %5970 = vmatmul.msk.f32.gmra.mxu0 %vm368_vm1, %v6549_v12  ;;  %11575 = vst [vmem:[#allocation24_spill] sm:$0xff] %v6673_v37 }
  0x6b   : > { %4583 = vst.msk [vmem:[#allocation4 + $0xd9] sm:$0xff] %vm368_vm1, %v6673_v37 }
  0x6c   : > { %11576 = vst [vmem:[#allocation25_spill] sm:$0xff] %v6692_v41 }
  0x6d   : > { %4584 = vst.msk [vmem:[#allocation4 + $0xe1] sm:$0xff] %vm368_vm1, %v6692_v41 }
  0x6e   : > { %1994 = vst.msk [vmem:[#allocation3] sm:$0xff] %vm1993_vm3, %v6240_v45 }
  0x6f   : > { %1995 = vst.msk [vmem:[#allocation3 + $0x8] sm:$0xff] %vm1993_vm3, %v6240_v45 }
  0x70   : > { %1996 = vst.msk [vmem:[#allocation3 + $0x10] sm:$0xff] %vm1993_vm3, %v6240_v45 }
  0x71   : > { %1997 = vst.msk [vmem:[#allocation3 + $0x18] sm:$0xff] %vm1993_vm3, %v6240_v45 }
  0x72   : > { %5971 = vmatmul.msk.f32.gmra.mxu0 %vm368_vm1, %v6556_v13  ;;  %1998 = vst.msk [vmem:[#allocation3 + $0x20] sm:$0xff] %vm1993_vm3, %v6240_v45  ;;  %v7211_v13 = vld [vmem:[%s6376_s27 + $0xe8] sm:$0xff] }
  0x73   : > { %1999 = vst.msk [vmem:[#allocation3 + $0x28] sm:$0xff] %vm1993_vm3, %v6240_v45 }
  0x74   : > { %2000 = vst.msk [vmem:[#allocation3 + $0x30] sm:$0xff] %vm1993_vm3, %v6240_v45 }
  0x75   : > { %2001 = vst.msk [vmem:[#allocation3 + $0x38] sm:$0xff] %vm1993_vm3, %v6240_v45 }
  0x76   : > { %2002 = vst.msk [vmem:[#allocation3 + $0x40] sm:$0xff] %vm1993_vm3, %v6240_v45 }
  0x77   : > { %2003 = vst.msk [vmem:[#allocation3 + $0x48] sm:$0xff] %vm1993_vm3, %v6240_v45 }
  0x78   : > { %2004 = vst.msk [vmem:[#allocation3 + $0x50] sm:$0xff] %vm1993_vm3, %v6240_v45 }
  0x79   : > { %2005 = vst.msk [vmem:[#allocation3 + $0x58] sm:$0xff] %vm1993_vm3, %v6240_v45 }
  0x7a   : > { %5972 = vmatmul.msk.f32.gmra.mxu0 %vm368_vm1, %v6569_v15  ;;  %2006 = vst.msk [vmem:[#allocation3 + $0x60] sm:$0xff] %vm1993_vm3, %v6240_v45 }
  0x7b   : > { %2007 = vst.msk [vmem:[#allocation3 + $0x68] sm:$0xff] %vm1993_vm3, %v6240_v45 }
  0x7c   : > { %2008 = vst.msk [vmem:[#allocation3 + $0x70] sm:$0xff] %vm1993_vm3, %v6240_v45 }
  0x7d   : > { %2009 = vst.msk [vmem:[#allocation3 + $0x78] sm:$0xff] %vm1993_vm3, %v6240_v45 }
  0x7e   : > { %2010 = vst.msk [vmem:[#allocation3 + $0x80] sm:$0xff] %vm1993_vm3, %v6240_v45 }
  0x7f   : > { %11577 = vst [vmem:[#allocation26_spill] sm:$0xff] %v6757_v46 }
  0x80   : > { %2011 = vst.msk [vmem:[#allocation3 + $0x88] sm:$0xff] %vm1993_vm3, %v6240_v45 }
  0x81   : > { %2012 = vst.msk [vmem:[#allocation3 + $0x90] sm:$0xff] %vm1993_vm3, %v6240_v45 }
  0x82   : > { %5973 = vmatmul.msk.f32.gmra.mxu0 %vm368_vm1, %v6592_v19  ;;  %2013 = vst.msk [vmem:[#allocation3 + $0x98] sm:$0xff] %vm1993_vm3, %v6240_v45 }
  0x83   : > { %2014 = vst.msk [vmem:[#allocation3 + $0xa0] sm:$0xff] %vm1993_vm3, %v6240_v45 }
  0x84   : > { %2015 = vst.msk [vmem:[#allocation3 + $0xa8] sm:$0xff] %vm1993_vm3, %v6240_v45 }
  0x85   : > { %2016 = vst.msk [vmem:[#allocation3 + $0xb0] sm:$0xff] %vm1993_vm3, %v6240_v45 }
  0x86   : > { %2017 = vst.msk [vmem:[#allocation3 + $0xb8] sm:$0xff] %vm1993_vm3, %v6240_v45 }
  0x87   : > { %2018 = vst.msk [vmem:[#allocation3 + $0xc0] sm:$0xff] %vm1993_vm3, %v6240_v45 }
  0x88   : > { %2019 = vst.msk [vmem:[#allocation3 + $0xc8] sm:$0xff] %vm1993_vm3, %v6240_v45 }
  0x89   : > { %2020 = vst.msk [vmem:[#allocation3 + $0xd0] sm:$0xff] %vm1993_vm3, %v6240_v45 }
  0x8a   : > { %5974 = vmatmul.msk.f32.gmra.mxu0 %vm368_vm1, %v6611_v23  ;;  %2021 = vst.msk [vmem:[#allocation3 + $0xd8] sm:$0xff] %vm1993_vm3, %v6240_v45 }
  0x8b   : > { %2022 = vst.msk [vmem:[#allocation3 + $0xe0] sm:$0xff] %vm1993_vm3, %v6240_v45 }
  0x8c   : > { %11578 = vst [vmem:[#allocation27_spill] sm:$0xff] %v6792_v48 }
  0x8d   : > { %2023 = vst.msk [vmem:[#allocation3 + $0xe8] sm:$0xff] %vm1993_vm3, %v6240_v45 }
  0x8e   : > { %2024 = vst.msk [vmem:[#allocation3 + $0xf0] sm:$0xff] %vm1993_vm3, %v6240_v45 }
  0x8f   : > { %2025 = vst.msk [vmem:[#allocation3 + $0xf8] sm:$0xff] %vm1993_vm3, %v6240_v45 }
  0x90   : > { %4585 = vst.msk [vmem:[#allocation4 + $0xf1] sm:$0xff] %vm368_vm1, %v6757_v46 }
  0x91   : > { %617 = vst.msk [vmem:[#allocation2 + $0x10] sm:$0xff] %vm614_vm5, %v6240_v45 }
  0x92   : > { %5975 = vmatmul.msk.f32.gmra.mxu0 %vm368_vm1, %v6654_v33  ;;  %618 = vst.msk [vmem:[#allocation2 + $0x18] sm:$0xff] %vm614_vm5, %v6240_v45 }
  0x93   : > { %615 = vst.msk [vmem:[#allocation2] sm:$0xff] %vm614_vm5, %v6240_v45 }
  0x94   : > { %616 = vst.msk [vmem:[#allocation2 + $0x8] sm:$0xff] %vm614_vm5, %v6240_v45 }
  0x95   : > { %619 = vst.msk [vmem:[#allocation2 + $0x20] sm:$0xff] %vm614_vm5, %v6240_v45 }
  0x96   : > { %620 = vst.msk [vmem:[#allocation2 + $0x28] sm:$0xff] %vm614_vm5, %v6240_v45 }
  0x97   : > { %v486_v16 = vpop.f32.mrf.mxu0  ;;  %621 = vst.msk [vmem:[#allocation2 + $0x30] sm:$0xff] %vm614_vm5, %v6240_v45 }
  0x98   : > { %v487_v17 = vadd.f32 %v6566_v14, %v486_v16  ;;  %622 = vst.msk [vmem:[#allocation2 + $0x38] sm:$0xff] %vm614_vm5, %v6240_v45 }
  0x99   : > { %623 = vst.msk [vmem:[#allocation2 + $0x40] sm:$0xff] %vm614_vm5, %v6240_v45 }
  0x9a   : > { %v6578_v18 = vmax.f32 %v487_v17, 0.0  ;;  %5976 = vmatmul.msk.f32.gmra.mxu0 %vm368_vm1, %v6673_v37  ;;  %624 = vst.msk [vmem:[#allocation2 + $0x48] sm:$0xff] %vm614_vm5, %v6240_v45  ;;  %v7181_v37 = vld [vmem:[%s6376_s27 + $0xe0] sm:$0xff] }
  0x9b   : > { %11580 = vst [vmem:[#allocation29_spill] sm:$0xff] %v6846_v53 }
  0x9c   : > { %1213 = vrot.lane.b32.xlu1 %v6578_v18, %s6235_s17  ;;  %1084 = vrot.lane.b32.xlu2 %v6578_v18, %s6236_s21  ;;  %5361 = vst.msk [vmem:[%s6584_s22] sm:$0xff] %vm368_vm1, %v6578_v18 }
  0x9d   : > { %677 = vrot.lane.b32.xlu0 %v6578_v18, %s6237_s23  ;;  %625 = vst.msk [vmem:[#allocation2 + $0x50] sm:$0xff] %vm614_vm5, %v6240_v45 }
  0x9e   : > { %626 = vst.msk [vmem:[#allocation2 + $0x58] sm:$0xff] %vm614_vm5, %v6240_v45 }
  0x9f   : > { %v489_v20 = vpop.f32.mrf.mxu0  ;;  %627 = vst.msk [vmem:[#allocation2 + $0x60] sm:$0xff] %vm614_vm5, %v6240_v45 }
  0xa0   : > { %v490_v21 = vadd.f32 %v6566_v14, %v489_v20  ;;  %628 = vst.msk [vmem:[#allocation2 + $0x68] sm:$0xff] %vm614_vm5, %v6240_v45 }
  0xa1   : > { %629 = vst.msk [vmem:[#allocation2 + $0x70] sm:$0xff] %vm614_vm5, %v6240_v45 }
  0xa2   : > { %v6599_v22 = vmax.f32 %v490_v21, 0.0  ;;  %5977 = vmatmul.msk.f32.gmra.mxu0 %vm368_vm1, %v6692_v41  ;;  %630 = vst.msk [vmem:[#allocation2 + $0x78] sm:$0xff] %vm614_vm5, %v6240_v45 }
  0xa3   : > { %631 = vst.msk [vmem:[#allocation2 + $0x80] sm:$0xff] %vm614_vm5, %v6240_v45 }
  0xa4   : > { %832 = vrot.lane.b32.xlu1 %v6599_v22, %s6238_s24  ;;  %1215 = vrot.lane.b32.xlu2 %v6599_v22, %s6235_s17  ;;  %5362 = vst.msk [vmem:[%s6584_s22 + $0x8] sm:$0xff] %vm368_vm1, %v6599_v22 }
  0xa5   : > { %830 = vrot.lane.b32.xlu0 %v6578_v18, %s6238_s24  ;;  %632 = vst.msk [vmem:[#allocation2 + $0x88] sm:$0xff] %vm614_vm5, %v6240_v45 }
  0xa6   : > { %633 = vst.msk [vmem:[#allocation2 + $0x90] sm:$0xff] %vm614_vm5, %v6240_v45 }
  0xa7   : > { %v492_v24 = vpop.f32.mrf.mxu0  ;;  %634 = vst.msk [vmem:[#allocation2 + $0x98] sm:$0xff] %vm614_vm5, %v6240_v45 }
  0xa8   : > { %v493_v25 = vadd.f32 %v6566_v14, %v492_v24  ;;  %11582 = vst [vmem:[#allocation31_spill] sm:$0xff] %v6879_v56  ;;  %v6949_v24 = vld [vmem:[%s6376_s27 + $0xb8] sm:$0xff] }
  0xa9   : > { %635 = vst.msk [vmem:[#allocation2 + $0xa0] sm:$0xff] %vm614_vm5, %v6240_v45 }
  0xaa   : > { %v6618_v26 = vmax.f32 %v493_v25, 0.0  ;;  %5978 = vmatmul.msk.f32.gmra.mxu0 %vm368_vm1, %v6757_v46  ;;  %636 = vst.msk [vmem:[#allocation2 + $0xa8] sm:$0xff] %vm614_vm5, %v6240_v45 }
  0xab   : > { %637 = vst.msk [vmem:[#allocation2 + $0xb0] sm:$0xff] %vm614_vm5, %v6240_v45 }
  0xac   : > { %956 = vrot.lane.b32.xlu1 %v6599_v22, %s11514_s25  ;;  %834 = vrot.lane.b32.xlu2 %v6618_v26, %s6238_s24  ;;  %5363 = vst.msk [vmem:[%s6584_s22 + $0x10] sm:$0xff] %vm368_vm1, %v6618_v26 }
  0xad   : > { %954 = vrot.lane.b32.xlu0 %v6578_v18, %s11514_s25  ;;  %638 = vst.msk [vmem:[#allocation2 + $0xb8] sm:$0xff] %vm614_vm5, %v6240_v45 }
  0xae   : > { %639 = vst.msk [vmem:[#allocation2 + $0xc0] sm:$0xff] %vm614_vm5, %v6240_v45 }
  0xaf   : > { %v495_v27 = vpop.f32.mrf.mxu0  ;;  %640 = vst.msk [vmem:[#allocation2 + $0xc8] sm:$0xff] %vm614_vm5, %v6240_v45 }
  0xb0   : > { %v496_v28 = vadd.f32 %v6566_v14, %v495_v27  ;;  %641 = vst.msk [vmem:[#allocation2 + $0xd0] sm:$0xff] %vm614_vm5, %v6240_v45 }
  0xb1   : > { %11585 = vst [vmem:[#allocation34_spill] sm:$0xff] %v6915_v63 }
  0xb2   : > { %v6630_v29 = vmax.f32 %v496_v28, 0.0  ;;  %5979 = vmatmul.msk.f32.gmra.mxu0 %vm368_vm1, %v6792_v48  ;;  %642 = vst.msk [vmem:[#allocation2 + $0xd8] sm:$0xff] %vm614_vm5, %v6240_v45 }
  0xb3   : > { %643 = vst.msk [vmem:[#allocation2 + $0xe0] sm:$0xff] %vm614_vm5, %v6240_v45 }
  0xb4   : > { %681 = vrot.lane.b32.xlu1 %v6618_v26, %s6237_s23  ;;  %958 = vrot.lane.b32.xlu2 %v6618_v26, %s11514_s25  ;;  %5364 = vst.msk [vmem:[%s6584_s22 + $0x18] sm:$0xff] %vm368_vm1, %v6630_v29 }
  0xb5   : > { %679 = vrot.lane.b32.xlu0 %v6599_v22, %s6237_s23  ;;  %644 = vst.msk [vmem:[#allocation2 + $0xe8] sm:$0xff] %vm614_vm5, %v6240_v45 }
  0xb6   : > { %645 = vst.msk [vmem:[#allocation2 + $0xf0] sm:$0xff] %vm614_vm5, %v6240_v45 }
  0xb7   : > { %v498_v30 = vpop.f32.mrf.mxu0  ;;  %646 = vst.msk [vmem:[#allocation2 + $0xf8] sm:$0xff] %vm614_vm5, %v6240_v45 }
  0xb8   : > { %v499_v31 = vadd.f32 %v6566_v14, %v498_v30  ;;  %4586 = vst.msk [vmem:[#allocation4 + $0xf9] sm:$0xff] %vm368_vm1, %v6792_v48 }
  0xb9   : > { %11589 = vst [vmem:[#allocation38_spill] sm:$0xff] %v6949_v24 }
  0xba   : > { %v6642_v32 = vmax.f32 %v499_v31, 0.0  ;;  %5980 = vmatmul.msk.f32.gmra.mxu0 %vm368_vm1, %v6846_v53  ;;  %4587 = vst.msk [vmem:[#allocation4 + $0x109] sm:$0xff] %vm368_vm1, %v6846_v53  ;;  %v7148_v53 = vld [vmem:[%s6376_s27 + $0xd8] sm:$0xff] }
  0xbb   : > { %4588 = vst.msk [vmem:[#allocation4 + $0x111] sm:$0xff] %vm368_vm1, %v6879_v56 }
  0xbc   : > { %1088 = vrot.lane.b32.xlu1 %v6618_v26, %s6236_s21  ;;  %1090 = vrot.lane.b32.xlu2 %v6630_v29, %s6236_s21  ;;  %5365 = vst.msk [vmem:[%s6584_s22 + $0x20] sm:$0xff] %vm368_vm1, %v6642_v32 }
  0xbd   : > { %1086 = vrot.lane.b32.xlu0 %v6599_v22, %s6236_s21  ;;  %4589 = vst.msk [vmem:[#allocation4 + $0x121] sm:$0xff] %vm368_vm1, %v6915_v63 }
  0xbe   : > { %4590 = vst.msk [vmem:[#allocation4 + $0x129] sm:$0xff] %vm368_vm1, %v6949_v24 }
  0xbf   : > { %v501_v34 = vpop.f32.mrf.mxu0  ;;  %11605 = vst [vmem:[#allocation54_spill] sm:$0xff] %v7148_v53 }
  0xc0   : > { %v502_v35 = vadd.f32 %v6566_v14, %v501_v34  ;;  %4594 = vst.msk [vmem:[#allocation4 + $0x159] sm:$0xff] %vm368_vm1, %v7148_v53 }
  0xc1   : > { %11609 = vst [vmem:[#allocation58_spill] sm:$0xff] %v7181_v37 }
  0xc2   : > { %v6661_v36 = vmax.f32 %v502_v35, 0.0  ;;  %5981 = vmatmul.msk.f32.gmra.mxu0 %vm368_vm1, %v6879_v56  ;;  %4595 = vst.msk [vmem:[#allocation4 + $0x169] sm:$0xff] %vm368_vm1, %v7181_v37 }
  0xc3   : > { %11612 = vst [vmem:[#allocation61_spill] sm:$0xff] %v7211_v13 }
  0xc4   : > { %683 = vrot.lane.b32.xlu1 %v6630_v29, %s6237_s23  ;;  %685 = vrot.lane.b32.xlu2 %v6642_v32, %s6237_s23  ;;  %5366 = vst.msk [vmem:[%s6584_s22 + $0x28] sm:$0xff] %vm368_vm1, %v6661_v36 }
  0xc5   : > { %1217 = vrot.lane.b32.xlu0 %v6618_v26, %s6235_s17  ;;  %4596 = vst.msk [vmem:[#allocation4 + $0x171] sm:$0xff] %vm368_vm1, %v7211_v13 }
  0xc6   : > { %11620 = vst [vmem:[#allocation69_spill] sm:$0xff] %v7289_v4 }
  0xc7   : > { %v504_v38 = vpop.f32.mrf.mxu0  ;;  %4597 = vst.msk [vmem:[#allocation4 + $0x181] sm:$0xff] %vm368_vm1, %v7289_v4 }
  0xc8   : > { %v505_v39 = vadd.f32 %v6566_v14, %v504_v38 }
  0xca   : > { %v6680_v40 = vmax.f32 %v505_v39, 0.0  ;;  %5982 = vmatmul.msk.f32.gmra.mxu0 %vm368_vm1, %v6915_v63 }
  0xcc   : > { %1219 = vrot.lane.b32.xlu1 %v6630_v29, %s6235_s17  ;;  %1221 = vrot.lane.b32.xlu2 %v6642_v32, %s6235_s17  ;;  %5367 = vst.msk [vmem:[%s6584_s22 + $0x30] sm:$0xff] %vm368_vm1, %v6680_v40 }
  0xcd   : > { %836 = vrot.lane.b32.xlu0 %v6630_v29, %s6238_s24 }
  0xcf   : > { %v507_v42 = vpop.f32.mrf.mxu0 }
  0xd0   : > { %v508_v43 = vadd.f32 %v6566_v14, %v507_v42  ;;  %v7012_v42 = vld [vmem:[%s6376_s27 + $0xc0] sm:$0xff] }
  0xd1   : > { %11593 = vst [vmem:[#allocation42_spill] sm:$0xff] %v7012_v42 }
  0xd2   : > { %v6699_v44 = vmax.f32 %v508_v43, 0.0  ;;  %5983 = vmatmul.msk.f32.gmra.mxu0 %vm368_vm1, %v6949_v24  ;;  %4591 = vst.msk [vmem:[#allocation4 + $0x139] sm:$0xff] %vm368_vm1, %v7012_v42 }
  0xd4   : > { %838 = vrot.lane.b32.xlu1 %v6642_v32, %s6238_s24  ;;  %687 = vrot.lane.b32.xlu2 %v6661_v36, %s6237_s23  ;;  %5368 = vst.msk [vmem:[%s6584_s22 + $0x38] sm:$0xff] %vm368_vm1, %v6699_v44 }
  0xd5   : > { %960 = vrot.lane.b32.xlu0 %v6630_v29, %s11514_s25 }
  0xd7   : > { %v510_v47 = vpop.f32.mrf.mxu0 }
  0xd8   : > { %v511_v49 = vadd.f32 %v6566_v14, %v510_v47 }
  0xda   : > { %v6815_v51 = vmax.f32 %v511_v49, 0.0  ;;  %5984 = vmatmul.msk.f32.gmra.mxu0 %vm368_vm1, %v7012_v42 }
  0xdc   : > { %962 = vrot.lane.b32.xlu1 %v6642_v32, %s11514_s25  ;;  %840 = vrot.lane.b32.xlu2 %v6661_v36, %s6238_s24  ;;  %5369 = vst.msk [vmem:[%s6584_s22 + $0x40] sm:$0xff] %vm368_vm1, %v6815_v51 }
  0xdd   : > { %1092 = vrot.lane.b32.xlu0 %v6642_v32, %s6236_s21 }
  0xdf   : > { %v513_v54 = vpop.f32.mrf.mxu0 }
  0xe0   : > { %v514_v57 = vadd.f32 %v6566_v14, %v513_v54 }
  0xe2   : > { %v6906_v62 = vmax.f32 %v514_v57, 0.0 }
  0xe4   : > { %1094 = vrot.lane.b32.xlu1 %v6661_v36, %s6236_s21  ;;  %964 = vrot.lane.b32.xlu2 %v6661_v36, %s11514_s25  ;;  %5370 = vst.msk [vmem:[%s6584_s22 + $0x48] sm:$0xff] %vm368_vm1, %v6906_v62 }
  0xe5   : > { %1223 = vrot.lane.b32.xlu0 %v6661_v36, %s6235_s17 }
  0xe7   : > { %v516_v61 = vpop.f32.mrf.mxu0 }
  0xe8   : > { %v517_v0 = vadd.f32 %v6566_v14, %v516_v61 }
  0xea   : > { %v6942_v20 = vmax.f32 %v517_v0, 0.0 }
  0xec   : > { %1225 = vrot.lane.b32.xlu1 %v6680_v40, %s6235_s17  ;;  %1096 = vrot.lane.b32.xlu2 %v6680_v40, %s6236_s21  ;;  %5371 = vst.msk [vmem:[%s6584_s22 + $0x50] sm:$0xff] %vm368_vm1, %v6942_v20 }
  0xed   : > { %689 = vrot.lane.b32.xlu0 %v6680_v40, %s6237_s23 }
  0xef   : > { %v519_v21 = vpop.f32.mrf.mxu0 }
  0xf0   : > { %v520_v25 = vadd.f32 %v6566_v14, %v519_v21 }
  0xf2   : > { %v6978_v31 = vmax.f32 %v520_v25, 0.0 }
  0xf4   : > { %691 = vrot.lane.b32.xlu1 %v6699_v44, %s6237_s23  ;;  %1227 = vrot.lane.b32.xlu2 %v6699_v44, %s6235_s17  ;;  %5372 = vst.msk [vmem:[%s6584_s22 + $0x58] sm:$0xff] %vm368_vm1, %v6978_v31 }
  0xf5   : > { %842 = vrot.lane.b32.xlu0 %v6680_v40, %s6238_s24 }
  0xf6   : > { %v6809_v50 = vpop.permute.xlu2 %1084 }
  0xf7   : > { %2859 = vst.msk [vmem:[#allocation3 + $0x2] sm:$0xff] %vm2858_vm4, %v6809_v50  ;;  %v522_v34 = vpop.f32.mrf.mxu0 }
  0xf8   : > { %v523_v54 = vadd.f32 %v6566_v14, %v522_v34 }
  0xfa   : > { %v7074_v25 = vmax.f32 %v523_v54, 0.0 }
  0xfc   : > { %844 = vrot.lane.b32.xlu1 %v6699_v44, %s6238_s24  ;;  %693 = vrot.lane.b32.xlu2 %v6815_v51, %s6237_s23  ;;  %5373 = vst.msk [vmem:[%s6584_s22 + $0x60] sm:$0xff] %vm368_vm1, %v7074_v25 }
  0xfd   : > { %966 = vrot.lane.b32.xlu0 %v6680_v40, %s11514_s25 }
  0xfe   : > { %v6835_v52 = vpop.permute.xlu2 %1215 }
  0xff   : > { %11579 = vst [vmem:[#allocation28_spill] sm:$0xff] %v6835_v52  ;;  %v525_v49 = vpop.f32.mrf.mxu0 }
 0x100   : > { %v526_v21 = vadd.f32 %v6566_v14, %v525_v49 }
 0x104   : > { %968 = vrot.lane.b32.xlu1 %v6699_v44, %s11514_s25  ;;  %846 = vrot.lane.b32.xlu2 %v6815_v51, %s6238_s24 }
 0x105   : > { %1098 = vrot.lane.b32.xlu0 %v6699_v44, %s6236_s21 }
 0x106   : > { %v6864_v55 = vpop.permute.xlu2 %834 }
 0x107   : > { %11581 = vst [vmem:[#allocation30_spill] sm:$0xff] %v6864_v55  ;;  %v528_v34 = vpop.f32.mrf.mxu0 }
 0x108   : > { %v529_v49 = vadd.f32 %v6566_v14, %v528_v34 }
 0x10a   : > { %v7116_v34 = vmax.f32 %v529_v49, 0.0 }
 0x10c   : > { %1100 = vrot.lane.b32.xlu1 %v6815_v51, %s6236_s21  ;;  %970 = vrot.lane.b32.xlu2 %v6815_v51, %s11514_s25  ;;  %5375 = vst.msk [vmem:[%s6584_s22 + $0x70] sm:$0xff] %vm368_vm1, %v7116_v34 }
 0x10d   : > { %1229 = vrot.lane.b32.xlu0 %v6815_v51, %s6235_s17 }
 0x10e   : > { %v6894_v58 = vpop.permute.xlu1 %1213  ;;  %v6896_v59 = vpop.permute.xlu2 %958 }
 0x10f   : > { %11583 = vst [vmem:[#allocation32_spill] sm:$0xff] %v6894_v58  ;;  %v6900_v60 = vpop.permute.xlu0 %677  ;;  %v531_v42 = vpop.f32.mrf.mxu0 }
 0x110   : > { %11584 = vst [vmem:[#allocation33_spill] sm:$0xff] %v6896_v59  ;;  %v532_v24 = vadd.f32 %v6566_v14, %v531_v42 }
 0x111   : > { %768 = vst.msk [vmem:[#allocation2 + $0x11] sm:$0xff] %vm368_vm1, %v6900_v60 }
 0x112   : > { %800 = vst.msk [vmem:[#allocation2 + $0x10] sm:$0xff] %vm799_vm6, %v6578_v18  ;;  %v7128_v63 = vmax.f32 %v532_v24, 0.0 }
 0x114   : > { %1231 = vrot.lane.b32.xlu1 %v6906_v62, %s6235_s17  ;;  %1102 = vrot.lane.b32.xlu2 %v6906_v62, %s6236_s21  ;;  %5376 = vst.msk [vmem:[%s6584_s22 + $0x78] sm:$0xff] %vm368_vm1, %v7128_v63 }
 0x115   : > { %695 = vrot.lane.b32.xlu0 %v6906_v62, %s6237_s23 }
 0x116   : > { %v6932_v1 = vpop.permute.xlu1 %832  ;;  %v6934_v16 = vpop.permute.xlu2 %1090 }
 0x117   : > { %11586 = vst [vmem:[#allocation35_spill] sm:$0xff] %v6932_v1  ;;  %v6938_v17 = vpop.permute.xlu0 %830  ;;  %v534_v24 = vpop.f32.mrf.mxu0 }
 0x118   : > { %11587 = vst [vmem:[#allocation36_spill] sm:$0xff] %v6934_v16  ;;  %v535_v48 = vadd.f32 %v6566_v14, %v534_v24 }
 0x119   : > { %11588 = vst [vmem:[#allocation37_spill] sm:$0xff] %v6938_v17 }
 0x11a   : > { %921 = vst.msk [vmem:[#allocation2 + $0xf] sm:$0xfe] %vm920_vm7, %v6938_v17  ;;  %v7161_v46 = vmax.f32 %v535_v48, 0.0 }
 0x11c   : > { %697 = vrot.lane.b32.xlu1 %v6942_v20, %s6237_s23  ;;  %1233 = vrot.lane.b32.xlu2 %v6942_v20, %s6235_s17  ;;  %5377 = vst.msk [vmem:[%s6584_s22 + $0x80] sm:$0xff] %vm368_vm1, %v7161_v46 }
 0x11d   : > { %848 = vrot.lane.b32.xlu0 %v6906_v62, %s6238_s24 }
 0x11e   : > { %v6966_v27 = vpop.permute.xlu1 %956  ;;  %v6968_v28 = vpop.permute.xlu2 %685 }
 0x11f   : > { %11590 = vst [vmem:[#allocation39_spill] sm:$0xff] %v6966_v27  ;;  %v6974_v30 = vpop.permute.xlu0 %954  ;;  %v537_v48 = vpop.f32.mrf.mxu0 }
 0x120   : > { %1053 = vst.msk [vmem:[#allocation2 + $0x9] sm:$0x7f] %vm1052_vm8, %v6966_v27  ;;  %v538_v19 = vadd.f32 %v6566_v14, %v537_v48 }
 0x121   : > { %11591 = vst [vmem:[#allocation40_spill] sm:$0xff] %v6974_v30 }
 0x122   : > { %773 = vst.msk [vmem:[#allocation2 + $0x31] sm:$0xff] %vm368_vm1, %v6968_v28 }
 0x123   : > { %804 = vst.msk [vmem:[#allocation2 + $0x30] sm:$0xff] %vm799_vm6, %v6642_v32 }
 0x124   : > { %1051 = vst.msk [vmem:[#allocation2 + $0x1] sm:$0xff] %vm1050_vm9, %v6974_v30  ;;  %850 = vrot.lane.b32.xlu1 %v6942_v20, %s6238_s24  ;;  %699 = vrot.lane.b32.xlu2 %v6978_v31, %s6237_s23 }
 0x125   : > { %1181 = vst.msk [vmem:[#allocation2] sm:$0xff] %vm1180_vm10, %v6809_v50  ;;  %972 = vrot.lane.b32.xlu0 %v6906_v62, %s11514_s25  ;;  %v7043_v50 = vld [vmem:[%s6376_s27 + $0xc8] sm:$0xff] }
 0x126   : > { %1310 = vst.msk [vmem:[#allocation2 - $0x1] sm:$0xfe] %vm1309_vm11, %v6894_v58  ;;  %v6996_v35 = vpop.permute.xlu1 %681  ;;  %v6998_v38 = vpop.permute.xlu2 %1221  ;;  %5985 = vmatmul.msk.f32.gmra.mxu0 %vm368_vm1, %v7043_v50 }
 0x127   : > { %11592 = vst [vmem:[#allocation41_spill] sm:$0xff] %v6998_v38  ;;  %v7005_v39 = vpop.permute.xlu0 %679  ;;  %v540_v9 = vpop.f32.mrf.mxu0 }
 0x128   : > { %771 = vst.msk [vmem:[#allocation2 + $0x21] sm:$0xff] %vm368_vm1, %v6996_v35  ;;  %v541_v8 = vadd.f32 %v6566_v14, %v540_v9 }
 0x129   : > { %802 = vst.msk [vmem:[#allocation2 + $0x20] sm:$0xff] %vm799_vm6, %v6618_v26 }
 0x12a   : > { %924 = vst.msk [vmem:[#allocation2 + $0x1f] sm:$0xfe] %vm920_vm7, %v6864_v55  ;;  %v7261_v7 = vmax.f32 %v541_v8, 0.0 }
 0x12b   : > { %770 = vst.msk [vmem:[#allocation2 + $0x19] sm:$0x7f] %vm769_vm12, %v7005_v39 }
 0x12c   : > { %801 = vst.msk [vmem:[#allocation2 + $0x18] sm:$0xff] %vm799_vm6, %v6599_v22  ;;  %974 = vrot.lane.b32.xlu1 %v6942_v20, %s11514_s25  ;;  %852 = vrot.lane.b32.xlu2 %v6978_v31, %s6238_s24 }
 0x12d   : > { %923 = vst.msk [vmem:[#allocation2 + $0x17] sm:$0xff] %vm922_vm13, %v6932_v1  ;;  %1104 = vrot.lane.b32.xlu0 %v6942_v20, %s6236_s21 }
 0x12e   : > { %1054 = vst.msk [vmem:[#allocation2 + $0x11] sm:$0xff] %vm1050_vm9, %v6896_v59  ;;  %v7030_v43 = vpop.permute.xlu1 %1088  ;;  %v7032_v45 = vpop.permute.xlu2 %687 }
 0x12f   : > { %11594 = vst [vmem:[#allocation43_spill] sm:$0xff] %v7030_v43  ;;  %v1087_v47 = vpop.permute.xlu0 %1086  ;;  %v543_v8 = vpop.f32.mrf.mxu0 }
 0x130   : > { %1183 = vst.msk [vmem:[#allocation2 + $0x10] sm:$0xff] %vm1180_vm10, %v7030_v43  ;;  %v544_v3 = vadd.f32 %v6566_v14, %v543_v8  ;;  %v7313_v8 = vld [vmem:[%s6376_s27 + $0xf8] sm:$0xff] }
 0x131   : > { %774 = vst.msk [vmem:[#allocation2 + $0x39] sm:$0x7f] %vm769_vm12, %v7032_v45 }
 0x132   : > { %805 = vst.msk [vmem:[#allocation2 + $0x38] sm:$0xff] %vm799_vm6, %v6661_v36 }
 0x133   : > { %11595 = vst [vmem:[#allocation44_spill] sm:$0xff] %v7043_v50 }
 0x134   : > { %1182 = vst.msk [vmem:[#allocation2 + $0x8] sm:$0xff] %vm1180_vm10, %v1087_v47  ;;  %1106 = vrot.lane.b32.xlu1 %v6978_v31, %s6236_s21  ;;  %976 = vrot.lane.b32.xlu2 %v6978_v31, %s11514_s25 }
 0x135   : > { %2861 = vst.msk [vmem:[#allocation3 + $0xa] sm:$0x3f] %vm2860_vm14, %v1087_v47  ;;  %1235 = vrot.lane.b32.xlu0 %v6978_v31, %s6235_s17  ;;  %v7081_v47 = vld [vmem:[%s6376_s27 + $0xd0] sm:$0xff]  ;;  %s6249_s27 = smov 10  }
 0x136   : > { %4592 = vst.msk [vmem:[#allocation4 + $0x141] sm:$0xff] %vm368_vm1, %v7043_v50  ;;  %v7060_v57 = vpop.permute.xlu1 %683  ;;  %v7062_v61 = vpop.permute.xlu2 %840  ;;  %v7083_v50 = vmax.f32 %v526_v21, 0.0  ;;  %5986 = vmatmul.msk.f32.gmra.mxu0 %vm368_vm1, %v7081_v47 }
 0x137   : > { %1312 = vst.msk [vmem:[#allocation2 + $0x7] sm:$0xff] %vm1311_vm15, %v6835_v52  ;;  %v7069_v0 = vpop.permute.xlu0 %1217 }
 0x138   : > { %11596 = vst [vmem:[#allocation45_spill] sm:$0xff] %v7062_v61 }
 0x139   : > { %772 = vst.msk [vmem:[#allocation2 + $0x29] sm:$0x7f] %vm769_vm12, %v7060_v57 }
 0x13a   : > { %11597 = vst [vmem:[#allocation46_spill] sm:$0xff] %v7069_v0 }
 0x13b   : > { %803 = vst.msk [vmem:[#allocation2 + $0x28] sm:$0xff] %vm799_vm6, %v6630_v29 }
 0x13c   : > { %927 = vst.msk [vmem:[#allocation2 + $0x37] sm:$0xff] %vm922_vm13, %v7062_v61  ;;  %1237 = vrot.lane.b32.xlu1 %v7074_v25, %s6235_s17  ;;  %1108 = vrot.lane.b32.xlu2 %v7074_v25, %s6236_s21 }
 0x13d   : > { %1313 = vst.msk [vmem:[#allocation2 + $0xf] sm:$0xfe] %vm1309_vm11, %v7069_v0  ;;  %701 = vrot.lane.b32.xlu0 %v7074_v25, %s6237_s23 }
 0x13e   : > { %11598 = vst [vmem:[#allocation47_spill] sm:$0xff] %v7081_v47  ;;  %v7102_v54 = vpop.permute.xlu1 %1219  ;;  %v7104_v21 = vpop.permute.xlu2 %964  ;;  %5987 = vmatmul.msk.f32.gmra.mxu0 %vm368_vm1, %v7148_v53 }
 0x13f   : > { %4593 = vst.msk [vmem:[#allocation4 + $0x151] sm:$0xff] %vm368_vm1, %v7081_v47  ;;  %v7109_v47 = vpop.permute.xlu0 %836 }
 0x140   : > { %11599 = vst [vmem:[#allocation48_spill] sm:$0xff] %v7102_v54 }
 0x141   : > { %11600 = vst [vmem:[#allocation49_spill] sm:$0xff] %v7104_v21 }
 0x142   : > { %11601 = vst [vmem:[#allocation50_spill] sm:$0xff] %v7109_v47 }
 0x143   : > { %5374 = vst.msk [vmem:[%s6584_s22 + $0x68] sm:$0xff] %vm368_vm1, %v7083_v50 }
 0x144   : > { %925 = vst.msk [vmem:[#allocation2 + $0x27] sm:$0xff] %vm922_vm13, %v7109_v47  ;;  %703 = vrot.lane.b32.xlu1 %v7083_v50, %s6237_s23  ;;  %1239 = vrot.lane.b32.xlu2 %v7083_v50, %s6235_s17 }
 0x145   : > { %1057 = vst.msk [vmem:[#allocation2 + $0x29] sm:$0x7f] %vm1052_vm8, %v7104_v21  ;;  %854 = vrot.lane.b32.xlu0 %v7074_v25, %s6238_s24 }
 0x146   : > { %v7132_v49 = vpop.permute.xlu1 %838  ;;  %v7134_v56 = vpop.permute.xlu2 %1096  ;;  %5988 = vmatmul.msk.f32.gmra.mxu0 %vm368_vm1, %v7181_v37  ;;  %v7208_v37 = vmax.f32 %v538_v19, 0.0  ;;  %5379 = vst.msk [vmem:[%s6584_s22 + $0x90] sm:$0xff] %vm368_vm1, %v7261_v7 }
 0x147   : > { %11602 = vst [vmem:[#allocation51_spill] sm:$0xff] %v7132_v49  ;;  %v7141_v42 = vpop.permute.xlu0 %960 }
 0x148   : > { %11603 = vst [vmem:[#allocation52_spill] sm:$0xff] %v7134_v56 }
 0x149   : > { %926 = vst.msk [vmem:[#allocation2 + $0x2f] sm:$0xfe] %vm920_vm7, %v7132_v49 }
 0x14a   : > { %11604 = vst [vmem:[#allocation53_spill] sm:$0xff] %v7141_v42 }
 0x14b   : > { %1055 = vst.msk [vmem:[#allocation2 + $0x19] sm:$0x7f] %vm1052_vm8, %v7141_v42 }
 0x14c   : > { %1184 = vst.msk [vmem:[#allocation2 + $0x18] sm:$0xff] %vm1180_vm10, %v6934_v16  ;;  %856 = vrot.lane.b32.xlu1 %v7083_v50, %s6238_s24  ;;  %705 = vrot.lane.b32.xlu2 %v7116_v34, %s6237_s23 }
 0x14d   : > { %1314 = vst.msk [vmem:[#allocation2 + $0x17] sm:$0xff] %vm1311_vm15, %v7102_v54  ;;  %978 = vrot.lane.b32.xlu0 %v7074_v25, %s11514_s25  ;;  %v546_v54 = vpop.f32.mrf.mxu0 }
 0x14e   : > { %v7165_v41 = vpop.permute.xlu1 %962  ;;  %v7167_v24 = vpop.permute.xlu2 %1227  ;;  %5378 = vst.msk [vmem:[%s6584_s22 + $0x88] sm:$0xff] %vm368_vm1, %v7208_v37  ;;  %5989 = vmatmul.msk.f32.gmra.mxu0 %vm368_vm1, %v7211_v13  ;;  %v547_v52 = vadd.f32 %v6566_v14, %v546_v54 }
 0x14f   : > { %11606 = vst [vmem:[#allocation55_spill] sm:$0xff] %v7165_v41  ;;  %v7174_v53 = vpop.permute.xlu0 %1092 }
 0x150   : > { %11607 = vst [vmem:[#allocation56_spill] sm:$0xff] %v7167_v24  ;;  %v7341_v58 = vmax.f32 %v547_v52, 0.0 }
 0x151   : > { %1056 = vst.msk [vmem:[#allocation2 + $0x21] sm:$0xff] %vm1050_vm9, %v7165_v41 }
 0x152   : > { %11608 = vst [vmem:[#allocation57_spill] sm:$0xff] %v7174_v53 }
 0x153   : > { %1185 = vst.msk [vmem:[#allocation2 + $0x20] sm:$0xff] %vm1180_vm10, %v7174_v53 }
 0x154   : > { %1315 = vst.msk [vmem:[#allocation2 + $0x1f] sm:$0xfe] %vm1309_vm11, %v6998_v38  ;;  %980 = vrot.lane.b32.xlu1 %v7083_v50, %s11514_s25  ;;  %858 = vrot.lane.b32.xlu2 %v7116_v34, %s6238_s24  ;;  %v7306_v38 = vmax.f32 %v544_v3, 0.0 }
 0x155   : > { %1110 = vrot.lane.b32.xlu0 %v7083_v50, %s6236_s21  ;;  %11624 = vst [vmem:[#allocation73_spill] sm:$0xff] %v7313_v8  ;;  %v549_v52 = vpop.f32.mrf.mxu0 }
 0x156   : > { %v7193_v33 = vpop.permute.xlu1 %1094  ;;  %v7195_v23 = vpop.permute.xlu2 %693  ;;  %5990 = vmatmul.msk.f32.gmra.mxu0 %vm368_vm1, %v7289_v4  ;;  %5380 = vst.msk [vmem:[%s6584_s22 + $0x98] sm:$0xff] %vm368_vm1, %v7306_v38 }
 0x157   : > { %11610 = vst [vmem:[#allocation59_spill] sm:$0xff] %v7193_v33  ;;  %v7200_v15 = vpop.permute.xlu0 %1223 }
 0x158   : > { %1186 = vst.msk [vmem:[#allocation2 + $0x28] sm:$0xff] %vm1180_vm10, %v7193_v33 }
 0x159   : > { %11611 = vst [vmem:[#allocation60_spill] sm:$0xff] %v7200_v15 }
 0x15a   : > { %777 = vst.msk [vmem:[#allocation2 + $0x51] sm:$0xff] %vm368_vm1, %v7195_v23 }
 0x15b   : > { %808 = vst.msk [vmem:[#allocation2 + $0x50] sm:$0xff] %vm799_vm6, %v6815_v51 }
 0x15c   : > { %1316 = vst.msk [vmem:[#allocation2 + $0x27] sm:$0xff] %vm1311_vm15, %v7200_v15  ;;  %1112 = vrot.lane.b32.xlu1 %v7116_v34, %s6236_s21  ;;  %982 = vrot.lane.b32.xlu2 %v7116_v34, %s11514_s25 }
 0x15d   : > { %1241 = vrot.lane.b32.xlu0 %v7116_v34, %s6235_s17  ;;  %4598 = vst.msk [vmem:[#allocation4 + $0x189] sm:$0xff] %vm368_vm1, %v7313_v8 }
 0x15e   : > { %v7226_v19 = vpop.permute.xlu1 %1225  ;;  %v7228_v48 = vpop.permute.xlu2 %846  ;;  %5991 = vmatmul.msk.f32.gmra.mxu0 %vm368_vm1, %v7313_v8  ;;  %5381 = vst.msk [vmem:[%s6584_s22 + $0xa0] sm:$0xff] %vm368_vm1, %v7341_v58 }
 0x15f   : > { %11613 = vst [vmem:[#allocation62_spill] sm:$0xff] %v7226_v19  ;;  %v7232_v12 = vpop.permute.xlu0 %689 }
 0x160   : > { %11614 = vst [vmem:[#allocation63_spill] sm:$0xff] %v7228_v48 }
 0x161   : > { %930 = vst.msk [vmem:[#allocation2 + $0x4f] sm:$0xfe] %vm920_vm7, %v7228_v48 }
 0x162   : > { %775 = vst.msk [vmem:[#allocation2 + $0x41] sm:$0xff] %vm368_vm1, %v7232_v12 }
 0x163   : > { %806 = vst.msk [vmem:[#allocation2 + $0x40] sm:$0xff] %vm799_vm6, %v6680_v40 }
 0x164   : > { %1243 = vrot.lane.b32.xlu1 %v7128_v63, %s6235_s17  ;;  %1114 = vrot.lane.b32.xlu2 %v7128_v63, %s6236_s21 }
 0x165   : > { %707 = vrot.lane.b32.xlu0 %v7128_v63, %s6237_s23 }
 0x166   : > { %v7244_v13 = vpop.permute.xlu1 %691  ;;  %v7246_v11 = vpop.permute.xlu2 %970 }
 0x167   : > { %11615 = vst [vmem:[#allocation64_spill] sm:$0xff] %v7246_v11  ;;  %v7250_v10 = vpop.permute.xlu0 %842 }
 0x168   : > { %776 = vst.msk [vmem:[#allocation2 + $0x49] sm:$0x7f] %vm769_vm12, %v7244_v13 }
 0x169   : > { %11616 = vst [vmem:[#allocation65_spill] sm:$0xff] %v7250_v10 }
 0x16a   : > { %807 = vst.msk [vmem:[#allocation2 + $0x48] sm:$0xff] %vm799_vm6, %v6699_v44 }
 0x16b   : > { %928 = vst.msk [vmem:[#allocation2 + $0x3f] sm:$0xfe] %vm920_vm7, %v7250_v10 }
 0x16c   : > { %709 = vrot.lane.b32.xlu1 %v7161_v46, %s6237_s23  ;;  %1245 = vrot.lane.b32.xlu2 %v7161_v46, %s6235_s17 }
 0x16d   : > { %860 = vrot.lane.b32.xlu0 %v7128_v63, %s6238_s24 }
 0x16e   : > { %v7265_v6 = vpop.permute.xlu1 %844  ;;  %v7267_v5 = vpop.permute.xlu2 %1102 }
 0x16f   : > { %11617 = vst [vmem:[#allocation66_spill] sm:$0xff] %v7265_v6  ;;  %v7274_v9 = vpop.permute.xlu0 %966 }
 0x170   : > { %11618 = vst [vmem:[#allocation67_spill] sm:$0xff] %v7267_v5 }
 0x171   : > { %929 = vst.msk [vmem:[#allocation2 + $0x47] sm:$0xff] %vm922_vm13, %v7265_v6 }
 0x172   : > { %11619 = vst [vmem:[#allocation68_spill] sm:$0xff] %v7274_v9 }
 0x173   : > { %1060 = vst.msk [vmem:[#allocation2 + $0x41] sm:$0xff] %vm1050_vm9, %v7246_v11 }
 0x174   : > { %1058 = vst.msk [vmem:[#allocation2 + $0x31] sm:$0xff] %vm1050_vm9, %v7274_v9  ;;  %862 = vrot.lane.b32.xlu1 %v7161_v46, %s6238_s24  ;;  %711 = vrot.lane.b32.xlu2 %v7208_v37, %s6237_s23 }
 0x175   : > { %1187 = vst.msk [vmem:[#allocation2 + $0x30] sm:$0xff] %vm1180_vm10, %v7134_v56  ;;  %984 = vrot.lane.b32.xlu0 %v7128_v63, %s11514_s25 }
 0x176   : > { %1317 = vst.msk [vmem:[#allocation2 + $0x2f] sm:$0xfe] %vm1309_vm11, %v7226_v19  ;;  %v7298_v2 = vpop.permute.xlu1 %968  ;;  %v7300_v19 = vpop.permute.xlu2 %1233 }
 0x177   : > { %11621 = vst [vmem:[#allocation70_spill] sm:$0xff] %v7298_v2  ;;  %v7304_v15 = vpop.permute.xlu0 %1098 }
 0x178   : > { %11622 = vst [vmem:[#allocation71_spill] sm:$0xff] %v7300_v19 }
 0x179   : > { %1059 = vst.msk [vmem:[#allocation2 + $0x39] sm:$0x7f] %vm1052_vm8, %v7298_v2 }
 0x17a   : > { %11623 = vst [vmem:[#allocation72_spill] sm:$0xff] %v7304_v15 }
 0x17b   : > { %1188 = vst.msk [vmem:[#allocation2 + $0x38] sm:$0xff] %vm1180_vm10, %v7304_v15 }
 0x17c   : > { %1318 = vst.msk [vmem:[#allocation2 + $0x37] sm:$0xff] %vm1311_vm15, %v7167_v24  ;;  %986 = vrot.lane.b32.xlu1 %v7161_v46, %s11514_s25  ;;  %864 = vrot.lane.b32.xlu2 %v7208_v37, %s6238_s24 }
 0x17d   : > { %1116 = vrot.lane.b32.xlu0 %v7161_v46, %s6236_s21 }
 0x17e   : > { %v7328_v3 = vpop.permute.xlu1 %1100  ;;  %v7330_v4 = vpop.permute.xlu2 %699 }
 0x17f   : > { %11625 = vst [vmem:[#allocation74_spill] sm:$0xff] %v7328_v3  ;;  %v7334_v24 = vpop.permute.xlu0 %1229 }
 0x180   : > { %1189 = vst.msk [vmem:[#allocation2 + $0x40] sm:$0xff] %vm1180_vm10, %v7328_v3 }
 0x181   : > { %11626 = vst [vmem:[#allocation75_spill] sm:$0xff] %v7334_v24 }
 0x182   : > { %780 = vst.msk [vmem:[#allocation2 + $0x69] sm:$0x7f] %vm769_vm12, %v7330_v4 }
 0x183   : > { %1319 = vst.msk [vmem:[#allocation2 + $0x3f] sm:$0xfe] %vm1309_vm11, %v7334_v24  ;;  %v550_v24 = vadd.f32 %v6566_v14, %v549_v52  ;;  %v552_v52 = vpop.f32.mrf.mxu0 }
 0x184   : > { %1118 = vrot.lane.b32.xlu1 %v7208_v37, %s6236_s21  ;;  %988 = vrot.lane.b32.xlu2 %v7208_v37, %s11514_s25  ;;  %v553_v43 = vadd.f32 %v6566_v14, %v552_v52 }
 0x185   : > { %1247 = vrot.lane.b32.xlu0 %v7208_v37, %s6235_s17  ;;  %v7381_v56 = vmax.f32 %v550_v24, 0.0 }
 0x186   : > { %v7352_v8 = vpop.permute.xlu1 %1231  ;;  %v7354_v54 = vpop.permute.xlu2 %852  ;;  %v7407_v15 = vmax.f32 %v553_v43, 0.0 }
 0x187   : > { %11627 = vst [vmem:[#allocation76_spill] sm:$0xff] %v7352_v8  ;;  %v7356_v0 = vpop.permute.xlu0 %695 }
 0x188   : > { %11628 = vst [vmem:[#allocation77_spill] sm:$0xff] %v7354_v54 }
 0x189   : > { %778 = vst.msk [vmem:[#allocation2 + $0x59] sm:$0x7f] %vm769_vm12, %v7356_v0 }
 0x18a   : > { %809 = vst.msk [vmem:[#allocation2 + $0x58] sm:$0xff] %vm799_vm6, %v6906_v62 }
 0x18b   : > { %5382 = vst.msk [vmem:[%s6584_s22 + $0xa8] sm:$0xff] %vm368_vm1, %v7381_v56 }
 0x18c   : > { %1249 = vrot.lane.b32.xlu1 %v7261_v7, %s6235_s17  ;;  %1120 = vrot.lane.b32.xlu2 %v7261_v7, %s6236_s21  ;;  %5383 = vst.msk [vmem:[%s6584_s22 + $0xb0] sm:$0xff] %vm368_vm1, %v7407_v15 }
 0x18d   : > { %713 = vrot.lane.b32.xlu0 %v7261_v7, %s6237_s23 }
 0x18e   : > { %v7369_v3 = vpop.permute.xlu1 %697  ;;  %v7371_v33 = vpop.permute.xlu2 %976 }
 0x18f   : > { %11629 = vst [vmem:[#allocation78_spill] sm:$0xff] %v7371_v33  ;;  %v7375_v53 = vpop.permute.xlu0 %848 }
 0x190   : > { %779 = vst.msk [vmem:[#allocation2 + $0x61] sm:$0xff] %vm368_vm1, %v7369_v3 }
 0x191   : > { %11630 = vst [vmem:[#allocation79_spill] sm:$0xff] %v7375_v53 }
 0x192   : > { %811 = vst.msk [vmem:[#allocation2 + $0x68] sm:$0xff] %vm799_vm6, %v6978_v31 }
 0x193   : > { %810 = vst.msk [vmem:[#allocation2 + $0x60] sm:$0xff] %vm799_vm6, %v6942_v20 }
 0x194   : > { %933 = vst.msk [vmem:[#allocation2 + $0x67] sm:$0xff] %vm922_vm13, %v7354_v54  ;;  %715 = vrot.lane.b32.xlu1 %v7306_v38, %s6237_s23  ;;  %1251 = vrot.lane.b32.xlu2 %v7306_v38, %s6235_s17 }
 0x195   : > { %931 = vst.msk [vmem:[#allocation2 + $0x57] sm:$0xff] %vm922_vm13, %v7375_v53  ;;  %866 = vrot.lane.b32.xlu0 %v7261_v7, %s6238_s24 }
 0x196   : > { %1063 = vst.msk [vmem:[#allocation2 + $0x59] sm:$0x7f] %vm1052_vm8, %v7371_v33  ;;  %v7399_v24 = vpop.permute.xlu1 %850  ;;  %v7401_v16 = vpop.permute.xlu2 %1108 }
 0x197   : > { %11631 = vst [vmem:[#allocation80_spill] sm:$0xff] %v7399_v24  ;;  %v7405_v52 = vpop.permute.xlu0 %972  ;;  %v555_v33 = vpop.f32.mrf.mxu0 }
 0x198   : > { %11632 = vst [vmem:[#allocation81_spill] sm:$0xff] %v7401_v16  ;;  %v556_v43 = vadd.f32 %v6566_v14, %v555_v33 }
 0x199   : > { %932 = vst.msk [vmem:[#allocation2 + $0x5f] sm:$0xfe] %vm920_vm7, %v7399_v24 }
 0x19a   : > { %11633 = vst [vmem:[#allocation82_spill] sm:$0xff] %v7405_v52  ;;  %v7435_v2 = vmax.f32 %v556_v43, 0.0 }
 0x19b   : > { %1061 = vst.msk [vmem:[#allocation2 + $0x49] sm:$0x7f] %vm1052_vm8, %v7405_v52 }
 0x19c   : > { %1190 = vst.msk [vmem:[#allocation2 + $0x48] sm:$0xff] %vm1180_vm10, %v7267_v5  ;;  %868 = vrot.lane.b32.xlu1 %v7306_v38, %s6238_s24  ;;  %717 = vrot.lane.b32.xlu2 %v7341_v58, %s6237_s23 }
 0x19d   : > { %1320 = vst.msk [vmem:[#allocation2 + $0x47] sm:$0xff] %vm1311_vm15, %v7352_v8  ;;  %990 = vrot.lane.b32.xlu0 %v7261_v7, %s11514_s25 }
 0x19e   : > { %v7425_v52 = vpop.permute.xlu1 %974  ;;  %v7427_v5 = vpop.permute.xlu2 %1239  ;;  %5384 = vst.msk [vmem:[%s6584_s22 + $0xb8] sm:$0xff] %vm368_vm1, %v7435_v2 }
 0x19f   : > { %11634 = vst [vmem:[#allocation83_spill] sm:$0xff] %v7425_v52  ;;  %v7431_v8 = vpop.permute.xlu0 %1104 }
 0x1a0   : > { %11635 = vst [vmem:[#allocation84_spill] sm:$0xff] %v7427_v5 }
 0x1a1   : > { %1062 = vst.msk [vmem:[#allocation2 + $0x51] sm:$0xff] %vm1050_vm9, %v7425_v52 }
 0x1a2   : > { %11636 = vst [vmem:[#allocation85_spill] sm:$0xff] %v7431_v8 }
 0x1a3   : > { %1191 = vst.msk [vmem:[#allocation2 + $0x50] sm:$0xff] %vm1180_vm10, %v7431_v8  ;;  %v558_v8 = vpop.f32.mrf.mxu0 }
 0x1a4   : > { %1321 = vst.msk [vmem:[#allocation2 + $0x4f] sm:$0xfe] %vm1309_vm11, %v7300_v19  ;;  %992 = vrot.lane.b32.xlu1 %v7306_v38, %s11514_s25  ;;  %870 = vrot.lane.b32.xlu2 %v7341_v58, %s6238_s24  ;;  %v559_v52 = vadd.f32 %v6566_v14, %v558_v8 }
 0x1a5   : > { %1122 = vrot.lane.b32.xlu0 %v7306_v38, %s6236_s21 }
 0x1a6   : > { %v7448_v33 = vpop.permute.xlu1 %1106  ;;  %v7450_v43 = vpop.permute.xlu2 %705 }
 0x1a7   : > { %11637 = vst [vmem:[#allocation86_spill] sm:$0xff] %v7448_v33  ;;  %v7454_v19 = vpop.permute.xlu0 %1235 }
 0x1a8   : > { %1192 = vst.msk [vmem:[#allocation2 + $0x58] sm:$0xff] %vm1180_vm10, %v7448_v33  ;;  %v7467_v33 = vmax.f32 %v559_v52, 0.0 }
 0x1a9   : > { %11638 = vst [vmem:[#allocation87_spill] sm:$0xff] %v7454_v19 }
 0x1aa   : > { %783 = vst.msk [vmem:[#allocation2 + $0x81] sm:$0xff] %vm368_vm1, %v7450_v43 }
 0x1ab   : > { %814 = vst.msk [vmem:[#allocation2 + $0x80] sm:$0xff] %vm799_vm6, %v7116_v34  ;;  %v561_v52 = vpop.f32.mrf.mxu0 }
 0x1ac   : > { %1322 = vst.msk [vmem:[#allocation2 + $0x57] sm:$0xff] %vm1311_vm15, %v7454_v19  ;;  %1124 = vrot.lane.b32.xlu1 %v7341_v58, %s6236_s21  ;;  %994 = vrot.lane.b32.xlu2 %v7341_v58, %s11514_s25  ;;  %v562_v19 = vadd.f32 %v6566_v14, %v561_v52 }
 0x1ad   : > { %719 = vrot.lane.b32.xlu0 %v7381_v56, %s6237_s23  ;;  %5385 = vst.msk [vmem:[%s6584_s22 + $0xc0] sm:$0xff] %vm368_vm1, %v7467_v33 }
 0x1ae   : > { %v7471_v9 = vpop.permute.xlu1 %1237  ;;  %v7473_v42 = vpop.permute.xlu2 %858  ;;  %v7491_v21 = vmax.f32 %v562_v19, 0.0 }
 0x1af   : > { %11639 = vst [vmem:[#allocation88_spill] sm:$0xff] %v7471_v9  ;;  %v7480_v8 = vpop.permute.xlu0 %701 }
 0x1b0   : > { %11640 = vst [vmem:[#allocation89_spill] sm:$0xff] %v7473_v42 }
 0x1b1   : > { %936 = vst.msk [vmem:[#allocation2 + $0x7f] sm:$0xfe] %vm920_vm7, %v7473_v42 }
 0x1b2   : > { %781 = vst.msk [vmem:[#allocation2 + $0x71] sm:$0xff] %vm368_vm1, %v7480_v8 }
 0x1b3   : > { %812 = vst.msk [vmem:[#allocation2 + $0x70] sm:$0xff] %vm799_vm6, %v7074_v25  ;;  %v564_v19 = vpop.f32.mrf.mxu0 }
 0x1b4   : > { %721 = vrot.lane.b32.xlu1 %v7407_v15, %s6237_s23  ;;  %1126 = vrot.lane.b32.xlu2 %v7381_v56, %s6236_s21  ;;  %5386 = vst.msk [vmem:[%s6584_s22 + $0xc8] sm:$0xff] %vm368_vm1, %v7491_v21  ;;  %v565_v30 = vadd.f32 %v6566_v14, %v564_v19 }
 0x1b5   : > { %872 = vrot.lane.b32.xlu0 %v7381_v56, %s6238_s24 }
 0x1b6   : > { %v7495_v41 = vpop.permute.xlu1 %703  ;;  %v7497_v27 = vpop.permute.xlu2 %982  ;;  %v7515_v11 = vmax.f32 %v565_v30, 0.0 }
 0x1b7   : > { %11641 = vst [vmem:[#allocation90_spill] sm:$0xff] %v7497_v27  ;;  %v7504_v52 = vpop.permute.xlu0 %854 }
 0x1b8   : > { %782 = vst.msk [vmem:[#allocation2 + $0x79] sm:$0x7f] %vm769_vm12, %v7495_v41 }
 0x1b9   : > { %11642 = vst [vmem:[#allocation91_spill] sm:$0xff] %v7504_v52 }
 0x1ba   : > { %813 = vst.msk [vmem:[#allocation2 + $0x78] sm:$0xff] %vm799_vm6, %v7083_v50 }
 0x1bb   : > { %934 = vst.msk [vmem:[#allocation2 + $0x6f] sm:$0xfe] %vm920_vm7, %v7504_v52 }
 0x1bc   : > { %874 = vrot.lane.b32.xlu1 %v7407_v15, %s6238_s24  ;;  %723 = vrot.lane.b32.xlu2 %v7435_v2, %s6237_s23  ;;  %5387 = vst.msk [vmem:[%s6584_s22 + $0xd0] sm:$0xff] %vm368_vm1, %v7515_v11 }
 0x1bd   : > { %996 = vrot.lane.b32.xlu0 %v7381_v56, %s11514_s25 }
 0x1be   : > { %v7519_v59 = vpop.permute.xlu1 %856  ;;  %v7521_v54 = vpop.permute.xlu2 %1114 }
 0x1bf   : > { %11643 = vst [vmem:[#allocation92_spill] sm:$0xff] %v7519_v59  ;;  %v7528_v14 = vpop.permute.xlu0 %978 }
 0x1c0   : > { %11644 = vst [vmem:[#allocation93_spill] sm:$0xff] %v7521_v54 }
 0x1c1   : > { %935 = vst.msk [vmem:[#allocation2 + $0x77] sm:$0xff] %vm922_vm13, %v7519_v59 }
 0x1c2   : > { %11645 = vst [vmem:[#allocation94_spill] sm:$0xff] %v7528_v14 }
 0x1c3   : > { %1066 = vst.msk [vmem:[#allocation2 + $0x71] sm:$0xff] %vm1050_vm9, %v7497_v27 }
 0x1c4   : > { %1064 = vst.msk [vmem:[#allocation2 + $0x61] sm:$0xff] %vm1050_vm9, %v7528_v14  ;;  %998 = vrot.lane.b32.xlu1 %v7407_v15, %s11514_s25  ;;  %876 = vrot.lane.b32.xlu2 %v7435_v2, %s6238_s24  ;;  %v7559_v14 = vld [vmem:[%s11300_s2] ss:$0 sm:$0xff] }
 0x1c5   : > { %1193 = vst.msk [vmem:[#allocation2 + $0x60] sm:$0xff] %vm1180_vm10, %v7401_v16  ;;  %1128 = vrot.lane.b32.xlu0 %v7407_v15, %s6236_s21 }
 0x1c6   : > { %1323 = vst.msk [vmem:[#allocation2 + $0x5f] sm:$0xfe] %vm1309_vm11, %v7471_v9  ;;  %v7544_v30 = vpop.permute.xlu1 %980  ;;  %v7546_v19 = vpop.permute.xlu2 %1245 }
 0x1c7   : > { %11646 = vst [vmem:[#allocation95_spill] sm:$0xff] %v7544_v30  ;;  %v7550_v16 = vpop.permute.xlu0 %1110  ;;  %v567_v9 = vpop.f32.mrf.mxu0 }
 0x1c8   : > { %11647 = vst [vmem:[#allocation96_spill] sm:$0xff] %v7546_v19  ;;  %v568_v27 = vadd.f32 %v7559_v14, %v567_v9 }
 0x1c9   : > { %1065 = vst.msk [vmem:[#allocation2 + $0x69] sm:$0x7f] %vm1052_vm8, %v7544_v30 }
 0x1ca   : > { %11648 = vst [vmem:[#allocation97_spill] sm:$0xff] %v7550_v16  ;;  %v7572_v30 = vmax.f32 %v568_v27, 0.0 }
 0x1cb   : > { %1194 = vst.msk [vmem:[#allocation2 + $0x68] sm:$0xff] %vm1180_vm10, %v7550_v16 }
 0x1cc   : > { %1324 = vst.msk [vmem:[#allocation2 + $0x67] sm:$0xff] %vm1311_vm15, %v7427_v5  ;;  %1130 = vrot.lane.b32.xlu1 %v7435_v2, %s6236_s21  ;;  %1000 = vrot.lane.b32.xlu2 %v7435_v2, %s11514_s25 }
 0x1cd   : > { %725 = vrot.lane.b32.xlu0 %v7467_v33, %s6237_s23  ;;  %5388 = vst.msk [vmem:[%s6584_s22 + $0xd8] sm:$0xff] %vm368_vm1, %v7572_v30 }
 0x1ce   : > { %v7568_v16 = vpop.permute.xlu1 %1112  ;;  %v7570_v5 = vpop.permute.xlu2 %711 }
 0x1cf   : > { %11649 = vst [vmem:[#allocation98_spill] sm:$0xff] %v7568_v16  ;;  %v7576_v9 = vpop.permute.xlu0 %1241  ;;  %v570_v59 = vpop.f32.mrf.mxu0 }
 0x1d0   : > { %1195 = vst.msk [vmem:[#allocation2 + $0x70] sm:$0xff] %vm1180_vm10, %v7568_v16  ;;  %v571_v52 = vadd.f32 %v7559_v14, %v570_v59 }
 0x1d1   : > { %11650 = vst [vmem:[#allocation99_spill] sm:$0xff] %v7576_v9 }
 0x1d2   : > { %786 = vst.msk [vmem:[#allocation2 + $0x99] sm:$0x7f] %vm769_vm12, %v7570_v5  ;;  %v7592_v27 = vmax.f32 %v571_v52, 0.0 }
 0x1d3   : > { %1325 = vst.msk [vmem:[#allocation2 + $0x6f] sm:$0xfe] %vm1309_vm11, %v7576_v9 }
 0x1d4   : > { %727 = vrot.lane.b32.xlu1 %v7491_v21, %s6237_s23  ;;  %1132 = vrot.lane.b32.xlu2 %v7467_v33, %s6236_s21  ;;  %5389 = vst.msk [vmem:[%s6584_s22 + $0xe0] sm:$0xff] %vm368_vm1, %v7592_v27 }
 0x1d5   : > { %878 = vrot.lane.b32.xlu0 %v7467_v33, %s6238_s24 }
 0x1d6   : > { %v7594_v16 = vpop.permute.xlu1 %1243  ;;  %v7596_v9 = vpop.permute.xlu2 %864 }
 0x1d7   : > { %11651 = vst [vmem:[#allocation100_spill] sm:$0xff] %v7594_v16  ;;  %v7598_v53 = vpop.permute.xlu0 %707  ;;  %v573_v59 = vpop.f32.mrf.mxu0 }
 0x1d8   : > { %11652 = vst [vmem:[#allocation101_spill] sm:$0xff] %v7596_v9  ;;  %v574_v10 = vadd.f32 %v7559_v14, %v573_v59 }
 0x1d9   : > { %784 = vst.msk [vmem:[#allocation2 + $0x89] sm:$0x7f] %vm769_vm12, %v7598_v53 }
 0x1da   : > { %815 = vst.msk [vmem:[#allocation2 + $0x88] sm:$0xff] %vm799_vm6, %v7128_v63  ;;  %v7630_v47 = vmax.f32 %v574_v10, 0.0 }
 0x1dc   : > { %880 = vrot.lane.b32.xlu1 %v7491_v21, %s6238_s24  ;;  %729 = vrot.lane.b32.xlu2 %v7515_v11, %s6237_s23  ;;  %5390 = vst.msk [vmem:[%s6584_s22 + $0xe8] sm:$0xff] %vm368_vm1, %v7630_v47 }
 0x1dd   : > { %1002 = vrot.lane.b32.xlu0 %v7467_v33, %s11514_s25 }
 0x1de   : > { %v7613_v52 = vpop.permute.xlu1 %709  ;;  %v7615_v24 = vpop.permute.xlu2 %988 }
 0x1df   : > { %11653 = vst [vmem:[#allocation102_spill] sm:$0xff] %v7615_v24  ;;  %v7619_v6 = vpop.permute.xlu0 %860 }
 0x1e0   : > { %785 = vst.msk [vmem:[#allocation2 + $0x91] sm:$0xff] %vm368_vm1, %v7613_v52 }
 0x1e1   : > { %11654 = vst [vmem:[#allocation103_spill] sm:$0xff] %v7619_v6 }
 0x1e2   : > { %817 = vst.msk [vmem:[#allocation2 + $0x98] sm:$0xff] %vm799_vm6, %v7208_v37 }
 0x1e3   : > { %816 = vst.msk [vmem:[#allocation2 + $0x90] sm:$0xff] %vm799_vm6, %v7161_v46 }
 0x1e4   : > { %939 = vst.msk [vmem:[#allocation2 + $0x97] sm:$0xff] %vm922_vm13, %v7596_v9  ;;  %1004 = vrot.lane.b32.xlu1 %v7491_v21, %s11514_s25  ;;  %882 = vrot.lane.b32.xlu2 %v7515_v11, %s6238_s24 }
 0x1e5   : > { %937 = vst.msk [vmem:[#allocation2 + $0x87] sm:$0xff] %vm922_vm13, %v7619_v6  ;;  %1134 = vrot.lane.b32.xlu0 %v7491_v21, %s6236_s21 }
 0x1e6   : > { %1069 = vst.msk [vmem:[#allocation2 + $0x89] sm:$0x7f] %vm1052_vm8, %v7615_v24  ;;  %v7643_v59 = vpop.permute.xlu1 %862  ;;  %v7645_v9 = vpop.permute.xlu2 %1120 }
 0x1e7   : > { %11655 = vst [vmem:[#allocation104_spill] sm:$0xff] %v7643_v59  ;;  %v7649_v10 = vpop.permute.xlu0 %984 }
 0x1e8   : > { %11656 = vst [vmem:[#allocation105_spill] sm:$0xff] %v7645_v9 }
 0x1e9   : > { %938 = vst.msk [vmem:[#allocation2 + $0x8f] sm:$0xfe] %vm920_vm7, %v7643_v59 }
 0x1ea   : > { %11657 = vst [vmem:[#allocation106_spill] sm:$0xff] %v7649_v10 }
 0x1eb   : > { %1067 = vst.msk [vmem:[#allocation2 + $0x79] sm:$0x7f] %vm1052_vm8, %v7649_v10 }
 0x1ec   : > { %1196 = vst.msk [vmem:[#allocation2 + $0x78] sm:$0xff] %vm1180_vm10, %v7521_v54  ;;  %1136 = vrot.lane.b32.xlu1 %v7515_v11, %s6236_s21  ;;  %1006 = vrot.lane.b32.xlu2 %v7515_v11, %s11514_s25 }
 0x1ed   : > { %1326 = vst.msk [vmem:[#allocation2 + $0x77] sm:$0xff] %vm1311_vm15, %v7594_v16  ;;  %731 = vrot.lane.b32.xlu0 %v7572_v30, %s6237_s23  ;;  %v576_v16 = vpop.f32.mrf.mxu0 }
 0x1ee   : > { %v7663_v24 = vpop.permute.xlu1 %986  ;;  %v7665_v6 = vpop.permute.xlu2 %1251  ;;  %v577_v10 = vadd.f32 %v7559_v14, %v576_v16 }
 0x1ef   : > { %11658 = vst [vmem:[#allocation107_spill] sm:$0xff] %v7663_v24  ;;  %v7669_v54 = vpop.permute.xlu0 %1116 }
 0x1f0   : > { %11659 = vst [vmem:[#allocation108_spill] sm:$0xff] %v7665_v6 }
 0x1f1   : > { %1068 = vst.msk [vmem:[#allocation2 + $0x81] sm:$0xff] %vm1050_vm9, %v7663_v24 }
 0x1f2   : > { %11660 = vst [vmem:[#allocation109_spill] sm:$0xff] %v7669_v54 }
 0x1f3   : > { %1197 = vst.msk [vmem:[#allocation2 + $0x80] sm:$0xff] %vm1180_vm10, %v7669_v54  ;;  %v7690_v54 = vmax.f32 %v577_v10, 0.0 }
 0x1f4   : > { %1327 = vst.msk [vmem:[#allocation2 + $0x7f] sm:$0xfe] %vm1309_vm11, %v7546_v19  ;;  %733 = vrot.lane.b32.xlu1 %v7592_v27, %s6237_s23  ;;  %1138 = vrot.lane.b32.xlu2 %v7572_v30, %s6236_s21 }
 0x1f5   : > { %884 = vrot.lane.b32.xlu0 %v7572_v30, %s6238_s24  ;;  %11663 = vst [vmem:[#allocation112_spill] sm:$0xff] %v7690_v54  ;;  %v579_v16 = vpop.f32.mrf.mxu0 }
 0x1f6   : > { %v7682_v24 = vpop.permute.xlu1 %1118  ;;  %v7684_v59 = vpop.permute.xlu2 %717  ;;  %5391 = vst.msk [vmem:[%s6584_s22 + $0xf0] sm:$0xff] %vm368_vm1, %v7690_v54  ;;  %v580_v10 = vadd.f32 %v7559_v14, %v579_v16 }
 0x1f7   : > { %11661 = vst [vmem:[#allocation110_spill] sm:$0xff] %v7682_v24  ;;  %v7688_v19 = vpop.permute.xlu0 %1247 }
 0x1f8   : > { %1198 = vst.msk [vmem:[#allocation2 + $0x88] sm:$0xff] %vm1180_vm10, %v7682_v24 }
 0x1f9   : > { %11662 = vst [vmem:[#allocation111_spill] sm:$0xff] %v7688_v19 }
 0x1fa   : > { %789 = vst.msk [vmem:[#allocation2 + $0xb1] sm:$0xff] %vm368_vm1, %v7684_v59 }
 0x1fb   : > { %820 = vst.msk [vmem:[#allocation2 + $0xb0] sm:$0xff] %vm799_vm6, %v7341_v58 }
 0x1fc   : > { %1328 = vst.msk [vmem:[#allocation2 + $0x87] sm:$0xff] %vm1311_vm15, %v7688_v19  ;;  %886 = vrot.lane.b32.xlu1 %v7592_v27, %s6238_s24  ;;  %735 = vrot.lane.b32.xlu2 %v7630_v47, %s6237_s23  ;;  %v7712_v19 = vmax.f32 %v580_v10, 0.0  ;;  %s6244_s23 = smov 120  }
 0x1fd   : > { %1008 = vrot.lane.b32.xlu0 %v7572_v30, %s11514_s25 }
 0x1fe   : > { %v7708_v24 = vpop.permute.xlu1 %1249  ;;  %v7710_v61 = vpop.permute.xlu2 %870  ;;  %5392 = vst.msk [vmem:[%s6584_s22 + $0xf8] sm:$0xff] %vm368_vm1, %v7712_v19 }
 0x1ff   : > { %11664 = vst [vmem:[#allocation113_spill] sm:$0xff] %v7708_v24  ;;  %v7716_v42 = vpop.permute.xlu0 %713 }
 0x200   : > { %11665 = vst [vmem:[#allocation114_spill] sm:$0xff] %v7710_v61 }
 0x201   : > { %942 = vst.msk [vmem:[#allocation2 + $0xaf] sm:$0xfe] %vm920_vm7, %v7710_v61 }
 0x202   : > { %787 = vst.msk [vmem:[#allocation2 + $0xa1] sm:$0xff] %vm368_vm1, %v7716_v42 }
 0x203   : > { %818 = vst.msk [vmem:[#allocation2 + $0xa0] sm:$0xff] %vm799_vm6, %v7261_v7 }
 0x204   : > { %1010 = vrot.lane.b32.xlu1 %v7592_v27, %s11514_s25  ;;  %888 = vrot.lane.b32.xlu2 %v7630_v47, %s6238_s24 }
 0x205   : > { %1140 = vrot.lane.b32.xlu0 %v7592_v27, %s6236_s21 }
 0x206   : > { %v7731_v14 = vpop.permute.xlu1 %715  ;;  %v7733_v16 = vpop.permute.xlu2 %994 }
 0x207   : > { %11666 = vst [vmem:[#allocation115_spill] sm:$0xff] %v7733_v16  ;;  %v7737_v10 = vpop.permute.xlu0 %866 }
 0x208   : > { %788 = vst.msk [vmem:[#allocation2 + $0xa9] sm:$0x7f] %vm769_vm12, %v7731_v14 }
 0x209   : > { %11667 = vst [vmem:[#allocation116_spill] sm:$0xff] %v7737_v10 }
 0x20a   : > { %819 = vst.msk [vmem:[#allocation2 + $0xa8] sm:$0xff] %vm799_vm6, %v7306_v38 }
 0x20b   : > { %940 = vst.msk [vmem:[#allocation2 + $0x9f] sm:$0xfe] %vm920_vm7, %v7737_v10 }
 0x20c   : > { %1142 = vrot.lane.b32.xlu1 %v7630_v47, %s6236_s21  ;;  %1012 = vrot.lane.b32.xlu2 %v7630_v47, %s11514_s25 }
 0x20d   : > { %1253 = vrot.lane.b32.xlu0 %v7341_v58, %s6235_s17 }
 0x20e   : > { %v7749_v61 = vpop.permute.xlu1 %868  ;;  %v7751_v49 = vpop.permute.xlu2 %1126 }
 0x20f   : > { %11668 = vst [vmem:[#allocation117_spill] sm:$0xff] %v7749_v61  ;;  %v7755_v1 = vpop.permute.xlu0 %990 }
 0x210   : > { %11669 = vst [vmem:[#allocation118_spill] sm:$0xff] %v7751_v49 }
 0x211   : > { %941 = vst.msk [vmem:[#allocation2 + $0xa7] sm:$0xff] %vm922_vm13, %v7749_v61 }
 0x212   : > { %11670 = vst [vmem:[#allocation119_spill] sm:$0xff] %v7755_v1 }
 0x213   : > { %1072 = vst.msk [vmem:[#allocation2 + $0xa1] sm:$0xff] %vm1050_vm9, %v7733_v16 }
 0x214   : > { %1070 = vst.msk [vmem:[#allocation2 + $0x91] sm:$0xff] %vm1050_vm9, %v7755_v1  ;;  %1255 = vrot.lane.b32.xlu1 %v7381_v56, %s6235_s17  ;;  %1144 = vrot.lane.b32.xlu2 %v7690_v54, %s6236_s21 }
 0x215   : > { %1199 = vst.msk [vmem:[#allocation2 + $0x90] sm:$0xff] %vm1180_vm10, %v7645_v9  ;;  %1014 = vrot.lane.b32.xlu0 %v7690_v54, %s11514_s25 }
 0x216   : > { %1329 = vst.msk [vmem:[#allocation2 + $0x8f] sm:$0xfe] %vm1309_vm11, %v7708_v24  ;;  %v7771_v61 = vpop.permute.xlu1 %992  ;;  %v7773_v16 = vpop.permute.xlu2 %723 }
 0x217   : > { %11671 = vst [vmem:[#allocation120_spill] sm:$0xff] %v7771_v61  ;;  %v7777_v9 = vpop.permute.xlu0 %1122 }
 0x218   : > { %1071 = vst.msk [vmem:[#allocation2 + $0x99] sm:$0x7f] %vm1052_vm8, %v7771_v61 }
 0x219   : > { %11672 = vst [vmem:[#allocation121_spill] sm:$0xff] %v7777_v9 }
 0x21a   : > { %792 = vst.msk [vmem:[#allocation2 + $0xc9] sm:$0x7f] %vm769_vm12, %v7773_v16 }
 0x21b   : > { %1200 = vst.msk [vmem:[#allocation2 + $0x98] sm:$0xff] %vm1180_vm10, %v7777_v9 }
 0x21c   : > { %1330 = vst.msk [vmem:[#allocation2 + $0x97] sm:$0xff] %vm1311_vm15, %v7665_v6  ;;  %1016 = vrot.lane.b32.xlu1 %v7712_v19, %s11514_s25  ;;  %1257 = vrot.lane.b32.xlu2 %v7407_v15, %s6235_s17  ;;  %s6246_s25 = smov 126  }
 0x21d   : > { %1146 = vrot.lane.b32.xlu0 %v7712_v19, %s6236_s21 }
 0x21e   : > { %v7791_v24 = vpop.permute.xlu1 %1124  ;;  %v7793_v61 = vpop.permute.xlu2 %876 }
 0x21f   : > { %11673 = vst [vmem:[#allocation122_spill] sm:$0xff] %v7791_v24  ;;  %v7797_v9 = vpop.permute.xlu0 %719 }
 0x220   : > { %11674 = vst [vmem:[#allocation123_spill] sm:$0xff] %v7793_v61 }
 0x221   : > { %1201 = vst.msk [vmem:[#allocation2 + $0xa0] sm:$0xff] %vm1180_vm10, %v7791_v24 }
 0x222   : > { %790 = vst.msk [vmem:[#allocation2 + $0xb9] sm:$0x7f] %vm769_vm12, %v7797_v9 }
 0x223   : > { %821 = vst.msk [vmem:[#allocation2 + $0xb8] sm:$0xff] %vm799_vm6, %v7381_v56 }
 0x224   : > { %1261 = vrot.lane.b32.xlu1 %v7467_v33, %s6235_s17  ;;  %1263 = vrot.lane.b32.xlu2 %v7491_v21, %s6235_s17 }
 0x225   : > { %1259 = vrot.lane.b32.xlu0 %v7435_v2, %s6235_s17 }
 0x226   : > { %v7809_v6 = vpop.permute.xlu1 %721  ;;  %v7811_v24 = vpop.permute.xlu2 %1000 }
 0x227   : > { %11675 = vst [vmem:[#allocation124_spill] sm:$0xff] %v7811_v24  ;;  %v7815_v1 = vpop.permute.xlu0 %872 }
 0x228   : > { %791 = vst.msk [vmem:[#allocation2 + $0xc1] sm:$0xff] %vm368_vm1, %v7809_v6 }
 0x229   : > { %11676 = vst [vmem:[#allocation125_spill] sm:$0xff] %v7815_v1 }
 0x22a   : > { %823 = vst.msk [vmem:[#allocation2 + $0xc8] sm:$0xff] %vm799_vm6, %v7435_v2 }
 0x22b   : > { %822 = vst.msk [vmem:[#allocation2 + $0xc0] sm:$0xff] %vm799_vm6, %v7407_v15 }
 0x22c   : > { %945 = vst.msk [vmem:[#allocation2 + $0xc7] sm:$0xff] %vm922_vm13, %v7793_v61  ;;  %1267 = vrot.lane.b32.xlu1 %v7572_v30, %s6235_s17  ;;  %1269 = vrot.lane.b32.xlu2 %v7592_v27, %s6235_s17 }
 0x22d   : > { %943 = vst.msk [vmem:[#allocation2 + $0xb7] sm:$0xff] %vm922_vm13, %v7815_v1  ;;  %1265 = vrot.lane.b32.xlu0 %v7515_v11, %s6235_s17 }
 0x22e   : > { %1075 = vst.msk [vmem:[#allocation2 + $0xb9] sm:$0x7f] %vm1052_vm8, %v7811_v24  ;;  %v7833_v10 = vpop.permute.xlu1 %874  ;;  %v7835_v17 = vpop.permute.xlu2 %1132 }
 0x22f   : > { %11677 = vst [vmem:[#allocation126_spill] sm:$0xff] %v7833_v10  ;;  %v7839_v61 = vpop.permute.xlu0 %996 }
 0x230   : > { %11678 = vst [vmem:[#allocation127_spill] sm:$0xff] %v7835_v17 }
 0x231   : > { %944 = vst.msk [vmem:[#allocation2 + $0xbf] sm:$0xfe] %vm920_vm7, %v7833_v10 }
 0x232   : > { %11679 = vst [vmem:[#allocation128_spill] sm:$0xff] %v7839_v61 }
 0x233   : > { %1073 = vst.msk [vmem:[#allocation2 + $0xa9] sm:$0x7f] %vm1052_vm8, %v7839_v61 }
 0x234   : > { %1202 = vst.msk [vmem:[#allocation2 + $0xa8] sm:$0xff] %vm1180_vm10, %v7751_v49  ;;  %1273 = vrot.lane.b32.xlu1 %v7690_v54, %s6235_s17  ;;  %1275 = vrot.lane.b32.xlu2 %v7712_v19, %s6235_s17 }
 0x235   : > { %1271 = vrot.lane.b32.xlu0 %v7630_v47, %s6235_s17 }
 0x236   : > { %v7851_v24 = vpop.permute.xlu1 %998  ;;  %v7853_v1 = vpop.permute.xlu2 %729 }
 0x237   : > { %11680 = vst [vmem:[#allocation129_spill] sm:$0xff] %v7851_v24  ;;  %v7857_v61 = vpop.permute.xlu0 %1128 }
 0x238   : > { %11681 = vst [vmem:[#allocation130_spill] sm:$0xff] %v7853_v1 }
 0x239   : > { %1074 = vst.msk [vmem:[#allocation2 + $0xb1] sm:$0xff] %vm1050_vm9, %v7851_v24 }
 0x23a   : > { %11682 = vst [vmem:[#allocation131_spill] sm:$0xff] %v7857_v61 }
 0x23b   : > { %795 = vst.msk [vmem:[#allocation2 + $0xe1] sm:$0xff] %vm368_vm1, %v7853_v1 }
 0x23c   : > { %826 = vst.msk [vmem:[#allocation2 + $0xe0] sm:$0xff] %vm799_vm6, %v7515_v11  ;;  %1345 = vrot.lane.b32.xlu1 %v6630_v29, %s6241_s29  ;;  %1347 = vrot.lane.b32.xlu2 %v6642_v32, %s6241_s29 }
 0x23d   : > { %1203 = vst.msk [vmem:[#allocation2 + $0xb0] sm:$0xff] %vm1180_vm10, %v7857_v61  ;;  %1343 = vrot.lane.b32.xlu0 %v6618_v26, %s6241_s29 }
 0x23e   : > { %v7871_v49 = vpop.permute.xlu1 %1130  ;;  %v7873_v24 = vpop.permute.xlu2 %882 }
 0x23f   : > { %11683 = vst [vmem:[#allocation132_spill] sm:$0xff] %v7871_v49  ;;  %v7877_v10 = vpop.permute.xlu0 %725 }
 0x240   : > { %11684 = vst [vmem:[#allocation133_spill] sm:$0xff] %v7873_v24 }
 0x241   : > { %1204 = vst.msk [vmem:[#allocation2 + $0xb8] sm:$0xff] %vm1180_vm10, %v7871_v49 }
 0x242   : > { %948 = vst.msk [vmem:[#allocation2 + $0xdf] sm:$0xfe] %vm920_vm7, %v7873_v24 }
 0x243   : > { %793 = vst.msk [vmem:[#allocation2 + $0xd1] sm:$0xff] %vm368_vm1, %v7877_v10 }
 0x244   : > { %824 = vst.msk [vmem:[#allocation2 + $0xd0] sm:$0xff] %vm799_vm6, %v7467_v33  ;;  %1351 = vrot.lane.b32.xlu1 %v6680_v40, %s6241_s29  ;;  %1353 = vrot.lane.b32.xlu2 %v6699_v44, %s6241_s29 }
 0x245   : > { %1349 = vrot.lane.b32.xlu0 %v6661_v36, %s6241_s29 }
 0x246   : > { %v7891_v49 = vpop.permute.xlu1 %727  ;;  %v7893_v61 = vpop.permute.xlu2 %1006 }
 0x247   : > { %11685 = vst [vmem:[#allocation134_spill] sm:$0xff] %v7893_v61  ;;  %v7897_v24 = vpop.permute.xlu0 %878 }
 0x248   : > { %794 = vst.msk [vmem:[#allocation2 + $0xd9] sm:$0x7f] %vm769_vm12, %v7891_v49 }
 0x249   : > { %11686 = vst [vmem:[#allocation135_spill] sm:$0xff] %v7897_v24 }
 0x24a   : > { %825 = vst.msk [vmem:[#allocation2 + $0xd8] sm:$0xff] %vm799_vm6, %v7491_v21 }
 0x24b   : > { %946 = vst.msk [vmem:[#allocation2 + $0xcf] sm:$0xfe] %vm920_vm7, %v7897_v24 }
 0x24c   : > { %1357 = vrot.lane.b32.xlu1 %v6906_v62, %s6241_s29  ;;  %1359 = vrot.lane.b32.xlu2 %v6942_v20, %s6241_s29 }
 0x24d   : > { %1355 = vrot.lane.b32.xlu0 %v6815_v51, %s6241_s29 }
 0x24e   : > { %v7909_v48 = vpop.permute.xlu1 %880  ;;  %v7911_v55 = vpop.permute.xlu2 %1138 }
 0x24f   : > { %11687 = vst [vmem:[#allocation136_spill] sm:$0xff] %v7909_v48  ;;  %v7915_v1 = vpop.permute.xlu0 %1002 }
 0x250   : > { %11688 = vst [vmem:[#allocation137_spill] sm:$0xff] %v7911_v55 }
 0x251   : > { %947 = vst.msk [vmem:[#allocation2 + $0xd7] sm:$0xff] %vm922_vm13, %v7909_v48 }
 0x252   : > { %11689 = vst [vmem:[#allocation138_spill] sm:$0xff] %v7915_v1 }
 0x253   : > { %1078 = vst.msk [vmem:[#allocation2 + $0xd1] sm:$0xff] %vm1050_vm9, %v7893_v61 }
 0x254   : > { %1076 = vst.msk [vmem:[#allocation2 + $0xc1] sm:$0xff] %vm1050_vm9, %v7915_v1  ;;  %1363 = vrot.lane.b32.xlu1 %v7074_v25, %s6241_s29  ;;  %1365 = vrot.lane.b32.xlu2 %v7083_v50, %s6241_s29 }
 0x255   : > { %1205 = vst.msk [vmem:[#allocation2 + $0xc0] sm:$0xff] %vm1180_vm10, %v7835_v17  ;;  %1361 = vrot.lane.b32.xlu0 %v6978_v31, %s6241_s29 }
 0x256   : > { %v7929_v48 = vpop.permute.xlu1 %1004  ;;  %v736_v24 = vpop.permute.xlu2 %735 }
 0x257   : > { %11690 = vst [vmem:[#allocation139_spill] sm:$0xff] %v7929_v48  ;;  %v7933_v61 = vpop.permute.xlu0 %1134 }
 0x258   : > { %1077 = vst.msk [vmem:[#allocation2 + $0xc9] sm:$0x7f] %vm1052_vm8, %v7929_v48 }
 0x259   : > { %11691 = vst [vmem:[#allocation140_spill] sm:$0xff] %v7933_v61 }
 0x25a   : > { %798 = vst.msk [vmem:[#allocation2 + $0xf9] sm:$0x7f] %vm769_vm12, %v736_v24 }
 0x25b   : > { %1206 = vst.msk [vmem:[#allocation2 + $0xc8] sm:$0xff] %vm1180_vm10, %v7933_v61 }
 0x25c   : > { %1369 = vrot.lane.b32.xlu1 %v7128_v63, %s6241_s29  ;;  %1371 = vrot.lane.b32.xlu2 %v7161_v46, %s6241_s29 }
 0x25d   : > { %1367 = vrot.lane.b32.xlu0 %v7116_v34, %s6241_s29 }
 0x25e   : > { %v7944_v17 = vpop.permute.xlu1 %1136  ;;  %v7946_v1 = vpop.permute.xlu2 %888 }
 0x25f   : > { %11692 = vst [vmem:[#allocation141_spill] sm:$0xff] %v7944_v17  ;;  %v7950_v24 = vpop.permute.xlu0 %731 }
 0x260   : > { %11693 = vst [vmem:[#allocation142_spill] sm:$0xff] %v7946_v1 }
 0x261   : > { %1207 = vst.msk [vmem:[#allocation2 + $0xd0] sm:$0xff] %vm1180_vm10, %v7944_v17 }
 0x262   : > { %11694 = vst [vmem:[#allocation143_spill] sm:$0xff] %v7950_v24 }
 0x263   : > { %796 = vst.msk [vmem:[#allocation2 + $0xe9] sm:$0x7f] %vm769_vm12, %v7950_v24  ;;  %vm2111_vm12 = vcmask 15360  }
 0x264   : > { %827 = vst.msk [vmem:[#allocation2 + $0xe8] sm:$0xff] %vm799_vm6, %v7572_v30  ;;  %1375 = vrot.lane.b32.xlu1 %v7261_v7, %s6241_s29  ;;  %1377 = vrot.lane.b32.xlu2 %v7306_v38, %s6241_s29 }
 0x265   : > { %1373 = vrot.lane.b32.xlu0 %v7208_v37, %s6241_s29 }
 0x266   : > { %v734_v61 = vpop.permute.xlu1 %733  ;;  %v7962_v48 = vpop.permute.xlu2 %1012 }
 0x267   : > { %11695 = vst [vmem:[#allocation144_spill] sm:$0xff] %v7962_v48  ;;  %v7965_v17 = vpop.permute.xlu0 %884 }
 0x268   : > { %797 = vst.msk [vmem:[#allocation2 + $0xf1] sm:$0xff] %vm368_vm1, %v734_v61 }
 0x269   : > { %11696 = vst [vmem:[#allocation145_spill] sm:$0xff] %v7965_v17 }
 0x26a   : > { %829 = vst.msk [vmem:[#allocation2 + $0xf8] sm:$0xff] %vm799_vm6, %v7630_v47 }
 0x26b   : > { %828 = vst.msk [vmem:[#allocation2 + $0xf0] sm:$0xff] %vm799_vm6, %v7592_v27  ;;  %vm1435_vm6 = vcmask 227520  }
 0x26c   : > { %951 = vst.msk [vmem:[#allocation2 + $0xf7] sm:$0xff] %vm922_vm13, %v7946_v1  ;;  %1381 = vrot.lane.b32.xlu1 %v7381_v56, %s6241_s29  ;;  %1383 = vrot.lane.b32.xlu2 %v7407_v15, %s6241_s29 }
 0x26d   : > { %949 = vst.msk [vmem:[#allocation2 + $0xe7] sm:$0xff] %vm922_vm13, %v7965_v17  ;;  %1379 = vrot.lane.b32.xlu0 %v7341_v58, %s6241_s29  ;;  %vm2113_vm13 = vcmask 13312  }
 0x26e   : > { %1081 = vst.msk [vmem:[#allocation2 + $0xe9] sm:$0x7f] %vm1052_vm8, %v7962_v48  ;;  %v7983_v61 = vpop.permute.xlu1 %886  ;;  %v7985_v24 = vpop.permute.xlu2 %1144 }
 0x26f   : > { %11697 = vst [vmem:[#allocation146_spill] sm:$0xff] %v7985_v24  ;;  %v7989_v17 = vpop.permute.xlu0 %1008 }
 0x270   : > { %950 = vst.msk [vmem:[#allocation2 + $0xef] sm:$0xfe] %vm920_vm7, %v7983_v61  ;;  %vm1555_vm7 = vcmask 261344  }
 0x271   : > { %11698 = vst [vmem:[#allocation147_spill] sm:$0xff] %v7989_v17 }
 0x272   : > { %1079 = vst.msk [vmem:[#allocation2 + $0xd9] sm:$0x7f] %vm1052_vm8, %v7989_v17 }
 0x273   : > { %1208 = vst.msk [vmem:[#allocation2 + $0xd8] sm:$0xff] %vm1180_vm10, %v7911_v55 }
 0x274   : > { %1387 = vrot.lane.b32.xlu1 %v7467_v33, %s6241_s29  ;;  %1389 = vrot.lane.b32.xlu2 %v7491_v21, %s6241_s29 }
 0x275   : > { %1385 = vrot.lane.b32.xlu0 %v7435_v2, %s6241_s29 }
 0x276   : > { %v8001_v48 = vpop.permute.xlu1 %1010  ;;  %v8003_v1 = vpop.permute.xlu2 %1257 }
 0x277   : > { %11699 = vst [vmem:[#allocation148_spill] sm:$0xff] %v8001_v48  ;;  %v8007_v17 = vpop.permute.xlu0 %1140 }
 0x278   : > { %11700 = vst [vmem:[#allocation149_spill] sm:$0xff] %v8003_v1 }
 0x279   : > { %1080 = vst.msk [vmem:[#allocation2 + $0xe1] sm:$0xff] %vm1050_vm9, %v8001_v48 }
 0x27a   : > { %11701 = vst [vmem:[#allocation150_spill] sm:$0xff] %v8007_v17 }
 0x27b   : > { %1333 = vst.msk [vmem:[#allocation2 + $0xaf] sm:$0xfe] %vm1309_vm11, %v8003_v1 }
 0x27c   : > { %1209 = vst.msk [vmem:[#allocation2 + $0xe0] sm:$0xff] %vm1180_vm10, %v8007_v17  ;;  %1393 = vrot.lane.b32.xlu1 %v7572_v30, %s6241_s29  ;;  %1395 = vrot.lane.b32.xlu2 %v7592_v27, %s6241_s29 }
 0x27d   : > { %1391 = vrot.lane.b32.xlu0 %v7515_v11, %s6241_s29 }
 0x27e   : > { %v8019_v55 = vpop.permute.xlu1 %1142  ;;  %v8021_v48 = vpop.permute.xlu2 %1263 }
 0x27f   : > { %11702 = vst [vmem:[#allocation151_spill] sm:$0xff] %v8019_v55  ;;  %v8025_v1 = vpop.permute.xlu0 %1253 }
 0x280   : > { %11703 = vst [vmem:[#allocation152_spill] sm:$0xff] %v8021_v48 }
 0x281   : > { %1210 = vst.msk [vmem:[#allocation2 + $0xe8] sm:$0xff] %vm1180_vm10, %v8019_v55 }
 0x282   : > { %11704 = vst [vmem:[#allocation153_spill] sm:$0xff] %v8025_v1 }
 0x283   : > { %1336 = vst.msk [vmem:[#allocation2 + $0xc7] sm:$0xff] %vm1311_vm15, %v8021_v48 }
 0x284   : > { %1331 = vst.msk [vmem:[#allocation2 + $0x9f] sm:$0xfe] %vm1309_vm11, %v8025_v1  ;;  %1399 = vrot.lane.b32.xlu1 %v7690_v54, %s6241_s29  ;;  %1401 = vrot.lane.b32.xlu2 %v7712_v19, %s6241_s29 }
 0x285   : > { %1397 = vrot.lane.b32.xlu0 %v7630_v47, %s6241_s29 }
 0x286   : > { %v8037_v17 = vpop.permute.xlu1 %1255  ;;  %v8039_v55 = vpop.permute.xlu2 %1269 }
 0x287   : > { %11705 = vst [vmem:[#allocation154_spill] sm:$0xff] %v8037_v17  ;;  %v1015_v48 = vpop.permute.xlu0 %1014 }
 0x288   : > { %11706 = vst [vmem:[#allocation155_spill] sm:$0xff] %v8039_v55 }
 0x289   : > { %1332 = vst.msk [vmem:[#allocation2 + $0xa7] sm:$0xff] %vm1311_vm15, %v8037_v17 }
 0x28a   : > { %1339 = vst.msk [vmem:[#allocation2 + $0xdf] sm:$0xfe] %vm1309_vm11, %v8039_v55 }
 0x28b   : > { %1082 = vst.msk [vmem:[#allocation2 + $0xf1] sm:$0xff] %vm1050_vm9, %v1015_v48 }
 0x28c   : > { %1211 = vst.msk [vmem:[#allocation2 + $0xf0] sm:$0xff] %vm1180_vm10, %v7985_v24  ;;  %1467 = vrot.lane.b32.xlu1 %v6630_v29, %s6242_s14  ;;  %1469 = vrot.lane.b32.xlu2 %v6642_v32, %s6242_s14 }
 0x28d   : > { %1465 = vrot.lane.b32.xlu0 %v6618_v26, %s6242_s14 }
 0x28e   : > { %v1017_v17 = vpop.permute.xlu1 %1016  ;;  %v8054_v1 = vpop.permute.xlu2 %1275 }
 0x28f   : > { %11707 = vst [vmem:[#allocation156_spill] sm:$0xff] %v8054_v1  ;;  %v8057_v55 = vpop.permute.xlu0 %1146 }
 0x290   : > { %1083 = vst.msk [vmem:[#allocation2 + $0xf9] sm:$0x7f] %vm1052_vm8, %v1017_v17  ;;  %vm1676_vm8 = vcmask 294145  }
 0x291   : > { %11708 = vst [vmem:[#allocation157_spill] sm:$0xff] %v8057_v55 }
 0x292   : > { %1212 = vst.msk [vmem:[#allocation2 + $0xf8] sm:$0xff] %vm1180_vm10, %v8057_v55  ;;  %v1743_v55 = vld [vmem:[%s11301_s3 + $0x18] sm:$0xff] }
 0x293   : > { %1342 = vst.msk [vmem:[#allocation2 + $0xf7] sm:$0xff] %vm1311_vm15, %v8054_v1 }
 0x294   : > { %1473 = vrot.lane.b32.xlu1 %v6680_v40, %s6242_s14  ;;  %1475 = vrot.lane.b32.xlu2 %v6699_v44, %s6242_s14 }
 0x295   : > { %1471 = vrot.lane.b32.xlu0 %v6661_v36, %s6242_s14 }
 0x296   : > { %v8069_v48 = vpop.permute.xlu1 %1261  ;;  %v8071_v17 = vpop.permute.xlu2 %1347 }
 0x297   : > { %11709 = vst [vmem:[#allocation158_spill] sm:$0xff] %v8069_v48  ;;  %v8075_v24 = vpop.permute.xlu0 %1259 }
 0x298   : > { %11710 = vst [vmem:[#allocation159_spill] sm:$0xff] %v8071_v17 }
 0x299   : > { %1335 = vst.msk [vmem:[#allocation2 + $0xbf] sm:$0xfe] %vm1309_vm11, %v8069_v48 }
 0x29a   : > { %11711 = vst [vmem:[#allocation160_spill] sm:$0xff] %v8075_v24 }
 0x29b   : > { %1437 = vst.msk [vmem:[#allocation2 + $0x11] sm:$0xff] %vm1433_vm2, %v8071_v17 }
 0x29c   : > { %1334 = vst.msk [vmem:[#allocation2 + $0xb7] sm:$0xff] %vm1311_vm15, %v8075_v24  ;;  %1479 = vrot.lane.b32.xlu1 %v6906_v62, %s6242_s14  ;;  %1481 = vrot.lane.b32.xlu2 %v6942_v20, %s6242_s14 }
 0x29d   : > { %1477 = vrot.lane.b32.xlu0 %v6815_v51, %s6242_s14 }
 0x29e   : > { %v8087_v1 = vpop.permute.xlu1 %1267  ;;  %v8089_v48 = vpop.permute.xlu2 %1353 }
 0x29f   : > { %11712 = vst [vmem:[#allocation161_spill] sm:$0xff] %v8087_v1  ;;  %v8093_v17 = vpop.permute.xlu0 %1265 }
 0x2a0   : > { %11713 = vst [vmem:[#allocation162_spill] sm:$0xff] %v8089_v48 }
 0x2a1   : > { %1338 = vst.msk [vmem:[#allocation2 + $0xd7] sm:$0xff] %vm1311_vm15, %v8087_v1 }
 0x2a2   : > { %11714 = vst [vmem:[#allocation163_spill] sm:$0xff] %v8093_v17 }
 0x2a3   : > { %1440 = vst.msk [vmem:[#allocation2 + $0x29] sm:$0x7f] %vm1435_vm6, %v8089_v48 }
 0x2a4   : > { %1337 = vst.msk [vmem:[#allocation2 + $0xcf] sm:$0xfe] %vm1309_vm11, %v8093_v17  ;;  %1485 = vrot.lane.b32.xlu1 %v7074_v25, %s6242_s14  ;;  %1487 = vrot.lane.b32.xlu2 %v7083_v50, %s6242_s14 }
 0x2a5   : > { %1483 = vrot.lane.b32.xlu0 %v6978_v31, %s6242_s14 }
 0x2a6   : > { %v8105_v24 = vpop.permute.xlu1 %1273  ;;  %v8107_v1 = vpop.permute.xlu2 %1359 }
 0x2a7   : > { %11715 = vst [vmem:[#allocation164_spill] sm:$0xff] %v8105_v24  ;;  %v8111_v48 = vpop.permute.xlu0 %1271 }
 0x2a8   : > { %11716 = vst [vmem:[#allocation165_spill] sm:$0xff] %v8107_v1 }
 0x2a9   : > { %1341 = vst.msk [vmem:[#allocation2 + $0xef] sm:$0xfe] %vm1309_vm11, %v8105_v24  ;;  %vm1678_vm11 = vcmask 294144  }
 0x2aa   : > { %11717 = vst [vmem:[#allocation166_spill] sm:$0xff] %v8111_v48 }
 0x2ab   : > { %1443 = vst.msk [vmem:[#allocation2 + $0x41] sm:$0xff] %vm1433_vm2, %v8107_v1 }
 0x2ac   : > { %1340 = vst.msk [vmem:[#allocation2 + $0xe7] sm:$0xff] %vm1311_vm15, %v8111_v48  ;;  %1491 = vrot.lane.b32.xlu1 %v7128_v63, %s6242_s14  ;;  %1493 = vrot.lane.b32.xlu2 %v7161_v46, %s6242_s14  ;;  %vm2227_vm15 = vcmask 30736  }
 0x2ad   : > { %1489 = vrot.lane.b32.xlu0 %v7116_v34, %s6242_s14 }
 0x2ae   : > { %v8123_v17 = vpop.permute.xlu1 %1345  ;;  %v8125_v24 = vpop.permute.xlu2 %1365 }
 0x2af   : > { %11718 = vst [vmem:[#allocation167_spill] sm:$0xff] %v8123_v17  ;;  %v8129_v1 = vpop.permute.xlu0 %1343 }
 0x2b0   : > { %11719 = vst [vmem:[#allocation168_spill] sm:$0xff] %v8125_v24 }
 0x2b1   : > { %1436 = vst.msk [vmem:[#allocation2 + $0x9] sm:$0x7f] %vm1435_vm6, %v8123_v17 }
 0x2b2   : > { %11720 = vst [vmem:[#allocation169_spill] sm:$0xff] %v8129_v1 }
 0x2b3   : > { %1446 = vst.msk [vmem:[#allocation2 + $0x59] sm:$0x7f] %vm1435_vm6, %v8125_v24 }
 0x2b4   : > { %1434 = vst.msk [vmem:[#allocation2 + $0x1] sm:$0xff] %vm1433_vm2, %v8129_v1  ;;  %1497 = vrot.lane.b32.xlu1 %v7261_v7, %s6242_s14  ;;  %1499 = vrot.lane.b32.xlu2 %v7306_v38, %s6242_s14 }
 0x2b5   : > { %1495 = vrot.lane.b32.xlu0 %v7208_v37, %s6242_s14 }
 0x2b6   : > { %v8141_v48 = vpop.permute.xlu1 %1351  ;;  %v8143_v17 = vpop.permute.xlu2 %1371 }
 0x2b7   : > { %11721 = vst [vmem:[#allocation170_spill] sm:$0xff] %v8141_v48  ;;  %v8147_v24 = vpop.permute.xlu0 %1349 }
 0x2b8   : > { %11722 = vst [vmem:[#allocation171_spill] sm:$0xff] %v8143_v17 }
 0x2b9   : > { %1439 = vst.msk [vmem:[#allocation2 + $0x21] sm:$0xff] %vm1433_vm2, %v8141_v48 }
 0x2ba   : > { %11723 = vst [vmem:[#allocation172_spill] sm:$0xff] %v8147_v24 }
 0x2bb   : > { %1449 = vst.msk [vmem:[#allocation2 + $0x71] sm:$0xff] %vm1433_vm2, %v8143_v17 }
 0x2bc   : > { %1438 = vst.msk [vmem:[#allocation2 + $0x19] sm:$0x7f] %vm1435_vm6, %v8147_v24  ;;  %1503 = vrot.lane.b32.xlu1 %v7381_v56, %s6242_s14  ;;  %1505 = vrot.lane.b32.xlu2 %v7407_v15, %s6242_s14 }
 0x2bd   : > { %1501 = vrot.lane.b32.xlu0 %v7341_v58, %s6242_s14 }
 0x2be   : > { %v8159_v1 = vpop.permute.xlu1 %1357  ;;  %v8161_v48 = vpop.permute.xlu2 %1377 }
 0x2bf   : > { %11724 = vst [vmem:[#allocation173_spill] sm:$0xff] %v8159_v1  ;;  %v8165_v17 = vpop.permute.xlu0 %1355 }
 0x2c0   : > { %11725 = vst [vmem:[#allocation174_spill] sm:$0xff] %v8161_v48 }
 0x2c1   : > { %1442 = vst.msk [vmem:[#allocation2 + $0x39] sm:$0x7f] %vm1435_vm6, %v8159_v1 }
 0x2c2   : > { %11726 = vst [vmem:[#allocation175_spill] sm:$0xff] %v8165_v17 }
 0x2c3   : > { %1452 = vst.msk [vmem:[#allocation2 + $0x89] sm:$0x7f] %vm1435_vm6, %v8161_v48 }
 0x2c4   : > { %1441 = vst.msk [vmem:[#allocation2 + $0x31] sm:$0xff] %vm1433_vm2, %v8165_v17  ;;  %1509 = vrot.lane.b32.xlu1 %v7467_v33, %s6242_s14  ;;  %1511 = vrot.lane.b32.xlu2 %v7491_v21, %s6242_s14 }
 0x2c5   : > { %1507 = vrot.lane.b32.xlu0 %v7435_v2, %s6242_s14 }
 0x2c6   : > { %v8177_v24 = vpop.permute.xlu1 %1363  ;;  %v8179_v1 = vpop.permute.xlu2 %1383 }
 0x2c7   : > { %11727 = vst [vmem:[#allocation176_spill] sm:$0xff] %v8177_v24  ;;  %v8183_v48 = vpop.permute.xlu0 %1361 }
 0x2c8   : > { %11728 = vst [vmem:[#allocation177_spill] sm:$0xff] %v8179_v1 }
 0x2c9   : > { %1445 = vst.msk [vmem:[#allocation2 + $0x51] sm:$0xff] %vm1433_vm2, %v8177_v24 }
 0x2ca   : > { %11729 = vst [vmem:[#allocation178_spill] sm:$0xff] %v8183_v48 }
 0x2cb   : > { %1455 = vst.msk [vmem:[#allocation2 + $0xa1] sm:$0xff] %vm1433_vm2, %v8179_v1 }
 0x2cc   : > { %1444 = vst.msk [vmem:[#allocation2 + $0x49] sm:$0x7f] %vm1435_vm6, %v8183_v48  ;;  %1515 = vrot.lane.b32.xlu1 %v7572_v30, %s6242_s14  ;;  %1517 = vrot.lane.b32.xlu2 %v7592_v27, %s6242_s14 }
 0x2cd   : > { %1513 = vrot.lane.b32.xlu0 %v7515_v11, %s6242_s14 }
 0x2ce   : > { %v8195_v17 = vpop.permute.xlu1 %1369  ;;  %v8197_v24 = vpop.permute.xlu2 %1389 }
 0x2cf   : > { %11730 = vst [vmem:[#allocation179_spill] sm:$0xff] %v8195_v17  ;;  %v8201_v1 = vpop.permute.xlu0 %1367 }
 0x2d0   : > { %11731 = vst [vmem:[#allocation180_spill] sm:$0xff] %v8197_v24 }
 0x2d1   : > { %1448 = vst.msk [vmem:[#allocation2 + $0x69] sm:$0x7f] %vm1435_vm6, %v8195_v17 }
 0x2d2   : > { %11732 = vst [vmem:[#allocation181_spill] sm:$0xff] %v8201_v1 }
 0x2d3   : > { %1458 = vst.msk [vmem:[#allocation2 + $0xb9] sm:$0x7f] %vm1435_vm6, %v8197_v24 }
 0x2d4   : > { %1447 = vst.msk [vmem:[#allocation2 + $0x61] sm:$0xff] %vm1433_vm2, %v8201_v1  ;;  %1521 = vrot.lane.b32.xlu1 %v7690_v54, %s6242_s14  ;;  %1523 = vrot.lane.b32.xlu2 %v7712_v19, %s6242_s14 }
 0x2d5   : > { %1519 = vrot.lane.b32.xlu0 %v7630_v47, %s6242_s14  ;;  %s6250_s14 = smov 14  }
 0x2d6   : > { %v8213_v48 = vpop.permute.xlu1 %1375  ;;  %v8215_v17 = vpop.permute.xlu2 %1395 }
 0x2d7   : > { %11733 = vst [vmem:[#allocation182_spill] sm:$0xff] %v8213_v48  ;;  %v8219_v24 = vpop.permute.xlu0 %1373 }
 0x2d8   : > { %11734 = vst [vmem:[#allocation183_spill] sm:$0xff] %v8215_v17 }
 0x2d9   : > { %1451 = vst.msk [vmem:[#allocation2 + $0x81] sm:$0xff] %vm1433_vm2, %v8213_v48 }
 0x2da   : > { %11735 = vst [vmem:[#allocation184_spill] sm:$0xff] %v8219_v24 }
 0x2db   : > { %1461 = vst.msk [vmem:[#allocation2 + $0xd1] sm:$0xff] %vm1433_vm2, %v8215_v17 }
 0x2dc   : > { %1450 = vst.msk [vmem:[#allocation2 + $0x79] sm:$0x7f] %vm1435_vm6, %v8219_v24  ;;  %1588 = vrot.lane.b32.xlu1 %v6630_v29, %s6243_s16  ;;  %1590 = vrot.lane.b32.xlu2 %v6642_v32, %s6243_s16 }
 0x2dd   : > { %1586 = vrot.lane.b32.xlu0 %v6618_v26, %s6243_s16 }
 0x2de   : > { %v8231_v1 = vpop.permute.xlu1 %1381  ;;  %v8233_v48 = vpop.permute.xlu2 %1401 }
 0x2df   : > { %11736 = vst [vmem:[#allocation185_spill] sm:$0xff] %v8231_v1  ;;  %v8237_v17 = vpop.permute.xlu0 %1379 }
 0x2e0   : > { %11737 = vst [vmem:[#allocation186_spill] sm:$0xff] %v8233_v48 }
 0x2e1   : > { %1454 = vst.msk [vmem:[#allocation2 + $0x99] sm:$0x7f] %vm1435_vm6, %v8231_v1 }
 0x2e2   : > { %11738 = vst [vmem:[#allocation187_spill] sm:$0xff] %v8237_v17 }
 0x2e3   : > { %1464 = vst.msk [vmem:[#allocation2 + $0xe9] sm:$0x7f] %vm1435_vm6, %v8233_v48 }
 0x2e4   : > { %1453 = vst.msk [vmem:[#allocation2 + $0x91] sm:$0xff] %vm1433_vm2, %v8237_v17  ;;  %1594 = vrot.lane.b32.xlu1 %v6680_v40, %s6243_s16  ;;  %1596 = vrot.lane.b32.xlu2 %v6699_v44, %s6243_s16 }
 0x2e5   : > { %1592 = vrot.lane.b32.xlu0 %v6661_v36, %s6243_s16 }
 0x2e6   : > { %v8249_v24 = vpop.permute.xlu1 %1387  ;;  %v8251_v1 = vpop.permute.xlu2 %1469 }
 0x2e7   : > { %11739 = vst [vmem:[#allocation188_spill] sm:$0xff] %v8249_v24  ;;  %v8255_v48 = vpop.permute.xlu0 %1385 }
 0x2e8   : > { %11740 = vst [vmem:[#allocation189_spill] sm:$0xff] %v8251_v1 }
 0x2e9   : > { %1457 = vst.msk [vmem:[#allocation2 + $0xb1] sm:$0xff] %vm1433_vm2, %v8249_v24 }
 0x2ea   : > { %11741 = vst [vmem:[#allocation190_spill] sm:$0xff] %v8255_v48 }
 0x2eb   : > { %1558 = vst.msk [vmem:[#allocation2 + $0x10] sm:$0xff] %vm1555_vm7, %v8251_v1 }
 0x2ec   : > { %1456 = vst.msk [vmem:[#allocation2 + $0xa9] sm:$0x7f] %vm1435_vm6, %v8255_v48  ;;  %1600 = vrot.lane.b32.xlu1 %v6906_v62, %s6243_s16  ;;  %1602 = vrot.lane.b32.xlu2 %v6942_v20, %s6243_s16 }
 0x2ed   : > { %1598 = vrot.lane.b32.xlu0 %v6815_v51, %s6243_s16 }
 0x2ee   : > { %v8267_v17 = vpop.permute.xlu1 %1393  ;;  %v8269_v24 = vpop.permute.xlu2 %1475 }
 0x2ef   : > { %11742 = vst [vmem:[#allocation191_spill] sm:$0xff] %v8267_v17  ;;  %v8273_v1 = vpop.permute.xlu0 %1391 }
 0x2f0   : > { %11743 = vst [vmem:[#allocation192_spill] sm:$0xff] %v8269_v24 }
 0x2f1   : > { %1460 = vst.msk [vmem:[#allocation2 + $0xc9] sm:$0x7f] %vm1435_vm6, %v8267_v17 }
 0x2f2   : > { %11744 = vst [vmem:[#allocation193_spill] sm:$0xff] %v8273_v1 }
 0x2f3   : > { %1561 = vst.msk [vmem:[#allocation2 + $0x28] sm:$0xff] %vm1555_vm7, %v8269_v24 }
 0x2f4   : > { %1459 = vst.msk [vmem:[#allocation2 + $0xc1] sm:$0xff] %vm1433_vm2, %v8273_v1  ;;  %1606 = vrot.lane.b32.xlu1 %v7074_v25, %s6243_s16  ;;  %1608 = vrot.lane.b32.xlu2 %v7083_v50, %s6243_s16 }
 0x2f5   : > { %1604 = vrot.lane.b32.xlu0 %v6978_v31, %s6243_s16 }
 0x2f6   : > { %v8285_v48 = vpop.permute.xlu1 %1399  ;;  %v8287_v17 = vpop.permute.xlu2 %1481 }
 0x2f7   : > { %11745 = vst [vmem:[#allocation194_spill] sm:$0xff] %v8285_v48  ;;  %v8291_v24 = vpop.permute.xlu0 %1397 }
 0x2f8   : > { %11746 = vst [vmem:[#allocation195_spill] sm:$0xff] %v8287_v17 }
 0x2f9   : > { %1463 = vst.msk [vmem:[#allocation2 + $0xe1] sm:$0xff] %vm1433_vm2, %v8285_v48  ;;  %vm2225_vm2 = vcmask 31760  }
 0x2fa   : > { %11747 = vst [vmem:[#allocation196_spill] sm:$0xff] %v8291_v24 }
 0x2fb   : > { %1564 = vst.msk [vmem:[#allocation2 + $0x40] sm:$0xff] %vm1555_vm7, %v8287_v17 }
 0x2fc   : > { %1462 = vst.msk [vmem:[#allocation2 + $0xd9] sm:$0x7f] %vm1435_vm6, %v8291_v24  ;;  %1612 = vrot.lane.b32.xlu1 %v7128_v63, %s6243_s16  ;;  %1614 = vrot.lane.b32.xlu2 %v7161_v46, %s6243_s16  ;;  %vm2255_vm6 = vcmask 48160  }
 0x2fd   : > { %1610 = vrot.lane.b32.xlu0 %v7116_v34, %s6243_s16 }
 0x2fe   : > { %v8303_v1 = vpop.permute.xlu1 %1467  ;;  %v8305_v48 = vpop.permute.xlu2 %1487 }
 0x2ff   : > { %11748 = vst [vmem:[#allocation197_spill] sm:$0xff] %v8303_v1  ;;  %v8309_v17 = vpop.permute.xlu0 %1465 }
 0x300   : > { %11749 = vst [vmem:[#allocation198_spill] sm:$0xff] %v8305_v48 }
 0x301   : > { %1557 = vst.msk [vmem:[#allocation2 + $0x8] sm:$0xff] %vm1555_vm7, %v8303_v1 }
 0x302   : > { %11750 = vst [vmem:[#allocation199_spill] sm:$0xff] %v8309_v17 }
 0x303   : > { %1567 = vst.msk [vmem:[#allocation2 + $0x58] sm:$0xff] %vm1555_vm7, %v8305_v48 }
 0x304   : > { %1556 = vst.msk [vmem:[#allocation2] sm:$0xff] %vm1555_vm7, %v8309_v17  ;;  %1618 = vrot.lane.b32.xlu1 %v7261_v7, %s6243_s16  ;;  %1620 = vrot.lane.b32.xlu2 %v7306_v38, %s6243_s16 }
 0x305   : > { %1616 = vrot.lane.b32.xlu0 %v7208_v37, %s6243_s16 }
 0x306   : > { %v8321_v24 = vpop.permute.xlu1 %1473  ;;  %v8323_v1 = vpop.permute.xlu2 %1493 }
 0x307   : > { %11751 = vst [vmem:[#allocation200_spill] sm:$0xff] %v8321_v24  ;;  %v8327_v48 = vpop.permute.xlu0 %1471 }
 0x308   : > { %11752 = vst [vmem:[#allocation201_spill] sm:$0xff] %v8323_v1 }
 0x309   : > { %1560 = vst.msk [vmem:[#allocation2 + $0x20] sm:$0xff] %vm1555_vm7, %v8321_v24 }
 0x30a   : > { %11753 = vst [vmem:[#allocation202_spill] sm:$0xff] %v8327_v48 }
 0x30b   : > { %1570 = vst.msk [vmem:[#allocation2 + $0x70] sm:$0xff] %vm1555_vm7, %v8323_v1 }
 0x30c   : > { %1559 = vst.msk [vmem:[#allocation2 + $0x18] sm:$0xff] %vm1555_vm7, %v8327_v48  ;;  %1624 = vrot.lane.b32.xlu1 %v7381_v56, %s6243_s16  ;;  %1626 = vrot.lane.b32.xlu2 %v7407_v15, %s6243_s16 }
 0x30d   : > { %1622 = vrot.lane.b32.xlu0 %v7341_v58, %s6243_s16 }
 0x30e   : > { %v8339_v17 = vpop.permute.xlu1 %1479  ;;  %v8341_v24 = vpop.permute.xlu2 %1499 }
 0x30f   : > { %11754 = vst [vmem:[#allocation203_spill] sm:$0xff] %v8339_v17  ;;  %v8345_v1 = vpop.permute.xlu0 %1477 }
 0x310   : > { %11755 = vst [vmem:[#allocation204_spill] sm:$0xff] %v8341_v24 }
 0x311   : > { %1563 = vst.msk [vmem:[#allocation2 + $0x38] sm:$0xff] %vm1555_vm7, %v8339_v17 }
 0x312   : > { %11756 = vst [vmem:[#allocation205_spill] sm:$0xff] %v8345_v1 }
 0x313   : > { %1573 = vst.msk [vmem:[#allocation2 + $0x88] sm:$0xff] %vm1555_vm7, %v8341_v24 }
 0x314   : > { %1562 = vst.msk [vmem:[#allocation2 + $0x30] sm:$0xff] %vm1555_vm7, %v8345_v1  ;;  %1630 = vrot.lane.b32.xlu1 %v7467_v33, %s6243_s16  ;;  %1632 = vrot.lane.b32.xlu2 %v7491_v21, %s6243_s16 }
 0x315   : > { %1628 = vrot.lane.b32.xlu0 %v7435_v2, %s6243_s16 }
 0x316   : > { %v8357_v48 = vpop.permute.xlu1 %1485  ;;  %v8359_v17 = vpop.permute.xlu2 %1505 }
 0x317   : > { %11757 = vst [vmem:[#allocation206_spill] sm:$0xff] %v8357_v48  ;;  %v8363_v24 = vpop.permute.xlu0 %1483 }
 0x318   : > { %11758 = vst [vmem:[#allocation207_spill] sm:$0xff] %v8359_v17 }
 0x319   : > { %1566 = vst.msk [vmem:[#allocation2 + $0x50] sm:$0xff] %vm1555_vm7, %v8357_v48 }
 0x31a   : > { %11759 = vst [vmem:[#allocation208_spill] sm:$0xff] %v8363_v24 }
 0x31b   : > { %1576 = vst.msk [vmem:[#allocation2 + $0xa0] sm:$0xff] %vm1555_vm7, %v8359_v17 }
 0x31c   : > { %1565 = vst.msk [vmem:[#allocation2 + $0x48] sm:$0xff] %vm1555_vm7, %v8363_v24  ;;  %1636 = vrot.lane.b32.xlu1 %v7572_v30, %s6243_s16  ;;  %1638 = vrot.lane.b32.xlu2 %v7592_v27, %s6243_s16 }
 0x31d   : > { %1634 = vrot.lane.b32.xlu0 %v7515_v11, %s6243_s16 }
 0x31e   : > { %v8375_v1 = vpop.permute.xlu1 %1491  ;;  %v8377_v48 = vpop.permute.xlu2 %1511 }
 0x31f   : > { %11760 = vst [vmem:[#allocation209_spill] sm:$0xff] %v8375_v1  ;;  %v8381_v17 = vpop.permute.xlu0 %1489 }
 0x320   : > { %11761 = vst [vmem:[#allocation210_spill] sm:$0xff] %v8377_v48 }
 0x321   : > { %1569 = vst.msk [vmem:[#allocation2 + $0x68] sm:$0xff] %vm1555_vm7, %v8375_v1 }
 0x322   : > { %11762 = vst [vmem:[#allocation211_spill] sm:$0xff] %v8381_v17 }
 0x323   : > { %1579 = vst.msk [vmem:[#allocation2 + $0xb8] sm:$0xff] %vm1555_vm7, %v8377_v48 }
 0x324   : > { %1568 = vst.msk [vmem:[#allocation2 + $0x60] sm:$0xff] %vm1555_vm7, %v8381_v17  ;;  %1642 = vrot.lane.b32.xlu1 %v7690_v54, %s6243_s16  ;;  %1644 = vrot.lane.b32.xlu2 %v7712_v19, %s6243_s16 }
 0x325   : > { %1640 = vrot.lane.b32.xlu0 %v7630_v47, %s6243_s16  ;;  %s6251_s16 = smov 18  }
 0x326   : > { %v8393_v24 = vpop.permute.xlu1 %1497  ;;  %v8395_v1 = vpop.permute.xlu2 %1517 }
 0x327   : > { %11763 = vst [vmem:[#allocation212_spill] sm:$0xff] %v8393_v24  ;;  %v8399_v48 = vpop.permute.xlu0 %1495 }
 0x328   : > { %11764 = vst [vmem:[#allocation213_spill] sm:$0xff] %v8395_v1 }
 0x329   : > { %1572 = vst.msk [vmem:[#allocation2 + $0x80] sm:$0xff] %vm1555_vm7, %v8393_v24  ;;  %v1744_v24 = vld [vmem:[%s11301_s3 + $0x20] sm:$0xf] }
 0x32a   : > { %11765 = vst [vmem:[#allocation214_spill] sm:$0xff] %v8399_v48  ;;  %5992 = vmatpush.msk.msra.mxu1 %vm465_vm0, %v1744_v24  ;;  %v1742_v24 = vld [vmem:[%s11301_s3 + $0x10] sm:$0xff] }
 0x32b   : > { %1582 = vst.msk [vmem:[#allocation2 + $0xd0] sm:$0xff] %vm1555_vm7, %v8395_v1 }
 0x32c   : > { %1571 = vst.msk [vmem:[#allocation2 + $0x78] sm:$0xff] %vm1555_vm7, %v8399_v48  ;;  %2028 = vrot.lane.b32.xlu1 %v6599_v22, %s6244_s23  ;;  %2030 = vrot.lane.b32.xlu2 %v6618_v26, %s6244_s23 }
 0x32d   : > { %2026 = vrot.lane.b32.xlu0 %v6578_v18, %s6244_s23  ;;  %1860 = vmatpush.msra.mxu1 %v1743_v55 }
 0x32e   : > { %v8414_v17 = vpop.permute.xlu1 %1503  ;;  %v8416_v1 = vpop.permute.xlu2 %1523 }
 0x32f   : > { %11766 = vst [vmem:[#allocation215_spill] sm:$0xff] %v8414_v17  ;;  %v8421_v48 = vpop.permute.xlu0 %1501  ;;  %1861 = vmatpush.msra.mxu1 %v1742_v24 }
 0x330   : > { %11767 = vst [vmem:[#allocation216_spill] sm:$0xff] %v8416_v1 }
 0x331   : > { %1575 = vst.msk [vmem:[#allocation2 + $0x98] sm:$0xff] %vm1555_vm7, %v8414_v17 }
 0x332   : > { %11768 = vst [vmem:[#allocation217_spill] sm:$0xff] %v8421_v48 }
 0x333   : > { %1585 = vst.msk [vmem:[#allocation2 + $0xe8] sm:$0xff] %vm1555_vm7, %v8416_v1  ;;  %v1741_v1 = vld [vmem:[%s11301_s3 + $0x8] sm:$0xff] }
 0x334   : > { %1574 = vst.msk [vmem:[#allocation2 + $0x90] sm:$0xff] %vm1555_vm7, %v8421_v48  ;;  %2034 = vrot.lane.b32.xlu1 %v6642_v32, %s6244_s23  ;;  %2036 = vrot.lane.b32.xlu2 %v6661_v36, %s6244_s23  ;;  %v1740_v48 = vld [vmem:[%s11301_s3] sm:$0xff] }
 0x335   : > { %2032 = vrot.lane.b32.xlu0 %v6630_v29, %s6244_s23  ;;  %1862 = vmatpush.msra.mxu1 %v1741_v1 }
 0x336   : > { %v8442_v55 = vpop.permute.xlu1 %1509  ;;  %v8444_v17 = vpop.permute.xlu2 %1590 }
 0x337   : > { %11769 = vst [vmem:[#allocation218_spill] sm:$0xff] %v8442_v55  ;;  %v8451_v54 = vpop.permute.xlu0 %1507  ;;  %1863 = vmatpush.msra.mxu1 %v1740_v48 }
 0x338   : > { %11770 = vst [vmem:[#allocation219_spill] sm:$0xff] %v8444_v17 }
 0x339   : > { %1578 = vst.msk [vmem:[#allocation2 + $0xb0] sm:$0xff] %vm1555_vm7, %v8442_v55 }
 0x33a   : > { %11771 = vst [vmem:[#allocation220_spill] sm:$0xff] %v8451_v54 }
 0x33b   : > { %1680 = vst.msk [vmem:[#allocation2 + $0xf] sm:$0xfe] %vm1676_vm8, %v8444_v17 }
 0x33c   : > { %1577 = vst.msk [vmem:[#allocation2 + $0xa8] sm:$0xff] %vm1555_vm7, %v8451_v54  ;;  %2040 = vrot.lane.b32.xlu1 %v6699_v44, %s6244_s23  ;;  %2042 = vrot.lane.b32.xlu2 %v6815_v51, %s6244_s23 }
 0x33d   : > { %2038 = vrot.lane.b32.xlu0 %v6680_v40, %s6244_s23 }
 0x33e   : > { %v8463_v24 = vpop.permute.xlu1 %1515  ;;  %v8465_v1 = vpop.permute.xlu2 %1596 }
 0x33f   : > { %11772 = vst [vmem:[#allocation221_spill] sm:$0xff] %v8463_v24  ;;  %v8469_v17 = vpop.permute.xlu0 %1513 }
 0x340   : > { %11773 = vst [vmem:[#allocation222_spill] sm:$0xff] %v8465_v1 }
 0x341   : > { %1581 = vst.msk [vmem:[#allocation2 + $0xc8] sm:$0xff] %vm1555_vm7, %v8463_v24 }
 0x342   : > { %11774 = vst [vmem:[#allocation223_spill] sm:$0xff] %v8469_v17 }
 0x343   : > { %1683 = vst.msk [vmem:[#allocation2 + $0x27] sm:$0xff] %vm1678_vm11, %v8465_v1 }
 0x344   : > { %1580 = vst.msk [vmem:[#allocation2 + $0xc0] sm:$0xff] %vm1555_vm7, %v8469_v17  ;;  %2046 = vrot.lane.b32.xlu1 %v6942_v20, %s6244_s23  ;;  %2048 = vrot.lane.b32.xlu2 %v6978_v31, %s6244_s23 }
 0x345   : > { %2044 = vrot.lane.b32.xlu0 %v6906_v62, %s6244_s23 }
 0x346   : > { %v8481_v48 = vpop.permute.xlu1 %1521  ;;  %v8483_v24 = vpop.permute.xlu2 %1602 }
 0x347   : > { %11775 = vst [vmem:[#allocation224_spill] sm:$0xff] %v8481_v48  ;;  %v8487_v1 = vpop.permute.xlu0 %1519 }
 0x348   : > { %11776 = vst [vmem:[#allocation225_spill] sm:$0xff] %v8483_v24 }
 0x349   : > { %1584 = vst.msk [vmem:[#allocation2 + $0xe0] sm:$0xff] %vm1555_vm7, %v8481_v48 }
 0x34a   : > { %11777 = vst [vmem:[#allocation226_spill] sm:$0xff] %v8487_v1 }
 0x34b   : > { %1686 = vst.msk [vmem:[#allocation2 + $0x3f] sm:$0xfe] %vm1676_vm8, %v8483_v24 }
 0x34c   : > { %1583 = vst.msk [vmem:[#allocation2 + $0xd8] sm:$0xff] %vm1555_vm7, %v8487_v1  ;;  %2052 = vrot.lane.b32.xlu1 %v7083_v50, %s6244_s23  ;;  %2054 = vrot.lane.b32.xlu2 %v7116_v34, %s6244_s23  ;;  %vm2368_vm7 = vcmask 64561  }
 0x34d   : > { %2050 = vrot.lane.b32.xlu0 %v7074_v25, %s6244_s23 }
 0x34e   : > { %v8499_v17 = vpop.permute.xlu1 %1588  ;;  %v8501_v48 = vpop.permute.xlu2 %1608 }
 0x34f   : > { %11778 = vst [vmem:[#allocation227_spill] sm:$0xff] %v8499_v17  ;;  %v8505_v24 = vpop.permute.xlu0 %1586 }
 0x350   : > { %11779 = vst [vmem:[#allocation228_spill] sm:$0xff] %v8501_v48 }
 0x351   : > { %1679 = vst.msk [vmem:[#allocation2 + $0x7] sm:$0xff] %vm1678_vm11, %v8499_v17 }
 0x352   : > { %11780 = vst [vmem:[#allocation229_spill] sm:$0xff] %v8505_v24 }
 0x353   : > { %1689 = vst.msk [vmem:[#allocation2 + $0x57] sm:$0xff] %vm1678_vm11, %v8501_v48 }
 0x354   : > { %1677 = vst.msk [vmem:[#allocation2 - $0x1] sm:$0xfe] %vm1676_vm8, %v8505_v24  ;;  %2058 = vrot.lane.b32.xlu1 %v7161_v46, %s6244_s23  ;;  %2060 = vrot.lane.b32.xlu2 %v7208_v37, %s6244_s23 }
 0x355   : > { %2056 = vrot.lane.b32.xlu0 %v7128_v63, %s6244_s23 }
 0x356   : > { %v8517_v1 = vpop.permute.xlu1 %1594  ;;  %v8519_v17 = vpop.permute.xlu2 %1614 }
 0x357   : > { %11781 = vst [vmem:[#allocation230_spill] sm:$0xff] %v8517_v1  ;;  %v8523_v48 = vpop.permute.xlu0 %1592 }
 0x358   : > { %11782 = vst [vmem:[#allocation231_spill] sm:$0xff] %v8519_v17 }
 0x359   : > { %1682 = vst.msk [vmem:[#allocation2 + $0x1f] sm:$0xfe] %vm1676_vm8, %v8517_v1 }
 0x35a   : > { %11783 = vst [vmem:[#allocation232_spill] sm:$0xff] %v8523_v48 }
 0x35b   : > { %1692 = vst.msk [vmem:[#allocation2 + $0x6f] sm:$0xfe] %vm1676_vm8, %v8519_v17  ;;  %v1708_v24 = vld [vmem:[#allocation2] sm:$0xff] }
 0x35c   : > { %1681 = vst.msk [vmem:[#allocation2 + $0x17] sm:$0xff] %vm1678_vm11, %v8523_v48  ;;  %5993 = vmatmul.msk.f32.vlgmr.msra.gmra.mxu1 %vm614_vm5, %v1708_v24  ;;  %2064 = vrot.lane.b32.xlu1 %v7306_v38, %s6244_s23  ;;  %v1709_v24 = vld [vmem:[#allocation2 + $0x8] sm:$0xff] }
 0x35d   : > { %2066 = vrot.lane.b32.xlu2 %v7341_v58, %s6244_s23  ;;  %2062 = vrot.lane.b32.xlu0 %v7261_v7, %s6244_s23 }
 0x35e   : > { %v8536_v1 = vpop.permute.xlu1 %1600  ;;  %v8538_v54 = vpop.permute.xlu2 %1620 }
 0x35f   : > { %11784 = vst [vmem:[#allocation233_spill] sm:$0xff] %v8536_v1  ;;  %v8542_v17 = vpop.permute.xlu0 %1598 }
 0x360   : > { %11785 = vst [vmem:[#allocation234_spill] sm:$0xff] %v8538_v54 }
 0x361   : > { %1685 = vst.msk [vmem:[#allocation2 + $0x37] sm:$0xff] %vm1678_vm11, %v8536_v1 }
 0x362   : > { %11786 = vst [vmem:[#allocation235_spill] sm:$0xff] %v8542_v17 }
 0x363   : > { %1695 = vst.msk [vmem:[#allocation2 + $0x87] sm:$0xff] %vm1678_vm11, %v8538_v54 }
 0x364   : > { %1684 = vst.msk [vmem:[#allocation2 + $0x2f] sm:$0xfe] %vm1676_vm8, %v8542_v17  ;;  %5994 = vmatmul.msk.f32.gmra.mxu1 %vm614_vm5, %v1709_v24  ;;  %2070 = vrot.lane.b32.xlu1 %v7407_v15, %s6244_s23  ;;  %v1710_v24 = vld [vmem:[#allocation2 + $0x10] sm:$0xff] }
 0x365   : > { %2072 = vrot.lane.b32.xlu2 %v7435_v2, %s6244_s23  ;;  %2068 = vrot.lane.b32.xlu0 %v7381_v56, %s6244_s23 }
 0x366   : > { %v8555_v1 = vpop.permute.xlu1 %1606  ;;  %v8557_v48 = vpop.permute.xlu2 %1626 }
 0x367   : > { %11787 = vst [vmem:[#allocation236_spill] sm:$0xff] %v8555_v1  ;;  %v8561_v54 = vpop.permute.xlu0 %1604 }
 0x368   : > { %11788 = vst [vmem:[#allocation237_spill] sm:$0xff] %v8557_v48 }
 0x369   : > { %1688 = vst.msk [vmem:[#allocation2 + $0x4f] sm:$0xfe] %vm1676_vm8, %v8555_v1 }
 0x36a   : > { %11789 = vst [vmem:[#allocation238_spill] sm:$0xff] %v8561_v54 }
 0x36b   : > { %1698 = vst.msk [vmem:[#allocation2 + $0x9f] sm:$0xfe] %vm1676_vm8, %v8557_v48 }
 0x36c   : > { %1687 = vst.msk [vmem:[#allocation2 + $0x47] sm:$0xff] %vm1678_vm11, %v8561_v54  ;;  %5995 = vmatmul.msk.f32.gmra.mxu1 %vm614_vm5, %v1710_v24  ;;  %2076 = vrot.lane.b32.xlu1 %v7491_v21, %s6244_s23  ;;  %v1711_v24 = vld [vmem:[#allocation2 + $0x18] sm:$0xff] }
 0x36d   : > { %2078 = vrot.lane.b32.xlu2 %v7515_v11, %s6244_s23  ;;  %2074 = vrot.lane.b32.xlu0 %v7467_v33, %s6244_s23 }
 0x36e   : > { %v8574_v1 = vpop.permute.xlu1 %1612  ;;  %v8576_v17 = vpop.permute.xlu2 %1632 }
 0x36f   : > { %11790 = vst [vmem:[#allocation239_spill] sm:$0xff] %v8574_v1  ;;  %v8580_v48 = vpop.permute.xlu0 %1610 }
 0x370   : > { %11791 = vst [vmem:[#allocation240_spill] sm:$0xff] %v8576_v17 }
 0x371   : > { %1691 = vst.msk [vmem:[#allocation2 + $0x67] sm:$0xff] %vm1678_vm11, %v8574_v1 }
 0x372   : > { %11792 = vst [vmem:[#allocation241_spill] sm:$0xff] %v8580_v48 }
 0x373   : > { %1701 = vst.msk [vmem:[#allocation2 + $0xb7] sm:$0xff] %vm1678_vm11, %v8576_v17  ;;  %v1717_v55 = vld [vmem:[#allocation2 + $0x48] sm:$0xff] }
 0x374   : > { %1690 = vst.msk [vmem:[#allocation2 + $0x5f] sm:$0xfe] %vm1676_vm8, %v8580_v48  ;;  %5996 = vmatmul.msk.f32.gmra.mxu1 %vm614_vm5, %v1711_v24  ;;  %2141 = vrot.lane.b32.xlu1 %v6578_v18, %s6245_s28  ;;  %v1712_v24 = vld [vmem:[#allocation2 + $0x20] sm:$0xff] }
 0x375   : > { %2143 = vrot.lane.b32.xlu2 %v6599_v22, %s6245_s28  ;;  %2080 = vrot.lane.b32.xlu0 %v7572_v30, %s6244_s23  ;;  %s6247_s23 = smov 2  }
 0x376   : > { %v8593_v1 = vpop.permute.xlu1 %1618  ;;  %v8595_v54 = vpop.permute.xlu2 %1638 }
 0x377   : > { %11793 = vst [vmem:[#allocation242_spill] sm:$0xff] %v8593_v1  ;;  %v8599_v17 = vpop.permute.xlu0 %1616 }
 0x378   : > { %11794 = vst [vmem:[#allocation243_spill] sm:$0xff] %v8595_v54 }
 0x379   : > { %1694 = vst.msk [vmem:[#allocation2 + $0x7f] sm:$0xfe] %vm1676_vm8, %v8593_v1 }
 0x37a   : > { %11795 = vst [vmem:[#allocation244_spill] sm:$0xff] %v8599_v17 }
 0x37b   : > { %1704 = vst.msk [vmem:[#allocation2 + $0xcf] sm:$0xfe] %vm1676_vm8, %v8595_v54 }
 0x37c   : > { %1693 = vst.msk [vmem:[#allocation2 + $0x77] sm:$0xff] %vm1678_vm11, %v8599_v17  ;;  %5997 = vmatmul.msk.f32.gmra.mxu1 %vm614_vm5, %v1712_v24  ;;  %2147 = vrot.lane.b32.xlu1 %v6630_v29, %s6245_s28  ;;  %v1713_v24 = vld [vmem:[#allocation2 + $0x28] sm:$0xff] }
 0x37d   : > { %2149 = vrot.lane.b32.xlu2 %v6642_v32, %s6245_s28  ;;  %2145 = vrot.lane.b32.xlu0 %v6618_v26, %s6245_s28 }
 0x37e   : > { %v8612_v1 = vpop.permute.xlu1 %1624  ;;  %v8614_v48 = vpop.permute.xlu2 %1644 }
 0x37f   : > { %11796 = vst [vmem:[#allocation245_spill] sm:$0xff] %v8612_v1  ;;  %v8618_v54 = vpop.permute.xlu0 %1622 }
 0x380   : > { %11797 = vst [vmem:[#allocation246_spill] sm:$0xff] %v8614_v48 }
 0x381   : > { %1697 = vst.msk [vmem:[#allocation2 + $0x97] sm:$0xff] %vm1678_vm11, %v8612_v1 }
 0x382   : > { %11798 = vst [vmem:[#allocation247_spill] sm:$0xff] %v8618_v54 }
 0x383   : > { %1707 = vst.msk [vmem:[#allocation2 + $0xe7] sm:$0xff] %vm1678_vm11, %v8614_v48 }
 0x384   : > { %1696 = vst.msk [vmem:[#allocation2 + $0x8f] sm:$0xfe] %vm1676_vm8, %v8618_v54  ;;  %5998 = vmatmul.msk.f32.gmra.mxu1 %vm614_vm5, %v1713_v24  ;;  %2153 = vrot.lane.b32.xlu1 %v6680_v40, %s6245_s28  ;;  %v1714_v24 = vld [vmem:[#allocation2 + $0x30] sm:$0xff] }
 0x385   : > { %2155 = vrot.lane.b32.xlu2 %v6699_v44, %s6245_s28  ;;  %2151 = vrot.lane.b32.xlu0 %v6661_v36, %s6245_s28 }
 0x386   : > { %v8631_v1 = vpop.permute.xlu1 %1630  ;;  %v2031_v17 = vpop.permute.xlu2 %2030 }
 0x387   : > { %11799 = vst [vmem:[#allocation248_spill] sm:$0xff] %v8631_v1  ;;  %v8635_v48 = vpop.permute.xlu0 %1628 }
 0x388   : > { %1700 = vst.msk [vmem:[#allocation2 + $0xaf] sm:$0xfe] %vm1676_vm8, %v8631_v1 }
 0x389   : > { %11800 = vst [vmem:[#allocation249_spill] sm:$0xff] %v8635_v48 }
 0x38a   : > { %2115 = vst.msk [vmem:[#allocation3 + $0x32] sm:$0xff] %vm2111_vm12, %v2031_v17 }
 0x38b   : > { %1699 = vst.msk [vmem:[#allocation2 + $0xa7] sm:$0xff] %vm1678_vm11, %v8635_v48 }
 0x38c   : > { %5999 = vmatmul.msk.f32.gmra.mxu1 %vm614_vm5, %v1714_v24  ;;  %2159 = vrot.lane.b32.xlu1 %v6906_v62, %s6245_s28  ;;  %v1715_v24 = vld [vmem:[#allocation2 + $0x38] sm:$0xff] }
 0x38d   : > { %2161 = vrot.lane.b32.xlu2 %v6942_v20, %s6245_s28  ;;  %2157 = vrot.lane.b32.xlu0 %v6815_v51, %s6245_s28 }
 0x38e   : > { %v8647_v1 = vpop.permute.xlu1 %1636  ;;  %v2037_v54 = vpop.permute.xlu2 %2036 }
 0x38f   : > { %11801 = vst [vmem:[#allocation250_spill] sm:$0xff] %v8647_v1  ;;  %v8651_v17 = vpop.permute.xlu0 %1634 }
 0x390   : > { %1703 = vst.msk [vmem:[#allocation2 + $0xc7] sm:$0xff] %vm1678_vm11, %v8647_v1 }
 0x391   : > { %11802 = vst [vmem:[#allocation251_spill] sm:$0xff] %v8651_v17 }
 0x392   : > { %2118 = vst.msk [vmem:[#allocation3 + $0x4a] sm:$0x3f] %vm2113_vm13, %v2037_v54 }
 0x393   : > { %1702 = vst.msk [vmem:[#allocation2 + $0xbf] sm:$0xfe] %vm1676_vm8, %v8651_v17 }
 0x394   : > { %6000 = vmatmul.msk.f32.gmra.mxu1 %vm614_vm5, %v1715_v24  ;;  %2165 = vrot.lane.b32.xlu1 %v7074_v25, %s6245_s28  ;;  %v1716_v24 = vld [vmem:[#allocation2 + $0x40] sm:$0xff] }
 0x395   : > { %2167 = vrot.lane.b32.xlu2 %v7083_v50, %s6245_s28  ;;  %2163 = vrot.lane.b32.xlu0 %v6978_v31, %s6245_s28 }
 0x396   : > { %v8663_v1 = vpop.permute.xlu1 %1642  ;;  %v2043_v48 = vpop.permute.xlu2 %2042 }
 0x397   : > { %11803 = vst [vmem:[#allocation252_spill] sm:$0xff] %v8663_v1  ;;  %v8667_v54 = vpop.permute.xlu0 %1640 }
 0x398   : > { %1706 = vst.msk [vmem:[#allocation2 + $0xdf] sm:$0xfe] %vm1676_vm8, %v8663_v1  ;;  %vm2398_vm8 = vcmask 80962  }
 0x399   : > { %11804 = vst [vmem:[#allocation253_spill] sm:$0xff] %v8667_v54 }
 0x39a   : > { %2121 = vst.msk [vmem:[#allocation3 + $0x62] sm:$0xff] %vm2111_vm12, %v2043_v48 }
 0x39b   : > { %1705 = vst.msk [vmem:[#allocation2 + $0xd7] sm:$0xff] %vm1678_vm11, %v8667_v54  ;;  %vm2370_vm11 = vcmask 64560  }
 0x39c   : > { %6001 = vmatmul.msk.f32.gmra.mxu1 %vm614_vm5, %v1716_v24  ;;  %2171 = vrot.lane.b32.xlu1 %v7128_v63, %s6245_s28 }
 0x39d   : > { %2173 = vrot.lane.b32.xlu2 %v7161_v46, %s6245_s28  ;;  %2169 = vrot.lane.b32.xlu0 %v7116_v34, %s6245_s28 }
 0x39e   : > { %v2029_v1 = vpop.permute.xlu1 %2028  ;;  %v2049_v17 = vpop.permute.xlu2 %2048 }
 0x39f   : > { %2114 = vst.msk [vmem:[#allocation3 + $0x2a] sm:$0x3f] %vm2113_vm13, %v2029_v1  ;;  %v2027_v48 = vpop.permute.xlu0 %2026 }
 0x3a0   : > { %2124 = vst.msk [vmem:[#allocation3 + $0x7a] sm:$0x3f] %vm2113_vm13, %v2049_v17  ;;  %v1718_v17 = vld [vmem:[#allocation2 + $0x50] sm:$0xff] }
 0x3a1   : > { %2112 = vst.msk [vmem:[#allocation3 + $0x22] sm:$0xff] %vm2111_vm12, %v2027_v48 }
 0x3a4   : > { %6002 = vmatmul.msk.f32.gmra.mxu1 %vm614_vm5, %v1717_v55  ;;  %2177 = vrot.lane.b32.xlu1 %v7261_v7, %s6245_s28 }
 0x3a5   : > { %2179 = vrot.lane.b32.xlu2 %v7306_v38, %s6245_s28  ;;  %2175 = vrot.lane.b32.xlu0 %v7208_v37, %s6245_s28 }
 0x3a6   : > { %v2035_v24 = vpop.permute.xlu1 %2034  ;;  %v2055_v54 = vpop.permute.xlu2 %2054 }
 0x3a7   : > { %2117 = vst.msk [vmem:[#allocation3 + $0x42] sm:$0xff] %vm2111_vm12, %v2035_v24  ;;  %v2033_v1 = vpop.permute.xlu0 %2032 }
 0x3a8   : > { %2127 = vst.msk [vmem:[#allocation3 + $0x92] sm:$0xff] %vm2111_vm12, %v2055_v54  ;;  %v1719_v54 = vld [vmem:[#allocation2 + $0x58] sm:$0xff] }
 0x3a9   : > { %2116 = vst.msk [vmem:[#allocation3 + $0x3a] sm:$0x3f] %vm2113_vm13, %v2033_v1 }
 0x3ac   : > { %6003 = vmatmul.msk.f32.gmra.mxu1 %vm614_vm5, %v1718_v17  ;;  %2183 = vrot.lane.b32.xlu1 %v7381_v56, %s6245_s28 }
 0x3ad   : > { %2185 = vrot.lane.b32.xlu2 %v7407_v15, %s6245_s28  ;;  %2181 = vrot.lane.b32.xlu0 %v7341_v58, %s6245_s28 }
 0x3ae   : > { %v2041_v55 = vpop.permute.xlu1 %2040  ;;  %v2061_v48 = vpop.permute.xlu2 %2060 }
 0x3af   : > { %2120 = vst.msk [vmem:[#allocation3 + $0x5a] sm:$0x3f] %vm2113_vm13, %v2041_v55  ;;  %v2039_v24 = vpop.permute.xlu0 %2038 }
 0x3b0   : > { %2130 = vst.msk [vmem:[#allocation3 + $0xaa] sm:$0x3f] %vm2113_vm13, %v2061_v48  ;;  %v1720_v48 = vld [vmem:[#allocation2 + $0x60] sm:$0xff] }
 0x3b1   : > { %2119 = vst.msk [vmem:[#allocation3 + $0x52] sm:$0xff] %vm2111_vm12, %v2039_v24 }
 0x3b4   : > { %6004 = vmatmul.msk.f32.gmra.mxu1 %vm614_vm5, %v1719_v54  ;;  %2189 = vrot.lane.b32.xlu1 %v7467_v33, %s6245_s28 }
 0x3b5   : > { %2191 = vrot.lane.b32.xlu2 %v7491_v21, %s6245_s28  ;;  %2187 = vrot.lane.b32.xlu0 %v7435_v2, %s6245_s28 }
 0x3b6   : > { %v2047_v1 = vpop.permute.xlu1 %2046 }
 0x3b7   : > { %v2067_v17 = vpop.permute.xlu2 %2066  ;;  %2123 = vst.msk [vmem:[#allocation3 + $0x72] sm:$0xff] %vm2111_vm12, %v2047_v1  ;;  %v2045_v55 = vpop.permute.xlu0 %2044 }
 0x3b8   : > { %2133 = vst.msk [vmem:[#allocation3 + $0xc2] sm:$0xff] %vm2111_vm12, %v2067_v17  ;;  %v1721_v17 = vld [vmem:[#allocation2 + $0x68] sm:$0xff] }
 0x3b9   : > { %2122 = vst.msk [vmem:[#allocation3 + $0x6a] sm:$0x3f] %vm2113_vm13, %v2045_v55 }
 0x3bc   : > { %6005 = vmatmul.msk.f32.gmra.mxu1 %vm614_vm5, %v1720_v48  ;;  %2195 = vrot.lane.b32.xlu1 %v7572_v30, %s6245_s28 }
 0x3bd   : > { %2284 = vrot.lane.b32.xlu2 %v6578_v18, %s6246_s25  ;;  %2193 = vrot.lane.b32.xlu0 %v7515_v11, %s6245_s28  ;;  %s6253_s28 = smov 26  }
 0x3be   : > { %v2053_v24 = vpop.permute.xlu1 %2052 }
 0x3bf   : > { %v2073_v54 = vpop.permute.xlu2 %2072  ;;  %2126 = vst.msk [vmem:[#allocation3 + $0x8a] sm:$0x3f] %vm2113_vm13, %v2053_v24  ;;  %v2051_v1 = vpop.permute.xlu0 %2050 }
 0x3c0   : > { %2136 = vst.msk [vmem:[#allocation3 + $0xda] sm:$0x3f] %vm2113_vm13, %v2073_v54  ;;  %v1722_v54 = vld [vmem:[#allocation2 + $0x70] sm:$0xff] }
 0x3c1   : > { %2125 = vst.msk [vmem:[#allocation3 + $0x82] sm:$0xff] %vm2111_vm12, %v2051_v1 }
 0x3c4   : > { %6006 = vmatmul.msk.f32.gmra.mxu1 %vm614_vm5, %v1721_v17  ;;  %2288 = vrot.lane.b32.xlu1 %v6618_v26, %s6246_s25 }
 0x3c5   : > { %2290 = vrot.lane.b32.xlu2 %v6630_v29, %s6246_s25  ;;  %2286 = vrot.lane.b32.xlu0 %v6599_v22, %s6246_s25 }
 0x3c6   : > { %v2059_v55 = vpop.permute.xlu1 %2058 }
 0x3c7   : > { %v2079_v48 = vpop.permute.xlu2 %2078  ;;  %2129 = vst.msk [vmem:[#allocation3 + $0xa2] sm:$0xff] %vm2111_vm12, %v2059_v55  ;;  %v2057_v24 = vpop.permute.xlu0 %2056 }
 0x3c8   : > { %2139 = vst.msk [vmem:[#allocation3 + $0xf2] sm:$0xff] %vm2111_vm12, %v2079_v48  ;;  %v1723_v48 = vld [vmem:[#allocation2 + $0x78] sm:$0xff] }
 0x3c9   : > { %2128 = vst.msk [vmem:[#allocation3 + $0x9a] sm:$0x3f] %vm2113_vm13, %v2057_v24 }
 0x3cc   : > { %6007 = vmatmul.msk.f32.gmra.mxu1 %vm614_vm5, %v1722_v54  ;;  %2294 = vrot.lane.b32.xlu1 %v6661_v36, %s6246_s25 }
 0x3cd   : > { %2296 = vrot.lane.b32.xlu2 %v6680_v40, %s6246_s25  ;;  %2292 = vrot.lane.b32.xlu0 %v6642_v32, %s6246_s25 }
 0x3ce   : > { %v2065_v1 = vpop.permute.xlu1 %2064 }
 0x3cf   : > { %v2144_v17 = vpop.permute.xlu2 %2143  ;;  %2132 = vst.msk [vmem:[#allocation3 + $0xba] sm:$0x3f] %vm2113_vm13, %v2065_v1  ;;  %v2063_v55 = vpop.permute.xlu0 %2062 }
 0x3d0   : > { %2228 = vst.msk [vmem:[#allocation3 + $0x29] sm:$0x7f] %vm2227_vm15, %v2144_v17  ;;  %v1724_v17 = vld [vmem:[#allocation2 + $0x80] sm:$0xff] }
 0x3d1   : > { %2131 = vst.msk [vmem:[#allocation3 + $0xb2] sm:$0xff] %vm2111_vm12, %v2063_v55 }
 0x3d4   : > { %6008 = vmatmul.msk.f32.gmra.mxu1 %vm614_vm5, %v1723_v48  ;;  %2300 = vrot.lane.b32.xlu1 %v6815_v51, %s6246_s25 }
 0x3d5   : > { %2302 = vrot.lane.b32.xlu2 %v6906_v62, %s6246_s25  ;;  %2298 = vrot.lane.b32.xlu0 %v6699_v44, %s6246_s25 }
 0x3d6   : > { %v2071_v24 = vpop.permute.xlu1 %2070 }
 0x3d7   : > { %2135 = vst.msk [vmem:[#allocation3 + $0xd2] sm:$0xff] %vm2111_vm12, %v2071_v24  ;;  %v2150_v54 = vpop.permute.xlu2 %2149  ;;  %v2069_v1 = vpop.permute.xlu0 %2068 }
 0x3d8   : > { %2231 = vst.msk [vmem:[#allocation3 + $0x41] sm:$0xff] %vm2225_vm2, %v2150_v54  ;;  %v1725_v54 = vld [vmem:[#allocation2 + $0x88] sm:$0xff] }
 0x3d9   : > { %2134 = vst.msk [vmem:[#allocation3 + $0xca] sm:$0x3f] %vm2113_vm13, %v2069_v1 }
 0x3da   : > { %2260 = vst.msk [vmem:[#allocation3 + $0x40] sm:$0xff] %vm2255_vm6, %v6968_v28 }
 0x3dc   : > { %6009 = vmatmul.msk.f32.gmra.mxu1 %vm614_vm5, %v1724_v17  ;;  %2306 = vrot.lane.b32.xlu1 %v6978_v31, %s6246_s25 }
 0x3dd   : > { %2308 = vrot.lane.b32.xlu2 %v7074_v25, %s6246_s25  ;;  %2304 = vrot.lane.b32.xlu0 %v6942_v20, %s6246_s25 }
 0x3de   : > { %v2077_v55 = vpop.permute.xlu1 %2076 }
 0x3df   : > { %2138 = vst.msk [vmem:[#allocation3 + $0xea] sm:$0x3f] %vm2113_vm13, %v2077_v55  ;;  %v2156_v48 = vpop.permute.xlu2 %2155  ;;  %v2075_v24 = vpop.permute.xlu0 %2074  ;;  %v1726_v55 = vld [vmem:[#allocation2 + $0x90] sm:$0xff] }
 0x3e0   : > { %2234 = vst.msk [vmem:[#allocation3 + $0x59] sm:$0x7f] %vm2227_vm15, %v2156_v48 }
 0x3e1   : > { %2137 = vst.msk [vmem:[#allocation3 + $0xe2] sm:$0xff] %vm2111_vm12, %v2075_v24  ;;  %vm2400_vm12 = vcmask 80960  }
 0x3e4   : > { %6010 = vmatmul.msk.f32.gmra.mxu1 %vm614_vm5, %v1725_v54  ;;  %2312 = vrot.lane.b32.xlu1 %v7116_v34, %s6246_s25 }
 0x3e5   : > { %2314 = vrot.lane.b32.xlu2 %v7128_v63, %s6246_s25  ;;  %2310 = vrot.lane.b32.xlu0 %v7083_v50, %s6246_s25 }
 0x3e6   : > { %v2142_v28 = vpop.permute.xlu1 %2141 }
 0x3e7   : > { %2226 = vst.msk [vmem:[#allocation3 + $0x21] sm:$0xff] %vm2225_vm2, %v2142_v28  ;;  %v2162_v1 = vpop.permute.xlu2 %2161  ;;  %v2081_v17 = vpop.permute.xlu0 %2080 }
 0x3e8   : > { %2237 = vst.msk [vmem:[#allocation3 + $0x71] sm:$0xff] %vm2225_vm2, %v2162_v1  ;;  %v1729_v1 = vld [vmem:[#allocation2 + $0xa8] sm:$0xff] }
 0x3e9   : > { %2140 = vst.msk [vmem:[#allocation3 + $0xfa] sm:$0x3f] %vm2113_vm13, %v2081_v17  ;;  %vm2551_vm13 = vcmask 113760  }
 0x3ea   : > { %2256 = vst.msk [vmem:[#allocation3 + $0x20] sm:$0xff] %vm2255_vm6, %v6900_v60 }
 0x3eb   : > { %2257 = vst.msk [vmem:[#allocation3 + $0x28] sm:$0xff] %vm2255_vm6, %v7005_v39  ;;  %v1727_v39 = vld [vmem:[#allocation2 + $0x98] sm:$0xff] }
 0x3ec   : > { %6011 = vmatmul.msk.f32.gmra.mxu1 %vm614_vm5, %v1726_v55  ;;  %2318 = vrot.lane.b32.xlu1 %v7208_v37, %s6246_s25  ;;  %2266 = vst.msk [vmem:[#allocation3 + $0x70] sm:$0xff] %vm2255_vm6, %v7369_v3 }
 0x3ed   : > { %2320 = vrot.lane.b32.xlu2 %v7261_v7, %s6246_s25  ;;  %2316 = vrot.lane.b32.xlu0 %v7161_v46, %s6246_s25 }
 0x3ee   : > { %v2148_v48 = vpop.permute.xlu1 %2147 }
 0x3ef   : > { %2230 = vst.msk [vmem:[#allocation3 + $0x39] sm:$0x7f] %vm2227_vm15, %v2148_v48  ;;  %v2168_v24 = vpop.permute.xlu2 %2167  ;;  %v2146_v60 = vpop.permute.xlu0 %2145  ;;  %v1731_v48 = vld [vmem:[#allocation2 + $0xb8] sm:$0xff] }
 0x3f0   : > { %2240 = vst.msk [vmem:[#allocation3 + $0x89] sm:$0x7f] %vm2227_vm15, %v2168_v24 }
 0x3f1   : > { %2229 = vst.msk [vmem:[#allocation3 + $0x31] sm:$0xff] %vm2225_vm2, %v2146_v60 }
 0x3f2   : > { %2258 = vst.msk [vmem:[#allocation3 + $0x30] sm:$0xff] %vm2255_vm6, %v6996_v35  ;;  %v1728_v35 = vld [vmem:[#allocation2 + $0xa0] sm:$0xff] }
 0x3f3   : > { %2259 = vst.msk [vmem:[#allocation3 + $0x38] sm:$0xff] %vm2255_vm6, %v7060_v57 }
 0x3f4   : > { %6012 = vmatmul.msk.f32.gmra.mxu1 %vm614_vm5, %v1727_v39  ;;  %2324 = vrot.lane.b32.xlu1 %v7341_v58, %s6246_s25 }
 0x3f5   : > { %2326 = vrot.lane.b32.xlu2 %v7381_v56, %s6246_s25  ;;  %2322 = vrot.lane.b32.xlu0 %v7306_v38, %s6246_s25 }
 0x3f6   : > { %v2154_v3 = vpop.permute.xlu1 %2153 }
 0x3f7   : > { %2233 = vst.msk [vmem:[#allocation3 + $0x51] sm:$0xff] %vm2225_vm2, %v2154_v3  ;;  %v2174_v54 = vpop.permute.xlu2 %2173  ;;  %v2152_v28 = vpop.permute.xlu0 %2151  ;;  %v1733_v3 = vld [vmem:[#allocation2 + $0xc8] sm:$0xff] }
 0x3f8   : > { %2243 = vst.msk [vmem:[#allocation3 + $0xa1] sm:$0xff] %vm2225_vm2, %v2174_v54 }
 0x3f9   : > { %2232 = vst.msk [vmem:[#allocation3 + $0x49] sm:$0x7f] %vm2227_vm15, %v2152_v28 }
 0x3fa   : > { %2261 = vst.msk [vmem:[#allocation3 + $0x48] sm:$0xff] %vm2255_vm6, %v7032_v45 }
 0x3fb   : > { %2262 = vst.msk [vmem:[#allocation3 + $0x50] sm:$0xff] %vm2255_vm6, %v7232_v12 }
 0x3fc   : > { %6013 = vmatmul.msk.f32.gmra.mxu1 %vm614_vm5, %v1728_v35  ;;  %2330 = vrot.lane.b32.xlu1 %v7435_v2, %s6246_s25  ;;  %2263 = vst.msk [vmem:[#allocation3 + $0x58] sm:$0xff] %vm2255_vm6, %v7244_v13 }
 0x3fd   : > { %2332 = vrot.lane.b32.xlu2 %v7467_v33, %s6246_s25  ;;  %2328 = vrot.lane.b32.xlu0 %v7407_v15, %s6246_s25  ;;  %2272 = vst.msk [vmem:[#allocation3 + $0xa0] sm:$0xff] %vm2255_vm6, %v7613_v52 }
 0x3fe   : > { %v2160_v57 = vpop.permute.xlu1 %2159 }
 0x3ff   : > { %2236 = vst.msk [vmem:[#allocation3 + $0x69] sm:$0x7f] %vm2227_vm15, %v2160_v57  ;;  %v2180_v45 = vpop.permute.xlu2 %2179  ;;  %v2158_v12 = vpop.permute.xlu0 %2157  ;;  %v1735_v57 = vld [vmem:[#allocation2 + $0xd8] sm:$0xff] }
 0x400   : > { %2246 = vst.msk [vmem:[#allocation3 + $0xb9] sm:$0x7f] %vm2227_vm15, %v2180_v45 }
 0x401   : > { %2235 = vst.msk [vmem:[#allocation3 + $0x61] sm:$0xff] %vm2225_vm2, %v2158_v12  ;;  %v11805_v12 = vld [vmem:[#allocation130_spill] sm:$0xff] }
 0x402   : > { %2264 = vst.msk [vmem:[#allocation3 + $0x60] sm:$0xff] %vm2255_vm6, %v7195_v23  ;;  %v1730_v23 = vld [vmem:[#allocation2 + $0xb0] sm:$0xff] }
 0x403   : > { %2265 = vst.msk [vmem:[#allocation3 + $0x68] sm:$0xff] %vm2255_vm6, %v7356_v0  ;;  %v8837_v0 = vpop.f32.mrf.mxu1 }
 0x404   : > { %6014 = vmatmul.msk.f32.gmra.mxu1 %vm614_vm5, %v1729_v1  ;;  %2336 = vrot.lane.b32.xlu1 %v7515_v11, %s6246_s25 }
 0x405   : > { %2338 = vrot.lane.b32.xlu2 %v7572_v30, %s6246_s25  ;;  %2334 = vrot.lane.b32.xlu0 %v7491_v21, %s6246_s25  ;;  %s6254_s25 = smov 30  }
 0x406   : > { %v2166_v13 = vpop.permute.xlu1 %2165 }
 0x407   : > { %2239 = vst.msk [vmem:[#allocation3 + $0x81] sm:$0xff] %vm2225_vm2, %v2166_v13  ;;  %v2186_v52 = vpop.permute.xlu2 %2185  ;;  %v2164_v17 = vpop.permute.xlu0 %2163 }
 0x408   : > { %2249 = vst.msk [vmem:[#allocation3 + $0xd1] sm:$0xff] %vm2225_vm2, %v2186_v52 }
 0x409   : > { %2238 = vst.msk [vmem:[#allocation3 + $0x79] sm:$0x7f] %vm2227_vm15, %v2164_v17  ;;  %v1736_v17 = vld [vmem:[#allocation2 + $0xe0] sm:$0xff] }
 0x40a   : > { %2267 = vst.msk [vmem:[#allocation3 + $0x78] sm:$0xff] %vm2255_vm6, %v7330_v4 }
 0x40b   : > { %2268 = vst.msk [vmem:[#allocation3 + $0x80] sm:$0xff] %vm2255_vm6, %v7480_v8 }
 0x40c   : > { %6015 = vmatmul.msk.f32.gmra.mxu1 %vm614_vm5, %v1730_v23  ;;  %2430 = vrot.lane.b32.xlu1 %v6599_v22, %s6247_s23  ;;  %2269 = vst.msk [vmem:[#allocation3 + $0x88] sm:$0xff] %vm2255_vm6, %v7495_v41  ;;  %v8861_v41 = vpop.f32.mrf.mxu1 }
 0x40d   : > { %2432 = vrot.lane.b32.xlu2 %v6618_v26, %s6247_s23  ;;  %2428 = vrot.lane.b32.xlu0 %v6578_v18, %s6247_s23  ;;  %2278 = vst.msk [vmem:[#allocation3 + $0xd0] sm:$0xff] %vm2255_vm6, %v7809_v6 }
 0x40e   : > { %v2172_v4 = vpop.permute.xlu1 %2171 }
 0x40f   : > { %2242 = vst.msk [vmem:[#allocation3 + $0x99] sm:$0x7f] %vm2227_vm15, %v2172_v4  ;;  %v2192_v8 = vpop.permute.xlu2 %2191  ;;  %v2170_v55 = vpop.permute.xlu0 %2169 }
 0x410   : > { %2252 = vst.msk [vmem:[#allocation3 + $0xe9] sm:$0x7f] %vm2227_vm15, %v2192_v8 }
 0x411   : > { %2241 = vst.msk [vmem:[#allocation3 + $0x91] sm:$0xff] %vm2225_vm2, %v2170_v55 }
 0x412   : > { %2270 = vst.msk [vmem:[#allocation3 + $0x90] sm:$0xff] %vm2255_vm6, %v7450_v43 }
 0x413   : > { %2271 = vst.msk [vmem:[#allocation3 + $0x98] sm:$0xff] %vm2255_vm6, %v7598_v53  ;;  %v1732_v53 = vld [vmem:[#allocation2 + $0xc0] sm:$0xff] }
 0x414   : > { %6016 = vmatmul.msk.f32.gmra.mxu1 %vm614_vm5, %v1731_v48  ;;  %2436 = vrot.lane.b32.xlu1 %v6642_v32, %s6247_s23  ;;  %v8887_v60 = vpop.f32.mrf.mxu1  ;;  %v1737_v48 = vld [vmem:[#allocation2 + $0xe8] sm:$0xff] }
 0x415   : > { %2438 = vrot.lane.b32.xlu2 %v6661_v36, %s6247_s23  ;;  %2434 = vrot.lane.b32.xlu0 %v6630_v29, %s6247_s23 }
 0x416   : > { %v2178_v6 = vpop.permute.xlu1 %2177 }
 0x417   : > { %2245 = vst.msk [vmem:[#allocation3 + $0xb1] sm:$0xff] %vm2225_vm2, %v2178_v6  ;;  %v2285_v43 = vpop.permute.xlu2 %2284  ;;  %v2176_v24 = vpop.permute.xlu0 %2175 }
 0x418   : > { %2369 = vst.msk [vmem:[#allocation3 + $0x1f] sm:$0xfe] %vm2368_vm7, %v2285_v43 }
 0x419   : > { %2399 = vst.msk [vmem:[#allocation3 + $0x1e] sm:$0xfc] %vm2398_vm8, %v6578_v18 }
 0x41a   : > { %2274 = vst.msk [vmem:[#allocation3 + $0xb0] sm:$0xff] %vm2255_vm6, %v7716_v42 }
 0x41b   : > { %2275 = vst.msk [vmem:[#allocation3 + $0xb8] sm:$0xff] %vm2255_vm6, %v7731_v14 }
 0x41c   : > { %6017 = vmatmul.msk.f32.gmra.mxu1 %vm614_vm5, %v1732_v53  ;;  %2244 = vst.msk [vmem:[#allocation3 + $0xa9] sm:$0x7f] %vm2227_vm15, %v2176_v24  ;;  %2442 = vrot.lane.b32.xlu1 %v6699_v44, %s6247_s23  ;;  %v8904_v35 = vpop.f32.mrf.mxu1 }
 0x41d   : > { %2444 = vrot.lane.b32.xlu2 %v6815_v51, %s6247_s23  ;;  %2273 = vst.msk [vmem:[#allocation3 + $0xa8] sm:$0xff] %vm2255_vm6, %v7570_v5  ;;  %2440 = vrot.lane.b32.xlu0 %v6680_v40, %s6247_s23 }
 0x41e   : > { %v2184_v42 = vpop.permute.xlu1 %2183 }
 0x41f   : > { %2248 = vst.msk [vmem:[#allocation3 + $0xc9] sm:$0x7f] %vm2227_vm15, %v2184_v42  ;;  %v2291_v14 = vpop.permute.xlu2 %2290  ;;  %v2182_v39 = vpop.permute.xlu0 %2181  ;;  %v1738_v42 = vld [vmem:[#allocation2 + $0xf0] sm:$0xff] }
 0x420   : > { %2373 = vst.msk [vmem:[#allocation3 + $0x37] sm:$0xff] %vm2370_vm11, %v2291_v14 }
 0x421   : > { %2247 = vst.msk [vmem:[#allocation3 + $0xc1] sm:$0xff] %vm2225_vm2, %v2182_v39 }
 0x422   : > { %2276 = vst.msk [vmem:[#allocation3 + $0xc0] sm:$0xff] %vm2255_vm6, %v7684_v59 }
 0x423   : > { %2277 = vst.msk [vmem:[#allocation3 + $0xc8] sm:$0xff] %vm2255_vm6, %v7797_v9  ;;  %v1734_v9 = vld [vmem:[#allocation2 + $0xd0] sm:$0xff] }
 0x424   : > { %6018 = vmatmul.msk.f32.gmra.mxu1 %vm614_vm5, %v1733_v3  ;;  %2448 = vrot.lane.b32.xlu1 %v6942_v20, %s6247_s23  ;;  %v8927_v45 = vpop.f32.mrf.mxu1 }
 0x425   : > { %2450 = vrot.lane.b32.xlu2 %v6978_v31, %s6247_s23  ;;  %2446 = vrot.lane.b32.xlu0 %v6906_v62, %s6247_s23 }
 0x426   : > { %v2190_v5 = vpop.permute.xlu1 %2189 }
 0x427   : > { %2251 = vst.msk [vmem:[#allocation3 + $0xe1] sm:$0xff] %vm2225_vm2, %v2190_v5  ;;  %v2297_v54 = vpop.permute.xlu2 %2296  ;;  %v2188_v28 = vpop.permute.xlu0 %2187  ;;  %v1739_v5 = vld [vmem:[#allocation2 + $0xf8] sm:$0xff] }
 0x428   : > { %2280 = vst.msk [vmem:[#allocation3 + $0xe0] sm:$0xff] %vm2255_vm6, %v7877_v10 }
 0x429   : > { %2281 = vst.msk [vmem:[#allocation3 + $0xe8] sm:$0xff] %vm2255_vm6, %v7891_v49 }
 0x42a   : > { %2376 = vst.msk [vmem:[#allocation3 + $0x4f] sm:$0xfe] %vm2368_vm7, %v2297_v54 }
 0x42b   : > { %2406 = vst.msk [vmem:[#allocation3 + $0x4e] sm:$0xfc] %vm2398_vm8, %v6680_v40 }
 0x42c   : > { %6019 = vmatmul.msk.f32.gmra.mxu1 %vm614_vm5, %v1734_v9  ;;  %2250 = vst.msk [vmem:[#allocation3 + $0xd9] sm:$0x7f] %vm2227_vm15, %v2188_v28  ;;  %2454 = vrot.lane.b32.xlu1 %v7083_v50, %s6247_s23  ;;  %v8948_v23 = vpop.f32.mrf.mxu1 }
 0x42d   : > { %2456 = vrot.lane.b32.xlu2 %v7116_v34, %s6247_s23  ;;  %2279 = vst.msk [vmem:[#allocation3 + $0xd8] sm:$0xff] %vm2255_vm6, %v7773_v16  ;;  %2452 = vrot.lane.b32.xlu0 %v7074_v25, %s6247_s23  ;;  %v11806_v16 = vld [vmem:[#allocation143_spill] sm:$0xff] }
 0x42e   : > { %v2196_v49 = vpop.permute.xlu1 %2195 }
 0x42f   : > { %2254 = vst.msk [vmem:[#allocation3 + $0xf9] sm:$0x7f] %vm2227_vm15, %v2196_v49  ;;  %v2303_v59 = vpop.permute.xlu2 %2302  ;;  %v2194_v10 = vpop.permute.xlu0 %2193  ;;  %vm2521_vm15 = vcmask 95312  }
 0x430   : > { %2379 = vst.msk [vmem:[#allocation3 + $0x67] sm:$0xff] %vm2370_vm11, %v2303_v59 }
 0x431   : > { %2253 = vst.msk [vmem:[#allocation3 + $0xf1] sm:$0xff] %vm2225_vm2, %v2194_v10  ;;  %vm2553_vm2 = vcmask 112736  }
 0x432   : > { %2282 = vst.msk [vmem:[#allocation3 + $0xf0] sm:$0xff] %vm2255_vm6, %v11805_v12 }
 0x433   : > { %2283 = vst.msk [vmem:[#allocation3 + $0xf8] sm:$0xff] %vm2255_vm6, %v11806_v16  ;;  %vm2673_vm6 = vcmask 130160  }
 0x434   : > { %6020 = vmatmul.msk.f32.gmra.mxu1 %vm614_vm5, %v1735_v57  ;;  %2460 = vrot.lane.b32.xlu1 %v7161_v46, %s6247_s23  ;;  %v8973_v6 = vpop.f32.mrf.mxu1 }
 0x435   : > { %2462 = vrot.lane.b32.xlu2 %v7208_v37, %s6247_s23  ;;  %2458 = vrot.lane.b32.xlu0 %v7128_v63, %s6247_s23 }
 0x436   : > { %v2289_v1 = vpop.permute.xlu1 %2288 }
 0x437   : > { %2372 = vst.msk [vmem:[#allocation3 + $0x2f] sm:$0xfe] %vm2368_vm7, %v2289_v1  ;;  %v2309_v13 = vpop.permute.xlu2 %2308  ;;  %v2287_v52 = vpop.permute.xlu0 %2286 }
 0x438   : > { %2402 = vst.msk [vmem:[#allocation3 + $0x2e] sm:$0xfc] %vm2398_vm8, %v6618_v26 }
 0x439   : > { %2403 = vst.msk [vmem:[#allocation3 + $0x36] sm:$0xff] %vm2400_vm12, %v6630_v29 }
 0x43a   : > { %2382 = vst.msk [vmem:[#allocation3 + $0x7f] sm:$0xfe] %vm2368_vm7, %v2309_v13  ;;  %v11807_v13 = vld [vmem:[#allocation30_spill] sm:$0xff] }
 0x43b   : > { %2412 = vst.msk [vmem:[#allocation3 + $0x7e] sm:$0xfc] %vm2398_vm8, %v7074_v25 }
 0x43c   : > { %6021 = vmatmul.msk.f32.gmra.mxu1 %vm614_vm5, %v1736_v17  ;;  %2371 = vst.msk [vmem:[#allocation3 + $0x27] sm:$0xff] %vm2370_vm11, %v2287_v52  ;;  %2466 = vrot.lane.b32.xlu1 %v7306_v38, %s6247_s23  ;;  %v8995_v54 = vpop.f32.mrf.mxu1 }
 0x43d   : > { %2468 = vrot.lane.b32.xlu2 %v7341_v58, %s6247_s23  ;;  %2401 = vst.msk [vmem:[#allocation3 + $0x26] sm:$0xff] %vm2400_vm12, %v6599_v22  ;;  %2464 = vrot.lane.b32.xlu0 %v7261_v7, %s6247_s23 }
 0x43e   : > { %v2295_v4 = vpop.permute.xlu1 %2294 }
 0x43f   : > { %2375 = vst.msk [vmem:[#allocation3 + $0x47] sm:$0xff] %vm2370_vm11, %v2295_v4  ;;  %v2315_v8 = vpop.permute.xlu2 %2314  ;;  %v2293_v55 = vpop.permute.xlu0 %2292 }
 0x440   : > { %2385 = vst.msk [vmem:[#allocation3 + $0x97] sm:$0xff] %vm2370_vm11, %v2315_v8 }
 0x441   : > { %2374 = vst.msk [vmem:[#allocation3 + $0x3f] sm:$0xfe] %vm2368_vm7, %v2293_v55 }
 0x442   : > { %2404 = vst.msk [vmem:[#allocation3 + $0x3e] sm:$0xfc] %vm2398_vm8, %v6642_v32 }
 0x443   : > { %2405 = vst.msk [vmem:[#allocation3 + $0x46] sm:$0xff] %vm2400_vm12, %v6661_v36 }
 0x444   : > { %6022 = vmatmul.msk.f32.gmra.mxu1 %vm614_vm5, %v1737_v48  ;;  %2472 = vrot.lane.b32.xlu1 %v7407_v15, %s6247_s23 }
 0x445   : > { %2474 = vrot.lane.b32.xlu2 %v7435_v2, %s6247_s23  ;;  %2470 = vrot.lane.b32.xlu0 %v7381_v56, %s6247_s23 }
 0x446   : > { %v2301_v43 = vpop.permute.xlu1 %2300 }
 0x447   : > { %2378 = vst.msk [vmem:[#allocation3 + $0x5f] sm:$0xfe] %vm2368_vm7, %v2301_v43  ;;  %v2321_v24 = vpop.permute.xlu2 %2320  ;;  %v2299_v53 = vpop.permute.xlu0 %2298  ;;  %v11808_v43 = vld [vmem:[#allocation63_spill] sm:$0xff] }
 0x448   : > { %2408 = vst.msk [vmem:[#allocation3 + $0x5e] sm:$0xfc] %vm2398_vm8, %v6815_v51 }
 0x449   : > { %2409 = vst.msk [vmem:[#allocation3 + $0x66] sm:$0xff] %vm2400_vm12, %v6906_v62 }
 0x44a   : > { %2388 = vst.msk [vmem:[#allocation3 + $0xaf] sm:$0xfe] %vm2368_vm7, %v2321_v24 }
 0x44b   : > { %2418 = vst.msk [vmem:[#allocation3 + $0xae] sm:$0xfc] %vm2398_vm8, %v7261_v7 }
 0x44c   : > { %6023 = vmatmul.msk.f32.gmra.mxu1 %vm614_vm5, %v1738_v42  ;;  %2377 = vst.msk [vmem:[#allocation3 + $0x57] sm:$0xff] %vm2370_vm11, %v2299_v53  ;;  %2478 = vrot.lane.b32.xlu1 %v7491_v21, %s6247_s23 }
 0x44d   : > { %2480 = vrot.lane.b32.xlu2 %v7515_v11, %s6247_s23  ;;  %2407 = vst.msk [vmem:[#allocation3 + $0x56] sm:$0xff] %vm2400_vm12, %v6699_v44  ;;  %2476 = vrot.lane.b32.xlu0 %v7467_v33, %s6247_s23 }
 0x44e   : > { %v2307_v14 = vpop.permute.xlu1 %2306 }
 0x44f   : > { %2381 = vst.msk [vmem:[#allocation3 + $0x77] sm:$0xff] %vm2370_vm11, %v2307_v14  ;;  %v2327_v39 = vpop.permute.xlu2 %2326  ;;  %v2305_v3 = vpop.permute.xlu0 %2304  ;;  %v11809_v14 = vld [vmem:[#allocation37_spill] sm:$0xff] }
 0x450   : > { %2391 = vst.msk [vmem:[#allocation3 + $0xc7] sm:$0xff] %vm2370_vm11, %v2327_v39  ;;  %v11810_v39 = vld [vmem:[#allocation35_spill] sm:$0xff] }
 0x451   : > { %2380 = vst.msk [vmem:[#allocation3 + $0x6f] sm:$0xfe] %vm2368_vm7, %v2305_v3 }
 0x452   : > { %2410 = vst.msk [vmem:[#allocation3 + $0x6e] sm:$0xfc] %vm2398_vm8, %v6942_v20 }
 0x453   : > { %2411 = vst.msk [vmem:[#allocation3 + $0x76] sm:$0xff] %vm2400_vm12, %v6978_v31 }
 0x454   : > { %6024 = vmatmul.msk.f32.gmra.mxu1 %vm614_vm5, %v1739_v5  ;;  %2484 = vrot.lane.b32.xlu1 %v7592_v27, %s6247_s23  ;;  %vm2519_vm5 = vcmask 97360  }
 0x455   : > { %2486 = vrot.lane.b32.xlu2 %v7630_v47, %s6247_s23  ;;  %2482 = vrot.lane.b32.xlu0 %v7572_v30, %s6247_s23  ;;  %s6255_s23 = smov 32  }
 0x456   : > { %v2313_v28 = vpop.permute.xlu1 %2312 }
 0x457   : > { %2384 = vst.msk [vmem:[#allocation3 + $0x8f] sm:$0xfe] %vm2368_vm7, %v2313_v28  ;;  %v2333_v9 = vpop.permute.xlu2 %2332  ;;  %v2311_v49 = vpop.permute.xlu0 %2310 }
 0x458   : > { %2414 = vst.msk [vmem:[#allocation3 + $0x8e] sm:$0xfc] %vm2398_vm8, %v7116_v34 }
 0x459   : > { %2415 = vst.msk [vmem:[#allocation3 + $0x96] sm:$0xff] %vm2400_vm12, %v7128_v63 }
 0x45a   : > { %2394 = vst.msk [vmem:[#allocation3 + $0xdf] sm:$0xfe] %vm2368_vm7, %v2333_v9  ;;  %v11811_v9 = vld [vmem:[#allocation51_spill] sm:$0xff] }
 0x45b   : > { %2424 = vst.msk [vmem:[#allocation3 + $0xde] sm:$0xfc] %vm2398_vm8, %v7467_v33 }
 0x45c   : > { %2383 = vst.msk [vmem:[#allocation3 + $0x87] sm:$0xff] %vm2370_vm11, %v2311_v49  ;;  %2585 = vrot.lane.b32.xlu1 %v6599_v22, %s6248_s26  ;;  %v11812_v49 = vld [vmem:[#allocation89_spill] sm:$0xff] }
 0x45d   : > { %2587 = vrot.lane.b32.xlu2 %v6618_v26, %s6248_s26  ;;  %2413 = vst.msk [vmem:[#allocation3 + $0x86] sm:$0xff] %vm2400_vm12, %v7083_v50  ;;  %2583 = vrot.lane.b32.xlu0 %v6578_v18, %s6248_s26 }
 0x45e   : > { %v2319_v59 = vpop.permute.xlu1 %2318 }
 0x45f   : > { %2387 = vst.msk [vmem:[#allocation3 + $0xa7] sm:$0xff] %vm2370_vm11, %v2319_v59  ;;  %v2339_v10 = vpop.permute.xlu2 %2338  ;;  %v2317_v57 = vpop.permute.xlu0 %2316  ;;  %v11813_v59 = vld [vmem:[#allocation45_spill] sm:$0xff] }
 0x460   : > { %2397 = vst.msk [vmem:[#allocation3 + $0xf7] sm:$0xff] %vm2370_vm11, %v2339_v10  ;;  %v11814_v10 = vld [vmem:[#allocation50_spill] sm:$0xff] }
 0x461   : > { %2386 = vst.msk [vmem:[#allocation3 + $0x9f] sm:$0xfe] %vm2368_vm7, %v2317_v57 }
 0x462   : > { %2416 = vst.msk [vmem:[#allocation3 + $0x9e] sm:$0xfc] %vm2398_vm8, %v7161_v46 }
 0x463   : > { %2417 = vst.msk [vmem:[#allocation3 + $0xa6] sm:$0xff] %vm2400_vm12, %v7208_v37 }
 0x464   : > { %2591 = vrot.lane.b32.xlu1 %v6642_v32, %s6248_s26 }
 0x465   : > { %2593 = vrot.lane.b32.xlu2 %v6661_v36, %s6248_s26  ;;  %2589 = vrot.lane.b32.xlu0 %v6630_v29, %s6248_s26 }
 0x466   : > { %v2325_v12 = vpop.permute.xlu1 %2324 }
 0x467   : > { %2390 = vst.msk [vmem:[#allocation3 + $0xbf] sm:$0xfe] %vm2368_vm7, %v2325_v12  ;;  %v2433_v16 = vpop.permute.xlu2 %2432  ;;  %v2323_v1 = vpop.permute.xlu0 %2322 }
 0x468   : > { %2420 = vst.msk [vmem:[#allocation3 + $0xbe] sm:$0xfc] %vm2398_vm8, %v7341_v58 }
 0x469   : > { %2421 = vst.msk [vmem:[#allocation3 + $0xc6] sm:$0xff] %vm2400_vm12, %v7381_v56 }
 0x46a   : > { %2523 = vst.msk [vmem:[#allocation3 + $0x22] sm:$0xff] %vm2519_vm5, %v2433_v16 }
 0x46b   : > { %2389 = vst.msk [vmem:[#allocation3 + $0xb7] sm:$0xff] %vm2370_vm11, %v2323_v1  ;;  %v11815_v1 = vld [vmem:[#allocation65_spill] sm:$0xff] }
 0x46c   : > { %2419 = vst.msk [vmem:[#allocation3 + $0xb6] sm:$0xff] %vm2400_vm12, %v7306_v38  ;;  %2597 = vrot.lane.b32.xlu1 %v6699_v44, %s6248_s26 }
 0x46d   : > { %2599 = vrot.lane.b32.xlu2 %v6815_v51, %s6248_s26  ;;  %2595 = vrot.lane.b32.xlu0 %v6680_v40, %s6248_s26  ;;  %2555 = vst.msk [vmem:[#allocation3 + $0x21] sm:$0xff] %vm2551_vm13, %v11807_v13  ;;  %v11816_v13 = vld [vmem:[#allocation66_spill] sm:$0xff] }
 0x46e   : > { %v2331_v52 = vpop.permute.xlu1 %2330 }
 0x46f   : > { %2393 = vst.msk [vmem:[#allocation3 + $0xd7] sm:$0xff] %vm2370_vm11, %v2331_v52  ;;  %v2439_v17 = vpop.permute.xlu2 %2438  ;;  %v2329_v4 = vpop.permute.xlu0 %2328 }
 0x470   : > { %2526 = vst.msk [vmem:[#allocation3 + $0x3a] sm:$0x3f] %vm2521_vm15, %v2439_v17 }
 0x471   : > { %2392 = vst.msk [vmem:[#allocation3 + $0xcf] sm:$0xfe] %vm2368_vm7, %v2329_v4 }
 0x472   : > { %2422 = vst.msk [vmem:[#allocation3 + $0xce] sm:$0xfc] %vm2398_vm8, %v7407_v15 }
 0x473   : > { %2423 = vst.msk [vmem:[#allocation3 + $0xd6] sm:$0xff] %vm2400_vm12, %v7435_v2 }
 0x474   : > { %2603 = vrot.lane.b32.xlu1 %v6942_v20, %s6248_s26 }
 0x475   : > { %2605 = vrot.lane.b32.xlu2 %v6978_v31, %s6248_s26  ;;  %2601 = vrot.lane.b32.xlu0 %v6906_v62, %s6248_s26 }
 0x476   : > { %v2337_v8 = vpop.permute.xlu1 %2336 }
 0x477   : > { %2396 = vst.msk [vmem:[#allocation3 + $0xef] sm:$0xfe] %vm2368_vm7, %v2337_v8  ;;  %v2445_v55 = vpop.permute.xlu2 %2444  ;;  %v2335_v48 = vpop.permute.xlu0 %2334  ;;  %v11817_v8 = vld [vmem:[#allocation80_spill] sm:$0xff]  ;;  %vm2704_vm7 = vcmask 146561  }
 0x478   : > { %2426 = vst.msk [vmem:[#allocation3 + $0xee] sm:$0xfc] %vm2398_vm8, %v7515_v11  ;;  %vm2706_vm8 = vcmask 146560  }
 0x479   : > { %2427 = vst.msk [vmem:[#allocation3 + $0xf6] sm:$0xff] %vm2400_vm12, %v7572_v30 }
 0x47a   : > { %2529 = vst.msk [vmem:[#allocation3 + $0x52] sm:$0xff] %vm2519_vm5, %v2445_v55  ;;  %v11818_v55 = vld [vmem:[#allocation114_spill] sm:$0xff] }
 0x47b   : > { %2395 = vst.msk [vmem:[#allocation3 + $0xe7] sm:$0xff] %vm2370_vm11, %v2335_v48  ;;  %v11819_v48 = vld [vmem:[#allocation79_spill] sm:$0xff]  ;;  %vm2826_vm11 = vcmask 162962  }
 0x47c   : > { %2425 = vst.msk [vmem:[#allocation3 + $0xe6] sm:$0xff] %vm2400_vm12, %v7491_v21  ;;  %2609 = vrot.lane.b32.xlu1 %v7083_v50, %s6248_s26  ;;  %vm2828_vm12 = vcmask 162960  }
 0x47d   : > { %2611 = vrot.lane.b32.xlu2 %v7116_v34, %s6248_s26  ;;  %2607 = vrot.lane.b32.xlu0 %v7074_v25, %s6248_s26  ;;  %2561 = vst.msk [vmem:[#allocation3 + $0x51] sm:$0xff] %vm2551_vm13, %v11808_v43  ;;  %v11820_v43 = vld [vmem:[#allocation77_spill] sm:$0xff] }
 0x47e   : > { %v2431_v24 = vpop.permute.xlu1 %2430 }
 0x47f   : > { %2522 = vst.msk [vmem:[#allocation3 + $0x1a] sm:$0x3f] %vm2521_vm15, %v2431_v24  ;;  %v2451_v53 = vpop.permute.xlu2 %2450  ;;  %v2429_v42 = vpop.permute.xlu0 %2428 }
 0x480   : > { %2532 = vst.msk [vmem:[#allocation3 + $0x6a] sm:$0x3f] %vm2521_vm15, %v2451_v53 }
 0x481   : > { %2520 = vst.msk [vmem:[#allocation3 + $0x12] sm:$0xff] %vm2519_vm5, %v2429_v42 }
 0x482   : > { %2552 = vst.msk [vmem:[#allocation3 + $0x11] sm:$0xff] %vm2551_vm13, %v11809_v14  ;;  %v11821_v14 = vld [vmem:[#allocation91_spill] sm:$0xff] }
 0x483   : > { %2554 = vst.msk [vmem:[#allocation3 + $0x19] sm:$0x7f] %vm2553_vm2, %v11810_v39  ;;  %v11822_v39 = vld [vmem:[#allocation92_spill] sm:$0xff] }
 0x484   : > { %2615 = vrot.lane.b32.xlu1 %v7161_v46, %s6248_s26 }
 0x485   : > { %2617 = vrot.lane.b32.xlu2 %v7208_v37, %s6248_s26  ;;  %2613 = vrot.lane.b32.xlu0 %v7128_v63, %s6248_s26 }
 0x486   : > { %v2437_v3 = vpop.permute.xlu1 %2436 }
 0x487   : > { %2525 = vst.msk [vmem:[#allocation3 + $0x32] sm:$0xff] %vm2519_vm5, %v2437_v3  ;;  %v2457_v5 = vpop.permute.xlu2 %2456  ;;  %v2435_v28 = vpop.permute.xlu0 %2434 }
 0x488   : > { %2535 = vst.msk [vmem:[#allocation3 + $0x82] sm:$0xff] %vm2519_vm5, %v2457_v5 }
 0x489   : > { %2524 = vst.msk [vmem:[#allocation3 + $0x2a] sm:$0x3f] %vm2521_vm15, %v2435_v28 }
 0x48a   : > { %2557 = vst.msk [vmem:[#allocation3 + $0x31] sm:$0xff] %vm2551_vm13, %v11811_v9  ;;  %v11823_v9 = vld [vmem:[#allocation104_spill] sm:$0xff] }
 0x48b   : > { %2567 = vst.msk [vmem:[#allocation3 + $0x81] sm:$0xff] %vm2551_vm13, %v11812_v49  ;;  %v11824_v49 = vld [vmem:[#allocation133_spill] sm:$0xff] }
 0x48c   : > { %2621 = vrot.lane.b32.xlu1 %v7306_v38, %s6248_s26  ;;  %2558 = vst.msk [vmem:[#allocation3 + $0x39] sm:$0x7f] %vm2553_vm2, %v11813_v59  ;;  %v11825_v59 = vld [vmem:[#allocation103_spill] sm:$0xff] }
 0x48d   : > { %2623 = vrot.lane.b32.xlu2 %v7341_v58, %s6248_s26  ;;  %2619 = vrot.lane.b32.xlu0 %v7261_v7, %s6248_s26  ;;  %2556 = vst.msk [vmem:[#allocation3 + $0x29] sm:$0x7f] %vm2553_vm2, %v11814_v10  ;;  %v11826_v10 = vld [vmem:[#allocation101_spill] sm:$0xff] }
 0x48e   : > { %v2443_v57 = vpop.permute.xlu1 %2442 }
 0x48f   : > { %2528 = vst.msk [vmem:[#allocation3 + $0x4a] sm:$0x3f] %vm2521_vm15, %v2443_v57  ;;  %v2463_v12 = vpop.permute.xlu2 %2462  ;;  %v2441_v16 = vpop.permute.xlu0 %2440 }
 0x490   : > { %2538 = vst.msk [vmem:[#allocation3 + $0x9a] sm:$0x3f] %vm2521_vm15, %v2463_v12 }
 0x491   : > { %2527 = vst.msk [vmem:[#allocation3 + $0x42] sm:$0xff] %vm2519_vm5, %v2441_v16 }
 0x492   : > { %2559 = vst.msk [vmem:[#allocation3 + $0x41] sm:$0xff] %vm2551_vm13, %v11815_v1  ;;  %v11827_v1 = vld [vmem:[#allocation116_spill] sm:$0xff] }
 0x493   : > { %2560 = vst.msk [vmem:[#allocation3 + $0x49] sm:$0x7f] %vm2553_vm2, %v11816_v13  ;;  %v11828_v13 = vld [vmem:[#allocation117_spill] sm:$0xff] }
 0x494   : > { %2627 = vrot.lane.b32.xlu1 %v7407_v15, %s6248_s26 }
 0x495   : > { %2629 = vrot.lane.b32.xlu2 %v7435_v2, %s6248_s26  ;;  %2625 = vrot.lane.b32.xlu0 %v7381_v56, %s6248_s26 }
 0x496   : > { %v2449_v52 = vpop.permute.xlu1 %2448 }
 0x497   : > { %2531 = vst.msk [vmem:[#allocation3 + $0x62] sm:$0xff] %vm2519_vm5, %v2449_v52  ;;  %v2469_v17 = vpop.permute.xlu2 %2468  ;;  %v2447_v4 = vpop.permute.xlu0 %2446 }
 0x498   : > { %2541 = vst.msk [vmem:[#allocation3 + $0xb2] sm:$0xff] %vm2519_vm5, %v2469_v17 }
 0x499   : > { %2530 = vst.msk [vmem:[#allocation3 + $0x5a] sm:$0x3f] %vm2521_vm15, %v2447_v4 }
 0x49a   : > { %2563 = vst.msk [vmem:[#allocation3 + $0x61] sm:$0xff] %vm2551_vm13, %v11817_v8  ;;  %v11829_v8 = vld [vmem:[#allocation126_spill] sm:$0xff] }
 0x49b   : > { %2573 = vst.msk [vmem:[#allocation3 + $0xb1] sm:$0xff] %vm2551_vm13, %v11818_v55  ;;  %v11830_v55 = vld [vmem:[#allocation125_spill] sm:$0xff] }
 0x49c   : > { %2633 = vrot.lane.b32.xlu1 %v7491_v21, %s6248_s26  ;;  %2562 = vst.msk [vmem:[#allocation3 + $0x59] sm:$0x7f] %vm2553_vm2, %v11819_v48  ;;  %v11831_v48 = vld [vmem:[#allocation123_spill] sm:$0xff] }
 0x49d   : > { %2635 = vrot.lane.b32.xlu2 %v7515_v11, %s6248_s26  ;;  %2631 = vrot.lane.b32.xlu0 %v7467_v33, %s6248_s26  ;;  %2564 = vst.msk [vmem:[#allocation3 + $0x69] sm:$0x7f] %vm2553_vm2, %v11820_v43  ;;  %v11832_v43 = vld [vmem:[#allocation33_spill] sm:$0xff] }
 0x49e   : > { %v2455_v24 = vpop.permute.xlu1 %2454 }
 0x49f   : > { %2534 = vst.msk [vmem:[#allocation3 + $0x7a] sm:$0x3f] %vm2521_vm15, %v2455_v24  ;;  %v2475_v53 = vpop.permute.xlu2 %2474  ;;  %v2453_v42 = vpop.permute.xlu0 %2452 }
 0x4a0   : > { %2544 = vst.msk [vmem:[#allocation3 + $0xca] sm:$0x3f] %vm2521_vm15, %v2475_v53 }
 0x4a1   : > { %2533 = vst.msk [vmem:[#allocation3 + $0x72] sm:$0xff] %vm2519_vm5, %v2453_v42 }
 0x4a2   : > { %2565 = vst.msk [vmem:[#allocation3 + $0x71] sm:$0xff] %vm2551_vm13, %v11821_v14  ;;  %v11833_v14 = vld [vmem:[#allocation135_spill] sm:$0xff] }
 0x4a3   : > { %2566 = vst.msk [vmem:[#allocation3 + $0x79] sm:$0x7f] %vm2553_vm2, %v11822_v39  ;;  %v11834_v39 = vld [vmem:[#allocation136_spill] sm:$0xff] }
 0x4a4   : > { %2639 = vrot.lane.b32.xlu1 %v7592_v27, %s6248_s26 }
 0x4a5   : > { %2641 = vrot.lane.b32.xlu2 %v7630_v47, %s6248_s26  ;;  %2637 = vrot.lane.b32.xlu0 %v7572_v30, %s6248_s26  ;;  %s6256_s26 = smov 34  }
 0x4a6   : > { %v2461_v3 = vpop.permute.xlu1 %2460 }
 0x4a7   : > { %2537 = vst.msk [vmem:[#allocation3 + $0x92] sm:$0xff] %vm2519_vm5, %v2461_v3  ;;  %v2481_v5 = vpop.permute.xlu2 %2480  ;;  %v2459_v28 = vpop.permute.xlu0 %2458 }
 0x4a8   : > { %2547 = vst.msk [vmem:[#allocation3 + $0xe2] sm:$0xff] %vm2519_vm5, %v2481_v5 }
 0x4a9   : > { %2536 = vst.msk [vmem:[#allocation3 + $0x8a] sm:$0x3f] %vm2521_vm15, %v2459_v28 }
 0x4aa   : > { %2569 = vst.msk [vmem:[#allocation3 + $0x91] sm:$0xff] %vm2551_vm13, %v11823_v9  ;;  %v11835_v9 = vld [vmem:[#allocation142_spill] sm:$0xff] }
 0x4ab   : > { %2579 = vst.msk [vmem:[#allocation3 + $0xe1] sm:$0xff] %vm2551_vm13, %v11824_v49  ;;  %v11836_v49 = vld [vmem:[#allocation145_spill] sm:$0xff] }
 0x4ac   : > { %2738 = vrot.lane.b32.xlu1 %v6599_v22, %s6249_s27  ;;  %2568 = vst.msk [vmem:[#allocation3 + $0x89] sm:$0x7f] %vm2553_vm2, %v11825_v59 }
 0x4ad   : > { %2740 = vrot.lane.b32.xlu2 %v6618_v26, %s6249_s27  ;;  %2736 = vrot.lane.b32.xlu0 %v6578_v18, %s6249_s27  ;;  %2570 = vst.msk [vmem:[#allocation3 + $0x99] sm:$0x7f] %vm2553_vm2, %v11826_v10 }
 0x4ae   : > { %v2467_v57 = vpop.permute.xlu1 %2466 }
 0x4af   : > { %2540 = vst.msk [vmem:[#allocation3 + $0xaa] sm:$0x3f] %vm2521_vm15, %v2467_v57  ;;  %v2487_v12 = vpop.permute.xlu2 %2486  ;;  %v2465_v16 = vpop.permute.xlu0 %2464 }
 0x4b0   : > { %2550 = vst.msk [vmem:[#allocation3 + $0xfa] sm:$0x3f] %vm2521_vm15, %v2487_v12  ;;  %v11838_v12 = vld [vmem:[#allocation40_spill] sm:$0xff] }
 0x4b1   : > { %2539 = vst.msk [vmem:[#allocation3 + $0xa2] sm:$0xff] %vm2519_vm5, %v2465_v16  ;;  %v11839_v16 = vld [vmem:[#allocation39_spill] sm:$0xff] }
 0x4b2   : > { %2571 = vst.msk [vmem:[#allocation3 + $0xa1] sm:$0xff] %vm2551_vm13, %v11827_v1 }
 0x4b3   : > { %2572 = vst.msk [vmem:[#allocation3 + $0xa9] sm:$0x7f] %vm2553_vm2, %v11828_v13 }
 0x4b4   : > { %2744 = vrot.lane.b32.xlu1 %v6642_v32, %s6249_s27 }
 0x4b5   : > { %2746 = vrot.lane.b32.xlu2 %v6661_v36, %s6249_s27  ;;  %2742 = vrot.lane.b32.xlu0 %v6630_v29, %s6249_s27 }
 0x4b6   : > { %v2473_v52 = vpop.permute.xlu1 %2472 }
 0x4b7   : > { %2543 = vst.msk [vmem:[#allocation3 + $0xc2] sm:$0xff] %vm2519_vm5, %v2473_v52  ;;  %v2588_v17 = vpop.permute.xlu2 %2587  ;;  %v2471_v4 = vpop.permute.xlu0 %2470 }
 0x4b8   : > { %2676 = vst.msk [vmem:[#allocation3 + $0x20] sm:$0xff] %vm2673_vm6, %v2588_v17  ;;  %v11840_v17 = vld [vmem:[#allocation55_spill] sm:$0xff] }
 0x4b9   : > { %2575 = vst.msk [vmem:[#allocation3 + $0xc1] sm:$0xff] %vm2551_vm13, %v11829_v8  ;;  %v11842_v8 = vld [vmem:[#allocation49_spill] sm:$0xff] }
 0x4ba   : > { %2542 = vst.msk [vmem:[#allocation3 + $0xba] sm:$0x3f] %vm2521_vm15, %v2471_v4  ;;  %v11841_v4 = vld [vmem:[#allocation90_spill] sm:$0xff] }
 0x4bb   : > { %2574 = vst.msk [vmem:[#allocation3 + $0xb9] sm:$0x7f] %vm2553_vm2, %v11830_v55  ;;  %v11843_v55 = vld [vmem:[#allocation53_spill] sm:$0xff] }
 0x4bc   : > { %2750 = vrot.lane.b32.xlu1 %v6699_v44, %s6249_s27  ;;  %2576 = vst.msk [vmem:[#allocation3 + $0xc9] sm:$0x7f] %vm2553_vm2, %v11831_v48 }
 0x4bd   : > { %2752 = vrot.lane.b32.xlu2 %v6815_v51, %s6249_s27  ;;  %2748 = vrot.lane.b32.xlu0 %v6680_v40, %s6249_s27  ;;  %2708 = vst.msk [vmem:[#allocation3 + $0x1f] sm:$0xfe] %vm2704_vm7, %v11832_v43 }
 0x4be   : > { %v2479_v24 = vpop.permute.xlu1 %2478 }
 0x4bf   : > { %2546 = vst.msk [vmem:[#allocation3 + $0xda] sm:$0x3f] %vm2521_vm15, %v2479_v24  ;;  %v2594_v53 = vpop.permute.xlu2 %2593  ;;  %v2477_v42 = vpop.permute.xlu0 %2476 }
 0x4c0   : > { %2679 = vst.msk [vmem:[#allocation3 + $0x38] sm:$0xff] %vm2673_vm6, %v2594_v53  ;;  %v11844_v53 = vld [vmem:[#allocation68_spill] sm:$0xff] }
 0x4c1   : > { %2545 = vst.msk [vmem:[#allocation3 + $0xd2] sm:$0xff] %vm2519_vm5, %v2477_v42  ;;  %v11845_v42 = vld [vmem:[#allocation70_spill] sm:$0xff] }
 0x4c2   : > { %2577 = vst.msk [vmem:[#allocation3 + $0xd1] sm:$0xff] %vm2551_vm13, %v11833_v14 }
 0x4c3   : > { %2578 = vst.msk [vmem:[#allocation3 + $0xd9] sm:$0x7f] %vm2553_vm2, %v11834_v39 }
 0x4c4   : > { %2756 = vrot.lane.b32.xlu1 %v6942_v20, %s6249_s27 }
 0x4c5   : > { %2758 = vrot.lane.b32.xlu2 %v6978_v31, %s6249_s27  ;;  %2754 = vrot.lane.b32.xlu0 %v6906_v62, %s6249_s27 }
 0x4c6   : > { %v2485_v3 = vpop.permute.xlu1 %2484 }
 0x4c7   : > { %2549 = vst.msk [vmem:[#allocation3 + $0xf2] sm:$0xff] %vm2519_vm5, %v2485_v3  ;;  %v2600_v5 = vpop.permute.xlu2 %2599  ;;  %v2483_v28 = vpop.permute.xlu0 %2482  ;;  %vm2988_vm5 = vcmask 195760  }
 0x4c8   : > { %2581 = vst.msk [vmem:[#allocation3 + $0xf1] sm:$0xff] %vm2551_vm13, %v7983_v61  ;;  %v11837_v61 = vld [vmem:[#allocation64_spill] sm:$0xff]  ;;  %vm3022_vm13 = vcmask 212160  }
 0x4c9   : > { %2582 = vst.msk [vmem:[#allocation3 + $0xf9] sm:$0x7f] %vm2553_vm2, %v11835_v9  ;;  %v11848_v9 = vld [vmem:[#allocation82_spill] sm:$0xff] }
 0x4ca   : > { %2682 = vst.msk [vmem:[#allocation3 + $0x50] sm:$0xff] %vm2673_vm6, %v2600_v5  ;;  %v11846_v5 = vld [vmem:[#allocation83_spill] sm:$0xff] }
 0x4cb   : > { %2548 = vst.msk [vmem:[#allocation3 + $0xea] sm:$0x3f] %vm2521_vm15, %v2483_v28  ;;  %v11847_v28 = vld [vmem:[#allocation115_spill] sm:$0xff]  ;;  %vm2990_vm15 = vcmask 194736  }
 0x4cc   : > { %2580 = vst.msk [vmem:[#allocation3 + $0xe9] sm:$0x7f] %vm2553_vm2, %v11836_v49  ;;  %2762 = vrot.lane.b32.xlu1 %v7083_v50, %s6249_s27  ;;  %v11849_v49 = vld [vmem:[#allocation78_spill] sm:$0xff]  ;;  %vm3191_vm2 = vcmask 244962  }
 0x4cd   : > { %2764 = vrot.lane.b32.xlu2 %v7116_v34, %s6249_s27  ;;  %2760 = vrot.lane.b32.xlu0 %v7074_v25, %s6249_s27  ;;  %2714 = vst.msk [vmem:[#allocation3 + $0x4f] sm:$0xfe] %vm2704_vm7, %v11837_v61 }
 0x4ce   : > { %v2586_v59 = vpop.permute.xlu1 %2585 }
 0x4cf   : > { %2675 = vst.msk [vmem:[#allocation3 + $0x18] sm:$0xff] %vm2673_vm6, %v2586_v59  ;;  %v2606_v10 = vpop.permute.xlu2 %2605  ;;  %v2584_v57 = vpop.permute.xlu0 %2583 }
 0x4d0   : > { %2685 = vst.msk [vmem:[#allocation3 + $0x68] sm:$0xff] %vm2673_vm6, %v2606_v10 }
 0x4d1   : > { %2674 = vst.msk [vmem:[#allocation3 + $0x10] sm:$0xff] %vm2673_vm6, %v2584_v57  ;;  %v11850_v57 = vld [vmem:[#allocation94_spill] sm:$0xff] }
 0x4d2   : > { %2705 = vst.msk [vmem:[#allocation3 + $0xf] sm:$0xfe] %vm2704_vm7, %v11838_v12  ;;  %v11851_v12 = vld [vmem:[#allocation95_spill] sm:$0xff] }
 0x4d3   : > { %2707 = vst.msk [vmem:[#allocation3 + $0x17] sm:$0xff] %vm2706_vm8, %v11839_v16 }
 0x4d4   : > { %2768 = vrot.lane.b32.xlu1 %v7161_v46, %s6249_s27 }
 0x4d5   : > { %2770 = vrot.lane.b32.xlu2 %v7208_v37, %s6249_s27  ;;  %2766 = vrot.lane.b32.xlu0 %v7128_v63, %s6249_s27 }
 0x4d6   : > { %v2592_v1 = vpop.permute.xlu1 %2591 }
 0x4d7   : > { %2678 = vst.msk [vmem:[#allocation3 + $0x30] sm:$0xff] %vm2673_vm6, %v2592_v1  ;;  %v2612_v13 = vpop.permute.xlu2 %2611  ;;  %v2590_v52 = vpop.permute.xlu0 %2589 }
 0x4d8   : > { %2710 = vst.msk [vmem:[#allocation3 + $0x2f] sm:$0xfe] %vm2704_vm7, %v11840_v17  ;;  %v11853_v17 = vld [vmem:[#allocation134_spill] sm:$0xff] }
 0x4d9   : > { %2688 = vst.msk [vmem:[#allocation3 + $0x80] sm:$0xff] %vm2673_vm6, %v2612_v13 }
 0x4da   : > { %2720 = vst.msk [vmem:[#allocation3 + $0x7f] sm:$0xfe] %vm2704_vm7, %v11841_v4  ;;  %v11854_v4 = vld [vmem:[#allocation106_spill] sm:$0xff] }
 0x4db   : > { %2677 = vst.msk [vmem:[#allocation3 + $0x28] sm:$0xff] %vm2673_vm6, %v2590_v52  ;;  %v11852_v52 = vld [vmem:[#allocation107_spill] sm:$0xff] }
 0x4dc   : > { %2774 = vrot.lane.b32.xlu1 %v7306_v38, %s6249_s27  ;;  %2711 = vst.msk [vmem:[#allocation3 + $0x37] sm:$0xff] %vm2706_vm8, %v11842_v8  ;;  %v11855_v8 = vld [vmem:[#allocation102_spill] sm:$0xff] }
 0x4dd   : > { %2776 = vrot.lane.b32.xlu2 %v7341_v58, %s6249_s27  ;;  %2772 = vrot.lane.b32.xlu0 %v7261_v7, %s6249_s27  ;;  %2709 = vst.msk [vmem:[#allocation3 + $0x27] sm:$0xff] %vm2706_vm8, %v11843_v55 }
 0x4de   : > { %v2598_v48 = vpop.permute.xlu1 %2597 }
 0x4df   : > { %2681 = vst.msk [vmem:[#allocation3 + $0x48] sm:$0xff] %vm2673_vm6, %v2598_v48  ;;  %v2618_v43 = vpop.permute.xlu2 %2617  ;;  %v2596_v24 = vpop.permute.xlu0 %2595 }
 0x4e0   : > { %2691 = vst.msk [vmem:[#allocation3 + $0x98] sm:$0xff] %vm2673_vm6, %v2618_v43 }
 0x4e1   : > { %2680 = vst.msk [vmem:[#allocation3 + $0x40] sm:$0xff] %vm2673_vm6, %v2596_v24  ;;  %v11856_v24 = vld [vmem:[#allocation119_spill] sm:$0xff] }
 0x4e2   : > { %2712 = vst.msk [vmem:[#allocation3 + $0x3f] sm:$0xfe] %vm2704_vm7, %v11844_v53  ;;  %v11857_v53 = vld [vmem:[#allocation120_spill] sm:$0xff] }
 0x4e3   : > { %2713 = vst.msk [vmem:[#allocation3 + $0x47] sm:$0xff] %vm2706_vm8, %v11845_v42 }
 0x4e4   : > { %2780 = vrot.lane.b32.xlu1 %v7407_v15, %s6249_s27 }
 0x4e5   : > { %2782 = vrot.lane.b32.xlu2 %v7435_v2, %s6249_s27  ;;  %2778 = vrot.lane.b32.xlu0 %v7381_v56, %s6249_s27 }
 0x4e6   : > { %v2604_v14 = vpop.permute.xlu1 %2603 }
 0x4e7   : > { %2684 = vst.msk [vmem:[#allocation3 + $0x60] sm:$0xff] %vm2673_vm6, %v2604_v14  ;;  %v2624_v39 = vpop.permute.xlu2 %2623  ;;  %v2602_v3 = vpop.permute.xlu0 %2601 }
 0x4e8   : > { %2716 = vst.msk [vmem:[#allocation3 + $0x5f] sm:$0xfe] %vm2704_vm7, %v11846_v5  ;;  %v11859_v5 = vld [vmem:[#allocation128_spill] sm:$0xff] }
 0x4e9   : > { %2694 = vst.msk [vmem:[#allocation3 + $0xb0] sm:$0xff] %vm2673_vm6, %v2624_v39 }
 0x4ea   : > { %2726 = vst.msk [vmem:[#allocation3 + $0xaf] sm:$0xfe] %vm2704_vm7, %v11847_v28  ;;  %v11860_v28 = vld [vmem:[#allocation124_spill] sm:$0xff] }
 0x4eb   : > { %2683 = vst.msk [vmem:[#allocation3 + $0x58] sm:$0xff] %vm2673_vm6, %v2602_v3  ;;  %v11858_v3 = vld [vmem:[#allocation129_spill] sm:$0xff] }
 0x4ec   : > { %2786 = vrot.lane.b32.xlu1 %v7491_v21, %s6249_s27  ;;  %2715 = vst.msk [vmem:[#allocation3 + $0x57] sm:$0xff] %vm2706_vm8, %v11848_v9 }
 0x4ed   : > { %2788 = vrot.lane.b32.xlu2 %v7515_v11, %s6249_s27  ;;  %2784 = vrot.lane.b32.xlu0 %v7467_v33, %s6249_s27  ;;  %2717 = vst.msk [vmem:[#allocation3 + $0x67] sm:$0xff] %vm2706_vm8, %v11849_v49 }
 0x4ee   : > { %v2610_v61 = vpop.permute.xlu1 %2609 }
 0x4ef   : > { %2687 = vst.msk [vmem:[#allocation3 + $0x78] sm:$0xff] %vm2673_vm6, %v2610_v61  ;;  %v2630_v59 = vpop.permute.xlu2 %2629  ;;  %v2608_v10 = vpop.permute.xlu0 %2607 }
 0x4f0   : > { %2697 = vst.msk [vmem:[#allocation3 + $0xc8] sm:$0xff] %vm2673_vm6, %v2630_v59  ;;  %v11861_v59 = vld [vmem:[#allocation72_spill] sm:$0xff] }
 0x4f1   : > { %2686 = vst.msk [vmem:[#allocation3 + $0x70] sm:$0xff] %vm2673_vm6, %v2608_v10  ;;  %v11862_v10 = vld [vmem:[#allocation138_spill] sm:$0xff] }
 0x4f2   : > { %2718 = vst.msk [vmem:[#allocation3 + $0x6f] sm:$0xfe] %vm2704_vm7, %v11850_v57  ;;  %v11863_v57 = vld [vmem:[#allocation139_spill] sm:$0xff] }
 0x4f3   : > { %2719 = vst.msk [vmem:[#allocation3 + $0x77] sm:$0xff] %vm2706_vm8, %v11851_v12 }
 0x4f4   : > { %2792 = vrot.lane.b32.xlu1 %v7592_v27, %s6249_s27 }
 0x4f5   : > { %2794 = vrot.lane.b32.xlu2 %v7630_v47, %s6249_s27  ;;  %2790 = vrot.lane.b32.xlu0 %v7572_v30, %s6249_s27  ;;  %s6257_s27 = smov 36  }
 0x4f6   : > { %v2616_v16 = vpop.permute.xlu1 %2615 }
 0x4f7   : > { %2690 = vst.msk [vmem:[#allocation3 + $0x90] sm:$0xff] %vm2673_vm6, %v2616_v16  ;;  %v2636_v1 = vpop.permute.xlu2 %2635  ;;  %v2614_v13 = vpop.permute.xlu0 %2613 }
 0x4f8   : > { %2722 = vst.msk [vmem:[#allocation3 + $0x8f] sm:$0xfe] %vm2704_vm7, %v11852_v52  ;;  %v11865_v52 = vld [vmem:[#allocation144_spill] sm:$0xff] }
 0x4f9   : > { %2700 = vst.msk [vmem:[#allocation3 + $0xe0] sm:$0xff] %vm2673_vm6, %v2636_v1 }
 0x4fa   : > { %2732 = vst.msk [vmem:[#allocation3 + $0xdf] sm:$0xfe] %vm2704_vm7, %v11853_v17  ;;  %v11866_v17 = vld [vmem:[#allocation147_spill] sm:$0xff] }
 0x4fb   : > { %2689 = vst.msk [vmem:[#allocation3 + $0x88] sm:$0xff] %vm2673_vm6, %v2614_v13  ;;  %v11864_v13 = vld [vmem:[#allocation148_spill] sm:$0xff] }
 0x4fc   : > { %2894 = vrot.lane.b32.xlu1 %v6599_v22, %s6250_s14  ;;  %2721 = vst.msk [vmem:[#allocation3 + $0x87] sm:$0xff] %vm2706_vm8, %v11854_v4 }
 0x4fd   : > { %2896 = vrot.lane.b32.xlu2 %v6618_v26, %s6250_s14  ;;  %2892 = vrot.lane.b32.xlu0 %v6578_v18, %s6250_s14  ;;  %2723 = vst.msk [vmem:[#allocation3 + $0x97] sm:$0xff] %vm2706_vm8, %v11855_v8 }
 0x4fe   : > { %v2622_v55 = vpop.permute.xlu1 %2621 }
 0x4ff   : > { %2693 = vst.msk [vmem:[#allocation3 + $0xa8] sm:$0xff] %vm2673_vm6, %v2622_v55  ;;  %v2642_v48 = vpop.permute.xlu2 %2641  ;;  %v2620_v43 = vpop.permute.xlu0 %2619 }
 0x500   : > { %2703 = vst.msk [vmem:[#allocation3 + $0xf8] sm:$0xff] %vm2673_vm6, %v2642_v48  ;;  %v11867_v48 = vld [vmem:[#allocation36_spill] sm:$0xff] }
 0x501   : > { %2692 = vst.msk [vmem:[#allocation3 + $0xa0] sm:$0xff] %vm2673_vm6, %v2620_v43  ;;  %v11868_v43 = vld [vmem:[#allocation97_spill] sm:$0xff] }
 0x502   : > { %2724 = vst.msk [vmem:[#allocation3 + $0x9f] sm:$0xfe] %vm2704_vm7, %v11856_v24  ;;  %v11869_v24 = vld [vmem:[#allocation43_spill] sm:$0xff] }
 0x503   : > { %2725 = vst.msk [vmem:[#allocation3 + $0xa7] sm:$0xff] %vm2706_vm8, %v11857_v53 }
 0x504   : > { %2900 = vrot.lane.b32.xlu1 %v6642_v32, %s6250_s14 }
 0x505   : > { %2902 = vrot.lane.b32.xlu2 %v6661_v36, %s6250_s14  ;;  %2898 = vrot.lane.b32.xlu0 %v6630_v29, %s6250_s14 }
 0x506   : > { %v2628_v42 = vpop.permute.xlu1 %2627 }
 0x507   : > { %2696 = vst.msk [vmem:[#allocation3 + $0xc0] sm:$0xff] %vm2673_vm6, %v2628_v42  ;;  %v2741_v14 = vpop.permute.xlu2 %2740  ;;  %v2626_v39 = vpop.permute.xlu0 %2625 }
 0x508   : > { %2728 = vst.msk [vmem:[#allocation3 + $0xbf] sm:$0xfe] %vm2704_vm7, %v11858_v3  ;;  %v11871_v3 = vld [vmem:[#allocation57_spill] sm:$0xff] }
 0x509   : > { %2830 = vst.msk [vmem:[#allocation3 + $0x1e] sm:$0xfc] %vm2826_vm11, %v2741_v14 }
 0x50a   : > { %2695 = vst.msk [vmem:[#allocation3 + $0xb8] sm:$0xff] %vm2673_vm6, %v2626_v39  ;;  %v11870_v39 = vld [vmem:[#allocation52_spill] sm:$0xff] }
 0x50b   : > { %2727 = vst.msk [vmem:[#allocation3 + $0xb7] sm:$0xff] %vm2706_vm8, %v11859_v5  ;;  %v11872_v5 = vld [vmem:[#allocation59_spill] sm:$0xff] }
 0x50c   : > { %2906 = vrot.lane.b32.xlu1 %v6699_v44, %s6250_s14  ;;  %2729 = vst.msk [vmem:[#allocation3 + $0xc7] sm:$0xff] %vm2706_vm8, %v11860_v28 }
 0x50d   : > { %2908 = vrot.lane.b32.xlu2 %v6815_v51, %s6250_s14  ;;  %2904 = vrot.lane.b32.xlu0 %v6680_v40, %s6250_s14 }
 0x50e   : > { %v2634_v9 = vpop.permute.xlu1 %2633 }
 0x50f   : > { %2699 = vst.msk [vmem:[#allocation3 + $0xd8] sm:$0xff] %vm2673_vm6, %v2634_v9  ;;  %v2747_v49 = vpop.permute.xlu2 %2746  ;;  %v2632_v61 = vpop.permute.xlu0 %2631 }
 0x510   : > { %2833 = vst.msk [vmem:[#allocation3 + $0x36] sm:$0xff] %vm2828_vm12, %v2747_v49 }
 0x511   : > { %2867 = vst.msk [vmem:[#allocation3 + $0x3a] sm:$0x3f] %vm2860_vm14, %v11861_v59  ;;  %v11874_v59 = vld [vmem:[#allocation121_spill] sm:$0xff] }
 0x512   : > { %2698 = vst.msk [vmem:[#allocation3 + $0xd0] sm:$0xff] %vm2673_vm6, %v2632_v61  ;;  %v11873_v61 = vld [vmem:[#allocation67_spill] sm:$0xff] }
 0x513   : > { %2730 = vst.msk [vmem:[#allocation3 + $0xcf] sm:$0xfe] %vm2704_vm7, %v11862_v10  ;;  %v11875_v10 = vld [vmem:[#allocation74_spill] sm:$0xff] }
 0x514   : > { %2731 = vst.msk [vmem:[#allocation3 + $0xd7] sm:$0xff] %vm2706_vm8, %v11863_v57  ;;  %2912 = vrot.lane.b32.xlu1 %v6942_v20, %s6250_s14 }
 0x515   : > { %2914 = vrot.lane.b32.xlu2 %v6978_v31, %s6250_s14  ;;  %2910 = vrot.lane.b32.xlu0 %v6906_v62, %s6250_s14 }
 0x516   : > { %v2640_v12 = vpop.permute.xlu1 %2639 }
 0x517   : > { %2702 = vst.msk [vmem:[#allocation3 + $0xf0] sm:$0xff] %vm2673_vm6, %v2640_v12  ;;  %v2753_v16 = vpop.permute.xlu2 %2752  ;;  %v2638_v1 = vpop.permute.xlu0 %2637 }
 0x518   : > { %2734 = vst.msk [vmem:[#allocation3 + $0xef] sm:$0xfe] %vm2704_vm7, %v11864_v13  ;;  %v11877_v13 = vld [vmem:[#allocation85_spill] sm:$0xff]  ;;  %vm3315_vm7 = vcmask 261360  }
 0x519   : > { %2735 = vst.msk [vmem:[#allocation3 + $0xf7] sm:$0xff] %vm2706_vm8, %v11865_v52  ;;  %v11878_v52 = vld [vmem:[#allocation86_spill] sm:$0xff] }
 0x51a   : > { %2836 = vst.msk [vmem:[#allocation3 + $0x4e] sm:$0xfc] %vm2826_vm11, %v2753_v16 }
 0x51b   : > { %2701 = vst.msk [vmem:[#allocation3 + $0xe8] sm:$0xff] %vm2673_vm6, %v2638_v1  ;;  %v11876_v1 = vld [vmem:[#allocation81_spill] sm:$0xff]  ;;  %vm3193_vm6 = vcmask 244960  }
 0x51c   : > { %2733 = vst.msk [vmem:[#allocation3 + $0xe7] sm:$0xff] %vm2706_vm8, %v11866_v17  ;;  %2918 = vrot.lane.b32.xlu1 %v7083_v50, %s6250_s14  ;;  %vm3347_vm8 = vcmask 277760  }
 0x51d   : > { %2920 = vrot.lane.b32.xlu2 %v7116_v34, %s6250_s14  ;;  %2916 = vrot.lane.b32.xlu0 %v7074_v25, %s6250_s14 }
 0x51e   : > { %v2739_v4 = vpop.permute.xlu1 %2738 }
 0x51f   : > { %2829 = vst.msk [vmem:[#allocation3 + $0x16] sm:$0xff] %vm2828_vm12, %v2739_v4  ;;  %v2759_v8 = vpop.permute.xlu2 %2758  ;;  %v2737_v55 = vpop.permute.xlu0 %2736 }
 0x520   : > { %2863 = vst.msk [vmem:[#allocation3 + $0x1a] sm:$0x3f] %vm2860_vm14, %v11867_v48  ;;  %v11880_v48 = vld [vmem:[#allocation140_spill] sm:$0xff] }
 0x521   : > { %2839 = vst.msk [vmem:[#allocation3 + $0x66] sm:$0xff] %vm2828_vm12, %v2759_v8 }
 0x522   : > { %2873 = vst.msk [vmem:[#allocation3 + $0x6a] sm:$0x3f] %vm2860_vm14, %v11868_v43  ;;  %v11881_v43 = vld [vmem:[#allocation98_spill] sm:$0xff] }
 0x523   : > { %2827 = vst.msk [vmem:[#allocation3 + $0xe] sm:$0xfc] %vm2826_vm11, %v2737_v55  ;;  %v11879_v55 = vld [vmem:[#allocation93_spill] sm:$0xff] }
 0x524   : > { %2862 = vst.msk [vmem:[#allocation3 + $0x12] sm:$0xff] %vm2858_vm4, %v11869_v24  ;;  %2924 = vrot.lane.b32.xlu1 %v7161_v46, %s6250_s14 }
 0x525   : > { %2926 = vrot.lane.b32.xlu2 %v7208_v37, %s6250_s14  ;;  %2922 = vrot.lane.b32.xlu0 %v7128_v63, %s6250_s14 }
 0x526   : > { %v2745_v53 = vpop.permute.xlu1 %2744 }
 0x527   : > { %2832 = vst.msk [vmem:[#allocation3 + $0x2e] sm:$0xfc] %vm2826_vm11, %v2745_v53  ;;  %v2765_v42 = vpop.permute.xlu2 %2764  ;;  %v2743_v14 = vpop.permute.xlu0 %2742 }
 0x528   : > { %2866 = vst.msk [vmem:[#allocation3 + $0x32] sm:$0xff] %vm2858_vm4, %v11870_v39  ;;  %v11883_v39 = vld [vmem:[#allocation109_spill] sm:$0xff] }
 0x529   : > { %2842 = vst.msk [vmem:[#allocation3 + $0x7e] sm:$0xfc] %vm2826_vm11, %v2765_v42 }
 0x52a   : > { %2831 = vst.msk [vmem:[#allocation3 + $0x26] sm:$0xff] %vm2828_vm12, %v2743_v14  ;;  %v11882_v14 = vld [vmem:[#allocation105_spill] sm:$0xff] }
 0x52b   : > { %2864 = vst.msk [vmem:[#allocation3 + $0x22] sm:$0xff] %vm2858_vm4, %v11871_v3  ;;  %v11884_v3 = vld [vmem:[#allocation110_spill] sm:$0xff] }
 0x52c   : > { %2865 = vst.msk [vmem:[#allocation3 + $0x2a] sm:$0x3f] %vm2860_vm14, %v11872_v5  ;;  %2930 = vrot.lane.b32.xlu1 %v7306_v38, %s6250_s14  ;;  %v11885_v5 = vld [vmem:[#allocation112_spill] sm:$0xff] }
 0x52d   : > { %2932 = vrot.lane.b32.xlu2 %v7341_v58, %s6250_s14  ;;  %2928 = vrot.lane.b32.xlu0 %v7261_v7, %s6250_s14 }
 0x52e   : > { %v2751_v28 = vpop.permute.xlu1 %2750 }
 0x52f   : > { %2835 = vst.msk [vmem:[#allocation3 + $0x46] sm:$0xff] %vm2828_vm12, %v2751_v28  ;;  %v2771_v9 = vpop.permute.xlu2 %2770  ;;  %v2749_v49 = vpop.permute.xlu0 %2748 }
 0x530   : > { %2869 = vst.msk [vmem:[#allocation3 + $0x4a] sm:$0x3f] %vm2860_vm14, %v11873_v61  ;;  %v11886_v61 = vld [vmem:[#allocation118_spill] sm:$0xff] }
 0x531   : > { %2845 = vst.msk [vmem:[#allocation3 + $0x96] sm:$0xff] %vm2828_vm12, %v2771_v9 }
 0x532   : > { %2879 = vst.msk [vmem:[#allocation3 + $0x9a] sm:$0x3f] %vm2860_vm14, %v11874_v59  ;;  %v11887_v59 = vld [vmem:[#allocation157_spill] sm:$0xff] }
 0x533   : > { %2834 = vst.msk [vmem:[#allocation3 + $0x3e] sm:$0xfc] %vm2826_vm11, %v2749_v49 }
 0x534   : > { %2868 = vst.msk [vmem:[#allocation3 + $0x42] sm:$0xff] %vm2858_vm4, %v11875_v10  ;;  %2936 = vrot.lane.b32.xlu1 %v7407_v15, %s6250_s14  ;;  %v11888_v10 = vld [vmem:[#allocation122_spill] sm:$0xff] }
 0x535   : > { %2938 = vrot.lane.b32.xlu2 %v7435_v2, %s6250_s14  ;;  %2934 = vrot.lane.b32.xlu0 %v7381_v56, %s6250_s14 }
 0x536   : > { %v2757_v57 = vpop.permute.xlu1 %2756 }
 0x537   : > { %2838 = vst.msk [vmem:[#allocation3 + $0x5e] sm:$0xfc] %vm2826_vm11, %v2757_v57  ;;  %v2777_v12 = vpop.permute.xlu2 %2776  ;;  %v2755_v16 = vpop.permute.xlu0 %2754 }
 0x538   : > { %2872 = vst.msk [vmem:[#allocation3 + $0x62] sm:$0xff] %vm2858_vm4, %v11876_v1  ;;  %v11889_v1 = vld [vmem:[#allocation127_spill] sm:$0xff] }
 0x539   : > { %2848 = vst.msk [vmem:[#allocation3 + $0xae] sm:$0xfc] %vm2826_vm11, %v2777_v12 }
 0x53a   : > { %2837 = vst.msk [vmem:[#allocation3 + $0x56] sm:$0xff] %vm2828_vm12, %v2755_v16 }
 0x53b   : > { %2870 = vst.msk [vmem:[#allocation3 + $0x52] sm:$0xff] %vm2858_vm4, %v11877_v13  ;;  %v11890_v13 = vld [vmem:[#allocation131_spill] sm:$0xff] }
 0x53c   : > { %2871 = vst.msk [vmem:[#allocation3 + $0x5a] sm:$0x3f] %vm2860_vm14, %v11878_v52  ;;  %2942 = vrot.lane.b32.xlu1 %v7491_v21, %s6250_s14  ;;  %v11891_v52 = vld [vmem:[#allocation132_spill] sm:$0xff] }
 0x53d   : > { %2944 = vrot.lane.b32.xlu2 %v7515_v11, %s6250_s14  ;;  %2940 = vrot.lane.b32.xlu0 %v7467_v33, %s6250_s14 }
 0x53e   : > { %v2763_v17 = vpop.permute.xlu1 %2762 }
 0x53f   : > { %2841 = vst.msk [vmem:[#allocation3 + $0x76] sm:$0xff] %vm2828_vm12, %v2763_v17  ;;  %v2783_v4 = vpop.permute.xlu2 %2782  ;;  %v2761_v8 = vpop.permute.xlu0 %2760  ;;  %v11892_v17 = vld [vmem:[#allocation46_spill] sm:$0xff] }
 0x540   : > { %2875 = vst.msk [vmem:[#allocation3 + $0x7a] sm:$0x3f] %vm2860_vm14, %v11879_v55 }
 0x541   : > { %2851 = vst.msk [vmem:[#allocation3 + $0xc6] sm:$0xff] %vm2828_vm12, %v2783_v4 }
 0x542   : > { %2885 = vst.msk [vmem:[#allocation3 + $0xca] sm:$0x3f] %vm2860_vm14, %v11880_v48  ;;  %v11893_v48 = vld [vmem:[#allocation137_spill] sm:$0xff] }
 0x543   : > { %2840 = vst.msk [vmem:[#allocation3 + $0x6e] sm:$0xfc] %vm2826_vm11, %v2761_v8 }
 0x544   : > { %2874 = vst.msk [vmem:[#allocation3 + $0x72] sm:$0xff] %vm2858_vm4, %v11881_v43  ;;  %2948 = vrot.lane.b32.xlu1 %v7592_v27, %s6250_s14  ;;  %v11894_v43 = vld [vmem:[#allocation141_spill] sm:$0xff] }
 0x545   : > { %2950 = vrot.lane.b32.xlu2 %v7630_v47, %s6250_s14  ;;  %2946 = vrot.lane.b32.xlu0 %v7572_v30, %s6250_s14 }
 0x546   : > { %v2769_v24 = vpop.permute.xlu1 %2768 }
 0x547   : > { %2844 = vst.msk [vmem:[#allocation3 + $0x8e] sm:$0xfc] %vm2826_vm11, %v2769_v24  ;;  %v2789_v53 = vpop.permute.xlu2 %2788  ;;  %v2767_v42 = vpop.permute.xlu0 %2766 }
 0x548   : > { %2878 = vst.msk [vmem:[#allocation3 + $0x92] sm:$0xff] %vm2858_vm4, %v11882_v14  ;;  %v11895_v14 = vld [vmem:[#allocation146_spill] sm:$0xff] }
 0x549   : > { %2854 = vst.msk [vmem:[#allocation3 + $0xde] sm:$0xfc] %vm2826_vm11, %v2789_v53 }
 0x54a   : > { %2843 = vst.msk [vmem:[#allocation3 + $0x86] sm:$0xff] %vm2828_vm12, %v2767_v42 }
 0x54b   : > { %2876 = vst.msk [vmem:[#allocation3 + $0x82] sm:$0xff] %vm2858_vm4, %v11883_v39  ;;  %v11896_v39 = vld [vmem:[#allocation150_spill] sm:$0xff] }
 0x54c   : > { %2877 = vst.msk [vmem:[#allocation3 + $0x8a] sm:$0x3f] %vm2860_vm14, %v11884_v3  ;;  %2954 = vrot.lane.b32.xlu1 %v7712_v19, %s6250_s14  ;;  %v11897_v3 = vld [vmem:[#allocation151_spill] sm:$0xff] }
 0x54d   : > { %3055 = vrot.lane.b32.xlu2 %v6578_v18, %s6251_s16  ;;  %2952 = vrot.lane.b32.xlu0 %v11885_v5, %s6250_s14  ;;  %s6258_s14 = smov 38  }
 0x54e   : > { %v2775_v28 = vpop.permute.xlu1 %2774 }
 0x54f   : > { %2847 = vst.msk [vmem:[#allocation3 + $0xa6] sm:$0xff] %vm2828_vm12, %v2775_v28  ;;  %v2795_v9 = vpop.permute.xlu2 %2794  ;;  %v2773_v49 = vpop.permute.xlu0 %2772  ;;  %v11898_v28 = vld [vmem:[#allocation75_spill] sm:$0xff] }
 0x550   : > { %2881 = vst.msk [vmem:[#allocation3 + $0xaa] sm:$0x3f] %vm2860_vm14, %v11886_v61 }
 0x551   : > { %2857 = vst.msk [vmem:[#allocation3 + $0xf6] sm:$0xff] %vm2828_vm12, %v2795_v9 }
 0x552   : > { %2891 = vst.msk [vmem:[#allocation3 + $0xfa] sm:$0x3f] %vm2860_vm14, %v11887_v59  ;;  %v11899_v59 = vld [vmem:[#allocation32_spill] sm:$0xff] }
 0x553   : > { %2846 = vst.msk [vmem:[#allocation3 + $0x9e] sm:$0xfc] %vm2826_vm11, %v2773_v49 }
 0x554   : > { %2880 = vst.msk [vmem:[#allocation3 + $0xa2] sm:$0xff] %vm2858_vm4, %v11888_v10  ;;  %3059 = vrot.lane.b32.xlu1 %v6618_v26, %s6251_s16  ;;  %v11900_v10 = vld [vmem:[#allocation28_spill] sm:$0xff] }
 0x555   : > { %3061 = vrot.lane.b32.xlu2 %v6630_v29, %s6251_s16  ;;  %3057 = vrot.lane.b32.xlu0 %v6599_v22, %s6251_s16 }
 0x556   : > { %v2781_v57 = vpop.permute.xlu1 %2780 }
 0x557   : > { %2850 = vst.msk [vmem:[#allocation3 + $0xbe] sm:$0xfc] %vm2826_vm11, %v2781_v57  ;;  %v2897_v12 = vpop.permute.xlu2 %2896  ;;  %v2779_v16 = vpop.permute.xlu0 %2778 }
 0x558   : > { %2884 = vst.msk [vmem:[#allocation3 + $0xc2] sm:$0xff] %vm2858_vm4, %v11889_v1  ;;  %v11901_v1 = vld [vmem:[#allocation48_spill] sm:$0xff] }
 0x559   : > { %2992 = vst.msk [vmem:[#allocation3 + $0x11] sm:$0xff] %vm2988_vm5, %v2897_v12 }
 0x55a   : > { %2849 = vst.msk [vmem:[#allocation3 + $0xb6] sm:$0xff] %vm2828_vm12, %v2779_v16 }
 0x55b   : > { %2882 = vst.msk [vmem:[#allocation3 + $0xb2] sm:$0xff] %vm2858_vm4, %v11890_v13  ;;  %v11902_v13 = vld [vmem:[#allocation41_spill] sm:$0xff] }
 0x55c   : > { %2883 = vst.msk [vmem:[#allocation3 + $0xba] sm:$0x3f] %vm2860_vm14, %v11891_v52  ;;  %3065 = vrot.lane.b32.xlu1 %v6661_v36, %s6251_s16  ;;  %v11903_v52 = vld [vmem:[#allocation60_spill] sm:$0xff] }
 0x55d   : > { %3067 = vrot.lane.b32.xlu2 %v6680_v40, %s6251_s16  ;;  %3063 = vrot.lane.b32.xlu0 %v6642_v32, %s6251_s16  ;;  %3025 = vst.msk [vmem:[#allocation3 + $0x10] sm:$0xff] %vm3022_vm13, %v11892_v17  ;;  %v11904_v17 = vld [vmem:[#allocation99_spill] sm:$0xff] }
 0x55e   : > { %v2787_v4 = vpop.permute.xlu1 %2786 }
 0x55f   : > { %2853 = vst.msk [vmem:[#allocation3 + $0xd6] sm:$0xff] %vm2828_vm12, %v2787_v4  ;;  %v2903_v8 = vpop.permute.xlu2 %2902  ;;  %v2785_v55 = vpop.permute.xlu0 %2784 }
 0x560   : > { %2887 = vst.msk [vmem:[#allocation3 + $0xda] sm:$0x3f] %vm2860_vm14, %v11893_v48  ;;  %v11905_v48 = vld [vmem:[#allocation62_spill] sm:$0xff] }
 0x561   : > { %2995 = vst.msk [vmem:[#allocation3 + $0x29] sm:$0x7f] %vm2990_vm15, %v2903_v8 }
 0x562   : > { %2852 = vst.msk [vmem:[#allocation3 + $0xce] sm:$0xfc] %vm2826_vm11, %v2785_v55 }
 0x563   : > { %2886 = vst.msk [vmem:[#allocation3 + $0xd2] sm:$0xff] %vm2858_vm4, %v11894_v43  ;;  %v11906_v43 = vld [vmem:[#allocation56_spill] sm:$0xff] }
 0x564   : > { %3071 = vrot.lane.b32.xlu1 %v6815_v51, %s6251_s16 }
 0x565   : > { %3073 = vrot.lane.b32.xlu2 %v6906_v62, %s6251_s16  ;;  %3069 = vrot.lane.b32.xlu0 %v6699_v44, %s6251_s16 }
 0x566   : > { %v2793_v24 = vpop.permute.xlu1 %2792 }
 0x567   : > { %2856 = vst.msk [vmem:[#allocation3 + $0xee] sm:$0xfc] %vm2826_vm11, %v2793_v24  ;;  %v2909_v53 = vpop.permute.xlu2 %2908  ;;  %v2791_v42 = vpop.permute.xlu0 %2790  ;;  %vm3317_vm11 = vcmask 259312  }
 0x568   : > { %2890 = vst.msk [vmem:[#allocation3 + $0xf2] sm:$0xff] %vm2858_vm4, %v11895_v14  ;;  %v11907_v14 = vld [vmem:[#allocation76_spill] sm:$0xff] }
 0x569   : > { %2998 = vst.msk [vmem:[#allocation3 + $0x41] sm:$0xff] %vm2988_vm5, %v2909_v53 }
 0x56a   : > { %2855 = vst.msk [vmem:[#allocation3 + $0xe6] sm:$0xff] %vm2828_vm12, %v2791_v42  ;;  %vm3349_vm12 = vcmask 276736  }
 0x56b   : > { %2888 = vst.msk [vmem:[#allocation3 + $0xe2] sm:$0xff] %vm2858_vm4, %v11896_v39  ;;  %v11908_v39 = vld [vmem:[#allocation71_spill] sm:$0xff]  ;;  %vm3151_vm4 = vcmask 228561  }
 0x56c   : > { %2889 = vst.msk [vmem:[#allocation3 + $0xea] sm:$0x3f] %vm2860_vm14, %v11897_v3  ;;  %3077 = vrot.lane.b32.xlu1 %v6978_v31, %s6251_s16  ;;  %v11909_v3 = vld [vmem:[#allocation87_spill] sm:$0xff]  ;;  %vm3153_vm14 = vcmask 228560  }
 0x56d   : > { %3079 = vrot.lane.b32.xlu2 %v7074_v25, %s6251_s16  ;;  %3075 = vrot.lane.b32.xlu0 %v6942_v20, %s6251_s16  ;;  %3031 = vst.msk [vmem:[#allocation3 + $0x40] sm:$0xff] %vm3022_vm13, %v11898_v28  ;;  %v11910_v28 = vld [vmem:[#allocation153_spill] sm:$0xff] }
 0x56e   : > { %v2895_v9 = vpop.permute.xlu1 %2894 }
 0x56f   : > { %2991 = vst.msk [vmem:[#allocation3 + $0x9] sm:$0x7f] %vm2990_vm15, %v2895_v9  ;;  %v2915_v49 = vpop.permute.xlu2 %2914  ;;  %v2893_v61 = vpop.permute.xlu0 %2892 }
 0x570   : > { %3001 = vst.msk [vmem:[#allocation3 + $0x59] sm:$0x7f] %vm2990_vm15, %v2915_v49 }
 0x571   : > { %2989 = vst.msk [vmem:[#allocation3 + $0x1] sm:$0xff] %vm2988_vm5, %v2893_v61 }
 0x572   : > { %3023 = vst.msk [vmem:[#allocation3] sm:$0xff] %vm3022_vm13, %v11899_v59  ;;  %v11911_v59 = vld [vmem:[#allocation88_spill] sm:$0xff] }
 0x573   : > { %3024 = vst.msk [vmem:[#allocation3 + $0x8] sm:$0xff] %vm3022_vm13, %v11900_v10  ;;  %v11912_v10 = vld [vmem:[#allocation84_spill] sm:$0xff] }
 0x574   : > { %3083 = vrot.lane.b32.xlu1 %v7116_v34, %s6251_s16 }
 0x575   : > { %3085 = vrot.lane.b32.xlu2 %v7128_v63, %s6251_s16  ;;  %3081 = vrot.lane.b32.xlu0 %v7083_v50, %s6251_s16 }
 0x576   : > { %v2901_v57 = vpop.permute.xlu1 %2900 }
 0x577   : > { %2994 = vst.msk [vmem:[#allocation3 + $0x21] sm:$0xff] %vm2988_vm5, %v2901_v57  ;;  %v2921_v12 = vpop.permute.xlu2 %2920  ;;  %v2899_v16 = vpop.permute.xlu0 %2898 }
 0x578   : > { %3004 = vst.msk [vmem:[#allocation3 + $0x71] sm:$0xff] %vm2988_vm5, %v2921_v12 }
 0x579   : > { %2993 = vst.msk [vmem:[#allocation3 + $0x19] sm:$0x7f] %vm2990_vm15, %v2899_v16 }
 0x57a   : > { %3026 = vst.msk [vmem:[#allocation3 + $0x18] sm:$0xff] %vm3022_vm13, %v11901_v1  ;;  %v11913_v1 = vld [vmem:[#allocation100_spill] sm:$0xff] }
 0x57b   : > { %3027 = vst.msk [vmem:[#allocation3 + $0x20] sm:$0xff] %vm3022_vm13, %v11902_v13  ;;  %v11914_v13 = vld [vmem:[#allocation96_spill] sm:$0xff] }
 0x57c   : > { %3089 = vrot.lane.b32.xlu1 %v7208_v37, %s6251_s16  ;;  %3028 = vst.msk [vmem:[#allocation3 + $0x28] sm:$0xff] %vm3022_vm13, %v11903_v52  ;;  %v11915_v52 = vld [vmem:[#allocation111_spill] sm:$0xff] }
 0x57d   : > { %3091 = vrot.lane.b32.xlu2 %v7261_v7, %s6251_s16  ;;  %3087 = vrot.lane.b32.xlu0 %v7161_v46, %s6251_s16  ;;  %3037 = vst.msk [vmem:[#allocation3 + $0x70] sm:$0xff] %vm3022_vm13, %v11904_v17  ;;  %v11916_v17 = vld [vmem:[#allocation163_spill] sm:$0xff] }
 0x57e   : > { %v2907_v4 = vpop.permute.xlu1 %2906 }
 0x57f   : > { %2997 = vst.msk [vmem:[#allocation3 + $0x39] sm:$0x7f] %vm2990_vm15, %v2907_v4  ;;  %v2927_v8 = vpop.permute.xlu2 %2926  ;;  %v2905_v55 = vpop.permute.xlu0 %2904 }
 0x580   : > { %3007 = vst.msk [vmem:[#allocation3 + $0x89] sm:$0x7f] %vm2990_vm15, %v2927_v8 }
 0x581   : > { %2996 = vst.msk [vmem:[#allocation3 + $0x31] sm:$0xff] %vm2988_vm5, %v2905_v55 }
 0x582   : > { %3029 = vst.msk [vmem:[#allocation3 + $0x30] sm:$0xff] %vm3022_vm13, %v11905_v48  ;;  %v11917_v48 = vld [vmem:[#allocation113_spill] sm:$0xff] }
 0x583   : > { %3030 = vst.msk [vmem:[#allocation3 + $0x38] sm:$0xff] %vm3022_vm13, %v11906_v43  ;;  %v11918_v43 = vld [vmem:[#allocation108_spill] sm:$0xff] }
 0x584   : > { %3095 = vrot.lane.b32.xlu1 %v7341_v58, %s6251_s16 }
 0x585   : > { %3097 = vrot.lane.b32.xlu2 %v7381_v56, %s6251_s16  ;;  %3093 = vrot.lane.b32.xlu0 %v7306_v38, %s6251_s16 }
 0x586   : > { %v2913_v24 = vpop.permute.xlu1 %2912 }
 0x587   : > { %3000 = vst.msk [vmem:[#allocation3 + $0x51] sm:$0xff] %vm2988_vm5, %v2913_v24  ;;  %v2933_v53 = vpop.permute.xlu2 %2932  ;;  %v2911_v42 = vpop.permute.xlu0 %2910 }
 0x588   : > { %3010 = vst.msk [vmem:[#allocation3 + $0xa1] sm:$0xff] %vm2988_vm5, %v2933_v53 }
 0x589   : > { %2999 = vst.msk [vmem:[#allocation3 + $0x49] sm:$0x7f] %vm2990_vm15, %v2911_v42 }
 0x58a   : > { %3032 = vst.msk [vmem:[#allocation3 + $0x48] sm:$0xff] %vm3022_vm13, %v11907_v14  ;;  %v11919_v14 = vld [vmem:[#allocation149_spill] sm:$0xff] }
 0x58b   : > { %3033 = vst.msk [vmem:[#allocation3 + $0x50] sm:$0xff] %vm3022_vm13, %v11908_v39  ;;  %v11920_v39 = vld [vmem:[#allocation160_spill] sm:$0xff] }
 0x58c   : > { %3101 = vrot.lane.b32.xlu1 %v7435_v2, %s6251_s16  ;;  %3034 = vst.msk [vmem:[#allocation3 + $0x58] sm:$0xff] %vm3022_vm13, %v11909_v3 }
 0x58d   : > { %3103 = vrot.lane.b32.xlu2 %v7467_v33, %s6251_s16  ;;  %3099 = vrot.lane.b32.xlu0 %v7407_v15, %s6251_s16  ;;  %3043 = vst.msk [vmem:[#allocation3 + $0xa0] sm:$0xff] %vm3022_vm13, %v11910_v28 }
 0x58e   : > { %v2919_v9 = vpop.permute.xlu1 %2918 }
 0x58f   : > { %3003 = vst.msk [vmem:[#allocation3 + $0x69] sm:$0x7f] %vm2990_vm15, %v2919_v9  ;;  %v2939_v49 = vpop.permute.xlu2 %2938  ;;  %v2917_v61 = vpop.permute.xlu0 %2916  ;;  %v11922_v9 = vld [vmem:[#allocation158_spill] sm:$0xff] }
 0x590   : > { %3013 = vst.msk [vmem:[#allocation3 + $0xb9] sm:$0x7f] %vm2990_vm15, %v2939_v49  ;;  %v11923_v49 = vld [vmem:[#allocation152_spill] sm:$0xff] }
 0x591   : > { %3002 = vst.msk [vmem:[#allocation3 + $0x61] sm:$0xff] %vm2988_vm5, %v2917_v61 }
 0x592   : > { %3035 = vst.msk [vmem:[#allocation3 + $0x60] sm:$0xff] %vm3022_vm13, %v11911_v59 }
 0x593   : > { %3036 = vst.msk [vmem:[#allocation3 + $0x68] sm:$0xff] %vm3022_vm13, %v11912_v10 }
 0x594   : > { %3107 = vrot.lane.b32.xlu1 %v7515_v11, %s6251_s16 }
 0x595   : > { %3109 = vrot.lane.b32.xlu2 %v7572_v30, %s6251_s16  ;;  %3105 = vrot.lane.b32.xlu0 %v7491_v21, %s6251_s16 }
 0x596   : > { %v2925_v57 = vpop.permute.xlu1 %2924 }
 0x597   : > { %3006 = vst.msk [vmem:[#allocation3 + $0x81] sm:$0xff] %vm2988_vm5, %v2925_v57  ;;  %v2945_v12 = vpop.permute.xlu2 %2944  ;;  %v2923_v16 = vpop.permute.xlu0 %2922  ;;  %v11924_v57 = vld [vmem:[#allocation155_spill] sm:$0xff] }
 0x598   : > { %3016 = vst.msk [vmem:[#allocation3 + $0xd1] sm:$0xff] %vm2988_vm5, %v2945_v12  ;;  %v11925_v12 = vld [vmem:[#allocation166_spill] sm:$0xff] }
 0x599   : > { %3005 = vst.msk [vmem:[#allocation3 + $0x79] sm:$0x7f] %vm2990_vm15, %v2923_v16  ;;  %v11926_v16 = vld [vmem:[#allocation170_spill] sm:$0xff] }
 0x59a   : > { %3038 = vst.msk [vmem:[#allocation3 + $0x78] sm:$0xff] %vm3022_vm13, %v11913_v1  ;;  %v11927_v1 = vld [vmem:[#allocation161_spill] sm:$0xff] }
 0x59b   : > { %3039 = vst.msk [vmem:[#allocation3 + $0x80] sm:$0xff] %vm3022_vm13, %v11914_v13 }
 0x59c   : > { %3113 = vrot.lane.b32.xlu1 %v7630_v47, %s6251_s16  ;;  %3040 = vst.msk [vmem:[#allocation3 + $0x88] sm:$0xff] %vm3022_vm13, %v11915_v52 }
 0x59d   : > { %3115 = vrot.lane.b32.xlu2 %v11885_v5, %s6251_s16  ;;  %3111 = vrot.lane.b32.xlu0 %v7592_v27, %s6251_s16  ;;  %3049 = vst.msk [vmem:[#allocation3 + $0xd0] sm:$0xff] %vm3022_vm13, %v11916_v17 }
 0x59e   : > { %v2931_v4 = vpop.permute.xlu1 %2930 }
 0x59f   : > { %3009 = vst.msk [vmem:[#allocation3 + $0x99] sm:$0x7f] %vm2990_vm15, %v2931_v4  ;;  %v2951_v8 = vpop.permute.xlu2 %2950  ;;  %v2929_v55 = vpop.permute.xlu0 %2928  ;;  %v11928_v4 = vld [vmem:[#allocation164_spill] sm:$0xff] }
 0x5a0   : > { %3019 = vst.msk [vmem:[#allocation3 + $0xe9] sm:$0x7f] %vm2990_vm15, %v2951_v8  ;;  %v11929_v8 = vld [vmem:[#allocation156_spill] sm:$0xff] }
 0x5a1   : > { %3008 = vst.msk [vmem:[#allocation3 + $0x91] sm:$0xff] %vm2988_vm5, %v2929_v55 }
 0x5a2   : > { %3041 = vst.msk [vmem:[#allocation3 + $0x90] sm:$0xff] %vm3022_vm13, %v11917_v48 }
 0x5a3   : > { %3042 = vst.msk [vmem:[#allocation3 + $0x98] sm:$0xff] %vm3022_vm13, %v11918_v43 }
 0x5a4   : > { %3185 = vrot.lane.b32.xlu1 %v6578_v18, %s6241_s29  ;;  %v11921_v18 = vld [vmem:[#allocation154_spill] sm:$0xff] }
 0x5a5   : > { %3187 = vrot.lane.b32.xlu2 %v6599_v22, %s6241_s29  ;;  %3117 = vrot.lane.b32.xlu0 %v7712_v19, %s6251_s16  ;;  %s6252_s29 = smov 22   ;;  %s6259_s16 = smov 40  }
 0x5a6   : > { %v2937_v24 = vpop.permute.xlu1 %2936 }
 0x5a7   : > { %3012 = vst.msk [vmem:[#allocation3 + $0xb1] sm:$0xff] %vm2988_vm5, %v2937_v24  ;;  %v3056_v53 = vpop.permute.xlu2 %3055  ;;  %v2935_v42 = vpop.permute.xlu0 %2934  ;;  %v11930_v24 = vld [vmem:[#allocation169_spill] sm:$0xff] }
 0x5a8   : > { %3152 = vst.msk [vmem:[#allocation3 - $0x1] sm:$0xfe] %vm3151_vm4, %v3056_v53  ;;  %v11931_v53 = vld [vmem:[#allocation167_spill] sm:$0xff] }
 0x5a9   : > { %3045 = vst.msk [vmem:[#allocation3 + $0xb0] sm:$0xff] %vm3022_vm13, %v11919_v14 }
 0x5aa   : > { %3046 = vst.msk [vmem:[#allocation3 + $0xb8] sm:$0xff] %vm3022_vm13, %v11920_v39 }
 0x5ab   : > { %3011 = vst.msk [vmem:[#allocation3 + $0xa9] sm:$0x7f] %vm2990_vm15, %v2935_v42  ;;  %v11932_v42 = vld [vmem:[#allocation176_spill] sm:$0xff] }
 0x5ac   : > { %3044 = vst.msk [vmem:[#allocation3 + $0xa8] sm:$0xff] %vm3022_vm13, %v11921_v18  ;;  %3227 = vrot.lane.b32.xlu1 %v6630_v29, %s6252_s29 }
 0x5ad   : > { %3229 = vrot.lane.b32.xlu2 %v6642_v32, %s6252_s29  ;;  %3225 = vrot.lane.b32.xlu0 %v6618_v26, %s6252_s29 }
 0x5ae   : > { %v2943_v22 = vpop.permute.xlu1 %2942 }
 0x5af   : > { %3015 = vst.msk [vmem:[#allocation3 + $0xc9] sm:$0x7f] %vm2990_vm15, %v2943_v22  ;;  %v3062_v3 = vpop.permute.xlu2 %3061  ;;  %v2941_v28 = vpop.permute.xlu0 %2940  ;;  %v11933_v22 = vld [vmem:[#allocation159_spill] sm:$0xff] }
 0x5b0   : > { %3156 = vst.msk [vmem:[#allocation3 + $0x17] sm:$0xff] %vm3153_vm14, %v3062_v3  ;;  %v11934_v3 = vld [vmem:[#allocation172_spill] sm:$0xff] }
 0x5b1   : > { %3014 = vst.msk [vmem:[#allocation3 + $0xc1] sm:$0xff] %vm2988_vm5, %v2941_v28 }
 0x5b2   : > { %3047 = vst.msk [vmem:[#allocation3 + $0xc0] sm:$0xff] %vm3022_vm13, %v11922_v9 }
 0x5b3   : > { %3048 = vst.msk [vmem:[#allocation3 + $0xc8] sm:$0xff] %vm3022_vm13, %v11923_v49 }
 0x5b4   : > { %3233 = vrot.lane.b32.xlu1 %v6680_v40, %s6252_s29 }
 0x5b5   : > { %3235 = vrot.lane.b32.xlu2 %v6699_v44, %s6252_s29  ;;  %3231 = vrot.lane.b32.xlu0 %v6661_v36, %s6252_s29 }
 0x5b6   : > { %v2949_v61 = vpop.permute.xlu1 %2948 }
 0x5b7   : > { %3018 = vst.msk [vmem:[#allocation3 + $0xe1] sm:$0xff] %vm2988_vm5, %v2949_v61  ;;  %v3068_v59 = vpop.permute.xlu2 %3067  ;;  %v2947_v10 = vpop.permute.xlu0 %2946  ;;  %v11935_v61 = vld [vmem:[#allocation175_spill] sm:$0xff] }
 0x5b8   : > { %3051 = vst.msk [vmem:[#allocation3 + $0xe0] sm:$0xff] %vm3022_vm13, %v11924_v57  ;;  %v11938_v57 = vld [vmem:[#allocation162_spill] sm:$0xff] }
 0x5b9   : > { %3052 = vst.msk [vmem:[#allocation3 + $0xe8] sm:$0xff] %vm3022_vm13, %v11925_v12 }
 0x5ba   : > { %3159 = vst.msk [vmem:[#allocation3 + $0x2f] sm:$0xfe] %vm3151_vm4, %v3068_v59  ;;  %v11936_v59 = vld [vmem:[#allocation173_spill] sm:$0xff] }
 0x5bb   : > { %3199 = vst.msk [vmem:[#allocation3 + $0x2e] sm:$0xfc] %vm3191_vm2, %v11926_v16 }
 0x5bc   : > { %3017 = vst.msk [vmem:[#allocation3 + $0xd9] sm:$0x7f] %vm2990_vm15, %v2947_v10  ;;  %3239 = vrot.lane.b32.xlu1 %v6906_v62, %s6252_s29  ;;  %v11937_v10 = vld [vmem:[#allocation182_spill] sm:$0xff] }
 0x5bd   : > { %3241 = vrot.lane.b32.xlu2 %v6942_v20, %s6252_s29  ;;  %3050 = vst.msk [vmem:[#allocation3 + $0xd8] sm:$0xff] %vm3022_vm13, %v11927_v1  ;;  %3237 = vrot.lane.b32.xlu0 %v6815_v51, %s6252_s29 }
 0x5be   : > { %v2955_v13 = vpop.permute.xlu1 %2954 }
 0x5bf   : > { %3021 = vst.msk [vmem:[#allocation3 + $0xf9] sm:$0x7f] %vm2990_vm15, %v2955_v13  ;;  %v3074_v52 = vpop.permute.xlu2 %3073  ;;  %v2953_v17 = vpop.permute.xlu0 %2952  ;;  %v11939_v13 = vld [vmem:[#allocation165_spill] sm:$0xff]  ;;  %vm3502_vm15 = vcmask 310560  }
 0x5c0   : > { %3162 = vst.msk [vmem:[#allocation3 + $0x47] sm:$0xff] %vm3153_vm14, %v3074_v52  ;;  %v11940_v52 = vld [vmem:[#allocation178_spill] sm:$0xff] }
 0x5c1   : > { %3020 = vst.msk [vmem:[#allocation3 + $0xf1] sm:$0xff] %vm2988_vm5, %v2953_v17  ;;  %vm3469_vm5 = vcmask 294160  }
 0x5c2   : > { %3053 = vst.msk [vmem:[#allocation3 + $0xf0] sm:$0xff] %vm3022_vm13, %v11928_v4 }
 0x5c3   : > { %3054 = vst.msk [vmem:[#allocation3 + $0xf8] sm:$0xff] %vm3022_vm13, %v11929_v8  ;;  %vm3500_vm13 = vcmask 310561  }
 0x5c4   : > { %3245 = vrot.lane.b32.xlu1 %v7074_v25, %s6252_s29 }
 0x5c5   : > { %3247 = vrot.lane.b32.xlu2 %v7083_v50, %s6252_s29  ;;  %3243 = vrot.lane.b32.xlu0 %v6978_v31, %s6252_s29 }
 0x5c6   : > { %v3060_v55 = vpop.permute.xlu1 %3059 }
 0x5c7   : > { %3155 = vst.msk [vmem:[#allocation3 + $0xf] sm:$0xfe] %vm3151_vm4, %v3060_v55  ;;  %v3080_v48 = vpop.permute.xlu2 %3079  ;;  %v3058_v43 = vpop.permute.xlu0 %3057  ;;  %v11941_v55 = vld [vmem:[#allocation181_spill] sm:$0xff] }
 0x5c8   : > { %3195 = vst.msk [vmem:[#allocation3 + $0xe] sm:$0xfc] %vm3191_vm2, %v11930_v24  ;;  %v11944_v24 = vld [vmem:[#allocation168_spill] sm:$0xff] }
 0x5c9   : > { %3196 = vst.msk [vmem:[#allocation3 + $0x16] sm:$0xff] %vm3193_vm6, %v11931_v53 }
 0x5ca   : > { %3165 = vst.msk [vmem:[#allocation3 + $0x5f] sm:$0xfe] %vm3151_vm4, %v3080_v48  ;;  %v11942_v48 = vld [vmem:[#allocation179_spill] sm:$0xff] }
 0x5cb   : > { %3205 = vst.msk [vmem:[#allocation3 + $0x5e] sm:$0xfc] %vm3191_vm2, %v11932_v42 }
 0x5cc   : > { %3154 = vst.msk [vmem:[#allocation3 + $0x7] sm:$0xff] %vm3153_vm14, %v3058_v43  ;;  %3251 = vrot.lane.b32.xlu1 %v7128_v63, %s6252_s29  ;;  %v11943_v43 = vld [vmem:[#allocation188_spill] sm:$0xff] }
 0x5cd   : > { %3253 = vrot.lane.b32.xlu2 %v7161_v46, %s6252_s29  ;;  %3249 = vrot.lane.b32.xlu0 %v7116_v34, %s6252_s29 }
 0x5ce   : > { %v3066_v14 = vpop.permute.xlu1 %3065 }
 0x5cf   : > { %3158 = vst.msk [vmem:[#allocation3 + $0x27] sm:$0xff] %vm3153_vm14, %v3066_v14  ;;  %v3086_v39 = vpop.permute.xlu2 %3085  ;;  %v3064_v18 = vpop.permute.xlu0 %3063 }
 0x5d0   : > { %3168 = vst.msk [vmem:[#allocation3 + $0x77] sm:$0xff] %vm3153_vm14, %v3086_v39  ;;  %v11945_v39 = vld [vmem:[#allocation171_spill] sm:$0xff] }
 0x5d1   : > { %3157 = vst.msk [vmem:[#allocation3 + $0x1f] sm:$0xfe] %vm3151_vm4, %v3064_v18  ;;  %v11946_v18 = vld [vmem:[#allocation184_spill] sm:$0xff] }
 0x5d2   : > { %3197 = vst.msk [vmem:[#allocation3 + $0x1e] sm:$0xfc] %vm3191_vm2, %v11933_v22 }
 0x5d3   : > { %3198 = vst.msk [vmem:[#allocation3 + $0x26] sm:$0xff] %vm3193_vm6, %v11934_v3 }
 0x5d4   : > { %3257 = vrot.lane.b32.xlu1 %v7261_v7, %s6252_s29 }
 0x5d5   : > { %3259 = vrot.lane.b32.xlu2 %v7306_v38, %s6252_s29  ;;  %3255 = vrot.lane.b32.xlu0 %v7208_v37, %s6252_s29 }
 0x5d6   : > { %v3072_v28 = vpop.permute.xlu1 %3071 }
 0x5d7   : > { %3161 = vst.msk [vmem:[#allocation3 + $0x3f] sm:$0xfe] %vm3151_vm4, %v3072_v28  ;;  %v3092_v9 = vpop.permute.xlu2 %3091  ;;  %v3070_v49 = vpop.permute.xlu0 %3069 }
 0x5d8   : > { %3201 = vst.msk [vmem:[#allocation3 + $0x3e] sm:$0xfc] %vm3191_vm2, %v11935_v61  ;;  %v11949_v61 = vld [vmem:[#allocation194_spill] sm:$0xff] }
 0x5d9   : > { %3202 = vst.msk [vmem:[#allocation3 + $0x46] sm:$0xff] %vm3193_vm6, %v11936_v59  ;;  %v11950_v59 = vld [vmem:[#allocation174_spill] sm:$0xff] }
 0x5da   : > { %3171 = vst.msk [vmem:[#allocation3 + $0x8f] sm:$0xfe] %vm3151_vm4, %v3092_v9  ;;  %v11947_v9 = vld [vmem:[#allocation187_spill] sm:$0xff] }
 0x5db   : > { %3211 = vst.msk [vmem:[#allocation3 + $0x8e] sm:$0xfc] %vm3191_vm2, %v11937_v10 }
 0x5dc   : > { %3160 = vst.msk [vmem:[#allocation3 + $0x37] sm:$0xff] %vm3153_vm14, %v3070_v49  ;;  %3263 = vrot.lane.b32.xlu1 %v7381_v56, %s6252_s29  ;;  %v11948_v49 = vld [vmem:[#allocation185_spill] sm:$0xff] }
 0x5dd   : > { %3265 = vrot.lane.b32.xlu2 %v7407_v15, %s6252_s29  ;;  %3200 = vst.msk [vmem:[#allocation3 + $0x36] sm:$0xff] %vm3193_vm6, %v11938_v57  ;;  %3261 = vrot.lane.b32.xlu0 %v7341_v58, %s6252_s29 }
 0x5de   : > { %v3078_v12 = vpop.permute.xlu1 %3077 }
 0x5df   : > { %3164 = vst.msk [vmem:[#allocation3 + $0x57] sm:$0xff] %vm3153_vm14, %v3078_v12  ;;  %v3098_v16 = vpop.permute.xlu2 %3097  ;;  %v3076_v1 = vpop.permute.xlu0 %3075 }
 0x5e0   : > { %3174 = vst.msk [vmem:[#allocation3 + $0xa7] sm:$0xff] %vm3153_vm14, %v3098_v16  ;;  %v11951_v16 = vld [vmem:[#allocation177_spill] sm:$0xff] }
 0x5e1   : > { %3163 = vst.msk [vmem:[#allocation3 + $0x4f] sm:$0xfe] %vm3151_vm4, %v3076_v1  ;;  %v11952_v1 = vld [vmem:[#allocation190_spill] sm:$0xff] }
 0x5e2   : > { %3203 = vst.msk [vmem:[#allocation3 + $0x4e] sm:$0xfc] %vm3191_vm2, %v11939_v13 }
 0x5e3   : > { %3204 = vst.msk [vmem:[#allocation3 + $0x56] sm:$0xff] %vm3193_vm6, %v11940_v52 }
 0x5e4   : > { %3269 = vrot.lane.b32.xlu1 %v7467_v33, %s6252_s29 }
 0x5e5   : > { %3271 = vrot.lane.b32.xlu2 %v7491_v21, %s6252_s29  ;;  %3267 = vrot.lane.b32.xlu0 %v7435_v2, %s6252_s29 }
 0x5e6   : > { %v3084_v17 = vpop.permute.xlu1 %3083 }
 0x5e7   : > { %3167 = vst.msk [vmem:[#allocation3 + $0x6f] sm:$0xfe] %vm3151_vm4, %v3084_v17  ;;  %v3104_v4 = vpop.permute.xlu2 %3103  ;;  %v3082_v8 = vpop.permute.xlu0 %3081 }
 0x5e8   : > { %3207 = vst.msk [vmem:[#allocation3 + $0x6e] sm:$0xfc] %vm3191_vm2, %v11941_v55  ;;  %v11955_v55 = vld [vmem:[#allocation180_spill] sm:$0xff] }
 0x5e9   : > { %3208 = vst.msk [vmem:[#allocation3 + $0x76] sm:$0xff] %vm3193_vm6, %v11942_v48  ;;  %v11956_v48 = vld [vmem:[#allocation189_spill] sm:$0xff] }
 0x5ea   : > { %3177 = vst.msk [vmem:[#allocation3 + $0xbf] sm:$0xfe] %vm3151_vm4, %v3104_v4  ;;  %v11953_v4 = vld [vmem:[#allocation193_spill] sm:$0xff] }
 0x5eb   : > { %3217 = vst.msk [vmem:[#allocation3 + $0xbe] sm:$0xfc] %vm3191_vm2, %v11943_v43 }
 0x5ec   : > { %3166 = vst.msk [vmem:[#allocation3 + $0x67] sm:$0xff] %vm3153_vm14, %v3082_v8  ;;  %3275 = vrot.lane.b32.xlu1 %v7572_v30, %s6252_s29  ;;  %v11954_v8 = vld [vmem:[#allocation191_spill] sm:$0xff] }
 0x5ed   : > { %3277 = vrot.lane.b32.xlu2 %v7592_v27, %s6252_s29  ;;  %3206 = vst.msk [vmem:[#allocation3 + $0x66] sm:$0xff] %vm3193_vm6, %v11944_v24  ;;  %3273 = vrot.lane.b32.xlu0 %v7515_v11, %s6252_s29 }
 0x5ee   : > { %v3090_v53 = vpop.permute.xlu1 %3089 }
 0x5ef   : > { %3170 = vst.msk [vmem:[#allocation3 + $0x87] sm:$0xff] %vm3153_vm14, %v3090_v53  ;;  %v3110_v42 = vpop.permute.xlu2 %3109  ;;  %v3088_v14 = vpop.permute.xlu0 %3087 }
 0x5f0   : > { %3180 = vst.msk [vmem:[#allocation3 + $0xd7] sm:$0xff] %vm3153_vm14, %v3110_v42  ;;  %v11957_v42 = vld [vmem:[#allocation183_spill] sm:$0xff] }
 0x5f1   : > { %3169 = vst.msk [vmem:[#allocation3 + $0x7f] sm:$0xfe] %vm3151_vm4, %v3088_v14  ;;  %v11958_v14 = vld [vmem:[#allocation196_spill] sm:$0xff] }
 0x5f2   : > { %3209 = vst.msk [vmem:[#allocation3 + $0x7e] sm:$0xfc] %vm3191_vm2, %v11945_v39 }
 0x5f3   : > { %3210 = vst.msk [vmem:[#allocation3 + $0x86] sm:$0xff] %vm3193_vm6, %v11946_v18 }
 0x5f4   : > { %3281 = vrot.lane.b32.xlu1 %v11885_v5, %s6252_s29 }
 0x5f5   : > { %3283 = vrot.lane.b32.xlu2 %v7712_v19, %s6252_s29  ;;  %3279 = vrot.lane.b32.xlu0 %v7630_v47, %s6252_s29 }
 0x5f6   : > { %v3096_v22 = vpop.permute.xlu1 %3095 }
 0x5f7   : > { %3173 = vst.msk [vmem:[#allocation3 + $0x9f] sm:$0xfe] %vm3151_vm4, %v3096_v22  ;;  %v3116_v3 = vpop.permute.xlu2 %3115  ;;  %v3094_v28 = vpop.permute.xlu0 %3093 }
 0x5f8   : > { %3213 = vst.msk [vmem:[#allocation3 + $0x9e] sm:$0xfc] %vm3191_vm2, %v11947_v9 }
 0x5f9   : > { %3214 = vst.msk [vmem:[#allocation3 + $0xa6] sm:$0xff] %vm3193_vm6, %v11948_v49 }
 0x5fa   : > { %3183 = vst.msk [vmem:[#allocation3 + $0xef] sm:$0xfe] %vm3151_vm4, %v3116_v3  ;;  %v11959_v3 = vld [vmem:[#allocation186_spill] sm:$0xff] }
 0x5fb   : > { %3223 = vst.msk [vmem:[#allocation3 + $0xee] sm:$0xfc] %vm3191_vm2, %v11949_v61 }
 0x5fc   : > { %3172 = vst.msk [vmem:[#allocation3 + $0x97] sm:$0xff] %vm3153_vm14, %v3094_v28  ;;  %3381 = vrot.lane.b32.xlu1 %v6630_v29, %s6253_s28  ;;  %v11960_v28 = vld [vmem:[#allocation195_spill] sm:$0xff] }
 0x5fd   : > { %3383 = vrot.lane.b32.xlu2 %v6642_v32, %s6253_s28  ;;  %3212 = vst.msk [vmem:[#allocation3 + $0x96] sm:$0xff] %vm3193_vm6, %v11950_v59  ;;  %3379 = vrot.lane.b32.xlu0 %v6618_v26, %s6253_s28  ;;  %v11961_v59 = vld [vmem:[#allocation199_spill] sm:$0xff] }
 0x5fe   : > { %v3102_v10 = vpop.permute.xlu1 %3101 }
 0x5ff   : > { %3176 = vst.msk [vmem:[#allocation3 + $0xb7] sm:$0xff] %vm3153_vm14, %v3102_v10  ;;  %v3188_v57 = vpop.permute.xlu2 %3187  ;;  %v3100_v12 = vpop.permute.xlu0 %3099  ;;  %v11962_v10 = vld [vmem:[#allocation197_spill] sm:$0xff] }
 0x600   : > { %3194 = vst.msk [vmem:[#allocation3 + $0x6] sm:$0xff] %vm3193_vm6, %v3188_v57 }
 0x601   : > { %3175 = vst.msk [vmem:[#allocation3 + $0xaf] sm:$0xfe] %vm3151_vm4, %v3100_v12 }
 0x602   : > { %3215 = vst.msk [vmem:[#allocation3 + $0xae] sm:$0xfc] %vm3191_vm2, %v11951_v16 }
 0x603   : > { %3216 = vst.msk [vmem:[#allocation3 + $0xb6] sm:$0xff] %vm3193_vm6, %v11952_v1  ;;  %v11963_v1 = vld [vmem:[#allocation200_spill] sm:$0xff] }
 0x604   : > { %3387 = vrot.lane.b32.xlu1 %v6680_v40, %s6253_s28 }
 0x605   : > { %3389 = vrot.lane.b32.xlu2 %v6699_v44, %s6253_s28  ;;  %3385 = vrot.lane.b32.xlu0 %v6661_v36, %s6253_s28 }
 0x606   : > { %v3108_v13 = vpop.permute.xlu1 %3107 }
 0x607   : > { %3179 = vst.msk [vmem:[#allocation3 + $0xcf] sm:$0xfe] %vm3151_vm4, %v3108_v13  ;;  %v3230_v52 = vpop.permute.xlu2 %3229  ;;  %v3106_v17 = vpop.permute.xlu0 %3105  ;;  %v11964_v13 = vld [vmem:[#allocation201_spill] sm:$0xff] }
 0x608   : > { %3219 = vst.msk [vmem:[#allocation3 + $0xce] sm:$0xfc] %vm3191_vm2, %v11953_v4 }
 0x609   : > { %3220 = vst.msk [vmem:[#allocation3 + $0xd6] sm:$0xff] %vm3193_vm6, %v11954_v8 }
 0x60a   : > { %3319 = vst.msk [vmem:[#allocation3 + $0x12] sm:$0xff] %vm3315_vm7, %v3230_v52  ;;  %v11965_v52 = vld [vmem:[#allocation192_spill] sm:$0xff] }
 0x60b   : > { %3178 = vst.msk [vmem:[#allocation3 + $0xc7] sm:$0xff] %vm3153_vm14, %v3106_v17  ;;  %v11966_v17 = vld [vmem:[#allocation202_spill] sm:$0xff] }
 0x60c   : > { %3218 = vst.msk [vmem:[#allocation3 + $0xc6] sm:$0xff] %vm3193_vm6, %v11955_v55  ;;  %3393 = vrot.lane.b32.xlu1 %v6906_v62, %s6253_s28 }
 0x60d   : > { %3395 = vrot.lane.b32.xlu2 %v6942_v20, %s6253_s28  ;;  %3391 = vrot.lane.b32.xlu0 %v6815_v51, %s6253_s28  ;;  %3351 = vst.msk [vmem:[#allocation3 + $0x11] sm:$0xff] %vm3347_vm8, %v11956_v48  ;;  %v11967_v48 = vld [vmem:[#allocation205_spill] sm:$0xff] }
 0x60e   : > { %v3114_v43 = vpop.permute.xlu1 %3113 }
 0x60f   : > { %3182 = vst.msk [vmem:[#allocation3 + $0xe7] sm:$0xff] %vm3153_vm14, %v3114_v43  ;;  %v3236_v24 = vpop.permute.xlu2 %3235  ;;  %v3112_v53 = vpop.permute.xlu0 %3111  ;;  %v11968_v43 = vld [vmem:[#allocation203_spill] sm:$0xff] }
 0x610   : > { %3322 = vst.msk [vmem:[#allocation3 + $0x2a] sm:$0x3f] %vm3317_vm11, %v3236_v24 }
 0x611   : > { %3181 = vst.msk [vmem:[#allocation3 + $0xdf] sm:$0xfe] %vm3151_vm4, %v3112_v53  ;;  %vm3622_vm4 = vcmask 326962  }
 0x612   : > { %3221 = vst.msk [vmem:[#allocation3 + $0xde] sm:$0xfc] %vm3191_vm2, %v11957_v42 }
 0x613   : > { %3222 = vst.msk [vmem:[#allocation3 + $0xe6] sm:$0xff] %vm3193_vm6, %v11958_v14  ;;  %v11969_v14 = vld [vmem:[#allocation206_spill] sm:$0xff] }
 0x614   : > { %3399 = vrot.lane.b32.xlu1 %v7074_v25, %s6253_s28 }
 0x615   : > { %3401 = vrot.lane.b32.xlu2 %v7083_v50, %s6253_s28  ;;  %3397 = vrot.lane.b32.xlu0 %v6978_v31, %s6253_s28 }
 0x616   : > { %v3186_v39 = vpop.permute.xlu1 %3185 }
 0x617   : > { %3192 = vst.msk [vmem:[#allocation3 - $0x2] sm:$0xfc] %vm3191_vm2, %v3186_v39  ;;  %v3242_v18 = vpop.permute.xlu2 %3241  ;;  %v3118_v22 = vpop.permute.xlu0 %3117  ;;  %v11970_v39 = vld [vmem:[#allocation207_spill] sm:$0xff]  ;;  %vm3738_vm2 = vcmask 343360  }
 0x618   : > { %3325 = vst.msk [vmem:[#allocation3 + $0x42] sm:$0xff] %vm3315_vm7, %v3242_v18  ;;  %v11971_v18 = vld [vmem:[#allocation208_spill] sm:$0xff] }
 0x619   : > { %3184 = vst.msk [vmem:[#allocation3 + $0xf7] sm:$0xff] %vm3153_vm14, %v3118_v22  ;;  %v11972_v22 = vld [vmem:[#allocation198_spill] sm:$0xff]  ;;  %vm3624_vm14 = vcmask 326960  }
 0x61a   : > { %3224 = vst.msk [vmem:[#allocation3 + $0xf6] sm:$0xff] %vm3193_vm6, %v11959_v3  ;;  %vm3740_vm6 = vcmask 341312  }
 0x61b   : > { %3357 = vst.msk [vmem:[#allocation3 + $0x41] sm:$0xff] %vm3347_vm8, %v11960_v28 }
 0x61c   : > { %3405 = vrot.lane.b32.xlu1 %v7128_v63, %s6253_s28 }
 0x61d   : > { %3407 = vrot.lane.b32.xlu2 %v7161_v46, %s6253_s28  ;;  %3403 = vrot.lane.b32.xlu0 %v7116_v34, %s6253_s28 }
 0x61e   : > { %v3228_v9 = vpop.permute.xlu1 %3227 }
 0x61f   : > { %3318 = vst.msk [vmem:[#allocation3 + $0xa] sm:$0x3f] %vm3317_vm11, %v3228_v9  ;;  %v3248_v49 = vpop.permute.xlu2 %3247  ;;  %v3226_v61 = vpop.permute.xlu0 %3225 }
 0x620   : > { %3328 = vst.msk [vmem:[#allocation3 + $0x5a] sm:$0x3f] %vm3317_vm11, %v3248_v49  ;;  %v11973_v49 = vld [vmem:[#allocation211_spill] sm:$0xff] }
 0x621   : > { %3316 = vst.msk [vmem:[#allocation3 + $0x2] sm:$0xff] %vm3315_vm7, %v3226_v61  ;;  %v11974_v61 = vld [vmem:[#allocation209_spill] sm:$0xff] }
 0x622   : > { %3348 = vst.msk [vmem:[#allocation3 + $0x1] sm:$0xff] %vm3347_vm8, %v11961_v59 }
 0x623   : > { %3350 = vst.msk [vmem:[#allocation3 + $0x9] sm:$0x7f] %vm3349_vm12, %v11962_v10 }
 0x624   : > { %3411 = vrot.lane.b32.xlu1 %v7261_v7, %s6253_s28 }
 0x625   : > { %3413 = vrot.lane.b32.xlu2 %v7306_v38, %s6253_s28  ;;  %3409 = vrot.lane.b32.xlu0 %v7208_v37, %s6253_s28 }
 0x626   : > { %v3234_v57 = vpop.permute.xlu1 %3233 }
 0x627   : > { %3321 = vst.msk [vmem:[#allocation3 + $0x22] sm:$0xff] %vm3315_vm7, %v3234_v57  ;;  %v3254_v12 = vpop.permute.xlu2 %3253  ;;  %v3232_v16 = vpop.permute.xlu0 %3231 }
 0x628   : > { %3331 = vst.msk [vmem:[#allocation3 + $0x72] sm:$0xff] %vm3315_vm7, %v3254_v12  ;;  %v11975_v12 = vld [vmem:[#allocation212_spill] sm:$0xff] }
 0x629   : > { %3320 = vst.msk [vmem:[#allocation3 + $0x1a] sm:$0x3f] %vm3317_vm11, %v3232_v16  ;;  %v11976_v16 = vld [vmem:[#allocation213_spill] sm:$0xff] }
 0x62a   : > { %3353 = vst.msk [vmem:[#allocation3 + $0x21] sm:$0xff] %vm3347_vm8, %v11963_v1  ;;  %v11977_v1 = vld [vmem:[#allocation214_spill] sm:$0xff] }
 0x62b   : > { %3363 = vst.msk [vmem:[#allocation3 + $0x71] sm:$0xff] %vm3347_vm8, %v11964_v13  ;;  %v11978_v13 = vld [vmem:[#allocation204_spill] sm:$0xff] }
 0x62c   : > { %3417 = vrot.lane.b32.xlu1 %v7381_v56, %s6253_s28  ;;  %3354 = vst.msk [vmem:[#allocation3 + $0x29] sm:$0x7f] %vm3349_vm12, %v11965_v52 }
 0x62d   : > { %3419 = vrot.lane.b32.xlu2 %v7407_v15, %s6253_s28  ;;  %3415 = vrot.lane.b32.xlu0 %v7341_v58, %s6253_s28  ;;  %3352 = vst.msk [vmem:[#allocation3 + $0x19] sm:$0x7f] %vm3349_vm12, %v11966_v17 }
 0x62e   : > { %v3240_v4 = vpop.permute.xlu1 %3239 }
 0x62f   : > { %3324 = vst.msk [vmem:[#allocation3 + $0x3a] sm:$0x3f] %vm3317_vm11, %v3240_v4  ;;  %v3260_v8 = vpop.permute.xlu2 %3259  ;;  %v3238_v55 = vpop.permute.xlu0 %3237 }
 0x630   : > { %3334 = vst.msk [vmem:[#allocation3 + $0x8a] sm:$0x3f] %vm3317_vm11, %v3260_v8  ;;  %v11980_v8 = vld [vmem:[#allocation215_spill] sm:$0xff] }
 0x631   : > { %3323 = vst.msk [vmem:[#allocation3 + $0x32] sm:$0xff] %vm3315_vm7, %v3238_v55 }
 0x632   : > { %3355 = vst.msk [vmem:[#allocation3 + $0x31] sm:$0xff] %vm3347_vm8, %v11967_v48 }
 0x633   : > { %3356 = vst.msk [vmem:[#allocation3 + $0x39] sm:$0x7f] %vm3349_vm12, %v11968_v43  ;;  %v11981_v43 = vld [vmem:[#allocation218_spill] sm:$0xff] }
 0x634   : > { %3423 = vrot.lane.b32.xlu1 %v7467_v33, %s6253_s28 }
 0x635   : > { %3425 = vrot.lane.b32.xlu2 %v7491_v21, %s6253_s28  ;;  %3421 = vrot.lane.b32.xlu0 %v7435_v2, %s6253_s28 }
 0x636   : > { %v3246_v24 = vpop.permute.xlu1 %3245 }
 0x637   : > { %3327 = vst.msk [vmem:[#allocation3 + $0x52] sm:$0xff] %vm3315_vm7, %v3246_v24  ;;  %v3266_v53 = vpop.permute.xlu2 %3265  ;;  %v3244_v42 = vpop.permute.xlu0 %3243  ;;  %v11982_v24 = vld [vmem:[#allocation220_spill] sm:$0xff] }
 0x638   : > { %3337 = vst.msk [vmem:[#allocation3 + $0xa2] sm:$0xff] %vm3315_vm7, %v3266_v53  ;;  %v11983_v53 = vld [vmem:[#allocation210_spill] sm:$0xff] }
 0x639   : > { %3326 = vst.msk [vmem:[#allocation3 + $0x4a] sm:$0x3f] %vm3317_vm11, %v3244_v42  ;;  %v11984_v42 = vld [vmem:[#allocation219_spill] sm:$0xff] }
 0x63a   : > { %3359 = vst.msk [vmem:[#allocation3 + $0x51] sm:$0xff] %vm3347_vm8, %v11969_v14 }
 0x63b   : > { %3369 = vst.msk [vmem:[#allocation3 + $0xa1] sm:$0xff] %vm3347_vm8, %v11970_v39 }
 0x63c   : > { %3429 = vrot.lane.b32.xlu1 %v7572_v30, %s6253_s28  ;;  %3358 = vst.msk [vmem:[#allocation3 + $0x49] sm:$0x7f] %vm3349_vm12, %v11971_v18 }
 0x63d   : > { %3431 = vrot.lane.b32.xlu2 %v7592_v27, %s6253_s28  ;;  %3427 = vrot.lane.b32.xlu0 %v7515_v11, %s6253_s28  ;;  %3360 = vst.msk [vmem:[#allocation3 + $0x59] sm:$0x7f] %vm3349_vm12, %v11972_v22  ;;  %v11985_v22 = vld [vmem:[#allocation223_spill] sm:$0xff] }
 0x63e   : > { %v3252_v3 = vpop.permute.xlu1 %3251 }
 0x63f   : > { %3330 = vst.msk [vmem:[#allocation3 + $0x6a] sm:$0x3f] %vm3317_vm11, %v3252_v3  ;;  %v3272_v28 = vpop.permute.xlu2 %3271  ;;  %v3250_v9 = vpop.permute.xlu0 %3249  ;;  %v11986_v3 = vld [vmem:[#allocation221_spill] sm:$0xff] }
 0x640   : > { %3340 = vst.msk [vmem:[#allocation3 + $0xba] sm:$0x3f] %vm3317_vm11, %v3272_v28 }
 0x641   : > { %3329 = vst.msk [vmem:[#allocation3 + $0x62] sm:$0xff] %vm3315_vm7, %v3250_v9 }
 0x642   : > { %3361 = vst.msk [vmem:[#allocation3 + $0x61] sm:$0xff] %vm3347_vm8, %v11973_v49 }
 0x643   : > { %3362 = vst.msk [vmem:[#allocation3 + $0x69] sm:$0x7f] %vm3349_vm12, %v11974_v61  ;;  %v11987_v61 = vld [vmem:[#allocation224_spill] sm:$0xff] }
 0x644   : > { %3435 = vrot.lane.b32.xlu1 %v11885_v5, %s6253_s28 }
 0x645   : > { %3437 = vrot.lane.b32.xlu2 %v7712_v19, %s6253_s28  ;;  %3433 = vrot.lane.b32.xlu0 %v7630_v47, %s6253_s28 }
 0x646   : > { %v3258_v59 = vpop.permute.xlu1 %3257 }
 0x647   : > { %3333 = vst.msk [vmem:[#allocation3 + $0x82] sm:$0xff] %vm3315_vm7, %v3258_v59  ;;  %v3278_v10 = vpop.permute.xlu2 %3277  ;;  %v3256_v57 = vpop.permute.xlu0 %3255  ;;  %v11988_v59 = vld [vmem:[#allocation216_spill] sm:$0xff] }
 0x648   : > { %3343 = vst.msk [vmem:[#allocation3 + $0xd2] sm:$0xff] %vm3315_vm7, %v3278_v10  ;;  %v11989_v10 = vld [vmem:[#allocation226_spill] sm:$0xff] }
 0x649   : > { %3332 = vst.msk [vmem:[#allocation3 + $0x7a] sm:$0x3f] %vm3317_vm11, %v3256_v57  ;;  %v11990_v57 = vld [vmem:[#allocation225_spill] sm:$0xff] }
 0x64a   : > { %3365 = vst.msk [vmem:[#allocation3 + $0x81] sm:$0xff] %vm3347_vm8, %v11975_v12 }
 0x64b   : > { %3375 = vst.msk [vmem:[#allocation3 + $0xd1] sm:$0xff] %vm3347_vm8, %v11976_v16 }
 0x64c   : > { %3534 = vrot.lane.b32.xlu1 %v6630_v29, %s6254_s25  ;;  %3364 = vst.msk [vmem:[#allocation3 + $0x79] sm:$0x7f] %vm3349_vm12, %v11977_v1  ;;  %v11979_v29 = vld [vmem:[#allocation217_spill] sm:$0xff] }
 0x64d   : > { %3536 = vrot.lane.b32.xlu2 %v6642_v32, %s6254_s25  ;;  %3532 = vrot.lane.b32.xlu0 %v6618_v26, %s6254_s25  ;;  %3366 = vst.msk [vmem:[#allocation3 + $0x89] sm:$0x7f] %vm3349_vm12, %v11978_v13  ;;  %v11991_v13 = vld [vmem:[#allocation229_spill] sm:$0xff] }
 0x64e   : > { %v3264_v52 = vpop.permute.xlu1 %3263 }
 0x64f   : > { %3336 = vst.msk [vmem:[#allocation3 + $0x9a] sm:$0x3f] %vm3317_vm11, %v3264_v52  ;;  %v3284_v17 = vpop.permute.xlu2 %3283  ;;  %v3262_v4 = vpop.permute.xlu0 %3261  ;;  %v11992_v52 = vld [vmem:[#allocation227_spill] sm:$0xff] }
 0x650   : > { %3346 = vst.msk [vmem:[#allocation3 + $0xea] sm:$0x3f] %vm3317_vm11, %v3284_v17 }
 0x651   : > { %3335 = vst.msk [vmem:[#allocation3 + $0x92] sm:$0xff] %vm3315_vm7, %v3262_v4 }
 0x652   : > { %3367 = vst.msk [vmem:[#allocation3 + $0x91] sm:$0xff] %vm3347_vm8, %v11979_v29 }
 0x653   : > { %3368 = vst.msk [vmem:[#allocation3 + $0x99] sm:$0x7f] %vm3349_vm12, %v11980_v8  ;;  %v11993_v8 = vld [vmem:[#allocation230_spill] sm:$0xff] }
 0x654   : > { %3540 = vrot.lane.b32.xlu1 %v6680_v40, %s6254_s25 }
 0x655   : > { %3542 = vrot.lane.b32.xlu2 %v6699_v44, %s6254_s25  ;;  %3538 = vrot.lane.b32.xlu0 %v6661_v36, %s6254_s25 }
 0x656   : > { %v3270_v26 = vpop.permute.xlu1 %3269 }
 0x657   : > { %3339 = vst.msk [vmem:[#allocation3 + $0xb2] sm:$0xff] %vm3315_vm7, %v3270_v26  ;;  %v3384_v55 = vpop.permute.xlu2 %3383  ;;  %v3268_v48 = vpop.permute.xlu0 %3267  ;;  %v11994_v26 = vld [vmem:[#allocation231_spill] sm:$0xff] }
 0x658   : > { %3472 = vst.msk [vmem:[#allocation3 + $0x10] sm:$0xff] %vm3469_vm5, %v3384_v55  ;;  %v11995_v55 = vld [vmem:[#allocation222_spill] sm:$0xff] }
 0x659   : > { %3371 = vst.msk [vmem:[#allocation3 + $0xb1] sm:$0xff] %vm3347_vm8, %v11981_v43 }
 0x65a   : > { %3338 = vst.msk [vmem:[#allocation3 + $0xaa] sm:$0x3f] %vm3317_vm11, %v3268_v48  ;;  %v11996_v48 = vld [vmem:[#allocation232_spill] sm:$0xff] }
 0x65b   : > { %3370 = vst.msk [vmem:[#allocation3 + $0xa9] sm:$0x7f] %vm3349_vm12, %v11982_v24 }
 0x65c   : > { %3546 = vrot.lane.b32.xlu1 %v6906_v62, %s6254_s25  ;;  %3372 = vst.msk [vmem:[#allocation3 + $0xb9] sm:$0x7f] %vm3349_vm12, %v11983_v53 }
 0x65d   : > { %3548 = vrot.lane.b32.xlu2 %v6942_v20, %s6254_s25  ;;  %3544 = vrot.lane.b32.xlu0 %v6815_v51, %s6254_s25  ;;  %3504 = vst.msk [vmem:[#allocation3 + $0xf] sm:$0xfe] %vm3500_vm13, %v11984_v42  ;;  %v11997_v42 = vld [vmem:[#allocation235_spill] sm:$0xff] }
 0x65e   : > { %v3276_v14 = vpop.permute.xlu1 %3275 }
 0x65f   : > { %3342 = vst.msk [vmem:[#allocation3 + $0xca] sm:$0x3f] %vm3317_vm11, %v3276_v14  ;;  %v3390_v39 = vpop.permute.xlu2 %3389  ;;  %v3274_v18 = vpop.permute.xlu0 %3273  ;;  %v11998_v14 = vld [vmem:[#allocation233_spill] sm:$0xff] }
 0x660   : > { %3475 = vst.msk [vmem:[#allocation3 + $0x28] sm:$0xff] %vm3469_vm5, %v3390_v39 }
 0x661   : > { %3341 = vst.msk [vmem:[#allocation3 + $0xc2] sm:$0xff] %vm3315_vm7, %v3274_v18 }
 0x662   : > { %3373 = vst.msk [vmem:[#allocation3 + $0xc1] sm:$0xff] %vm3347_vm8, %v11985_v22 }
 0x663   : > { %3374 = vst.msk [vmem:[#allocation3 + $0xc9] sm:$0x7f] %vm3349_vm12, %v11986_v3  ;;  %v11999_v3 = vld [vmem:[#allocation236_spill] sm:$0xff] }
 0x664   : > { %3552 = vrot.lane.b32.xlu1 %v7074_v25, %s6254_s25 }
 0x665   : > { %3554 = vrot.lane.b32.xlu2 %v7083_v50, %s6254_s25  ;;  %3550 = vrot.lane.b32.xlu0 %v6978_v31, %s6254_s25 }
 0x666   : > { %v3282_v28 = vpop.permute.xlu1 %3281 }
 0x667   : > { %3345 = vst.msk [vmem:[#allocation3 + $0xe2] sm:$0xff] %vm3315_vm7, %v3282_v28  ;;  %v3396_v9 = vpop.permute.xlu2 %3395  ;;  %v3280_v49 = vpop.permute.xlu0 %3279  ;;  %v12000_v28 = vld [vmem:[#allocation237_spill] sm:$0xff]  ;;  %vm3854_vm7 = vcmask 358736  }
 0x668   : > { %3377 = vst.msk [vmem:[#allocation3 + $0xe1] sm:$0xff] %vm3347_vm8, %v11987_v61  ;;  %vm3852_vm8 = vcmask 359760  }
 0x669   : > { %3378 = vst.msk [vmem:[#allocation3 + $0xe9] sm:$0x7f] %vm3349_vm12, %v11988_v59 }
 0x66a   : > { %3478 = vst.msk [vmem:[#allocation3 + $0x40] sm:$0xff] %vm3469_vm5, %v3396_v9  ;;  %v12001_v9 = vld [vmem:[#allocation238_spill] sm:$0xff] }
 0x66b   : > { %3344 = vst.msk [vmem:[#allocation3 + $0xda] sm:$0x3f] %vm3317_vm11, %v3280_v49  ;;  %v12002_v49 = vld [vmem:[#allocation228_spill] sm:$0xff]  ;;  %vm3966_vm11 = vcmask 376160  }
 0x66c   : > { %3376 = vst.msk [vmem:[#allocation3 + $0xd9] sm:$0x7f] %vm3349_vm12, %v11989_v10  ;;  %3558 = vrot.lane.b32.xlu1 %v7128_v63, %s6254_s25  ;;  %vm4362_vm12 = vcmask 1041408  }
 0x66d   : > { %3560 = vrot.lane.b32.xlu2 %v7161_v46, %s6254_s25  ;;  %3556 = vrot.lane.b32.xlu0 %v7116_v34, %s6254_s25  ;;  %3510 = vst.msk [vmem:[#allocation3 + $0x3f] sm:$0xfe] %vm3500_vm13, %v11990_v57  ;;  %v12003_v57 = vld [vmem:[#allocation241_spill] sm:$0xff] }
 0x66e   : > { %v3382_v12 = vpop.permute.xlu1 %3381 }
 0x66f   : > { %3471 = vst.msk [vmem:[#allocation3 + $0x8] sm:$0xff] %vm3469_vm5, %v3382_v12  ;;  %v3402_v16 = vpop.permute.xlu2 %3401  ;;  %v3380_v1 = vpop.permute.xlu0 %3379  ;;  %v12004_v12 = vld [vmem:[#allocation239_spill] sm:$0xff] }
 0x670   : > { %3481 = vst.msk [vmem:[#allocation3 + $0x58] sm:$0xff] %vm3469_vm5, %v3402_v16 }
 0x671   : > { %3470 = vst.msk [vmem:[#allocation3] sm:$0xff] %vm3469_vm5, %v3380_v1 }
 0x672   : > { %3501 = vst.msk [vmem:[#allocation3 - $0x1] sm:$0xfe] %vm3500_vm13, %v11991_v13 }
 0x673   : > { %3503 = vst.msk [vmem:[#allocation3 + $0x7] sm:$0xff] %vm3502_vm15, %v11992_v52  ;;  %v12005_v52 = vld [vmem:[#allocation242_spill] sm:$0xff] }
 0x674   : > { %3564 = vrot.lane.b32.xlu1 %v7261_v7, %s6254_s25 }
 0x675   : > { %3566 = vrot.lane.b32.xlu2 %v7306_v38, %s6254_s25  ;;  %3562 = vrot.lane.b32.xlu0 %v7208_v37, %s6254_s25 }
 0x676   : > { %v3388_v17 = vpop.permute.xlu1 %3387 }
 0x677   : > { %3474 = vst.msk [vmem:[#allocation3 + $0x20] sm:$0xff] %vm3469_vm5, %v3388_v17  ;;  %v3408_v4 = vpop.permute.xlu2 %3407  ;;  %v3386_v29 = vpop.permute.xlu0 %3385  ;;  %v12006_v17 = vld [vmem:[#allocation243_spill] sm:$0xff] }
 0x678   : > { %3506 = vst.msk [vmem:[#allocation3 + $0x1f] sm:$0xfe] %vm3500_vm13, %v11993_v8 }
 0x679   : > { %3484 = vst.msk [vmem:[#allocation3 + $0x70] sm:$0xff] %vm3469_vm5, %v3408_v4  ;;  %v12007_v4 = vld [vmem:[#allocation244_spill] sm:$0xff] }
 0x67a   : > { %3516 = vst.msk [vmem:[#allocation3 + $0x6f] sm:$0xfe] %vm3500_vm13, %v11994_v26 }
 0x67b   : > { %3473 = vst.msk [vmem:[#allocation3 + $0x18] sm:$0xff] %vm3469_vm5, %v3386_v29  ;;  %v12008_v29 = vld [vmem:[#allocation234_spill] sm:$0xff] }
 0x67c   : > { %3570 = vrot.lane.b32.xlu1 %v7381_v56, %s6254_s25  ;;  %3507 = vst.msk [vmem:[#allocation3 + $0x27] sm:$0xff] %vm3502_vm15, %v11995_v55 }
 0x67d   : > { %3572 = vrot.lane.b32.xlu2 %v7407_v15, %s6254_s25  ;;  %3568 = vrot.lane.b32.xlu0 %v7341_v58, %s6254_s25  ;;  %3505 = vst.msk [vmem:[#allocation3 + $0x17] sm:$0xff] %vm3502_vm15, %v11996_v48  ;;  %v12009_v48 = vld [vmem:[#allocation247_spill] sm:$0xff] }
 0x67e   : > { %v3394_v43 = vpop.permute.xlu1 %3393 }
 0x67f   : > { %3477 = vst.msk [vmem:[#allocation3 + $0x38] sm:$0xff] %vm3469_vm5, %v3394_v43  ;;  %v3414_v24 = vpop.permute.xlu2 %3413  ;;  %v3392_v53 = vpop.permute.xlu0 %3391  ;;  %v12010_v43 = vld [vmem:[#allocation245_spill] sm:$0xff] }
 0x680   : > { %3487 = vst.msk [vmem:[#allocation3 + $0x88] sm:$0xff] %vm3469_vm5, %v3414_v24 }
 0x681   : > { %3476 = vst.msk [vmem:[#allocation3 + $0x30] sm:$0xff] %vm3469_vm5, %v3392_v53 }
 0x682   : > { %3508 = vst.msk [vmem:[#allocation3 + $0x2f] sm:$0xfe] %vm3500_vm13, %v11997_v42 }
 0x683   : > { %3509 = vst.msk [vmem:[#allocation3 + $0x37] sm:$0xff] %vm3502_vm15, %v11998_v14  ;;  %v12011_v14 = vld [vmem:[#allocation248_spill] sm:$0xff] }
 0x684   : > { %3576 = vrot.lane.b32.xlu1 %v7467_v33, %s6254_s25 }
 0x685   : > { %3578 = vrot.lane.b32.xlu2 %v7491_v21, %s6254_s25  ;;  %3574 = vrot.lane.b32.xlu0 %v7435_v2, %s6254_s25 }
 0x686   : > { %v3400_v39 = vpop.permute.xlu1 %3399 }
 0x687   : > { %3480 = vst.msk [vmem:[#allocation3 + $0x50] sm:$0xff] %vm3469_vm5, %v3400_v39  ;;  %v3420_v18 = vpop.permute.xlu2 %3419  ;;  %v3398_v22 = vpop.permute.xlu0 %3397  ;;  %v12012_v39 = vld [vmem:[#allocation249_spill] sm:$0xff] }
 0x688   : > { %3512 = vst.msk [vmem:[#allocation3 + $0x4f] sm:$0xfe] %vm3500_vm13, %v11999_v3 }
 0x689   : > { %3490 = vst.msk [vmem:[#allocation3 + $0xa0] sm:$0xff] %vm3469_vm5, %v3420_v18  ;;  %v12013_v18 = vld [vmem:[#allocation240_spill] sm:$0xff] }
 0x68a   : > { %3522 = vst.msk [vmem:[#allocation3 + $0x9f] sm:$0xfe] %vm3500_vm13, %v12000_v28 }
 0x68b   : > { %3479 = vst.msk [vmem:[#allocation3 + $0x48] sm:$0xff] %vm3469_vm5, %v3398_v22 }
 0x68c   : > { %3582 = vrot.lane.b32.xlu1 %v7572_v30, %s6254_s25  ;;  %3511 = vst.msk [vmem:[#allocation3 + $0x47] sm:$0xff] %vm3502_vm15, %v12001_v9  ;;  %v12014_v9 = vld [vmem:[#allocation251_spill] sm:$0xff] }
 0x68d   : > { %3584 = vrot.lane.b32.xlu2 %v7592_v27, %s6254_s25  ;;  %3580 = vrot.lane.b32.xlu0 %v7515_v11, %s6254_s25  ;;  %3513 = vst.msk [vmem:[#allocation3 + $0x57] sm:$0xff] %vm3502_vm15, %v12002_v49  ;;  %v12015_v49 = vld [vmem:[#allocation250_spill] sm:$0xff] }
 0x68e   : > { %v3406_v61 = vpop.permute.xlu1 %3405 }
 0x68f   : > { %3483 = vst.msk [vmem:[#allocation3 + $0x68] sm:$0xff] %vm3469_vm5, %v3406_v61  ;;  %v3426_v59 = vpop.permute.xlu2 %3425  ;;  %v3404_v10 = vpop.permute.xlu0 %3403 }
 0x690   : > { %3493 = vst.msk [vmem:[#allocation3 + $0xb8] sm:$0xff] %vm3469_vm5, %v3426_v59 }
 0x691   : > { %3482 = vst.msk [vmem:[#allocation3 + $0x60] sm:$0xff] %vm3469_vm5, %v3404_v10 }
 0x692   : > { %3514 = vst.msk [vmem:[#allocation3 + $0x5f] sm:$0xfe] %vm3500_vm13, %v12003_v57  ;;  %v12016_v57 = vld [vmem:[#allocation252_spill] sm:$0xff] }
 0x693   : > { %3515 = vst.msk [vmem:[#allocation3 + $0x67] sm:$0xff] %vm3502_vm15, %v12004_v12  ;;  %v12017_v12 = vld [vmem:[#allocation246_spill] sm:$0xff] }
 0x694   : > { %3588 = vrot.lane.b32.xlu1 %v11885_v5, %s6254_s25 }
 0x695   : > { %3590 = vrot.lane.b32.xlu2 %v7712_v19, %s6254_s25  ;;  %3586 = vrot.lane.b32.xlu0 %v7630_v47, %s6254_s25 }
 0x696   : > { %v3412_v16 = vpop.permute.xlu1 %3411 }
 0x697   : > { %3486 = vst.msk [vmem:[#allocation3 + $0x80] sm:$0xff] %vm3469_vm5, %v3412_v16  ;;  %v3432_v1 = vpop.permute.xlu2 %3431  ;;  %v3410_v13 = vpop.permute.xlu0 %3409  ;;  %v12018_v16 = vld [vmem:[#allocation253_spill] sm:$0xff] }
 0x698   : > { %3518 = vst.msk [vmem:[#allocation3 + $0x7f] sm:$0xfe] %vm3500_vm13, %v12005_v52 }
 0x699   : > { %3496 = vst.msk [vmem:[#allocation3 + $0xd0] sm:$0xff] %vm3469_vm5, %v3432_v1 }
 0x69a   : > { %3528 = vst.msk [vmem:[#allocation3 + $0xcf] sm:$0xfe] %vm3500_vm13, %v12006_v17 }
 0x69b   : > { %3485 = vst.msk [vmem:[#allocation3 + $0x78] sm:$0xff] %vm3469_vm5, %v3410_v13 }
 0x69c   : > { %3656 = vrot.lane.b32.xlu1 %v6661_v36, %s6255_s23  ;;  %3517 = vst.msk [vmem:[#allocation3 + $0x77] sm:$0xff] %vm3502_vm15, %v12007_v4 }
 0x69d   : > { %3658 = vrot.lane.b32.xlu2 %v6680_v40, %s6255_s23  ;;  %3654 = vrot.lane.b32.xlu0 %v6642_v32, %s6255_s23  ;;  %3519 = vst.msk [vmem:[#allocation3 + $0x87] sm:$0xff] %vm3502_vm15, %v12008_v29 }
 0x69e   : > { %v3418_v8 = vpop.permute.xlu1 %3417 }
 0x69f   : > { %3489 = vst.msk [vmem:[#allocation3 + $0x98] sm:$0xff] %vm3469_vm5, %v3418_v8  ;;  %v3438_v26 = vpop.permute.xlu2 %3437  ;;  %v3416_v55 = vpop.permute.xlu0 %3415 }
 0x6a0   : > { %3499 = vst.msk [vmem:[#allocation3 + $0xe8] sm:$0xff] %vm3469_vm5, %v3438_v26 }
 0x6a1   : > { %3488 = vst.msk [vmem:[#allocation3 + $0x90] sm:$0xff] %vm3469_vm5, %v3416_v55 }
 0x6a2   : > { %3520 = vst.msk [vmem:[#allocation3 + $0x8f] sm:$0xfe] %vm3500_vm13, %v12009_v48 }
 0x6a3   : > { %3521 = vst.msk [vmem:[#allocation3 + $0x97] sm:$0xff] %vm3502_vm15, %v12010_v43 }
 0x6a4   : > { %3662 = vrot.lane.b32.xlu1 %v6815_v51, %s6255_s23 }
 0x6a5   : > { %3664 = vrot.lane.b32.xlu2 %v6906_v62, %s6255_s23  ;;  %3660 = vrot.lane.b32.xlu0 %v6699_v44, %s6255_s23 }
 0x6a6   : > { %v3424_v24 = vpop.permute.xlu1 %3423 }
 0x6a7   : > { %3492 = vst.msk [vmem:[#allocation3 + $0xb0] sm:$0xff] %vm3469_vm5, %v3424_v24  ;;  %v3537_v53 = vpop.permute.xlu2 %3536  ;;  %v3422_v42 = vpop.permute.xlu0 %3421 }
 0x6a8   : > { %3524 = vst.msk [vmem:[#allocation3 + $0xaf] sm:$0xfe] %vm3500_vm13, %v12011_v14 }
 0x6a9   : > { %3626 = vst.msk [vmem:[#allocation3 + $0xe] sm:$0xfc] %vm3622_vm4, %v3537_v53 }
 0x6aa   : > { %3491 = vst.msk [vmem:[#allocation3 + $0xa8] sm:$0xff] %vm3469_vm5, %v3422_v42 }
 0x6ab   : > { %3523 = vst.msk [vmem:[#allocation3 + $0xa7] sm:$0xff] %vm3502_vm15, %v12012_v39 }
 0x6ac   : > { %3668 = vrot.lane.b32.xlu1 %v6978_v31, %s6255_s23  ;;  %3525 = vst.msk [vmem:[#allocation3 + $0xb7] sm:$0xff] %vm3502_vm15, %v12013_v18 }
 0x6ad   : > { %3670 = vrot.lane.b32.xlu2 %v7074_v25, %s6255_s23  ;;  %3666 = vrot.lane.b32.xlu0 %v6942_v20, %s6255_s23 }
 0x6ae   : > { %v3430_v22 = vpop.permute.xlu1 %3429 }
 0x6af   : > { %3495 = vst.msk [vmem:[#allocation3 + $0xc8] sm:$0xff] %vm3469_vm5, %v3430_v22  ;;  %v3543_v3 = vpop.permute.xlu2 %3542  ;;  %v3428_v28 = vpop.permute.xlu0 %3427 }
 0x6b0   : > { %3629 = vst.msk [vmem:[#allocation3 + $0x26] sm:$0xff] %vm3624_vm14, %v3543_v3 }
 0x6b1   : > { %3494 = vst.msk [vmem:[#allocation3 + $0xc0] sm:$0xff] %vm3469_vm5, %v3428_v28 }
 0x6b2   : > { %3526 = vst.msk [vmem:[#allocation3 + $0xbf] sm:$0xfe] %vm3500_vm13, %v12014_v9 }
 0x6b3   : > { %3527 = vst.msk [vmem:[#allocation3 + $0xc7] sm:$0xff] %vm3502_vm15, %v12015_v49 }
 0x6b4   : > { %3674 = vrot.lane.b32.xlu1 %v7116_v34, %s6255_s23 }
 0x6b5   : > { %3676 = vrot.lane.b32.xlu2 %v7128_v63, %s6255_s23  ;;  %3672 = vrot.lane.b32.xlu0 %v7083_v50, %s6255_s23 }
 0x6b6   : > { %v3436_v61 = vpop.permute.xlu1 %3435 }
 0x6b7   : > { %3498 = vst.msk [vmem:[#allocation3 + $0xe0] sm:$0xff] %vm3469_vm5, %v3436_v61  ;;  %v3549_v59 = vpop.permute.xlu2 %3548  ;;  %v3434_v10 = vpop.permute.xlu0 %3433 }
 0x6b8   : > { %3530 = vst.msk [vmem:[#allocation3 + $0xdf] sm:$0xfe] %vm3500_vm13, %v12016_v57  ;;  %vm4079_vm13 = vcmask 392561  }
 0x6b9   : > { %3531 = vst.msk [vmem:[#allocation3 + $0xe7] sm:$0xff] %vm3502_vm15, %v12017_v12 }
 0x6ba   : > { %3632 = vst.msk [vmem:[#allocation3 + $0x3e] sm:$0xfc] %vm3622_vm4, %v3549_v59 }
 0x6bb   : > { %3497 = vst.msk [vmem:[#allocation3 + $0xd8] sm:$0xff] %vm3469_vm5, %v3434_v10  ;;  %vm4081_vm5 = vcmask 392560  }
 0x6bc   : > { %3529 = vst.msk [vmem:[#allocation3 + $0xd7] sm:$0xff] %vm3502_vm15, %v12018_v16  ;;  %3680 = vrot.lane.b32.xlu1 %v7208_v37, %s6255_s23  ;;  %vm4195_vm15 = vcmask 408960  }
 0x6bd   : > { %3682 = vrot.lane.b32.xlu2 %v7261_v7, %s6255_s23  ;;  %3678 = vrot.lane.b32.xlu0 %v7161_v46, %s6255_s23 }
 0x6be   : > { %v3535_v1 = vpop.permute.xlu1 %3534 }
 0x6bf   : > { %3625 = vst.msk [vmem:[#allocation3 + $0x6] sm:$0xff] %vm3624_vm14, %v3535_v1  ;;  %v3555_v13 = vpop.permute.xlu2 %3554  ;;  %v3533_v52 = vpop.permute.xlu0 %3532 }
 0x6c0   : > { %3635 = vst.msk [vmem:[#allocation3 + $0x56] sm:$0xff] %vm3624_vm14, %v3555_v13 }
 0x6c1   : > { %3623 = vst.msk [vmem:[#allocation3 - $0x2] sm:$0xfc] %vm3622_vm4, %v3533_v52 }
 0x6c4   : > { %3686 = vrot.lane.b32.xlu1 %v7341_v58, %s6255_s23 }
 0x6c5   : > { %3688 = vrot.lane.b32.xlu2 %v7381_v56, %s6255_s23  ;;  %3684 = vrot.lane.b32.xlu0 %v7306_v38, %s6255_s23 }
 0x6c6   : > { %v3541_v17 = vpop.permute.xlu1 %3540 }
 0x6c7   : > { %3628 = vst.msk [vmem:[#allocation3 + $0x1e] sm:$0xfc] %vm3622_vm4, %v3541_v17  ;;  %v3561_v4 = vpop.permute.xlu2 %3560  ;;  %v3539_v29 = vpop.permute.xlu0 %3538 }
 0x6c8   : > { %3638 = vst.msk [vmem:[#allocation3 + $0x6e] sm:$0xfc] %vm3622_vm4, %v3561_v4 }
 0x6c9   : > { %3627 = vst.msk [vmem:[#allocation3 + $0x16] sm:$0xff] %vm3624_vm14, %v3539_v29 }
 0x6cc   : > { %3692 = vrot.lane.b32.xlu1 %v7435_v2, %s6255_s23 }
 0x6cd   : > { %3694 = vrot.lane.b32.xlu2 %v7467_v33, %s6255_s23  ;;  %3690 = vrot.lane.b32.xlu0 %v7407_v15, %s6255_s23 }
 0x6ce   : > { %v3547_v8 = vpop.permute.xlu1 %3546 }
 0x6cf   : > { %3631 = vst.msk [vmem:[#allocation3 + $0x36] sm:$0xff] %vm3624_vm14, %v3547_v8  ;;  %v3567_v26 = vpop.permute.xlu2 %3566  ;;  %v3545_v55 = vpop.permute.xlu0 %3544 }
 0x6d0   : > { %3641 = vst.msk [vmem:[#allocation3 + $0x86] sm:$0xff] %vm3624_vm14, %v3567_v26 }
 0x6d1   : > { %3630 = vst.msk [vmem:[#allocation3 + $0x2e] sm:$0xfc] %vm3622_vm4, %v3545_v55 }
 0x6d4   : > { %3698 = vrot.lane.b32.xlu1 %v7515_v11, %s6255_s23 }
 0x6d5   : > { %3700 = vrot.lane.b32.xlu2 %v7572_v30, %s6255_s23  ;;  %3696 = vrot.lane.b32.xlu0 %v7491_v21, %s6255_s23 }
 0x6d6   : > { %v3553_v48 = vpop.permute.xlu1 %3552 }
 0x6d7   : > { %3634 = vst.msk [vmem:[#allocation3 + $0x4e] sm:$0xfc] %vm3622_vm4, %v3553_v48  ;;  %v3573_v43 = vpop.permute.xlu2 %3572  ;;  %v3551_v24 = vpop.permute.xlu0 %3550 }
 0x6d8   : > { %3644 = vst.msk [vmem:[#allocation3 + $0x9e] sm:$0xfc] %vm3622_vm4, %v3573_v43 }
 0x6d9   : > { %3633 = vst.msk [vmem:[#allocation3 + $0x46] sm:$0xff] %vm3624_vm14, %v3551_v24 }
 0x6dc   : > { %3704 = vrot.lane.b32.xlu1 %v7630_v47, %s6255_s23 }
 0x6dd   : > { %3706 = vrot.lane.b32.xlu2 %v11885_v5, %s6255_s23  ;;  %3702 = vrot.lane.b32.xlu0 %v7592_v27, %s6255_s23 }
 0x6de   : > { %v3559_v53 = vpop.permute.xlu1 %3558 }
 0x6df   : > { %3637 = vst.msk [vmem:[#allocation3 + $0x66] sm:$0xff] %vm3624_vm14, %v3559_v53  ;;  %v3579_v42 = vpop.permute.xlu2 %3578  ;;  %v3557_v14 = vpop.permute.xlu0 %3556 }
 0x6e0   : > { %3647 = vst.msk [vmem:[#allocation3 + $0xb6] sm:$0xff] %vm3624_vm14, %v3579_v42 }
 0x6e1   : > { %3636 = vst.msk [vmem:[#allocation3 + $0x5e] sm:$0xfc] %vm3622_vm4, %v3557_v14 }
 0x6e4   : > { %3768 = vrot.lane.b32.xlu1 %v6642_v32, %s6256_s26 }
 0x6e5   : > { %3770 = vrot.lane.b32.xlu2 %v6661_v36, %s6256_s26  ;;  %3708 = vrot.lane.b32.xlu0 %v7712_v19, %s6255_s23  ;;  %s5887_s23 = sshll.u32 %s6584_s22, 4  ;;  %s5888_s23 = int_to_ptr.vmem [resolvable:$true] %s5887_s23 }
 0x6e6   : > { %v3565_v39 = vpop.permute.xlu1 %3564 }
 0x6e7   : > { %3640 = vst.msk [vmem:[#allocation3 + $0x7e] sm:$0xfc] %vm3622_vm4, %v3565_v39  ;;  %v3585_v18 = vpop.permute.xlu2 %3584  ;;  %v3563_v22 = vpop.permute.xlu0 %3562 }
 0x6e8   : > { %3650 = vst.msk [vmem:[#allocation3 + $0xce] sm:$0xfc] %vm3622_vm4, %v3585_v18 }
 0x6e9   : > { %3639 = vst.msk [vmem:[#allocation3 + $0x76] sm:$0xff] %vm3624_vm14, %v3563_v22 }
 0x6ec   : > { %3774 = vrot.lane.b32.xlu1 %v6699_v44, %s6256_s26 }
 0x6ed   : > { %3776 = vrot.lane.b32.xlu2 %v6815_v51, %s6256_s26  ;;  %3772 = vrot.lane.b32.xlu0 %v6680_v40, %s6256_s26 }
 0x6ee   : > { %v3571_v3 = vpop.permute.xlu1 %3570 }
 0x6ef   : > { %3643 = vst.msk [vmem:[#allocation3 + $0x96] sm:$0xff] %vm3624_vm14, %v3571_v3  ;;  %v3591_v28 = vpop.permute.xlu2 %3590  ;;  %v3569_v9 = vpop.permute.xlu0 %3568 }
 0x6f0   : > { %3653 = vst.msk [vmem:[#allocation3 + $0xe6] sm:$0xff] %vm3624_vm14, %v3591_v28 }
 0x6f1   : > { %3642 = vst.msk [vmem:[#allocation3 + $0x8e] sm:$0xfc] %vm3622_vm4, %v3569_v9 }
 0x6f4   : > { %3780 = vrot.lane.b32.xlu1 %v6942_v20, %s6256_s26 }
 0x6f5   : > { %3782 = vrot.lane.b32.xlu2 %v6978_v31, %s6256_s26  ;;  %3778 = vrot.lane.b32.xlu0 %v6906_v62, %s6256_s26 }
 0x6f6   : > { %v3577_v49 = vpop.permute.xlu1 %3576 }
 0x6f7   : > { %3646 = vst.msk [vmem:[#allocation3 + $0xae] sm:$0xfc] %vm3622_vm4, %v3577_v49  ;;  %v3659_v61 = vpop.permute.xlu2 %3658  ;;  %v3575_v59 = vpop.permute.xlu0 %3574 }
 0x6f8   : > { %3742 = vst.msk [vmem:[#allocation3 + $0x12] sm:$0xff] %vm3738_vm2, %v3659_v61 }
 0x6f9   : > { %3645 = vst.msk [vmem:[#allocation3 + $0xa6] sm:$0xff] %vm3624_vm14, %v3575_v59 }
 0x6fc   : > { %3786 = vrot.lane.b32.xlu1 %v7083_v50, %s6256_s26 }
 0x6fd   : > { %3788 = vrot.lane.b32.xlu2 %v7116_v34, %s6256_s26  ;;  %3784 = vrot.lane.b32.xlu0 %v7074_v25, %s6256_s26 }
 0x6fe   : > { %v3583_v10 = vpop.permute.xlu1 %3582 }
 0x6ff   : > { %3649 = vst.msk [vmem:[#allocation3 + $0xc6] sm:$0xff] %vm3624_vm14, %v3583_v10  ;;  %v3665_v57 = vpop.permute.xlu2 %3664  ;;  %v3581_v12 = vpop.permute.xlu0 %3580 }
 0x700   : > { %3745 = vst.msk [vmem:[#allocation3 + $0x2a] sm:$0x3f] %vm3740_vm6, %v3665_v57 }
 0x701   : > { %3648 = vst.msk [vmem:[#allocation3 + $0xbe] sm:$0xfc] %vm3622_vm4, %v3581_v12 }
 0x704   : > { %3792 = vrot.lane.b32.xlu1 %v7161_v46, %s6256_s26 }
 0x705   : > { %3794 = vrot.lane.b32.xlu2 %v7208_v37, %s6256_s26  ;;  %3790 = vrot.lane.b32.xlu0 %v7128_v63, %s6256_s26 }
 0x706   : > { %v3589_v16 = vpop.permute.xlu1 %3588 }
 0x707   : > { %3652 = vst.msk [vmem:[#allocation3 + $0xde] sm:$0xfc] %vm3622_vm4, %v3589_v16  ;;  %v3671_v1 = vpop.permute.xlu2 %3670  ;;  %v3587_v13 = vpop.permute.xlu0 %3586  ;;  %vm4193_vm4 = vcmask 408962  }
 0x708   : > { %3748 = vst.msk [vmem:[#allocation3 + $0x42] sm:$0xff] %vm3738_vm2, %v3671_v1 }
 0x709   : > { %3651 = vst.msk [vmem:[#allocation3 + $0xd6] sm:$0xff] %vm3624_vm14, %v3587_v13 }
 0x70c   : > { %3798 = vrot.lane.b32.xlu1 %v7306_v38, %s6256_s26 }
 0x70d   : > { %3800 = vrot.lane.b32.xlu2 %v7341_v58, %s6256_s26  ;;  %3796 = vrot.lane.b32.xlu0 %v7261_v7, %s6256_s26 }
 0x70e   : > { %v3657_v52 = vpop.permute.xlu1 %3656 }
 0x70f   : > { %3741 = vst.msk [vmem:[#allocation3 + $0xa] sm:$0x3f] %vm3740_vm6, %v3657_v52  ;;  %v3677_v17 = vpop.permute.xlu2 %3676  ;;  %v3655_v4 = vpop.permute.xlu0 %3654 }
 0x710   : > { %3751 = vst.msk [vmem:[#allocation3 + $0x5a] sm:$0x3f] %vm3740_vm6, %v3677_v17 }
 0x711   : > { %3739 = vst.msk [vmem:[#allocation3 + $0x2] sm:$0xff] %vm3738_vm2, %v3655_v4 }
 0x714   : > { %3804 = vrot.lane.b32.xlu1 %v7407_v15, %s6256_s26 }
 0x715   : > { %3806 = vrot.lane.b32.xlu2 %v7435_v2, %s6256_s26  ;;  %3802 = vrot.lane.b32.xlu0 %v7381_v56, %s6256_s26 }
 0x716   : > { %v3663_v29 = vpop.permute.xlu1 %3662 }
 0x717   : > { %3744 = vst.msk [vmem:[#allocation3 + $0x22] sm:$0xff] %vm3738_vm2, %v3663_v29  ;;  %v3683_v8 = vpop.permute.xlu2 %3682  ;;  %v3661_v26 = vpop.permute.xlu0 %3660 }
 0x718   : > { %3754 = vst.msk [vmem:[#allocation3 + $0x72] sm:$0xff] %vm3738_vm2, %v3683_v8 }
 0x719   : > { %3743 = vst.msk [vmem:[#allocation3 + $0x1a] sm:$0x3f] %vm3740_vm6, %v3661_v26 }
 0x71c   : > { %3810 = vrot.lane.b32.xlu1 %v7491_v21, %s6256_s26 }
 0x71d   : > { %3812 = vrot.lane.b32.xlu2 %v7515_v11, %s6256_s26  ;;  %3808 = vrot.lane.b32.xlu0 %v7467_v33, %s6256_s26 }
 0x71e   : > { %v3669_v55 = vpop.permute.xlu1 %3668 }
 0x71f   : > { %3747 = vst.msk [vmem:[#allocation3 + $0x3a] sm:$0x3f] %vm3740_vm6, %v3669_v55  ;;  %v3689_v48 = vpop.permute.xlu2 %3688  ;;  %v3667_v43 = vpop.permute.xlu0 %3666 }
 0x720   : > { %3757 = vst.msk [vmem:[#allocation3 + $0x8a] sm:$0x3f] %vm3740_vm6, %v3689_v48 }
 0x721   : > { %3746 = vst.msk [vmem:[#allocation3 + $0x32] sm:$0xff] %vm3738_vm2, %v3667_v43 }
 0x724   : > { %3816 = vrot.lane.b32.xlu1 %v7592_v27, %s6256_s26 }
 0x725   : > { %3818 = vrot.lane.b32.xlu2 %v7630_v47, %s6256_s26  ;;  %3814 = vrot.lane.b32.xlu0 %v7572_v30, %s6256_s26 }
 0x726   : > { %v3675_v24 = vpop.permute.xlu1 %3674 }
 0x727   : > { %3750 = vst.msk [vmem:[#allocation3 + $0x52] sm:$0xff] %vm3738_vm2, %v3675_v24  ;;  %v3695_v53 = vpop.permute.xlu2 %3694  ;;  %v3673_v42 = vpop.permute.xlu0 %3672 }
 0x728   : > { %3760 = vst.msk [vmem:[#allocation3 + $0xa2] sm:$0xff] %vm3738_vm2, %v3695_v53 }
 0x729   : > { %3749 = vst.msk [vmem:[#allocation3 + $0x4a] sm:$0x3f] %vm3740_vm6, %v3673_v42  ;;  %v10361_v42 = vpop.f32.mrf.mxu1 }
 0x72c   : > { %3822 = vrot.lane.b32.xlu1 %v7712_v19, %s6256_s26 }
 0x72d   : > { %3882 = vrot.lane.b32.xlu2 %v6642_v32, %s6257_s27  ;;  %3820 = vrot.lane.b32.xlu0 %v11885_v5, %s6256_s26  ;;  %s12051_s26 = sand.u32 1, %s6224_s10  }
 0x72e   : > { %v3681_v14 = vpop.permute.xlu1 %3680 }
 0x72f   : > { %3753 = vst.msk [vmem:[#allocation3 + $0x6a] sm:$0x3f] %vm3740_vm6, %v3681_v14  ;;  %v3701_v39 = vpop.permute.xlu2 %3700  ;;  %v3679_v18 = vpop.permute.xlu0 %3678 }
 0x730   : > { %3763 = vst.msk [vmem:[#allocation3 + $0xba] sm:$0x3f] %vm3740_vm6, %v3701_v39 }
 0x731   : > { %3752 = vst.msk [vmem:[#allocation3 + $0x62] sm:$0xff] %vm3738_vm2, %v3679_v18 }
 0x734   : > { %3886 = vrot.lane.b32.xlu1 %v6680_v40, %s6257_s27 }
 0x735   : > { %3888 = vrot.lane.b32.xlu2 %v6699_v44, %s6257_s27  ;;  %3884 = vrot.lane.b32.xlu0 %v6661_v36, %s6257_s27 }
 0x736   : > { %v3687_v22 = vpop.permute.xlu1 %3686 }
 0x737   : > { %3756 = vst.msk [vmem:[#allocation3 + $0x82] sm:$0xff] %vm3738_vm2, %v3687_v22  ;;  %v3707_v3 = vpop.permute.xlu2 %3706  ;;  %v3685_v28 = vpop.permute.xlu0 %3684 }
 0x738   : > { %3766 = vst.msk [vmem:[#allocation3 + $0xd2] sm:$0xff] %vm3738_vm2, %v3707_v3  ;;  %v10373_v3 = vpop.f32.mrf.mxu1 }
 0x739   : > { %3755 = vst.msk [vmem:[#allocation3 + $0x7a] sm:$0x3f] %vm3740_vm6, %v3685_v28 }
 0x73c   : > { %3892 = vrot.lane.b32.xlu1 %v6906_v62, %s6257_s27 }
 0x73d   : > { %3894 = vrot.lane.b32.xlu2 %v6942_v20, %s6257_s27  ;;  %3890 = vrot.lane.b32.xlu0 %v6815_v51, %s6257_s27 }
 0x73e   : > { %v3693_v9 = vpop.permute.xlu1 %3692 }
 0x73f   : > { %3759 = vst.msk [vmem:[#allocation3 + $0x9a] sm:$0x3f] %vm3740_vm6, %v3693_v9  ;;  %v3771_v49 = vpop.permute.xlu2 %3770  ;;  %v3691_v61 = vpop.permute.xlu0 %3690 }
 0x740   : > { %3855 = vst.msk [vmem:[#allocation3 + $0x9] sm:$0x7f] %vm3854_vm7, %v3771_v49  ;;  %v10386_v49 = vpop.f32.mrf.mxu1 }
 0x741   : > { %3758 = vst.msk [vmem:[#allocation3 + $0x92] sm:$0xff] %vm3738_vm2, %v3691_v61 }
 0x744   : > { %3898 = vrot.lane.b32.xlu1 %v7074_v25, %s6257_s27 }
 0x745   : > { %3900 = vrot.lane.b32.xlu2 %v7083_v50, %s6257_s27  ;;  %3896 = vrot.lane.b32.xlu0 %v6978_v31, %s6257_s27 }
 0x746   : > { %v3699_v59 = vpop.permute.xlu1 %3698 }
 0x747   : > { %3762 = vst.msk [vmem:[#allocation3 + $0xb2] sm:$0xff] %vm3738_vm2, %v3699_v59  ;;  %v3777_v10 = vpop.permute.xlu2 %3776  ;;  %v3697_v57 = vpop.permute.xlu0 %3696 }
 0x748   : > { %3858 = vst.msk [vmem:[#allocation3 + $0x21] sm:$0xff] %vm3852_vm8, %v3777_v10  ;;  %v10397_v10 = vpop.f32.mrf.mxu1 }
 0x749   : > { %3761 = vst.msk [vmem:[#allocation3 + $0xaa] sm:$0x3f] %vm3740_vm6, %v3697_v57 }
 0x74c   : > { %3904 = vrot.lane.b32.xlu1 %v7128_v63, %s6257_s27 }
 0x74d   : > { %3906 = vrot.lane.b32.xlu2 %v7161_v46, %s6257_s27  ;;  %3902 = vrot.lane.b32.xlu0 %v7116_v34, %s6257_s27 }
 0x74e   : > { %v3705_v12 = vpop.permute.xlu1 %3704 }
 0x74f   : > { %3765 = vst.msk [vmem:[#allocation3 + $0xca] sm:$0x3f] %vm3740_vm6, %v3705_v12  ;;  %v3783_v16 = vpop.permute.xlu2 %3782  ;;  %v3703_v1 = vpop.permute.xlu0 %3702 }
 0x750   : > { %3861 = vst.msk [vmem:[#allocation3 + $0x39] sm:$0x7f] %vm3854_vm7, %v3783_v16  ;;  %v10414_v12 = vpop.f32.mrf.mxu1 }
 0x751   : > { %3764 = vst.msk [vmem:[#allocation3 + $0xc2] sm:$0xff] %vm3738_vm2, %v3703_v1 }
 0x754   : > { %3910 = vrot.lane.b32.xlu1 %v7261_v7, %s6257_s27 }
 0x755   : > { %3912 = vrot.lane.b32.xlu2 %v7306_v38, %s6257_s27  ;;  %3908 = vrot.lane.b32.xlu0 %v7208_v37, %s6257_s27 }
 0x756   : > { %v3769_v13 = vpop.permute.xlu1 %3768 }
 0x757   : > { %3853 = vst.msk [vmem:[#allocation3 + $0x1] sm:$0xff] %vm3852_vm8, %v3769_v13  ;;  %v3789_v52 = vpop.permute.xlu2 %3788  ;;  %v3709_v17 = vpop.permute.xlu0 %3708 }
 0x758   : > { %3864 = vst.msk [vmem:[#allocation3 + $0x51] sm:$0xff] %vm3852_vm8, %v3789_v52 }
 0x759   : > { %3767 = vst.msk [vmem:[#allocation3 + $0xda] sm:$0x3f] %vm3740_vm6, %v3709_v17  ;;  %v10426_v17 = vpop.f32.mrf.mxu1 }
 0x75c   : > { %3916 = vrot.lane.b32.xlu1 %v7381_v56, %s6257_s27 }
 0x75d   : > { %3918 = vrot.lane.b32.xlu2 %v7407_v15, %s6257_s27  ;;  %3914 = vrot.lane.b32.xlu0 %v7341_v58, %s6257_s27 }
 0x75e   : > { %v3775_v4 = vpop.permute.xlu1 %3774 }
 0x75f   : > { %3857 = vst.msk [vmem:[#allocation3 + $0x19] sm:$0x7f] %vm3854_vm7, %v3775_v4  ;;  %v3795_v29 = vpop.permute.xlu2 %3794  ;;  %v3773_v8 = vpop.permute.xlu0 %3772 }
 0x760   : > { %3867 = vst.msk [vmem:[#allocation3 + $0x69] sm:$0x7f] %vm3854_vm7, %v3795_v29 }
 0x761   : > { %3856 = vst.msk [vmem:[#allocation3 + $0x11] sm:$0xff] %vm3852_vm8, %v3773_v8 }
 0x764   : > { %3922 = vrot.lane.b32.xlu1 %v7467_v33, %s6257_s27 }
 0x765   : > { %3924 = vrot.lane.b32.xlu2 %v7491_v21, %s6257_s27  ;;  %3920 = vrot.lane.b32.xlu0 %v7435_v2, %s6257_s27 }
 0x766   : > { %v3781_v26 = vpop.permute.xlu1 %3780 }
 0x767   : > { %3860 = vst.msk [vmem:[#allocation3 + $0x31] sm:$0xff] %vm3852_vm8, %v3781_v26  ;;  %v3801_v55 = vpop.permute.xlu2 %3800  ;;  %v3779_v48 = vpop.permute.xlu0 %3778 }
 0x768   : > { %3870 = vst.msk [vmem:[#allocation3 + $0x81] sm:$0xff] %vm3852_vm8, %v3801_v55  ;;  %v10439_v26 = vpop.f32.mrf.mxu1 }
 0x769   : > { %3859 = vst.msk [vmem:[#allocation3 + $0x29] sm:$0x7f] %vm3854_vm7, %v3779_v48 }
 0x76c   : > { %3995 = vrot.lane.b32.xlu1 %v6642_v32, %s6258_s14 }
 0x76d   : > { %3997 = vrot.lane.b32.xlu2 %v6661_v36, %s6258_s14  ;;  %3926 = vrot.lane.b32.xlu0 %v7515_v11, %s6257_s27 }
 0x76e   : > { %v3787_v43 = vpop.permute.xlu1 %3786 }
 0x76f   : > { %3863 = vst.msk [vmem:[#allocation3 + $0x49] sm:$0x7f] %vm3854_vm7, %v3787_v43  ;;  %v3807_v24 = vpop.permute.xlu2 %3806  ;;  %v3785_v53 = vpop.permute.xlu0 %3784 }
 0x770   : > { %3873 = vst.msk [vmem:[#allocation3 + $0x99] sm:$0x7f] %vm3854_vm7, %v3807_v24  ;;  %v10450_v48 = vpop.f32.mrf.mxu1  ;;  %v4261_v24 = vld [vmem:[%s11303_s5 + $0x30] sm:$0x3] }
 0x771   : > { %3862 = vst.msk [vmem:[#allocation3 + $0x41] sm:$0xff] %vm3852_vm8, %v3785_v53  ;;  %6025 = vmatpush.msk.msra.mxu2 %vm4362_vm12, %v4261_v24  ;;  %v4260_v53 = vld [vmem:[%s11303_s5 + $0x28] sm:$0xff] }
 0x773   : > { %4376 = vmatpush.msra.mxu2 %v4260_v53 }
 0x774   : > { %4111 = vrot.lane.b32.xlu1 %v6661_v36, %s6259_s16 }
 0x775   : > { %3928 = vrot.lane.b32.xlu2 %v7572_v30, %s6257_s27  ;;  %4109 = vrot.lane.b32.xlu0 %v6642_v32, %s6259_s16 }
 0x776   : > { %v3793_v14 = vpop.permute.xlu1 %3792 }
 0x777   : > { %3866 = vst.msk [vmem:[#allocation3 + $0x61] sm:$0xff] %vm3852_vm8, %v3793_v14  ;;  %v3813_v39 = vpop.permute.xlu2 %3812  ;;  %v3791_v18 = vpop.permute.xlu0 %3790  ;;  %v4259_v14 = vld [vmem:[%s11303_s5 + $0x20] sm:$0xff] }
 0x778   : > { %3876 = vst.msk [vmem:[#allocation3 + $0xb1] sm:$0xff] %vm3852_vm8, %v3813_v39  ;;  %v10476_v39 = vpop.f32.mrf.mxu1  ;;  %4377 = vmatpush.msra.mxu2 %v4259_v14 }
 0x779   : > { %3865 = vst.msk [vmem:[#allocation3 + $0x59] sm:$0x7f] %vm3854_vm7, %v3791_v18 }
 0x77c   : > { %4001 = vrot.lane.b32.xlu1 %v6699_v44, %s6258_s14 }
 0x77d   : > { %4113 = vrot.lane.b32.xlu2 %v6680_v40, %s6259_s16  ;;  %3999 = vrot.lane.b32.xlu0 %v6680_v40, %s6258_s14 }
 0x77e   : > { %v3799_v32 = vpop.permute.xlu1 %3798 }
 0x77f   : > { %3869 = vst.msk [vmem:[#allocation3 + $0x79] sm:$0x7f] %vm3854_vm7, %v3799_v32  ;;  %v3819_v36 = vpop.permute.xlu2 %3818  ;;  %v3797_v22 = vpop.permute.xlu0 %3796 }
 0x780   : > { %3879 = vst.msk [vmem:[#allocation3 + $0xc9] sm:$0x7f] %vm3854_vm7, %v3819_v36 }
 0x781   : > { %3868 = vst.msk [vmem:[#allocation3 + $0x71] sm:$0xff] %vm3852_vm8, %v3797_v22  ;;  %v4256_v22 = vld [vmem:[%s11303_s5 + $0x8] sm:$0xff] }
 0x784   : > { %3930 = vrot.lane.b32.xlu1 %v7592_v27, %s6257_s27 }
 0x785   : > { %4003 = vrot.lane.b32.xlu2 %v6815_v51, %s6258_s14  ;;  %4115 = vrot.lane.b32.xlu0 %v6699_v44, %s6259_s16 }
 0x786   : > { %v3805_v40 = vpop.permute.xlu1 %3804 }
 0x787   : > { %3872 = vst.msk [vmem:[#allocation3 + $0x91] sm:$0xff] %vm3852_vm8, %v3805_v40  ;;  %v3883_v28 = vpop.permute.xlu2 %3882  ;;  %v3803_v9 = vpop.permute.xlu0 %3802  ;;  %v4255_v40 = vld [vmem:[%s11303_s5] sm:$0xff] }
 0x788   : > { %3967 = vst.msk [vmem:[#allocation3] sm:$0xff] %vm3966_vm11, %v3883_v28 }
 0x789   : > { %3871 = vst.msk [vmem:[#allocation3 + $0x89] sm:$0x7f] %vm3854_vm7, %v3803_v9 }
 0x78c   : > { %4117 = vrot.lane.b32.xlu1 %v6815_v51, %s6259_s16 }
 0x78d   : > { %4119 = vrot.lane.b32.xlu2 %v6906_v62, %s6259_s16  ;;  %4005 = vrot.lane.b32.xlu0 %v6906_v62, %s6258_s14 }
 0x78e   : > { %v3811_v44 = vpop.permute.xlu1 %3810 }
 0x78f   : > { %3875 = vst.msk [vmem:[#allocation3 + $0xa9] sm:$0x7f] %vm3854_vm7, %v3811_v44  ;;  %v3889_v61 = vpop.permute.xlu2 %3888  ;;  %v3809_v59 = vpop.permute.xlu0 %3808 }
 0x790   : > { %3970 = vst.msk [vmem:[#allocation3 + $0x18] sm:$0xff] %vm3966_vm11, %v3889_v61  ;;  %v10500_v61 = vpop.f32.mrf.mxu1 }
 0x791   : > { %3874 = vst.msk [vmem:[#allocation3 + $0xa1] sm:$0xff] %vm3852_vm8, %v3809_v59 }
 0x794   : > { %3934 = vrot.lane.b32.xlu1 %v11885_v5, %s6257_s27 }
 0x795   : > { %4007 = vrot.lane.b32.xlu2 %v6942_v20, %s6258_s14  ;;  %3932 = vrot.lane.b32.xlu0 %v7630_v47, %s6257_s27 }
 0x796   : > { %v3817_v51 = vpop.permute.xlu1 %3816 }
 0x797   : > { %3878 = vst.msk [vmem:[#allocation3 + $0xc1] sm:$0xff] %vm3852_vm8, %v3817_v51  ;;  %v3895_v62 = vpop.permute.xlu2 %3894  ;;  %v3815_v57 = vpop.permute.xlu0 %3814 }
 0x798   : > { %3973 = vst.msk [vmem:[#allocation3 + $0x30] sm:$0xff] %vm3966_vm11, %v3895_v62  ;;  %v10512_v62 = vpop.f32.mrf.mxu1 }
 0x799   : > { %3877 = vst.msk [vmem:[#allocation3 + $0xb9] sm:$0x7f] %vm3854_vm7, %v3815_v57 }
 0x79c   : > { %4121 = vrot.lane.b32.xlu1 %v6942_v20, %s6259_s16 }
 0x79d   : > { %4123 = vrot.lane.b32.xlu2 %v6978_v31, %s6259_s16  ;;  %4009 = vrot.lane.b32.xlu0 %v6978_v31, %s6258_s14 }
 0x79e   : > { %v3823_v16 = vpop.permute.xlu1 %3822 }
 0x79f   : > { %3881 = vst.msk [vmem:[#allocation3 + $0xd9] sm:$0x7f] %vm3854_vm7, %v3823_v16  ;;  %v3901_v1 = vpop.permute.xlu2 %3900  ;;  %v3821_v13 = vpop.permute.xlu0 %3820 }
 0x7a0   : > { %3976 = vst.msk [vmem:[#allocation3 + $0x48] sm:$0xff] %vm3966_vm11, %v3901_v1  ;;  %v10523_v1 = vpop.f32.mrf.mxu1 }
 0x7a1   : > { %3880 = vst.msk [vmem:[#allocation3 + $0xd1] sm:$0xff] %vm3852_vm8, %v3821_v13 }
 0x7a4   : > { %4011 = vrot.lane.b32.xlu1 %v7074_v25, %s6258_s14 }
 0x7a5   : > { %4013 = vrot.lane.b32.xlu2 %v7083_v50, %s6258_s14  ;;  %3936 = vrot.lane.b32.xlu0 %v7712_v19, %s6257_s27 }
 0x7a6   : > { %v3887_v20 = vpop.permute.xlu1 %3886 }
 0x7a7   : > { %3969 = vst.msk [vmem:[#allocation3 + $0x10] sm:$0xff] %vm3966_vm11, %v3887_v20  ;;  %v3907_v31 = vpop.permute.xlu2 %3906  ;;  %v3885_v52 = vpop.permute.xlu0 %3884 }
 0x7a8   : > { %3979 = vst.msk [vmem:[#allocation3 + $0x60] sm:$0xff] %vm3966_vm11, %v3907_v31  ;;  %v10539_v31 = vpop.f32.mrf.mxu1 }
 0x7a9   : > { %3968 = vst.msk [vmem:[#allocation3 + $0x8] sm:$0xff] %vm3966_vm11, %v3885_v52 }
 0x7ac   : > { %4127 = vrot.lane.b32.xlu1 %v7083_v50, %s6259_s16 }
 0x7ad   : > { %4015 = vrot.lane.b32.xlu2 %v7116_v34, %s6258_s14  ;;  %4125 = vrot.lane.b32.xlu0 %v7074_v25, %s6259_s16 }
 0x7ae   : > { %v3893_v4 = vpop.permute.xlu1 %3892 }
 0x7af   : > { %3972 = vst.msk [vmem:[#allocation3 + $0x28] sm:$0xff] %vm3966_vm11, %v3893_v4  ;;  %v3913_v29 = vpop.permute.xlu2 %3912  ;;  %v3891_v8 = vpop.permute.xlu0 %3890 }
 0x7b0   : > { %3982 = vst.msk [vmem:[#allocation3 + $0x78] sm:$0xff] %vm3966_vm11, %v3913_v29 }
 0x7b1   : > { %3971 = vst.msk [vmem:[#allocation3 + $0x20] sm:$0xff] %vm3966_vm11, %v3891_v8 }
 0x7b4   : > { %4129 = vrot.lane.b32.xlu1 %v7116_v34, %s6259_s16 }
 0x7b5   : > { %4131 = vrot.lane.b32.xlu2 %v7128_v63, %s6259_s16  ;;  %4017 = vrot.lane.b32.xlu0 %v7128_v63, %s6258_s14 }
 0x7b6   : > { %v3899_v50 = vpop.permute.xlu1 %3898 }
 0x7b7   : > { %3975 = vst.msk [vmem:[#allocation3 + $0x40] sm:$0xff] %vm3966_vm11, %v3899_v50  ;;  %v3919_v25 = vpop.permute.xlu2 %3918  ;;  %v3897_v55 = vpop.permute.xlu0 %3896 }
 0x7b8   : > { %3985 = vst.msk [vmem:[#allocation3 + $0x90] sm:$0xff] %vm3966_vm11, %v3919_v25  ;;  %v10553_v25 = vpop.f32.mrf.mxu1 }
 0x7b9   : > { %3974 = vst.msk [vmem:[#allocation3 + $0x38] sm:$0xff] %vm3966_vm11, %v3897_v55 }
 0x7bc   : > { %4021 = vrot.lane.b32.xlu1 %v7208_v37, %s6258_s14 }
 0x7bd   : > { %4023 = vrot.lane.b32.xlu2 %v7261_v7, %s6258_s14  ;;  %4019 = vrot.lane.b32.xlu0 %v7161_v46, %s6258_s14 }
 0x7be   : > { %v3905_v63 = vpop.permute.xlu1 %3904 }
 0x7bf   : > { %3978 = vst.msk [vmem:[#allocation3 + $0x58] sm:$0xff] %vm3966_vm11, %v3905_v63  ;;  %v3925_v34 = vpop.permute.xlu2 %3924  ;;  %v3903_v43 = vpop.permute.xlu0 %3902 }
 0x7c0   : > { %3988 = vst.msk [vmem:[#allocation3 + $0xa8] sm:$0xff] %vm3966_vm11, %v3925_v34 }
 0x7c1   : > { %3977 = vst.msk [vmem:[#allocation3 + $0x50] sm:$0xff] %vm3966_vm11, %v3903_v43 }
 0x7c4   : > { %4135 = vrot.lane.b32.xlu1 %v7208_v37, %s6259_s16  ;;  %v4258_v37 = vld [vmem:[%s11303_s5 + $0x18] sm:$0xff] }
 0x7c5   : > { %4025 = vrot.lane.b32.xlu2 %v7306_v38, %s6258_s14  ;;  %4133 = vrot.lane.b32.xlu0 %v7161_v46, %s6259_s16  ;;  %v4257_v46 = vld [vmem:[%s11303_s5 + $0x10] sm:$0xff] }
 0x7c6   : > { %v3911_v18 = vpop.permute.xlu1 %3910  ;;  %4378 = vmatpush.msra.mxu2 %v4258_v37 }
 0x7c7   : > { %3981 = vst.msk [vmem:[#allocation3 + $0x70] sm:$0xff] %vm3966_vm11, %v3911_v18  ;;  %v3998_v32 = vpop.permute.xlu2 %3997  ;;  %v3909_v36 = vpop.permute.xlu0 %3908 }
 0x7c8   : > { %4082 = vst.msk [vmem:[#allocation3 + $0x7] sm:$0xff] %vm4081_vm5, %v3998_v32  ;;  %4379 = vmatpush.msra.mxu2 %v4257_v46 }
 0x7c9   : > { %3980 = vst.msk [vmem:[#allocation3 + $0x68] sm:$0xff] %vm3966_vm11, %v3909_v36 }
 0x7ca   : > { %4380 = vmatpush.msra.mxu2 %v4256_v22 }
 0x7cc   : > { %4029 = vrot.lane.b32.xlu1 %v7381_v56, %s6258_s14  ;;  %4381 = vmatpush.msra.mxu2 %v4255_v40 }
 0x7cd   : > { %4137 = vrot.lane.b32.xlu2 %v7261_v7, %s6259_s16  ;;  %4027 = vrot.lane.b32.xlu0 %v7341_v58, %s6258_s14 }
 0x7ce   : > { %v3917_v28 = vpop.permute.xlu1 %3916 }
 0x7cf   : > { %3984 = vst.msk [vmem:[#allocation3 + $0x88] sm:$0xff] %vm3966_vm11, %v3917_v28  ;;  %v3929_v9 = vpop.permute.xlu2 %3928  ;;  %v3915_v44 = vpop.permute.xlu0 %3914 }
 0x7d0   : > { %3990 = vst.msk [vmem:[#allocation3 + $0xb8] sm:$0xff] %vm3966_vm11, %v3929_v9 }
 0x7d1   : > { %3983 = vst.msk [vmem:[#allocation3 + $0x80] sm:$0xff] %vm3966_vm11, %v3915_v44  ;;  %v4727_v44 = vld [vmem:[#allocation4 + $0x2] sm:$0xff] }
 0x7d4   : > { %4031 = vrot.lane.b32.xlu1 %v7407_v15, %s6258_s14 }
 0x7d5   : > { %4033 = vrot.lane.b32.xlu2 %v7435_v2, %s6258_s14  ;;  %4139 = vrot.lane.b32.xlu0 %v7306_v38, %s6259_s16 }
 0x7d6   : > { %v3923_v7 = vpop.permute.xlu1 %3922 }
 0x7d7   : > { %3987 = vst.msk [vmem:[#allocation3 + $0xa0] sm:$0xff] %vm3966_vm11, %v3923_v7  ;;  %v4114_v59 = vpop.permute.xlu2 %4113  ;;  %v3921_v51 = vpop.permute.xlu0 %3920  ;;  %v4600_v7 = vld [vmem:[#allocation4 + $0x8] sm:$0xff] }
 0x7d8   : > { %3986 = vst.msk [vmem:[#allocation3 + $0x98] sm:$0xff] %vm3966_vm11, %v3921_v51 }
 0x7dc   : > { %4037 = vrot.lane.b32.xlu1 %v7491_v21, %s6258_s14 }
 0x7dd   : > { %4141 = vrot.lane.b32.xlu2 %v7341_v58, %s6259_s16  ;;  %4035 = vrot.lane.b32.xlu0 %v7467_v33, %s6258_s14 }
 0x7de   : > { %v3996_v38 = vpop.permute.xlu1 %3995 }
 0x7df   : > { %4080 = vst.msk [vmem:[#allocation3 - $0x1] sm:$0xfe] %vm4079_vm13, %v3996_v38  ;;  %v4004_v57 = vpop.permute.xlu2 %4003  ;;  %v3927_v16 = vpop.permute.xlu0 %3926 }
 0x7e0   : > { %4085 = vst.msk [vmem:[#allocation3 + $0x1f] sm:$0xfe] %vm4079_vm13, %v4004_v57 }
 0x7e1   : > { %3989 = vst.msk [vmem:[#allocation3 + $0xb0] sm:$0xff] %vm3966_vm11, %v3927_v16 }
 0x7e4   : > { %4039 = vrot.lane.b32.xlu1 %v7515_v11, %s6258_s14 }
 0x7e5   : > { %4041 = vrot.lane.b32.xlu2 %v7572_v30, %s6258_s14  ;;  %4143 = vrot.lane.b32.xlu0 %v7381_v56, %s6259_s16 }
 0x7e6   : > { %v4112_v58 = vpop.permute.xlu1 %4111 }
 0x7e7   : > { %4196 = vst.msk [vmem:[#allocation3 + $0x6] sm:$0xff] %vm4195_vm15, %v4112_v58  ;;  %v4120_v13 = vpop.permute.xlu2 %4119  ;;  %v4110_v20 = vpop.permute.xlu0 %4109 }
 0x7e8   : > { %4194 = vst.msk [vmem:[#allocation3 - $0x2] sm:$0xfc] %vm4193_vm4, %v4110_v20 }
 0x7ec   : > { %4145 = vrot.lane.b32.xlu1 %v7407_v15, %s6259_s16 }
 0x7ed   : > { %4147 = vrot.lane.b32.xlu2 %v7435_v2, %s6259_s16  ;;  %4043 = vrot.lane.b32.xlu0 %v7592_v27, %s6258_s14 }
 0x7ee   : > { %v4002_v56 = vpop.permute.xlu1 %4001  ;;  %v4224_v50 = vld [vmem:[#allocation3 + $0x8] sm:$0xff] }
 0x7ef   : > { %4084 = vst.msk [vmem:[#allocation3 + $0x17] sm:$0xff] %vm4081_vm5, %v4002_v56  ;;  %v4008_v52 = vpop.permute.xlu2 %4007  ;;  %v4000_v4 = vpop.permute.xlu0 %3999  ;;  %v4223_v29 = vld [vmem:[#allocation3] sm:$0xff] }
 0x7f0   : > { %4087 = vst.msk [vmem:[#allocation3 + $0x2f] sm:$0xfe] %vm4079_vm13, %v4008_v52  ;;  %6026 = vmatmul.msk.f32.vlgmr.msra.gmra.mxu2 %vm1993_vm3, %v4223_v29 }
 0x7f1   : > { %4083 = vst.msk [vmem:[#allocation3 + $0xf] sm:$0xfe] %vm4079_vm13, %v4000_v4  ;;  %v4664_v4 = vld [vmem:[#allocation4 + $0x9] sm:$0xff] }
 0x7f2   : > { %4197 = vst.msk [vmem:[#allocation3 + $0xe] sm:$0xfc] %vm4193_vm4, %v4114_v59 }
 0x7f4   : > { %4047 = vrot.lane.b32.xlu1 %v11885_v5, %s6258_s14 }
 0x7f5   : > { %4049 = vrot.lane.b32.xlu2 %v7712_v19, %s6258_s14  ;;  %4045 = vrot.lane.b32.xlu0 %v7630_v47, %s6258_s14 }
 0x7f6   : > { %v3931_v2 = vpop.permute.xlu1 %3930 }
 0x7f7   : > { %3991 = vst.msk [vmem:[#allocation3 + $0xc0] sm:$0xff] %vm3966_vm11, %v3931_v2  ;;  %v4124_v15 = vpop.permute.xlu2 %4123  ;;  %v4116_v8 = vpop.permute.xlu0 %4115 }
 0x7f8   : > { %4198 = vst.msk [vmem:[#allocation3 + $0x16] sm:$0xff] %vm4195_vm15, %v4116_v8  ;;  %6027 = vmatmul.msk.f32.gmra.mxu2 %vm1993_vm3, %v4224_v50  ;;  %v5112_v50 = vld [vmem:[%s11305_s7] sm:$0xf] }
 0x7f9   : > { %6058 = vmatpush.msk.msra.mxu3 %vm465_vm0, %v5112_v50  ;;  %v5049_v50 = vld [vmem:[#allocation4 + $0x3a] sm:$0xff]  ;;  %vm5521_vm0 = vcmask 97312  }
 0x7fc   : > { %4151 = vrot.lane.b32.xlu1 %v7491_v21, %s6259_s16  ;;  %v10570_v21 = vld [vmem:[%s11302_s4] ss:$0 sm:$0xff] }
 0x7fd   : > { %4153 = vrot.lane.b32.xlu2 %v7515_v11, %s6259_s16  ;;  %4149 = vrot.lane.b32.xlu0 %v7467_v33, %s6259_s16  ;;  %v10572_v11 = vpop.f32.mrf.mxu1  ;;  %v1866_v33 = vadd.f32 %v10570_v21, %v8837_v0  ;;  %v1872_v0 = vadd.f32 %v10570_v21, %v8887_v60  ;;  %v1875_v32 = vadd.f32 %v10570_v21, %v8904_v35  ;;  %v4663_v60 = vld [vmem:[#allocation4 + $0x1] sm:$0xff] }
 0x7fe   : > { %v4118_v55 = vpop.permute.xlu1 %4117  ;;  %v1869_v37 = vadd.f32 %v10570_v21, %v8861_v41  ;;  %v1881_v59 = vadd.f32 %v10570_v21, %v8948_v23  ;;  %v1884_v51 = vadd.f32 %v10570_v21, %v8973_v6  ;;  %v1878_v16 = vadd.f32 %v10570_v21, %v8927_v45  ;;  %v12020_v23 = vld [vmem:[#allocation9_spill] sm:$0xff] }
 0x7ff   : > { %4199 = vst.msk [vmem:[#allocation3 + $0x1e] sm:$0xfc] %vm4193_vm4, %v4118_v55  ;;  %v4014_v63 = vpop.permute.xlu2 %4013  ;;  %v4006_v34 = vpop.permute.xlu0 %4005  ;;  %v4225_v43 = vld [vmem:[#allocation3 + $0x10] sm:$0xff]  ;;  %v4226_v18 = vld [vmem:[#allocation3 + $0x18] sm:$0xff]  ;;  %v1963_v35 = vmax.f32 %v1872_v0, 0.0  ;;  %v1964_v28 = vmax.f32 %v1875_v32, 0.0  ;;  %v4632_v52 = vmax.f32 %v12020_v23, %v4600_v7  ;;  %v1902_v7 = vadd.f32 %v10570_v21, %v10414_v12 }
 0x800   : > { %4090 = vst.msk [vmem:[#allocation3 + $0x47] sm:$0xff] %vm4081_vm5, %v4014_v63  ;;  %6028 = vmatmul.msk.f32.gmra.mxu2 %vm1993_vm3, %v4225_v43  ;;  %v1962_v9 = vmax.f32 %v1869_v37, 0.0  ;;  %v4791_v6 = vld [vmem:[#allocation4 + $0x18] sm:$0xff]  ;;  %v1966_v29 = vmax.f32 %v1881_v59, 0.0  ;;  %v1967_v2 = vmax.f32 %v1884_v51, 0.0  ;;  %v4728_v55 = vld [vmem:[#allocation4 + $0xa] sm:$0xff]  ;;  %v1890_v63 = vadd.f32 %v10570_v21, %v10361_v42 }
 0x801   : > { %4086 = vst.msk [vmem:[#allocation3 + $0x27] sm:$0xff] %vm4081_vm5, %v4006_v34  ;;  %v4696_v8 = vmax.f32 %v4632_v52, %v4664_v4  ;;  %v1893_v34 = vadd.f32 %v10570_v21, %v10373_v3  ;;  %v4855_v42 = vld [vmem:[#allocation4 + $0x1a] sm:$0xff]  ;;  %v1896_v51 = vadd.f32 %v10570_v21, %v10386_v49  ;;  %v4793_v52 = vld [vmem:[#allocation4 + $0x30] sm:$0xff] }
 0x802   : > { %4200 = vst.msk [vmem:[#allocation3 + $0x26] sm:$0xff] %vm4195_vm15, %v4120_v13  ;;  %v12021_v3 = vld [vmem:[#allocation10_spill] sm:$0xff]  ;;  %v4921_v12 = vld [vmem:[#allocation4 + $0x38] sm:$0xff] }
 0x803   : > { %v4665_v0 = vld [vmem:[#allocation4 + $0x19] sm:$0xff]  ;;  %v1970_v37 = vmax.f32 %v1893_v34, 0.0 }
 0x804   : > { %4157 = vrot.lane.b32.xlu1 %v7592_v27, %s6259_s16  ;;  %v1961_v27 = vmax.f32 %v1866_v33, 0.0  ;;  %v1887_v33 = vadd.f32 %v10570_v21, %v8995_v54  ;;  %v4792_v54 = vld [vmem:[#allocation4 + $0x20] sm:$0xff] }
 0x805   : > { %4159 = vrot.lane.b32.xlu2 %v7630_v47, %s6259_s16  ;;  %4155 = vrot.lane.b32.xlu0 %v7572_v30, %s6259_s16  ;;  %v10587_v47 = vpop.f32.mrf.mxu1  ;;  %v4599_v30 = vld [vmem:[#allocation4] sm:$0xff] }
 0x806   : > { %v3935_v24 = vpop.permute.xlu1 %3934 }
 0x807   : > { %3993 = vst.msk [vmem:[#allocation3 + $0xd0] sm:$0xff] %vm3966_vm11, %v3935_v24  ;;  %v4016_v53 = vpop.permute.xlu2 %4015  ;;  %v3933_v14 = vpop.permute.xlu0 %3932 }
 0x808   : > { %4091 = vst.msk [vmem:[#allocation3 + $0x4f] sm:$0xfe] %vm4079_vm13, %v4016_v53  ;;  %6029 = vmatmul.msk.f32.gmra.mxu2 %vm1993_vm3, %v4226_v18 }
 0x809   : > { %3992 = vst.msk [vmem:[#allocation3 + $0xc8] sm:$0xff] %vm3966_vm11, %v3933_v14  ;;  %v4227_v22 = vld [vmem:[#allocation3 + $0x20] sm:$0xff]  ;;  %v4228_v20 = vld [vmem:[#allocation3 + $0x28] sm:$0xff] }
 0x80c   : > { %4163 = vrot.lane.b32.xlu1 %v7712_v19, %s6259_s16 }
 0x80d   : > { %5425 = vrot.lane.b32.xlu2 %v1961_v27, %s6238_s24  ;;  %4161 = vrot.lane.b32.xlu0 %v11885_v5, %s6259_s16  ;;  %v12019_v5 = vld [vmem:[#allocation8_spill] sm:$0xff]  ;;  %v10614_v38 = vpop.f32.mrf.mxu1  ;;  %v4760_v27 = vmax.f32 %v4696_v8, %v4728_v55 }
 0x80e   : > { %v4122_v36 = vpop.permute.xlu1 %4121  ;;  %v4631_v40 = vmax.f32 %v12019_v5, %v4599_v30  ;;  %v4633_v30 = vmax.f32 %v12021_v3, %v4791_v6  ;;  %v1968_v5 = vmax.f32 %v1887_v33, 0.0  ;;  %v1908_v33 = vadd.f32 %v10570_v21, %v10439_v26 }
 0x80f   : > { %4201 = vst.msk [vmem:[#allocation3 + $0x2e] sm:$0xfc] %vm4193_vm4, %v4122_v36  ;;  %v10601_v46 = vpop.permute.xlu2 %4131  ;;  %v4010_v19 = vpop.permute.xlu0 %4009  ;;  %v1969_v36 = vmax.f32 %v1890_v63, 0.0 }
 0x810   : > { %4088 = vst.msk [vmem:[#allocation3 + $0x37] sm:$0xff] %vm4081_vm5, %v4010_v19  ;;  %6030 = vmatmul.msk.f32.gmra.mxu2 %vm1993_vm3, %v4227_v22  ;;  %v4695_v41 = vmax.f32 %v4631_v40, %v4663_v60  ;;  %v4920_v19 = vld [vmem:[#allocation4 + $0x30] sm:$0xff] }
 0x811   : > { %4202 = vst.msk [vmem:[#allocation3 + $0x36] sm:$0xff] %vm4195_vm15, %v4124_v15  ;;  %v1965_v15 = vmax.f32 %v1878_v16, 0.0  ;;  %v4984_v22 = vld [vmem:[#allocation4 + $0x31] sm:$0xff] }
 0x812   : > { %v4759_v56 = vmax.f32 %v4695_v41, %v4727_v44  ;;  %v10645_v60 = vld [vmem:[#allocation4 + $0x32] sm:$0xff]  ;;  %v4729_v41 = vld [vmem:[#allocation4 + $0x1a] sm:$0xff]  ;;  %v1899_v44 = vadd.f32 %v10570_v21, %v10397_v10 }
 0x814   : > { %5429 = vrot.lane.b32.xlu1 %v1963_v35, %s6238_s24  ;;  %v4823_v45 = vmax.f32 %v4759_v56, %v4791_v6  ;;  %v4824_v35 = vmax.f32 %v4760_v27, %v4792_v54  ;;  %v12022_v56 = vld [vmem:[#allocation11_spill] sm:$0xff]  ;;  %v1972_v4 = vmax.f32 %v1899_v44, 0.0  ;;  %v1917_v44 = vadd.f32 %v10570_v21, %v10500_v61 }
 0x815   : > { %5431 = vrot.lane.b32.xlu2 %v1964_v28, %s6238_s24  ;;  %5427 = vrot.lane.b32.xlu0 %v1962_v9, %s6238_s24  ;;  %v10637_v18 = vpop.f32.mrf.mxu1  ;;  %v4697_v28 = vmax.f32 %v4633_v30, %v4665_v0  ;;  %v4634_v23 = vmax.f32 %v12022_v56, %v4792_v54  ;;  %v4666_v6 = vld [vmem:[#allocation4 + $0x21] sm:$0xff]  ;;  %v12023_v30 = vld [vmem:[#allocation12_spill] sm:$0xff]  ;;  %v4794_v54 = vld [vmem:[#allocation4 + $0x38] sm:$0xff] }
 0x816   : > { %v4012_v57 = vpop.permute.xlu1 %4011  ;;  %v4887_v32 = vmax.f32 %v4823_v45, %v4855_v42  ;;  %v1971_v45 = vmax.f32 %v1896_v51, 0.0  ;;  %v4635_v0 = vmax.f32 %v12023_v30, %v4793_v52  ;;  %v1914_v51 = vadd.f32 %v10570_v21, %v10476_v39  ;;  %v12024_v56 = vld [vmem:[#allocation13_spill] sm:$0xff]  ;;  %v4669_v30 = vld [vmem:[#allocation4 + $0x49] sm:$0xff] }
 0x817   : > { %4089 = vst.msk [vmem:[#allocation3 + $0x3f] sm:$0xfe] %vm4079_vm13, %v4012_v57  ;;  %v4024_v58 = vpop.permute.xlu2 %4023  ;;  %v3937_v13 = vpop.permute.xlu0 %3936  ;;  %v4761_v10 = vmax.f32 %v4697_v28, %v4729_v41  ;;  %v4698_v63 = vmax.f32 %v4634_v23, %v4666_v6  ;;  %v5050_v28 = vld [vmem:[#allocation4 + $0x4a] sm:$0xff]  ;;  %v4731_v41 = vld [vmem:[#allocation4 + $0x32] sm:$0xff]  ;;  %v4636_v23 = vmax.f32 %v12024_v56, %v4794_v54 }
 0x818   : > { %4095 = vst.msk [vmem:[#allocation3 + $0x6f] sm:$0xfe] %vm4079_vm13, %v4024_v58  ;;  %6031 = vmatmul.msk.f32.gmra.mxu2 %vm1993_vm3, %v4228_v20  ;;  %v4229_v14 = vld [vmem:[#allocation3 + $0x30] sm:$0xff]  ;;  %v4952_v40 = vmax.f32 %v4887_v32, %v4920_v19  ;;  %v4230_v58 = vld [vmem:[#allocation3 + $0x38] sm:$0xff]  ;;  %v4856_v20 = vld [vmem:[#allocation4 + $0x22] sm:$0xff]  ;;  %v1977_v6 = vmax.f32 %v1914_v51, 0.0 }
 0x819   : > { %3994 = vst.msk [vmem:[#allocation3 + $0xd8] sm:$0xff] %vm3966_vm11, %v3937_v13  ;;  %v4888_v49 = vmax.f32 %v4824_v35, %v4856_v20  ;;  %v4825_v55 = vmax.f32 %v4761_v10, %v4793_v52  ;;  %v4667_v32 = vld [vmem:[#allocation4 + $0x31] sm:$0xff]  ;;  %v4986_v19 = vld [vmem:[#allocation4 + $0x49] sm:$0xff]  ;;  %v4668_v52 = vld [vmem:[#allocation4 + $0x39] sm:$0xff] }
 0x81a   : > { %v5016_v9 = vmax.f32 %v4952_v40, %v4984_v22  ;;  %v4699_v40 = vmax.f32 %v4635_v0, %v4667_v32  ;;  %v4795_v10 = vld [vmem:[#allocation4 + $0x48] sm:$0xff] }
 0x81b   : > { %v4953_v8 = vmax.f32 %v4888_v49, %v4921_v12  ;;  %v1978_v49 = vmax.f32 %v1917_v44, 0.0  ;;  %v4987_v12 = vld [vmem:[#allocation4 + $0x51] sm:$0xff]  ;;  %v12026_v51 = vld [vmem:[#allocation15_spill] sm:$0xff] }
 0x81c   : > { %5435 = vrot.lane.b32.xlu1 %v1966_v29, %s6238_s24  ;;  %v5080_v13 = vmax.f32 %v5016_v9, %v10645_v60  ;;  %v1973_v29 = vmax.f32 %v1902_v7, 0.0  ;;  %v1920_v7 = vadd.f32 %v10570_v21, %v10512_v62  ;;  %v4763_v20 = vmax.f32 %v4699_v40, %v4731_v41  ;;  %v4923_v62 = vld [vmem:[#allocation4 + $0x50] sm:$0xff] }
 0x81d   : > { %5437 = vrot.lane.b32.xlu2 %v1967_v2, %s6238_s24  ;;  %5433 = vrot.lane.b32.xlu0 %v1965_v15, %s6238_s24  ;;  %v10661_v2 = vpop.f32.mrf.mxu1  ;;  %v4985_v15 = vld [vmem:[#allocation4 + $0x39] sm:$0xff]  ;;  %v1938_v40 = vadd.f32 %v10570_v21, %v10614_v38  ;;  %v1932_v41 = vadd.f32 %v10570_v21, %v10572_v11 }
 0x81e   : > { %v4128_v43 = vpop.permute.xlu1 %4127  ;;  %6059 = vmatmul.msk.f32.vlgmr.msra.gmra.mxu3 %vm368_vm1, %v5080_v13  ;;  %v5017_v34 = vmax.f32 %v4953_v8, %v4985_v15  ;;  %v1979_v39 = vmax.f32 %v1920_v7, 0.0  ;;  %v10699_v15 = vld [vmem:[#allocation4 + $0x52] sm:$0xff]  ;;  %v4700_v8 = vmax.f32 %v4636_v23, %v4668_v52  ;;  %v4797_v38 = vld [vmem:[#allocation4 + $0x60] sm:$0xff] }
 0x81f   : > { %4204 = vst.msk [vmem:[#allocation3 + $0x46] sm:$0xff] %vm4195_vm15, %v4128_v43  ;;  %v4026_v24 = vpop.permute.xlu2 %4025  ;;  %v4126_v53 = vpop.permute.xlu0 %4125  ;;  %v4730_v43 = vld [vmem:[#allocation4 + $0x22] sm:$0xff] }
 0x820   : > { %4096 = vst.msk [vmem:[#allocation3 + $0x77] sm:$0xff] %vm4081_vm5, %v4026_v24  ;;  %6032 = vmatmul.msk.f32.gmra.mxu2 %vm1993_vm3, %v4229_v14  ;;  %v5081_v3 = vmax.f32 %v5017_v34, %v5049_v50  ;;  %v4762_v26 = vmax.f32 %v4698_v63, %v4730_v43  ;;  %v4732_v43 = vld [vmem:[#allocation4 + $0x3a] sm:$0xff] }
 0x821   : > { %4203 = vst.msk [vmem:[#allocation3 + $0x3e] sm:$0xfc] %vm4193_vm4, %v4126_v53  ;;  %v1905_v53 = vadd.f32 %v10570_v21, %v10426_v17  ;;  %v4889_v17 = vmax.f32 %v4825_v55, %v10645_v60  ;;  %v1929_v55 = vadd.f32 %v10570_v21, %v10553_v25  ;;  %v4924_v25 = vld [vmem:[#allocation4 + $0x60] sm:$0xff] }
 0x822   : > { %v4826_v9 = vmax.f32 %v4762_v26, %v4794_v54  ;;  %v10718_v54 = vld [vmem:[#allocation4 + $0x62] sm:$0xff] }
 0x823   : > { %v1974_v22 = vmax.f32 %v1905_v53, 0.0  ;;  %v1982_v26 = vmax.f32 %v1929_v55, 0.0 }
 0x824   : > { %5441 = vrot.lane.b32.xlu1 %v1969_v36, %s6238_s24  ;;  %v1975_v36 = vmax.f32 %v1908_v33, 0.0  ;;  %v4890_v61 = vmax.f32 %v4826_v9, %v5049_v50  ;;  %v1926_v50 = vadd.f32 %v10570_v21, %v10539_v31  ;;  %v1923_v33 = vadd.f32 %v10570_v21, %v10523_v1  ;;  %v4988_v1 = vld [vmem:[#allocation4 + $0x61] sm:$0xff] }
 0x825   : > { %5443 = vrot.lane.b32.xlu2 %v1970_v37, %s6238_s24  ;;  %5439 = vrot.lane.b32.xlu0 %v1968_v5, %s6238_s24  ;;  %v10681_v35 = vpop.f32.mrf.mxu1 }
 0x826   : > { %v4130_v59 = vpop.permute.xlu1 %4129  ;;  %6060 = vmatmul.msk.f32.gmra.mxu3 %vm368_vm1, %v5081_v3  ;;  %v4764_v3 = vmax.f32 %v4700_v8, %v4732_v43  ;;  %v1981_v0 = vmax.f32 %v1926_v50, 0.0  ;;  %v1947_v52 = vadd.f32 %v10570_v21, %v10681_v35  ;;  %v4926_v43 = vld [vmem:[#allocation4 + $0x78] sm:$0xff] }
 0x827   : > { %4205 = vst.msk [vmem:[#allocation3 + $0x4e] sm:$0xfc] %vm4193_vm4, %v4130_v59  ;;  %v4138_v57 = vpop.permute.xlu2 %4137  ;;  %v4018_v16 = vpop.permute.xlu0 %4017 }
 0x828   : > { %4209 = vst.msk [vmem:[#allocation3 + $0x6e] sm:$0xfc] %vm4193_vm4, %v4138_v57  ;;  %6033 = vmatmul.msk.f32.gmra.mxu2 %vm1993_vm3, %v4230_v58  ;;  %v4231_v27 = vld [vmem:[#allocation3 + $0x40] sm:$0xff]  ;;  %v4232_v58 = vld [vmem:[#allocation3 + $0x48] sm:$0xff] }
 0x829   : > { %4092 = vst.msk [vmem:[#allocation3 + $0x57] sm:$0xff] %vm4081_vm5, %v4018_v16 }
 0x82a   : > { %4206 = vst.msk [vmem:[#allocation3 + $0x56] sm:$0xff] %vm4195_vm15, %v10601_v46  ;;  %v1911_v46 = vadd.f32 %v10570_v21, %v10450_v48  ;;  %v4922_v48 = vld [vmem:[#allocation4 + $0x48] sm:$0xff] }
 0x82b   : > { %v4954_v5 = vmax.f32 %v4889_v17, %v4922_v48  ;;  %v4796_v17 = vld [vmem:[#allocation4 + $0x50] sm:$0xff]  ;;  %v1980_v48 = vmax.f32 %v1923_v33, 0.0  ;;  %v4798_v33 = vld [vmem:[#allocation4 + $0x68] sm:$0xff] }
 0x82c   : > { %5447 = vrot.lane.b32.xlu1 %v1972_v4, %s6238_s24  ;;  %v1976_v37 = vmax.f32 %v1911_v46, 0.0  ;;  %v4955_v4 = vmax.f32 %v4890_v61, %v4923_v62  ;;  %v4989_v61 = vld [vmem:[#allocation4 + $0x69] sm:$0xff] }
 0x82d   : > { %5449 = vrot.lane.b32.xlu2 %v1973_v29, %s6238_s24  ;;  %5445 = vrot.lane.b32.xlu0 %v1971_v45, %s6238_s24  ;;  %v5018_v60 = vmax.f32 %v4954_v5, %v4986_v19  ;;  %v4827_v29 = vmax.f32 %v4763_v20, %v4795_v10  ;;  %v10706_v63 = vpop.f32.mrf.mxu1  ;;  %v4828_v19 = vmax.f32 %v4764_v3, %v4796_v17  ;;  %v4925_v20 = vld [vmem:[#allocation4 + $0x68] sm:$0xff] }
 0x82e   : > { %v4022_v24 = vpop.permute.xlu1 %4021  ;;  %v5019_v45 = vmax.f32 %v4955_v4, %v4987_v12  ;;  %v1935_v5 = vadd.f32 %v10570_v21, %v10587_v47  ;;  %v1944_v12 = vadd.f32 %v10570_v21, %v10661_v2  ;;  %v12027_v2 = vld [vmem:[#allocation16_spill] sm:$0xff] }
 0x82f   : > { %4094 = vst.msk [vmem:[#allocation3 + $0x67] sm:$0xff] %vm4081_vm5, %v4022_v24  ;;  %v4034_v14 = vpop.permute.xlu2 %4033  ;;  %v4020_v42 = vpop.permute.xlu0 %4019  ;;  %v5082_v13 = vmax.f32 %v5018_v60, %v5050_v28  ;;  %v4891_v31 = vmax.f32 %v4827_v29, %v5050_v28  ;;  %v1941_v29 = vadd.f32 %v10570_v21, %v10637_v18  ;;  %v4671_v18 = vld [vmem:[#allocation4 + $0x61] sm:$0xff] }
 0x830   : > { %4100 = vst.msk [vmem:[#allocation3 + $0x97] sm:$0xff] %vm4081_vm5, %v4034_v14  ;;  %6034 = vmatmul.msk.f32.gmra.mxu2 %vm1993_vm3, %v4231_v27  ;;  %v5083_v14 = vmax.f32 %v5019_v45, %v10699_v15  ;;  %v1984_v11 = vmax.f32 %v1935_v5, 0.0 }
 0x831   : > { %4093 = vst.msk [vmem:[#allocation3 + $0x5f] sm:$0xfe] %vm4079_vm13, %v4020_v42  ;;  %6061 = vmatmul.msk.f32.gmra.mxu3 %vm368_vm1, %v5082_v13  ;;  %v4233_v53 = vld [vmem:[#allocation3 + $0x50] sm:$0xff]  ;;  %v12025_v42 = vld [vmem:[#allocation14_spill] sm:$0xff]  ;;  %v4956_v32 = vmax.f32 %v4891_v31, %v4924_v25  ;;  %v4234_v7 = vld [vmem:[#allocation3 + $0x58] sm:$0xff]  ;;  %v4892_v13 = vmax.f32 %v4828_v19, %v10699_v15  ;;  %v1986_v31 = vmax.f32 %v1941_v29, 0.0 }
 0x832   : > { %v4637_v27 = vmax.f32 %v12025_v42, %v4795_v10  ;;  %v1983_v10 = vmax.f32 %v1932_v41, 0.0  ;;  %v5054_v42 = vld [vmem:[#allocation4 + $0x7a] sm:$0xff]  ;;  %v4672_v41 = vld [vmem:[#allocation4 + $0x69] sm:$0xff] }
 0x833   : > { %v4957_v62 = vmax.f32 %v4892_v13, %v4925_v20 }
 0x834   : > { %5453 = vrot.lane.b32.xlu1 %v1975_v36, %s6238_s24  ;;  %v5020_v36 = vmax.f32 %v4956_v32, %v4988_v1 }
 0x835   : > { %5455 = vrot.lane.b32.xlu2 %v1976_v37, %s6238_s24  ;;  %5451 = vrot.lane.b32.xlu0 %v1974_v22, %s6238_s24  ;;  %v4701_v37 = vmax.f32 %v4637_v27, %v4669_v30  ;;  %v4733_v22 = vld [vmem:[#allocation4 + $0x4a] sm:$0xff]  ;;  %v5021_v4 = vmax.f32 %v4957_v62, %v4989_v61  ;;  %v4735_v30 = vld [vmem:[#allocation4 + $0x62] sm:$0xff] }
 0x836   : > { %v4136_v59 = vpop.permute.xlu1 %4135  ;;  %v5084_v9 = vmax.f32 %v5020_v36, %v10718_v54 }
 0x837   : > { %4208 = vst.msk [vmem:[#allocation3 + $0x66] sm:$0xff] %vm4195_vm15, %v4136_v59  ;;  %v4142_v57 = vpop.permute.xlu2 %4141  ;;  %v4134_v16 = vpop.permute.xlu0 %4133  ;;  %v4765_v47 = vmax.f32 %v4701_v37, %v4733_v22  ;;  %v12028_v22 = vld [vmem:[#allocation17_spill] sm:$0xff] }
 0x838   : > { %4207 = vst.msk [vmem:[#allocation3 + $0x5e] sm:$0xfc] %vm4193_vm4, %v4134_v16  ;;  %6035 = vmatmul.msk.f32.gmra.mxu2 %vm1993_vm3, %v4232_v58  ;;  %v1952_v59 = vpop.f32.mrf.mxu1  ;;  %v4670_v16 = vld [vmem:[#allocation4 + $0x51] sm:$0xff]  ;;  %v1985_v58 = vmax.f32 %v1938_v40, 0.0  ;;  %v4640_v5 = vmax.f32 %v12028_v22, %v4798_v33 }
 0x839   : > { %6062 = vmatmul.msk.f32.gmra.mxu3 %vm368_vm1, %v5083_v14  ;;  %v4829_v56 = vmax.f32 %v4765_v47, %v4797_v38  ;;  %v4990_v14 = vld [vmem:[#allocation4 + $0x79] sm:$0xff]  ;;  %v12031_v22 = vld [vmem:[#allocation20_spill] sm:$0xff] }
 0x83b   : > { %v4893_v35 = vmax.f32 %v4829_v56, %v10718_v54 }
 0x83c   : > { %5459 = vrot.lane.b32.xlu1 %v1978_v49, %s6238_s24  ;;  %v5053_v49 = vld [vmem:[#allocation4 + $0x6a] sm:$0xff] }
 0x83d   : > { %5461 = vrot.lane.b32.xlu2 %v1979_v39, %s6238_s24  ;;  %5457 = vrot.lane.b32.xlu0 %v1977_v6, %s6238_s24  ;;  %v4734_v39 = vld [vmem:[#allocation4 + $0x52] sm:$0xff]  ;;  %v5085_v50 = vmax.f32 %v5021_v4, %v5053_v49  ;;  %v4958_v25 = vmax.f32 %v4893_v35, %v4926_v43 }
 0x83e   : > { %v4030_v34 = vpop.permute.xlu1 %4029  ;;  %v4236_v36 = vld [vmem:[#allocation3 + $0x68] sm:$0xff] }
 0x83f   : > { %4098 = vst.msk [vmem:[#allocation3 + $0x87] sm:$0xff] %vm4081_vm5, %v4030_v34  ;;  %v4042_v46 = vpop.permute.xlu2 %4041  ;;  %v4028_v24 = vpop.permute.xlu0 %4027  ;;  %v4235_v8 = vld [vmem:[#allocation3 + $0x60] sm:$0xff]  ;;  %v4639_v34 = vmax.f32 %v12027_v2, %v4797_v38  ;;  %v5022_v3 = vmax.f32 %v4958_v25, %v4990_v14  ;;  %v4704_v38 = vmax.f32 %v4640_v5, %v4672_v41  ;;  %v4929_v14 = vld [vmem:[#allocation4 + $0x98] sm:$0xff] }
 0x840   : > { %4104 = vst.msk [vmem:[#allocation3 + $0xb7] sm:$0xff] %vm4081_vm5, %v4042_v46  ;;  %6036 = vmatmul.msk.f32.gmra.mxu2 %vm1993_vm3, %v4233_v53  ;;  %v1987_v46 = vmax.f32 %v1944_v12, 0.0  ;;  %v1955_v53 = vpop.f32.mrf.mxu1  ;;  %v4928_v12 = vld [vmem:[#allocation4 + $0x90] sm:$0xff]  ;;  %v4674_v25 = vld [vmem:[#allocation4 + $0x81] sm:$0xff] }
 0x841   : > { %4097 = vst.msk [vmem:[#allocation3 + $0x7f] sm:$0xfe] %vm4079_vm13, %v4028_v24  ;;  %6063 = vmatmul.msk.f32.gmra.mxu3 %vm368_vm1, %v5084_v9  ;;  %v1988_v24 = vmax.f32 %v1947_v52, 0.0  ;;  %v4703_v1 = vmax.f32 %v4639_v34, %v4671_v18  ;;  %v5086_v37 = vmax.f32 %v5022_v3, %v5054_v42  ;;  %v4799_v9 = vld [vmem:[#allocation4 + $0x78] sm:$0xff]  ;;  %v4800_v52 = vld [vmem:[#allocation4 + $0x80] sm:$0xff] }
 0x842   : > { %4211 = vst.msk [vmem:[#allocation3 + $0x7e] sm:$0xfc] %vm4193_vm4, %v4142_v57  ;;  %v4638_v57 = vmax.f32 %v12026_v51, %v4796_v17  ;;  %v1950_v17 = vadd.f32 %v10570_v21, %v10706_v63  ;;  %v5055_v51 = vld [vmem:[#allocation4 + $0x82] sm:$0xff]  ;;  %v4675_v41 = vld [vmem:[#allocation4 + $0x91] sm:$0xff] }
 0x843   : > { %v4767_v19 = vmax.f32 %v4703_v1, %v4735_v30  ;;  %v5057_v1 = vld [vmem:[#allocation4 + $0x9a] sm:$0xff] }
 0x844   : > { %5465 = vrot.lane.b32.xlu1 %v1981_v0, %s6238_s24  ;;  %v4702_v23 = vmax.f32 %v4638_v57, %v4670_v16  ;;  %v1953_v0 = vadd.f32 %v10570_v21, %v1952_v59 }
 0x845   : > { %5467 = vrot.lane.b32.xlu2 %v1982_v26, %s6238_s24  ;;  %5463 = vrot.lane.b32.xlu0 %v1980_v48, %s6238_s24  ;;  %v1956_v26 = vadd.f32 %v10570_v21, %v1955_v53  ;;  %v4831_v57 = vmax.f32 %v4767_v19, %v4799_v9 }
 0x846   : > { %v4032_v28 = vpop.permute.xlu1 %4031  ;;  %v4766_v55 = vmax.f32 %v4702_v23, %v4734_v39  ;;  %v1990_v63 = vmax.f32 %v1953_v0, 0.0  ;;  %v12029_v23 = vld [vmem:[#allocation18_spill] sm:$0xff] }
 0x847   : > { %4099 = vst.msk [vmem:[#allocation3 + $0x8f] sm:$0xfe] %vm4079_vm13, %v4032_v28  ;;  %v4148_v60 = vpop.permute.xlu2 %4147  ;;  %v4140_v44 = vpop.permute.xlu0 %4139  ;;  %v4927_v28 = vld [vmem:[#allocation4 + $0x80] sm:$0xff]  ;;  %v4895_v39 = vmax.f32 %v4831_v57, %v5054_v42 }
 0x848   : > { %4214 = vst.msk [vmem:[#allocation3 + $0x96] sm:$0xff] %vm4195_vm15, %v4148_v60  ;;  %6037 = vmatmul.msk.f32.gmra.mxu2 %vm1993_vm3, %v4234_v7  ;;  %v4830_v27 = vmax.f32 %v4766_v55, %v4798_v33  ;;  %v1991_v60 = vmax.f32 %v1956_v26, 0.0  ;;  %v1989_v7 = vmax.f32 %v1950_v17, 0.0  ;;  %v1958_v47 = vpop.f32.mrf.mxu1  ;;  %v4737_v55 = vld [vmem:[#allocation4 + $0x7a] sm:$0xff]  ;;  %v4738_v26 = vld [vmem:[#allocation4 + $0x82] sm:$0xff] }
 0x849   : > { %4210 = vst.msk [vmem:[#allocation3 + $0x76] sm:$0xff] %vm4195_vm15, %v4140_v44  ;;  %6064 = vmatmul.msk.f32.gmra.mxu3 %vm368_vm1, %v5085_v50  ;;  %v4991_v44 = vld [vmem:[#allocation4 + $0x81] sm:$0xff]  ;;  %v1959_v13 = vadd.f32 %v10570_v21, %v1958_v47  ;;  %v4992_v21 = vld [vmem:[#allocation4 + $0x91] sm:$0xff]  ;;  %v4960_v29 = vmax.f32 %v4895_v39, %v4928_v12  ;;  %v4993_v42 = vld [vmem:[#allocation4 + $0x99] sm:$0xff] }
 0x84a   : > { %v4894_v40 = vmax.f32 %v4830_v27, %v5053_v49  ;;  %v4641_v49 = vmax.f32 %v12029_v23, %v4799_v9  ;;  %v4802_v9 = vld [vmem:[#allocation4 + $0x98] sm:$0xff]  ;;  %v4803_v39 = vld [vmem:[#allocation4 + $0xa8] sm:$0xff] }
 0x84b   : > { %v1992_v4 = vmax.f32 %v1959_v13, 0.0  ;;  %v5024_v50 = vmax.f32 %v4960_v29, %v4992_v21  ;;  %v4676_v12 = vld [vmem:[#allocation4 + $0x99] sm:$0xff] }
 0x84c   : > { %5471 = vrot.lane.b32.xlu1 %v1984_v11, %s6238_s24  ;;  %v4959_v59 = vmax.f32 %v4894_v40, %v4927_v28  ;;  %v4736_v11 = vld [vmem:[#allocation4 + $0x6a] sm:$0xff]  ;;  %v5059_v29 = vld [vmem:[#allocation4 + $0xb2] sm:$0xff] }
 0x84d   : > { %5473 = vrot.lane.b32.xlu2 %v1985_v58, %s6238_s24  ;;  %5469 = vrot.lane.b32.xlu0 %v1983_v10, %s6238_s24  ;;  %v4768_v56 = vmax.f32 %v4704_v38, %v4736_v11  ;;  %v4930_v28 = vld [vmem:[#allocation4 + $0xa8] sm:$0xff]  ;;  %v4739_v38 = vld [vmem:[#allocation4 + $0x92] sm:$0xff] }
 0x84e   : > { %v4038_v6 = vpop.permute.xlu1 %4037  ;;  %v5023_v16 = vmax.f32 %v4959_v59, %v4991_v44  ;;  %v5058_v59 = vld [vmem:[#allocation4 + $0xaa] sm:$0xff] }
 0x84f   : > { %4102 = vst.msk [vmem:[#allocation3 + $0xa7] sm:$0xff] %vm4081_vm5, %v4038_v6  ;;  %v4050_v15 = vpop.permute.xlu2 %4049  ;;  %v4036_v45 = vpop.permute.xlu0 %4035  ;;  %v4673_v6 = vld [vmem:[#allocation4 + $0x79] sm:$0xff] }
 0x850   : > { %4108 = vst.msk [vmem:[#allocation3 + $0xd7] sm:$0xff] %vm4081_vm5, %v4050_v15  ;;  %6038 = vmatmul.msk.f32.gmra.mxu2 %vm1993_vm3, %v4235_v8  ;;  %v4237_v61 = vld [vmem:[#allocation3 + $0x70] sm:$0xff]  ;;  %v5087_v62 = vmax.f32 %v5023_v16, %v5055_v51  ;;  %v4705_v8 = vmax.f32 %v4641_v49, %v4673_v6  ;;  %v4238_v43 = vld [vmem:[#allocation3 + $0x78] sm:$0xff] }
 0x851   : > { %4101 = vst.msk [vmem:[#allocation3 + $0x9f] sm:$0xfe] %vm4079_vm13, %v4036_v45  ;;  %6065 = vmatmul.msk.f32.gmra.mxu3 %vm368_vm1, %v5086_v37  ;;  %v5056_v15 = vld [vmem:[#allocation4 + $0x92] sm:$0xff]  ;;  %v4832_v45 = vmax.f32 %v4768_v56, %v4800_v52  ;;  %v10791_v37 = vld [vmem:[%s11304_s6] ss:$0 sm:$0xff] }
 0x852   : > { %v5088_v33 = vmax.f32 %v5024_v50, %v5056_v15  ;;  %v4769_v18 = vmax.f32 %v4705_v8, %v4737_v55  ;;  %v4931_v49 = vld [vmem:[#allocation4 + $0xb0] sm:$0xff]  ;;  %v4740_v50 = vld [vmem:[#allocation4 + $0x9a] sm:$0xff] }
 0x853   : > { %v4896_v53 = vmax.f32 %v4832_v45, %v5055_v51 }
 0x854   : > { %5477 = vrot.lane.b32.xlu1 %v1987_v46, %s6238_s24  ;;  %v12030_v46 = vld [vmem:[#allocation19_spill] sm:$0xff] }
 0x855   : > { %5479 = vrot.lane.b32.xlu2 %v1988_v24, %s6238_s24  ;;  %5475 = vrot.lane.b32.xlu0 %v1986_v31, %s6238_s24  ;;  %v4642_v24 = vmax.f32 %v12030_v46, %v4800_v52  ;;  %v4801_v31 = vld [vmem:[#allocation4 + $0x90] sm:$0xff]  ;;  %v4961_v27 = vmax.f32 %v4896_v53, %v4929_v14  ;;  %v12033_v46 = vld [vmem:[#allocation22_spill] sm:$0xff] }
 0x856   : > { %v4040_v32 = vpop.permute.xlu1 %4039  ;;  %v4833_v3 = vmax.f32 %v4769_v18, %v4801_v31  ;;  %v4643_v5 = vmax.f32 %v12031_v22, %v4801_v31  ;;  %v4995_v52 = vld [vmem:[#allocation4 + $0xb1] sm:$0xff]  ;;  %v4932_v14 = vld [vmem:[#allocation4 + $0xc0] sm:$0xff] }
 0x857   : > { %4103 = vst.msk [vmem:[#allocation3 + $0xaf] sm:$0xfe] %vm4079_vm13, %v4040_v32  ;;  %v4154_v48 = vpop.permute.xlu2 %4153  ;;  %v4144_v54 = vpop.permute.xlu0 %4143  ;;  %v4706_v30 = vmax.f32 %v4642_v24, %v4674_v25  ;;  %v5025_v0 = vmax.f32 %v4961_v27, %v4993_v42  ;;  %v4645_v24 = vmax.f32 %v12033_v46, %v4803_v39  ;;  %v4804_v31 = vld [vmem:[#allocation4 + $0xb0] sm:$0xff]  ;;  %v4996_v42 = vld [vmem:[#allocation4 + $0xc1] sm:$0xff]  ;;  %v4242_v22 = vld [vmem:[#allocation3 + $0x98] sm:$0xff] }
 0x858   : > { %4217 = vst.msk [vmem:[#allocation3 + $0xae] sm:$0xfc] %vm4193_vm4, %v4154_v48  ;;  %6039 = vmatmul.msk.f32.gmra.mxu2 %vm1993_vm3, %v4236_v36  ;;  %v4897_v40 = vmax.f32 %v4833_v3, %v5056_v15  ;;  %v4707_v51 = vmax.f32 %v4643_v5, %v4675_v41  ;;  %v4677_v25 = vld [vmem:[#allocation4 + $0xa9] sm:$0xff] }
 0x859   : > { %4212 = vst.msk [vmem:[#allocation3 + $0x86] sm:$0xff] %vm4195_vm15, %v4144_v54  ;;  %6066 = vmatmul.msk.f32.gmra.mxu3 %vm368_vm1, %v5087_v62  ;;  %v5089_v36 = vmax.f32 %v5025_v0, %v5057_v1  ;;  %v4770_v19 = vmax.f32 %v4706_v30, %v4738_v26  ;;  %v12032_v62 = vld [vmem:[#allocation21_spill] sm:$0xff]  ;;  %v5060_v30 = vld [vmem:[#allocation4 + $0xc2] sm:$0xff]  ;;  %v4709_v26 = vmax.f32 %v4645_v24, %v4677_v25 }
 0x85a   : > { %v4962_v44 = vmax.f32 %v4897_v40, %v4930_v28  ;;  %v4644_v56 = vmax.f32 %v12032_v62, %v4802_v9  ;;  %v12034_v28 = vld [vmem:[#allocation23_spill] sm:$0xff]  ;;  %v4807_v25 = vld [vmem:[#allocation4 + $0xd8] sm:$0xff] }
 0x85b   : > { %v4834_v47 = vmax.f32 %v4770_v19, %v4802_v9  ;;  %v4646_v9 = vmax.f32 %v12034_v28, %v4804_v31 }
 0x85c   : > { %5483 = vrot.lane.b32.xlu1 %v1990_v63, %s6238_s24  ;;  %v4994_v63 = vld [vmem:[#allocation4 + $0xa9] sm:$0xff]  ;;  %v4708_v45 = vmax.f32 %v4644_v56, %v4676_v12  ;;  %v4679_v12 = vld [vmem:[#allocation4 + $0xc1] sm:$0xff] }
 0x85d   : > { %5485 = vrot.lane.b32.xlu2 %v1991_v60, %s6238_s24  ;;  %5481 = vrot.lane.b32.xlu0 %v1989_v7, %s6238_s24  ;;  %v5026_v57 = vmax.f32 %v4962_v44, %v4994_v63  ;;  %v4898_v23 = vmax.f32 %v4834_v47, %v5057_v1  ;;  %v4933_v63 = vld [vmem:[#allocation4 + $0xc8] sm:$0xff]  ;;  %v4678_v44 = vld [vmem:[#allocation4 + $0xb1] sm:$0xff] }
 0x85e   : > { %v4146_v58 = vpop.permute.xlu1 %4145  ;;  %v4772_v18 = vmax.f32 %v4708_v45, %v4740_v50  ;;  %v5062_v50 = vld [vmem:[#allocation4 + $0xda] sm:$0xff] }
 0x85f   : > { %4213 = vst.msk [vmem:[#allocation3 + $0x8e] sm:$0xfc] %vm4193_vm4, %v4146_v58  ;;  %v4160_v20 = vpop.permute.xlu2 %4159  ;;  %v4044_v10 = vpop.permute.xlu0 %4043  ;;  %v4963_v21 = vmax.f32 %v4898_v23, %v4931_v49  ;;  %v12035_v23 = vld [vmem:[#allocation24_spill] sm:$0xff] }
 0x860   : > { %4105 = vst.msk [vmem:[#allocation3 + $0xbf] sm:$0xfe] %vm4079_vm13, %v4044_v10  ;;  %6040 = vmatmul.msk.f32.gmra.mxu2 %vm1993_vm3, %v4237_v61  ;;  %v4239_v54 = vld [vmem:[#allocation3 + $0x80] sm:$0xff]  ;;  %v5090_v10 = vmax.f32 %v5026_v57, %v5058_v59  ;;  %v4771_v61 = vmax.f32 %v4707_v51, %v4739_v38  ;;  %v4836_v0 = vmax.f32 %v4772_v18, %v4804_v31  ;;  %v5061_v57 = vld [vmem:[#allocation4 + $0xca] sm:$0xff] }
 0x861   : > { %6067 = vmatmul.msk.f32.gmra.mxu3 %vm368_vm1, %v5088_v33  ;;  %v5027_v8 = vmax.f32 %v4963_v21, %v4995_v52  ;;  %v4806_v21 = vld [vmem:[#allocation4 + $0xc8] sm:$0xff] }
 0x862   : > { %v4835_v15 = vmax.f32 %v4771_v61, %v4803_v39  ;;  %v4900_v41 = vmax.f32 %v4836_v0, %v5059_v29 }
 0x863   : > { %v5091_v33 = vmax.f32 %v5027_v8, %v5059_v29 }
 0x864   : > { %v4899_v53 = vmax.f32 %v4835_v15, %v5058_v59  ;;  %v4965_v47 = vmax.f32 %v4900_v41, %v4933_v63  ;;  %v12037_v63 = vld [vmem:[#allocation26_spill] sm:$0xff] }
 0x865   : > { %5487 = vrot.lane.b32.xlu0 %v1992_v4, %s6238_s24 }
 0x866   : > { %v4048_v2 = vpop.permute.xlu1 %4047  ;;  %v4964_v1 = vmax.f32 %v4899_v53, %v4932_v14  ;;  %v12036_v14 = vld [vmem:[#allocation25_spill] sm:$0xff] }
 0x867   : > { %4107 = vst.msk [vmem:[#allocation3 + $0xcf] sm:$0xfe] %vm4079_vm13, %v4048_v2  ;;  %v5426_v34 = vpop.permute.xlu2 %5425  ;;  %v4046_v35 = vpop.permute.xlu0 %4045  ;;  %v4648_v31 = vmax.f32 %v12036_v14, %v4806_v21 }
 0x868   : > { %5522 = vst.msk [vmem:[%s6584_s22] sm:$0xff] %vm5521_vm0, %v5426_v34  ;;  %6041 = vmatmul.msk.f32.gmra.mxu2 %vm1993_vm3, %v4238_v43  ;;  %v4241_v43 = vld [vmem:[#allocation3 + $0x90] sm:$0xff] }
 0x869   : > { %4106 = vst.msk [vmem:[#allocation3 + $0xc7] sm:$0xff] %vm4081_vm5, %v4046_v35  ;;  %6068 = vmatmul.msk.f32.gmra.mxu3 %vm368_vm1, %v5089_v36 }
 0x86a   : > { %4220 = vst.msk [vmem:[#allocation3 + $0xc6] sm:$0xff] %vm4195_vm15, %v4160_v20  ;;  %v4240_v20 = vld [vmem:[#allocation3 + $0x88] sm:$0xff] }
 0x86e   : > { %v4152_v32 = vpop.permute.xlu1 %4151 }
 0x86f   : > { %4216 = vst.msk [vmem:[#allocation3 + $0xa6] sm:$0xff] %vm4195_vm15, %v4152_v32  ;;  %v5432_v17 = vpop.permute.xlu2 %5431  ;;  %v4150_v48 = vpop.permute.xlu0 %4149  ;;  %v5028_v32 = vmax.f32 %v4964_v1, %v4996_v42  ;;  %v4680_v42 = vld [vmem:[#allocation4 + $0xc9] sm:$0xff]  ;;  %v4935_v1 = vld [vmem:[#allocation4 + $0xe0] sm:$0xff] }
 0x870   : > { %5525 = vst.msk [vmem:[%s6584_s22 + $0x18] sm:$0xff] %vm5521_vm0, %v5432_v17  ;;  %6042 = vmatmul.msk.f32.gmra.mxu2 %vm1993_vm3, %v4239_v54  ;;  %v4741_v17 = vld [vmem:[#allocation4 + $0xaa] sm:$0xff] }
 0x871   : > { %4215 = vst.msk [vmem:[#allocation3 + $0x9e] sm:$0xfc] %vm4193_vm4, %v4150_v48  ;;  %6069 = vmatmul.msk.f32.gmra.mxu3 %vm368_vm1, %v5090_v10  ;;  %v5092_v5 = vmax.f32 %v5028_v32, %v5060_v30  ;;  %v4773_v40 = vmax.f32 %v4709_v26, %v4741_v17  ;;  %v4712_v32 = vmax.f32 %v4648_v31, %v4680_v42 }
 0x873   : > { %v4383_v60 = vpop.f32.mrf.mxu2 }
 0x874   : > { %v4384_v7 = vadd.f32 %v10791_v37, %v4383_v60  ;;  %v4805_v60 = vld [vmem:[#allocation4 + $0xc0] sm:$0xff] }
 0x875   : > { %v4837_v38 = vmax.f32 %v4773_v40, %v4805_v60  ;;  %v4647_v49 = vmax.f32 %v12035_v23, %v4805_v60  ;;  %v4649_v60 = vmax.f32 %v12037_v63, %v4807_v25 }
 0x876   : > { %v4479_v16 = vmax.f32 %v4384_v7, 0.0  ;;  %v4158_v11 = vpop.permute.xlu1 %4157  ;;  %v4997_v7 = vld [vmem:[#allocation4 + $0xc9] sm:$0xff] }
 0x877   : > { %4219 = vst.msk [vmem:[#allocation3 + $0xbe] sm:$0xfc] %vm4193_vm4, %v4158_v11  ;;  %v5438_v58 = vpop.permute.xlu2 %5437  ;;  %v4156_v13 = vpop.permute.xlu0 %4155  ;;  %v5029_v11 = vmax.f32 %v4965_v47, %v4997_v7  ;;  %v4901_v52 = vmax.f32 %v4837_v38, %v5060_v30  ;;  %v4711_v45 = vmax.f32 %v4647_v49, %v4679_v12  ;;  %v4244_v46 = vld [vmem:[#allocation3 + $0xa8] sm:$0xff]  ;;  %v4936_v7 = vld [vmem:[#allocation4 + $0xf0] sm:$0xff]  ;;  %v4681_v47 = vld [vmem:[#allocation4 + $0xd9] sm:$0xff] }
 0x878   : > { %5528 = vst.msk [vmem:[%s6584_s22 + $0x30] sm:$0xff] %vm5521_vm0, %v5438_v58  ;;  %5586 = vrot.lane.b32.xlu1 %v4479_v16, %s6236_s21  ;;  %6043 = vmatmul.msk.f32.gmra.mxu2 %vm1993_vm3, %v4240_v20  ;;  %v4710_v16 = vmax.f32 %v4646_v9, %v4678_v44  ;;  %v4742_v58 = vld [vmem:[#allocation4 + $0xb2] sm:$0xff]  ;;  %v4243_v62 = vld [vmem:[#allocation3 + $0xa0] sm:$0xff] }
 0x879   : > { %4218 = vst.msk [vmem:[#allocation3 + $0xb6] sm:$0xff] %vm4195_vm15, %v4156_v13  ;;  %6070 = vmatmul.msk.f32.gmra.mxu3 %vm368_vm1, %v5091_v33  ;;  %v5093_v56 = vmax.f32 %v5029_v11, %v5061_v57 }
 0x87a   : > { %v4774_v39 = vmax.f32 %v4710_v16, %v4742_v58  ;;  %v5064_v16 = vld [vmem:[#allocation4 + $0xf2] sm:$0xff]  ;;  %v4713_v58 = vmax.f32 %v4649_v60, %v4681_v47 }
 0x87b   : > { %v4386_v6 = vpop.f32.mrf.mxu2  ;;  %v4684_v47 = vld [vmem:[#allocation4 + $0xf9] sm:$0xff] }
 0x87c   : > { %v4387_v4 = vadd.f32 %v10791_v37, %v4386_v6  ;;  %v4934_v6 = vld [vmem:[#allocation4 + $0xd8] sm:$0xff] }
 0x87d   : > { %v4966_v15 = vmax.f32 %v4901_v52, %v4934_v6  ;;  %v12038_v52 = vld [vmem:[#allocation27_spill] sm:$0xff] }
 0x87e   : > { %v4480_v55 = vmax.f32 %v4387_v4, 0.0  ;;  %v4164_v2 = vpop.permute.xlu1 %4163  ;;  %v4998_v4 = vld [vmem:[#allocation4 + $0xd9] sm:$0xff] }
 0x87f   : > { %4222 = vst.msk [vmem:[#allocation3 + $0xd6] sm:$0xff] %vm4195_vm15, %v4164_v2  ;;  %v5444_v34 = vpop.permute.xlu2 %5443  ;;  %v4162_v35 = vpop.permute.xlu0 %4161  ;;  %v4743_v2 = vld [vmem:[#allocation4 + $0xc2] sm:$0xff] }
 0x880   : > { %5531 = vst.msk [vmem:[%s6584_s22 + $0x48] sm:$0xff] %vm5521_vm0, %v5444_v34  ;;  %5588 = vrot.lane.b32.xlu2 %v4480_v55, %s6236_s21  ;;  %6044 = vmatmul.msk.f32.gmra.mxu2 %vm1993_vm3, %v4241_v43  ;;  %v4838_v55 = vmax.f32 %v4774_v39, %v4806_v21  ;;  %v5030_v34 = vmax.f32 %v4966_v15, %v4998_v4  ;;  %v4245_v28 = vld [vmem:[#allocation3 + $0xb0] sm:$0xff]  ;;  %v4246_v39 = vld [vmem:[#allocation3 + $0xb8] sm:$0xff]  ;;  %v4682_v15 = vld [vmem:[#allocation4 + $0xe1] sm:$0xff] }
 0x881   : > { %4221 = vst.msk [vmem:[#allocation3 + $0xce] sm:$0xfc] %vm4193_vm4, %v4162_v35  ;;  %6071 = vmatmul.msk.f32.gmra.mxu3 %vm368_vm1, %v5092_v5  ;;  %v4775_v53 = vmax.f32 %v4711_v45, %v4743_v2  ;;  %v4937_v4 = vld [vmem:[#allocation4 + $0xf8] sm:$0xff] }
 0x882   : > { %v5094_v24 = vmax.f32 %v5030_v34, %v5062_v50  ;;  %v5001_v45 = vld [vmem:[#allocation4 + $0xf9] sm:$0xff] }
 0x883   : > { %v4389_v27 = vpop.f32.mrf.mxu2  ;;  %v4839_v26 = vmax.f32 %v4775_v53, %v4807_v25  ;;  %v4683_v25 = vld [vmem:[#allocation4 + $0xf1] sm:$0xff] }
 0x884   : > { %v4390_v3 = vadd.f32 %v10791_v37, %v4389_v27  ;;  %v4902_v27 = vmax.f32 %v4838_v55, %v5061_v57  ;;  %v5065_v55 = vld [vmem:[#allocation4 + $0xfa] sm:$0xff] }
 0x885   : > { %v4903_v44 = vmax.f32 %v4839_v26, %v5062_v50  ;;  %v4810_v26 = vld [vmem:[#allocation4 + $0xf8] sm:$0xff] }
 0x886   : > { %v4481_v48 = vmax.f32 %v4390_v3, 0.0  ;;  %v5430_v54 = vpop.permute.xlu1 %5429  ;;  %v4999_v3 = vld [vmem:[#allocation4 + $0xe1] sm:$0xff]  ;;  %v4967_v0 = vmax.f32 %v4902_v27, %v4935_v1 }
 0x887   : > { %5524 = vst.msk [vmem:[%s6584_s22 + $0x10] sm:$0xff] %vm5521_vm0, %v5430_v54  ;;  %v5450_v36 = vpop.permute.xlu2 %5449  ;;  %v5428_v19 = vpop.permute.xlu0 %5427  ;;  %v4744_v54 = vld [vmem:[#allocation4 + $0xca] sm:$0xff]  ;;  %v4968_v57 = vmax.f32 %v4903_v44, %v4936_v7  ;;  %v4247_v1 = vld [vmem:[#allocation3 + $0xc0] sm:$0xff] }
 0x888   : > { %5534 = vst.msk [vmem:[%s6584_s22 + $0x60] sm:$0xff] %vm5521_vm0, %v5450_v36  ;;  %5590 = vrot.lane.b32.xlu0 %v4481_v48, %s6236_s21  ;;  %6045 = vmatmul.msk.f32.gmra.mxu2 %vm1993_vm3, %v4242_v22  ;;  %v5063_v48 = vld [vmem:[#allocation4 + $0xe2] sm:$0xff]  ;;  %v5031_v36 = vmax.f32 %v4967_v0, %v4999_v3  ;;  %v4776_v41 = vmax.f32 %v4712_v32, %v4744_v54  ;;  %v4747_v54 = vld [vmem:[#allocation4 + $0xf2] sm:$0xff] }
 0x889   : > { %5523 = vst.msk [vmem:[%s6584_s22 + $0x8] sm:$0xff] %vm5521_vm0, %v5428_v19  ;;  %6072 = vmatmul.msk.f32.gmra.mxu3 %vm368_vm1, %v5093_v56  ;;  %v4938_v0 = vld [vmem:[#allocation4 + $0x108] sm:$0xff] }
 0x88a   : > { %v5095_v9 = vmax.f32 %v5031_v36, %v5063_v48  ;;  %v5002_v32 = vld [vmem:[#allocation4 + $0x109] sm:$0xff] }
 0x88b   : > { %v4392_v59 = vpop.f32.mrf.mxu2 }
 0x88c   : > { %v4393_v51 = vadd.f32 %v10791_v37, %v4392_v59  ;;  %v4808_v59 = vld [vmem:[#allocation4 + $0xe0] sm:$0xff] }
 0x88d   : > { %v4840_v11 = vmax.f32 %v4776_v41, %v4808_v59  ;;  %v4650_v6 = vmax.f32 %v12038_v52, %v4808_v59  ;;  %v12040_v41 = vld [vmem:[#allocation31_spill] sm:$0xff] }
 0x88e   : > { %v4482_v13 = vmax.f32 %v4393_v51, 0.0  ;;  %v5436_v20 = vpop.permute.xlu1 %5435  ;;  %v5000_v51 = vld [vmem:[#allocation4 + $0xf1] sm:$0xff]  ;;  %v4652_v63 = vmax.f32 %v12040_v41, %v4810_v26  ;;  %v4811_v59 = vld [vmem:[#allocation4 + $0x108] sm:$0xff] }
 0x88f   : > { %5527 = vst.msk [vmem:[%s6584_s22 + $0x28] sm:$0xff] %vm5521_vm0, %v5436_v20  ;;  %v5456_v10 = vpop.permute.xlu2 %5455  ;;  %v5434_v61 = vpop.permute.xlu0 %5433  ;;  %v5032_v20 = vmax.f32 %v4968_v57, %v5000_v51  ;;  %v4904_v21 = vmax.f32 %v4840_v11, %v5063_v48  ;;  %v4714_v34 = vmax.f32 %v4650_v6, %v4682_v15  ;;  %v4939_v11 = vld [vmem:[#allocation4 + $0x110] sm:$0xff] }
 0x890   : > { %5537 = vst.msk [vmem:[%s6584_s22 + $0x78] sm:$0xff] %vm5521_vm0, %v5456_v10  ;;  %5592 = vrot.lane.b32.xlu1 %v4482_v13, %s6236_s21  ;;  %6046 = vmatmul.msk.f32.gmra.mxu2 %vm1993_vm3, %v4243_v62  ;;  %v4745_v10 = vld [vmem:[#allocation4 + $0xda] sm:$0xff]  ;;  %v4750_v41 = vld [vmem:[#allocation4 + $0x112] sm:$0xff] }
 0x891   : > { %5526 = vst.msk [vmem:[%s6584_s22 + $0x20] sm:$0xff] %vm5521_vm0, %v5434_v61  ;;  %6073 = vmatmul.msk.f32.gmra.mxu3 %vm368_vm1, %v5094_v24  ;;  %v5096_v56 = vmax.f32 %v5032_v20, %v5064_v16  ;;  %v4777_v12 = vmax.f32 %v4713_v58, %v4745_v10  ;;  %v5003_v58 = vld [vmem:[#allocation4 + $0x111] sm:$0xff]  ;;  %v4716_v20 = vmax.f32 %v4652_v63, %v4684_v47 }
 0x893   : > { %v4395_v29 = vpop.f32.mrf.mxu2 }
 0x894   : > { %v4396_v8 = vadd.f32 %v10791_v37, %v4395_v29  ;;  %v4809_v29 = vld [vmem:[#allocation4 + $0xf0] sm:$0xff] }
 0x895   : > { %v4841_v2 = vmax.f32 %v4777_v12, %v4809_v29  ;;  %v12041_v12 = vld [vmem:[#allocation34_spill] sm:$0xff] }
 0x896   : > { %v4483_v35 = vmax.f32 %v4396_v8, 0.0  ;;  %v5442_v43 = vpop.permute.xlu1 %5441  ;;  %v4969_v8 = vmax.f32 %v4904_v21, %v4937_v4  ;;  %v4653_v52 = vmax.f32 %v12041_v12, %v4811_v59  ;;  %v4685_v21 = vld [vmem:[#allocation4 + $0x109] sm:$0xff] }
 0x897   : > { %5530 = vst.msk [vmem:[%s6584_s22 + $0x40] sm:$0xff] %vm5521_vm0, %v5442_v43  ;;  %v5462_v33 = vpop.permute.xlu2 %5461  ;;  %v5440_v18 = vpop.permute.xlu0 %5439  ;;  %v4751_v12 = vld [vmem:[#allocation4 + $0x122] sm:$0xff] }
 0x898   : > { %5540 = vst.msk [vmem:[%s6584_s22 + $0x90] sm:$0xff] %vm5521_vm0, %v5462_v33  ;;  %5594 = vrot.lane.b32.xlu2 %v4483_v35, %s6236_s21  ;;  %6047 = vmatmul.msk.f32.gmra.mxu2 %vm1993_vm3, %v4244_v46  ;;  %v5033_v33 = vmax.f32 %v4969_v8, %v5001_v45  ;;  %v12039_v46 = vld [vmem:[#allocation29_spill] sm:$0xff]  ;;  %v4940_v8 = vld [vmem:[#allocation4 + $0x120] sm:$0xff] }
 0x899   : > { %5529 = vst.msk [vmem:[%s6584_s22 + $0x38] sm:$0xff] %vm5521_vm0, %v5440_v18  ;;  %6074 = vmatmul.msk.f32.gmra.mxu3 %vm368_vm1, %v5095_v9  ;;  %v4746_v18 = vld [vmem:[#allocation4 + $0xe2] sm:$0xff]  ;;  %v4651_v24 = vmax.f32 %v12039_v46, %v4809_v29 }
 0x89a   : > { %v5097_v31 = vmax.f32 %v5033_v33, %v5065_v55  ;;  %v4778_v3 = vmax.f32 %v4714_v34, %v4746_v18  ;;  %v5004_v34 = vld [vmem:[#allocation4 + $0x121] sm:$0xff]  ;;  %v4717_v18 = vmax.f32 %v4653_v52, %v4685_v21 }
 0x89b   : > { %v4398_v30 = vpop.f32.mrf.mxu2  ;;  %v5070_v21 = vld [vmem:[#allocation4 + $0x13a] sm:$0xff] }
 0x89c   : > { %v4399_v17 = vadd.f32 %v10791_v37, %v4398_v30  ;;  %v4905_v30 = vmax.f32 %v4841_v2, %v5064_v16  ;;  %v4249_v2 = vld [vmem:[#allocation3 + $0xd0] sm:$0xff] }
 0x89e   : > { %v4484_v19 = vmax.f32 %v4399_v17, 0.0  ;;  %v5448_v22 = vpop.permute.xlu1 %5447  ;;  %v4715_v17 = vmax.f32 %v4651_v24, %v4683_v25  ;;  %v4970_v48 = vmax.f32 %v4905_v30, %v4938_v0  ;;  %v4749_v24 = vld [vmem:[#allocation4 + $0x10a] sm:$0xff] }
 0x89f   : > { %5533 = vst.msk [vmem:[%s6584_s22 + $0x58] sm:$0xff] %vm5521_vm0, %v5448_v22  ;;  %v5468_v5 = vpop.permute.xlu2 %5467  ;;  %v5446_v40 = vpop.permute.xlu0 %5445  ;;  %v4842_v22 = vmax.f32 %v4778_v3, %v4810_v26  ;;  %v4686_v3 = vld [vmem:[#allocation4 + $0x111] sm:$0xff] }
 0x8a0   : > { %5543 = vst.msk [vmem:[%s6584_s22 + $0xa8] sm:$0xff] %vm5521_vm0, %v5468_v5  ;;  %5596 = vrot.lane.b32.xlu0 %v4484_v19, %s6236_s21  ;;  %6048 = vmatmul.msk.f32.gmra.mxu2 %vm1993_vm3, %v4245_v28  ;;  %v5066_v19 = vld [vmem:[#allocation4 + $0x10a] sm:$0xff]  ;;  %v5034_v28 = vmax.f32 %v4970_v48, %v5002_v32  ;;  %v4779_v9 = vmax.f32 %v4715_v17, %v4747_v54  ;;  %v4813_v48 = vld [vmem:[#allocation4 + $0x120] sm:$0xff] }
 0x8a1   : > { %5532 = vst.msk [vmem:[%s6584_s22 + $0x50] sm:$0xff] %vm5521_vm0, %v5446_v40  ;;  %6075 = vmatmul.msk.f32.gmra.mxu3 %vm368_vm1, %v5096_v56  ;;  %v10870_v43 = vpop.f32.mrf.mxu3  ;;  %v4906_v16 = vmax.f32 %v4842_v22, %v5065_v55  ;;  %v5067_v56 = vld [vmem:[#allocation4 + $0x112] sm:$0xff]  ;;  %v4941_v17 = vld [vmem:[#allocation4 + $0x128] sm:$0xff] }
 0x8a2   : > { %v5098_v7 = vmax.f32 %v5034_v28, %v5066_v19 }
 0x8a3   : > { %v4401_v38 = vpop.f32.mrf.mxu2  ;;  %v4971_v10 = vmax.f32 %v4906_v16, %v4939_v11 }
 0x8a4   : > { %v4402_v13 = vadd.f32 %v10791_v37, %v4401_v38  ;;  %v4248_v38 = vld [vmem:[#allocation3 + $0xc8] sm:$0xff] }
 0x8a6   : > { %v4485_v61 = vmax.f32 %v4402_v13, 0.0  ;;  %v5454_v62 = vpop.permute.xlu1 %5453  ;;  %v4843_v13 = vmax.f32 %v4779_v9, %v4811_v59  ;;  %v12043_v59 = vld [vmem:[#allocation42_spill] sm:$0xff] }
 0x8a7   : > { %5536 = vst.msk [vmem:[%s6584_s22 + $0x70] sm:$0xff] %vm5521_vm0, %v5454_v62  ;;  %v5474_v23 = vpop.permute.xlu2 %5473  ;;  %v5452_v49 = vpop.permute.xlu0 %5451  ;;  %v4655_v47 = vmax.f32 %v12043_v59, %v4813_v48  ;;  %v4753_v59 = vld [vmem:[#allocation4 + $0x13a] sm:$0xff] }
 0x8a8   : > { %5546 = vst.msk [vmem:[%s6584_s22 + $0xc0] sm:$0xff] %vm5521_vm0, %v5474_v23  ;;  %5598 = vrot.lane.b32.xlu1 %v4485_v61, %s6236_s21  ;;  %6049 = vmatmul.msk.f32.gmra.mxu2 %vm1993_vm3, %v4246_v39  ;;  %v4748_v61 = vld [vmem:[#allocation4 + $0xfa] sm:$0xff]  ;;  %v5035_v39 = vmax.f32 %v4971_v10, %v5003_v58  ;;  %v4907_v45 = vmax.f32 %v4843_v13, %v5066_v19  ;;  %v5005_v19 = vld [vmem:[#allocation4 + $0x129] sm:$0xff] }
 0x8a9   : > { %5535 = vst.msk [vmem:[%s6584_s22 + $0x68] sm:$0xff] %vm5521_vm0, %v5452_v49  ;;  %6076 = vmatmul.msk.f32.gmra.mxu3 %vm368_vm1, %v5097_v31  ;;  %v10883_v40 = vpop.f32.mrf.mxu3  ;;  %v4780_v6 = vmax.f32 %v4716_v20, %v4748_v61  ;;  %v4942_v13 = vld [vmem:[#allocation4 + $0x138] sm:$0xff]  ;;  %v4814_v20 = vld [vmem:[#allocation4 + $0x128] sm:$0xff]  ;;  %v4251_v61 = vld [vmem:[#allocation3 + $0xe0] sm:$0xff] }
 0x8aa   : > { %v5099_v15 = vmax.f32 %v5035_v39, %v5067_v56 }
 0x8ab   : > { %v4404_v50 = vpop.f32.mrf.mxu2 }
 0x8ac   : > { %v4405_v35 = vadd.f32 %v10791_v37, %v4404_v50  ;;  %v4812_v50 = vld [vmem:[#allocation4 + $0x110] sm:$0xff] }
 0x8ad   : > { %v4844_v33 = vmax.f32 %v4780_v6, %v4812_v50 }
 0x8ae   : > { %v4486_v53 = vmax.f32 %v4405_v35, 0.0  ;;  %v5460_v14 = vpop.permute.xlu1 %5459  ;;  %v4972_v35 = vmax.f32 %v4907_v45, %v4940_v8  ;;  %v12044_v45 = vld [vmem:[#allocation44_spill] sm:$0xff] }
 0x8af   : > { %5539 = vst.msk [vmem:[%s6584_s22 + $0x88] sm:$0xff] %vm5521_vm0, %v5460_v14  ;;  %v5480_v42 = vpop.permute.xlu2 %5479  ;;  %v5458_v27 = vpop.permute.xlu0 %5457  ;;  %v5068_v14 = vld [vmem:[#allocation4 + $0x122] sm:$0xff]  ;;  %v4908_v32 = vmax.f32 %v4844_v33, %v5067_v56  ;;  %v4656_v8 = vmax.f32 %v12044_v45, %v4814_v20  ;;  %v4815_v33 = vld [vmem:[#allocation4 + $0x138] sm:$0xff] }
 0x8b0   : > { %5549 = vst.msk [vmem:[%s6584_s22 + $0xd8] sm:$0xff] %vm5521_vm0, %v5480_v42  ;;  %5600 = vrot.lane.b32.xlu2 %v4486_v53, %s6236_s21  ;;  %6050 = vmatmul.msk.f32.gmra.mxu2 %vm1993_vm3, %v4247_v1  ;;  %v5036_v46 = vmax.f32 %v4972_v35, %v5004_v34  ;;  %v12042_v42 = vld [vmem:[#allocation38_spill] sm:$0xff]  ;;  %v4781_v1 = vmax.f32 %v4717_v18, %v4749_v24 }
 0x8b1   : > { %5538 = vst.msk [vmem:[%s6584_s22 + $0x80] sm:$0xff] %vm5521_vm0, %v5458_v27  ;;  %6077 = vmatmul.msk.f32.gmra.mxu3 %vm368_vm1, %v5098_v7  ;;  %v4654_v27 = vmax.f32 %v12042_v42, %v4812_v50  ;;  %v4973_v22 = vmax.f32 %v4908_v32, %v4941_v17  ;;  %v4688_v50 = vld [vmem:[#allocation4 + $0x129] sm:$0xff]  ;;  %v4943_v35 = vld [vmem:[#allocation4 + $0x140] sm:$0xff] }
 0x8b2   : > { %v5100_v26 = vmax.f32 %v5036_v46, %v5068_v14  ;;  %v4252_v46 = vld [vmem:[#allocation3 + $0xe8] sm:$0xff] }
 0x8b3   : > { %v4407_v36 = vpop.f32.mrf.mxu2  ;;  %v4718_v28 = vmax.f32 %v4654_v27, %v4686_v3  ;;  %v5037_v9 = vmax.f32 %v4973_v22, %v5005_v19  ;;  %v5007_v24 = vld [vmem:[#allocation4 + $0x141] sm:$0xff] }
 0x8b4   : > { %v4408_v5 = vadd.f32 %v10791_v37, %v4407_v36  ;;  %v10896_v49 = vpop.f32.mrf.mxu3  ;;  %v4250_v36 = vld [vmem:[#allocation3 + $0xd8] sm:$0xff]  ;;  %v4754_v45 = vld [vmem:[#allocation4 + $0x142] sm:$0xff] }
 0x8b6   : > { %v4487_v60 = vmax.f32 %v4408_v5, 0.0  ;;  %v5466_v44 = vpop.permute.xlu1 %5465  ;;  %v4845_v5 = vmax.f32 %v4781_v1, %v4813_v48  ;;  %v4752_v1 = vld [vmem:[#allocation4 + $0x12a] sm:$0xff] }
 0x8b7   : > { %5542 = vst.msk [vmem:[%s6584_s22 + $0xa0] sm:$0xff] %vm5521_vm0, %v5466_v44  ;;  %v5486_v51 = vpop.permute.xlu2 %5485  ;;  %v5464_v57 = vpop.permute.xlu0 %5463 }
 0x8b8   : > { %5552 = vst.msk [vmem:[%s6584_s22 + $0xf0] sm:$0xff] %vm5521_vm0, %v5486_v51  ;;  %5602 = vrot.lane.b32.xlu0 %v4487_v60, %s6236_s21  ;;  %6051 = vmatmul.msk.f32.gmra.mxu2 %vm1993_vm3, %v4248_v38  ;;  %v5069_v60 = vld [vmem:[#allocation4 + $0x12a] sm:$0xff]  ;;  %v4782_v51 = vmax.f32 %v4718_v28, %v4750_v41  ;;  %v4909_v58 = vmax.f32 %v4845_v5, %v5068_v14  ;;  %v4816_v28 = vld [vmem:[#allocation4 + $0x140] sm:$0xff] }
 0x8b9   : > { %5541 = vst.msk [vmem:[%s6584_s22 + $0x98] sm:$0xff] %vm5521_vm0, %v5464_v57  ;;  %6078 = vmatmul.msk.f32.gmra.mxu3 %vm368_vm1, %v5099_v15  ;;  %v4687_v57 = vld [vmem:[#allocation4 + $0x121] sm:$0xff]  ;;  %v5101_v11 = vmax.f32 %v5037_v9, %v5069_v60  ;;  %v4944_v5 = vld [vmem:[#allocation4 + $0x150] sm:$0xff] }
 0x8ba   : > { %v4974_v56 = vmax.f32 %v4909_v58, %v4942_v13  ;;  %v4846_v39 = vmax.f32 %v4782_v51, %v4814_v20  ;;  %v4253_v9 = vld [vmem:[#allocation3 + $0xf0] sm:$0xff]  ;;  %v12046_v13 = vld [vmem:[#allocation54_spill] sm:$0xff] }
 0x8bb   : > { %v4410_v62 = vpop.f32.mrf.mxu2  ;;  %v5008_v41 = vld [vmem:[#allocation4 + $0x151] sm:$0xff]  ;;  %v4658_v20 = vmax.f32 %v12046_v13, %v4816_v28 }
 0x8bc   : > { %v4411_v23 = vadd.f32 %v10791_v37, %v4410_v62  ;;  %v10907_v25 = vpop.f32.mrf.mxu3  ;;  %v5006_v62 = vld [vmem:[#allocation4 + $0x139] sm:$0xff]  ;;  %v4910_v34 = vmax.f32 %v4846_v39, %v5069_v60  ;;  %v4817_v58 = vld [vmem:[#allocation4 + $0x150] sm:$0xff] }
 0x8bd   : > { %v5038_v52 = vmax.f32 %v4974_v56, %v5006_v62  ;;  %v4945_v56 = vld [vmem:[#allocation4 + $0x158] sm:$0xff] }
 0x8be   : > { %v4488_v4 = vmax.f32 %v4411_v23, 0.0  ;;  %v5472_v29 = vpop.permute.xlu1 %5471  ;;  %v4719_v23 = vmax.f32 %v4655_v47, %v4687_v57  ;;  %v5072_v57 = vld [vmem:[#allocation4 + $0x152] sm:$0xff] }
 0x8bf   : > { %5545 = vst.msk [vmem:[%s6584_s22 + $0xb8] sm:$0xff] %vm5521_vm0, %v5472_v29  ;;  %v5470_v55 = vpop.permute.xlu0 %5469  ;;  %v4254_v39 = vld [vmem:[#allocation3 + $0xf8] sm:$0xff] }
 0x8c0   : > { %5544 = vst.msk [vmem:[%s6584_s22 + $0xb0] sm:$0xff] %vm5521_vm0, %v5470_v55  ;;  %5604 = vrot.lane.b32.xlu1 %v4488_v4, %s6236_s21  ;;  %6052 = vmatmul.msk.f32.gmra.mxu2 %vm1993_vm3, %v4249_v2  ;;  %v4783_v29 = vmax.f32 %v4719_v23, %v4751_v12  ;;  %v5102_v2 = vmax.f32 %v5038_v52, %v5070_v21  ;;  %v4690_v23 = vld [vmem:[#allocation4 + $0x141] sm:$0xff]  ;;  %v5009_v12 = vld [vmem:[#allocation4 + $0x159] sm:$0xff] }
 0x8c1   : > { %6079 = vmatmul.msk.f32.gmra.mxu3 %vm368_vm1, %v5100_v26  ;;  %v12045_v26 = vld [vmem:[#allocation47_spill] sm:$0xff] }
 0x8c2   : > { %v4847_v14 = vmax.f32 %v4783_v29, %v4815_v33  ;;  %v4657_v32 = vmax.f32 %v12045_v26, %v4815_v33 }
 0x8c3   : > { %v4413_v53 = vpop.f32.mrf.mxu2 }
 0x8c4   : > { %v4414_v31 = vadd.f32 %v10791_v37, %v4413_v53  ;;  %v10918_v7 = vpop.f32.mrf.mxu3  ;;  %v4975_v53 = vmax.f32 %v4910_v34, %v4943_v35  ;;  %v4911_v22 = vmax.f32 %v4847_v14, %v5070_v21  ;;  %v4722_v21 = vmax.f32 %v4658_v20, %v4690_v23  ;;  %v4946_v14 = vld [vmem:[#allocation4 + $0x168] sm:$0xff]  ;;  %v5075_v20 = vld [vmem:[#allocation4 + $0x172] sm:$0xff] }
 0x8c6   : > { %v4489_v30 = vmax.f32 %v4414_v31, 0.0  ;;  %v5478_v0 = vpop.permute.xlu1 %5477  ;;  %v4720_v31 = vmax.f32 %v4656_v8, %v4688_v50  ;;  %v5039_v27 = vmax.f32 %v4975_v53, %v5007_v24  ;;  %v5073_v50 = vld [vmem:[#allocation4 + $0x15a] sm:$0xff]  ;;  %v4786_v33 = vmax.f32 %v4722_v21, %v4754_v45 }
 0x8c7   : > { %5548 = vst.msk [vmem:[%s6584_s22 + $0xd0] sm:$0xff] %vm5521_vm0, %v5478_v0  ;;  %v5476_v54 = vpop.permute.xlu0 %5475  ;;  %v4948_v21 = vld [vmem:[#allocation4 + $0x180] sm:$0xff] }
 0x8c8   : > { %5547 = vst.msk [vmem:[%s6584_s22 + $0xc8] sm:$0xff] %vm5521_vm0, %v5476_v54  ;;  %5606 = vrot.lane.b32.xlu2 %v4489_v30, %s6236_s21  ;;  %6053 = vmatmul.msk.f32.gmra.mxu2 %vm1993_vm3, %v4250_v36  ;;  %v5071_v30 = vld [vmem:[#allocation4 + $0x142] sm:$0xff]  ;;  %v4784_v48 = vmax.f32 %v4720_v31, %v4752_v1  ;;  %v4689_v54 = vld [vmem:[#allocation4 + $0x139] sm:$0xff] }
 0x8c9   : > { %6080 = vmatmul.msk.f32.gmra.mxu3 %vm368_vm1, %v5101_v11  ;;  %v5103_v19 = vmax.f32 %v5039_v27, %v5071_v30  ;;  %v4721_v60 = vmax.f32 %v4657_v32, %v4689_v54  ;;  %v4818_v31 = vld [vmem:[#allocation4 + $0x158] sm:$0xff] }
 0x8cb   : > { %v4416_v63 = vpop.f32.mrf.mxu2 }
 0x8cc   : > { %v4417_v44 = vadd.f32 %v10791_v37, %v4416_v63  ;;  %v10929_v15 = vpop.f32.mrf.mxu3  ;;  %v4976_v63 = vmax.f32 %v4911_v22, %v4944_v5  ;;  %v12048_v22 = vld [vmem:[#allocation61_spill] sm:$0xff] }
 0x8cd   : > { %v4660_v5 = vmax.f32 %v12048_v22, %v4818_v31 }
 0x8ce   : > { %v4490_v38 = vmax.f32 %v4417_v44, 0.0  ;;  %v5484_v16 = vpop.permute.xlu1 %5483  ;;  %v4848_v44 = vmax.f32 %v4784_v48, %v4816_v28  ;;  %v5040_v47 = vmax.f32 %v4976_v63, %v5008_v41  ;;  %v5074_v48 = vld [vmem:[#allocation4 + $0x16a] sm:$0xff] }
 0x8cf   : > { %5551 = vst.msk [vmem:[%s6584_s22 + $0xe8] sm:$0xff] %vm5521_vm0, %v5484_v16  ;;  %v5482_v10 = vpop.permute.xlu0 %5481  ;;  %v4785_v16 = vmax.f32 %v4721_v60, %v4753_v59  ;;  %v4947_v63 = vld [vmem:[#allocation4 + $0x170] sm:$0xff]  ;;  %v4819_v60 = vld [vmem:[#allocation4 + $0x168] sm:$0xff] }
 0x8d0   : > { %5550 = vst.msk [vmem:[%s6584_s22 + $0xe0] sm:$0xff] %vm5521_vm0, %v5482_v10  ;;  %5608 = vrot.lane.b32.xlu0 %v4490_v38, %s6236_s21  ;;  %6054 = vmatmul.msk.f32.gmra.mxu2 %vm1993_vm3, %v4251_v61  ;;  %v5104_v61 = vmax.f32 %v5040_v47, %v5072_v57  ;;  %v4912_v62 = vmax.f32 %v4848_v44, %v5071_v30  ;;  %v4755_v30 = vld [vmem:[#allocation4 + $0x152] sm:$0xff] }
 0x8d1   : > { %6081 = vmatmul.msk.f32.gmra.mxu3 %vm368_vm1, %v5102_v2  ;;  %v12047_v2 = vld [vmem:[#allocation58_spill] sm:$0xff]  ;;  %v5011_v59 = vld [vmem:[#allocation4 + $0x171] sm:$0xff] }
 0x8d2   : > { %v4977_v52 = vmax.f32 %v4912_v62, %v4945_v56  ;;  %v4659_v34 = vmax.f32 %v12047_v2, %v4817_v58  ;;  %v4692_v44 = vld [vmem:[#allocation4 + $0x159] sm:$0xff] }
 0x8d3   : > { %v4419_v6 = vpop.f32.mrf.mxu2 }
 0x8d4   : > { %v4420_v4 = vadd.f32 %v10791_v37, %v4419_v6  ;;  %v10941_v17 = vpop.f32.mrf.mxu3  ;;  %v4849_v6 = vmax.f32 %v4785_v16, %v4817_v58  ;;  %v5041_v29 = vmax.f32 %v4977_v52, %v5009_v12  ;;  %v4756_v58 = vld [vmem:[#allocation4 + $0x15a] sm:$0xff] }
 0x8d6   : > { %v4491_v55 = vmax.f32 %v4420_v4, 0.0  ;;  %v5105_v24 = vmax.f32 %v5041_v29, %v5073_v50  ;;  %v4913_v53 = vmax.f32 %v4849_v6, %v5072_v57  ;;  %v4724_v57 = vmax.f32 %v4660_v5, %v4692_v44  ;;  %v5012_v29 = vld [vmem:[#allocation4 + $0x181] sm:$0xff]  ;;  %v4758_v5 = vld [vmem:[#allocation4 + $0x172] sm:$0xff] }
 0x8d7   : > { %v5488_v18 = vpop.permute.xlu0 %5487 }
 0x8d8   : > { %5553 = vst.msk [vmem:[%s6584_s22 + $0xf8] sm:$0xff] %vm5521_vm0, %v5488_v18  ;;  %5610 = vrot.lane.b32.xlu1 %v4491_v55, %s6236_s21  ;;  %6055 = vmatmul.msk.f32.gmra.mxu2 %vm1993_vm3, %v4252_v46  ;;  %v4691_v18 = vld [vmem:[#allocation4 + $0x151] sm:$0xff]  ;;  %v4978_v27 = vmax.f32 %v4913_v53, %v4946_v14  ;;  %v4788_v23 = vmax.f32 %v4724_v57, %v4756_v58  ;;  %v4822_v57 = vld [vmem:[#allocation4 + $0x188] sm:$0xff] }
 0x8d9   : > { %6082 = vmatmul.msk.f32.gmra.mxu3 %vm368_vm1, %v5103_v19  ;;  %v4723_v1 = vmax.f32 %v4659_v34, %v4691_v18  ;;  %v5076_v18 = vld [vmem:[#allocation4 + $0x182] sm:$0xff]  ;;  %v12050_v14 = vld [vmem:[#allocation73_spill] sm:$0xff] }
 0x8da   : > { %v5589_v42 = vpop.permute.xlu2 %5588 }
 0x8db   : > { %5683 = vst.msk [vmem:[%s6584_s22 + $0x8] sm:$0xff] %vm1050_vm9, %v5589_v42  ;;  %v4422_v3 = vpop.f32.mrf.mxu2  ;;  %v5010_v42 = vld [vmem:[#allocation4 + $0x169] sm:$0xff] }
 0x8dc   : > { %v4423_v0 = vadd.f32 %v10791_v37, %v4422_v3  ;;  %v10947_v11 = vpop.f32.mrf.mxu3  ;;  %v4850_v3 = vmax.f32 %v4786_v33, %v4818_v31  ;;  %v5042_v26 = vmax.f32 %v4978_v27, %v5010_v42 }
 0x8de   : > { %v4492_v36 = vmax.f32 %v4423_v0, 0.0  ;;  %v4914_v41 = vmax.f32 %v4850_v3, %v5073_v50  ;;  %v4949_v3 = vld [vmem:[#allocation4 + $0x188] sm:$0xff] }
 0x8e0   : > { %5612 = vrot.lane.b32.xlu2 %v4492_v36, %s6236_s21  ;;  %6056 = vmatmul.msk.f32.gmra.mxu2 %vm1993_vm3, %v4253_v9  ;;  %v4787_v36 = vmax.f32 %v4723_v1, %v4755_v30  ;;  %v5106_v9 = vmax.f32 %v5042_v26, %v5074_v48  ;;  %v4979_v47 = vmax.f32 %v4914_v41, %v4947_v63  ;;  %v4821_v30 = vld [vmem:[#allocation4 + $0x180] sm:$0xff]  ;;  %v5013_v26 = vld [vmem:[#allocation4 + $0x189] sm:$0xff] }
 0x8e1   : > { %6083 = vmatmul.msk.f32.gmra.mxu3 %vm368_vm1, %v5104_v61  ;;  %v12049_v61 = vld [vmem:[#allocation69_spill] sm:$0xff] }
 0x8e2   : > { %v5043_v16 = vmax.f32 %v4979_v47, %v5011_v59  ;;  %v4661_v62 = vmax.f32 %v12049_v61, %v4819_v60  ;;  %v10997_v61 = vld [vmem:[%s11304_s6] ss:$0 sm:$0xff] }
 0x8e3   : > { %v4425_v51 = vpop.f32.mrf.mxu2 }
 0x8e4   : > { %v4426_v38 = vadd.f32 %v10791_v37, %v4425_v51  ;;  %v10957_v35 = vpop.f32.mrf.mxu3  ;;  %v4851_v51 = vmax.f32 %v4787_v36, %v4819_v60  ;;  %v5107_v52 = vmax.f32 %v5043_v16, %v5075_v20 }
 0x8e6   : > { %v4493_v10 = vmax.f32 %v4426_v38, 0.0  ;;  %v4915_v6 = vmax.f32 %v4851_v51, %v5074_v48  ;;  %v4950_v51 = vld [vmem:[#allocation4 + $0x198] sm:$0xff] }
 0x8e8   : > { %5614 = vrot.lane.b32.xlu0 %v4493_v10, %s6236_s21  ;;  %6057 = vmatmul.msk.f32.gmra.mxu2 %vm1993_vm3, %v4254_v39  ;;  %v4693_v39 = vld [vmem:[#allocation4 + $0x169] sm:$0xff]  ;;  %v4980_v45 = vmax.f32 %v4915_v6, %v4948_v21  ;;  %v4951_v6 = vld [vmem:[#allocation4 + $0x1a0] sm:$0xff] }
 0x8e9   : > { %6084 = vmatmul.msk.f32.gmra.mxu3 %vm368_vm1, %v5105_v24  ;;  %v5015_v21 = vld [vmem:[#allocation4 + $0x1a1] sm:$0xff] }
 0x8ea   : > { %v5587_v4 = vpop.permute.xlu1 %5586  ;;  %v5044_v34 = vmax.f32 %v4980_v45, %v5012_v29 }
 0x8eb   : > { %5682 = vst.msk [vmem:[%s6584_s22] sm:$0xff] %vm1050_vm9, %v5587_v4  ;;  %v4428_v8 = vpop.f32.mrf.mxu2  ;;  %v4820_v4 = vld [vmem:[#allocation4 + $0x170] sm:$0xff] }
 0x8ec   : > { %v4429_v55 = vadd.f32 %v10791_v37, %v4428_v8  ;;  %v10964_v19 = vpop.f32.mrf.mxu3  ;;  %v4725_v8 = vmax.f32 %v4661_v62, %v4693_v39  ;;  %v4852_v50 = vmax.f32 %v4788_v23, %v4820_v4  ;;  %v4662_v31 = vmax.f32 %v12050_v14, %v4820_v4 }
 0x8ed   : > { %v5108_v27 = vmax.f32 %v5044_v34, %v5076_v18 }
 0x8ee   : > { %v4494_v46 = vmax.f32 %v4429_v55, 0.0  ;;  %v4757_v55 = vld [vmem:[#allocation4 + $0x16a] sm:$0xff]  ;;  %v4916_v1 = vmax.f32 %v4852_v50, %v5075_v20  ;;  %v5079_v50 = vld [vmem:[#allocation4 + $0x1a2] sm:$0xff] }
 0x8ef   : > { %v4789_v24 = vmax.f32 %v4725_v8, %v4757_v55 }
 0x8f0   : > { %5616 = vrot.lane.b32.xlu1 %v4494_v46, %s6236_s21 }
 0x8f1   : > { %6085 = vmatmul.msk.f32.gmra.mxu3 %vm368_vm1, %v5106_v9  ;;  %v4853_v48 = vmax.f32 %v4789_v24, %v4821_v30  ;;  %v5077_v9 = vld [vmem:[#allocation4 + $0x18a] sm:$0xff] }
 0x8f2   : > { %v5595_v0 = vpop.permute.xlu2 %5594 }
 0x8f3   : > { %5686 = vst.msk [vmem:[%s6584_s22 + $0x20] sm:$0xff] %vm1050_vm9, %v5595_v0  ;;  %v4431_v32 = vpop.f32.mrf.mxu2  ;;  %v4694_v0 = vld [vmem:[#allocation4 + $0x171] sm:$0xff]  ;;  %v4917_v47 = vmax.f32 %v4853_v48, %v5076_v18 }
 0x8f4   : > { %v4432_v54 = vadd.f32 %v10791_v37, %v4431_v32  ;;  %v10973_v56 = vpop.f32.mrf.mxu3  ;;  %v4981_v32 = vmax.f32 %v4916_v1, %v4949_v3 }
 0x8f5   : > { %v4982_v16 = vmax.f32 %v4917_v47, %v4950_v51 }
 0x8f6   : > { %v4495_v28 = vmax.f32 %v4432_v54, 0.0  ;;  %v4726_v54 = vmax.f32 %v4662_v31, %v4694_v0  ;;  %v5045_v22 = vmax.f32 %v4981_v32, %v5013_v26 }
 0x8f8   : > { %5618 = vrot.lane.b32.xlu2 %v4495_v28, %s6236_s21  ;;  %v4790_v60 = vmax.f32 %v4726_v54, %v4758_v5  ;;  %v5109_v59 = vmax.f32 %v5045_v22, %v5077_v9 }
 0x8f9   : > { %6086 = vmatmul.msk.f32.gmra.mxu3 %vm368_vm1, %v5107_v52 }
 0x8fa   : > { %v5591_v38 = vpop.permute.xlu0 %5590  ;;  %v4854_v58 = vmax.f32 %v4790_v60, %v4822_v57 }
 0x8fb   : > { %5684 = vst.msk [vmem:[%s6584_s22 + $0x10] sm:$0xff] %vm1050_vm9, %v5591_v38  ;;  %v4434_v13 = vpop.f32.mrf.mxu2  ;;  %v5014_v38 = vld [vmem:[#allocation4 + $0x199] sm:$0xff] }
 0x8fc   : > { %v4435_v10 = vadd.f32 %v10791_v37, %v4434_v13  ;;  %v10980_v53 = vpop.f32.mrf.mxu3  ;;  %v5046_v20 = vmax.f32 %v4982_v16, %v5014_v38  ;;  %v4918_v52 = vmax.f32 %v4854_v58, %v5077_v9 }
 0x8fe   : > { %v4496_v12 = vmax.f32 %v4435_v10, 0.0  ;;  %v5078_v10 = vld [vmem:[#allocation4 + $0x19a] sm:$0xff]  ;;  %v4983_v4 = vmax.f32 %v4918_v52, %v4951_v6 }
 0x900   : > { %5620 = vrot.lane.b32.xlu0 %v4496_v12, %s6236_s21  ;;  %v5110_v12 = vmax.f32 %v5046_v20, %v5078_v10  ;;  %v5047_v45 = vmax.f32 %v4983_v4, %v5015_v21  ;;  %v11061_v21 = vld [vmem:[%s11306_s8] ss:$0 sm:$0xff] }
 0x901   : > { %6087 = vmatmul.msk.f32.gmra.mxu3 %vm368_vm1, %v5108_v27 }
 0x902   : > { %v5593_v2 = vpop.permute.xlu1 %5592 }
 0x903   : > { %5685 = vst.msk [vmem:[%s6584_s22 + $0x18] sm:$0xff] %vm1050_vm9, %v5593_v2  ;;  %v4437_v33 = vpop.f32.mrf.mxu2 }
 0x904   : > { %v4438_v46 = vadd.f32 %v10791_v37, %v4437_v33  ;;  %v10988_v63 = vpop.f32.mrf.mxu3  ;;  %v5111_v33 = vmax.f32 %v5047_v45, %v5079_v50 }
 0x906   : > { %v4497_v42 = vmax.f32 %v4438_v46, 0.0 }
 0x908   : > { %5622 = vrot.lane.b32.xlu1 %v4497_v42, %s6236_s21 }
 0x909   : > { %6088 = vmatmul.msk.f32.gmra.mxu3 %vm368_vm1, %v5109_v59 }
 0x90a   : > { %v5601_v36 = vpop.permute.xlu2 %5600 }
 0x90b   : > { %5689 = vst.msk [vmem:[%s6584_s22 + $0x38] sm:$0xff] %vm1050_vm9, %v5601_v36  ;;  %v4440_v28 = vpop.f32.mrf.mxu2 }
 0x90c   : > { %v4441_v41 = vadd.f32 %v10791_v37, %v4440_v28  ;;  %v11000_v23 = vpop.f32.mrf.mxu3 }
 0x90e   : > { %v4498_v44 = vmax.f32 %v4441_v41, 0.0 }
 0x910   : > { %5624 = vrot.lane.b32.xlu2 %v4498_v44, %s6236_s21 }
 0x911   : > { %6089 = vmatmul.msk.f32.gmra.mxu3 %vm368_vm1, %v5110_v12 }
 0x912   : > { %v5597_v13 = vpop.permute.xlu0 %5596 }
 0x913   : > { %5687 = vst.msk [vmem:[%s6584_s22 + $0x28] sm:$0xff] %vm1050_vm9, %v5597_v13  ;;  %v4443_v37 = vpop.f32.mrf.mxu2 }
 0x914   : > { %v4444_v62 = vadd.f32 %v10997_v61, %v4443_v37  ;;  %v11007_v2 = vpop.f32.mrf.mxu3 }
 0x916   : > { %v4499_v39 = vmax.f32 %v4444_v62, 0.0 }
 0x918   : > { %5626 = vrot.lane.b32.xlu0 %v4499_v39, %s6236_s21 }
 0x919   : > { %6090 = vmatmul.msk.f32.gmra.mxu3 %vm368_vm1, %v5111_v33 }
 0x91a   : > { %v5599_v29 = vpop.permute.xlu1 %5598 }
 0x91b   : > { %5688 = vst.msk [vmem:[%s6584_s22 + $0x30] sm:$0xff] %vm1050_vm9, %v5599_v29  ;;  %v4446_v8 = vpop.f32.mrf.mxu2  ;;  %v5234_v29 = vadd.f32 %v11061_v21, %v10870_v43  ;;  %v5243_v43 = vadd.f32 %v11061_v21, %v10907_v25  ;;  %v5246_v25 = vadd.f32 %v11061_v21, %v10918_v7  ;;  %v5249_v7 = vadd.f32 %v11061_v21, %v10929_v15 }
 0x91c   : > { %v4447_v55 = vadd.f32 %v10997_v61, %v4446_v8  ;;  %v11014_v14 = vpop.f32.mrf.mxu3  ;;  %v5258_v15 = vadd.f32 %v11061_v21, %v10957_v35  ;;  %v5267_v35 = vadd.f32 %v11061_v21, %v10980_v53  ;;  %v5276_v53 = vadd.f32 %v11061_v21, %v11007_v2 }
 0x91e   : > { %v4500_v34 = vmax.f32 %v4447_v55, 0.0 }
 0x920   : > { %5628 = vrot.lane.b32.xlu1 %v4500_v34, %s6236_s21  ;;  %v5329_v34 = vmax.f32 %v5234_v29, 0.0 }
 0x922   : > { %v5607_v18 = vpop.permute.xlu2 %5606 }
 0x923   : > { %5692 = vst.msk [vmem:[%s6584_s22 + $0x50] sm:$0xff] %vm1050_vm9, %v5607_v18  ;;  %v4449_v46 = vpop.f32.mrf.mxu2  ;;  %v5237_v18 = vadd.f32 %v11061_v21, %v10883_v40  ;;  %v5240_v40 = vadd.f32 %v11061_v21, %v10896_v49 }
 0x924   : > { %v4450_v24 = vadd.f32 %v10997_v61, %v4449_v46  ;;  %v11020_v3 = vpop.f32.mrf.mxu3 }
 0x926   : > { %v4501_v31 = vmax.f32 %v4450_v24, 0.0 }
 0x928   : > { %5630 = vrot.lane.b32.xlu2 %v4501_v31, %s6236_s21 }
 0x92a   : > { %v5603_v42 = vpop.permute.xlu0 %5602 }
 0x92b   : > { %5690 = vst.msk [vmem:[%s6584_s22 + $0x40] sm:$0xff] %vm1050_vm9, %v5603_v42  ;;  %v4452_v27 = vpop.f32.mrf.mxu2  ;;  %v5330_v42 = vmax.f32 %v5237_v18, 0.0 }
 0x92c   : > { %v4453_v1 = vadd.f32 %v10997_v61, %v4452_v27  ;;  %v11026_v48 = vpop.f32.mrf.mxu3 }
 0x92d   : > { %v5285_v2 = vadd.f32 %v11061_v21, %v11026_v48 }
 0x92e   : > { %v4502_v30 = vmax.f32 %v4453_v1, 0.0  ;;  %v5332_v1 = vmax.f32 %v5243_v43, 0.0 }
 0x930   : > { %5632 = vrot.lane.b32.xlu0 %v4502_v30, %s6236_s21 }
 0x932   : > { %v5605_v0 = vpop.permute.xlu1 %5604 }
 0x933   : > { %5691 = vst.msk [vmem:[%s6584_s22 + $0x48] sm:$0xff] %vm1050_vm9, %v5605_v0  ;;  %v4455_v26 = vpop.f32.mrf.mxu2 }
 0x934   : > { %v4456_v32 = vadd.f32 %v10997_v61, %v4455_v26  ;;  %v11032_v28 = vpop.f32.mrf.mxu3  ;;  %v5331_v26 = vmax.f32 %v5240_v40, 0.0 }
 0x936   : > { %v4503_v54 = vmax.f32 %v4456_v32, 0.0  ;;  %v5333_v32 = vmax.f32 %v5246_v25, 0.0 }
 0x938   : > { %5634 = vrot.lane.b32.xlu1 %v4503_v54, %s6236_s21 }
 0x93a   : > { %v5613_v36 = vpop.permute.xlu2 %5612 }
 0x93b   : > { %5695 = vst.msk [vmem:[%s6584_s22 + $0x68] sm:$0xff] %vm1050_vm9, %v5613_v36  ;;  %v4458_v22 = vpop.f32.mrf.mxu2 }
 0x93c   : > { %v4459_v5 = vadd.f32 %v10997_v61, %v4458_v22  ;;  %v11038_v59 = vpop.f32.mrf.mxu3  ;;  %v5261_v22 = vadd.f32 %v11061_v21, %v10964_v19  ;;  %v5270_v19 = vadd.f32 %v11061_v21, %v10988_v63 }
 0x93e   : > { %v4504_v9 = vmax.f32 %v4459_v5, 0.0  ;;  %v5334_v5 = vmax.f32 %v5249_v7, 0.0 }
 0x940   : > { %5636 = vrot.lane.b32.xlu2 %v4504_v9, %s6236_s21 }
 0x942   : > { %v5609_v41 = vpop.permute.xlu0 %5608 }
 0x943   : > { %5693 = vst.msk [vmem:[%s6584_s22 + $0x58] sm:$0xff] %vm1050_vm9, %v5609_v41  ;;  %v4461_v60 = vpop.f32.mrf.mxu2  ;;  %v5338_v41 = vmax.f32 %v5261_v22, 0.0 }
 0x944   : > { %v4462_v44 = vadd.f32 %v10997_v61, %v4461_v60  ;;  %v11044_v16 = vpop.f32.mrf.mxu3 }
 0x946   : > { %v4505_v47 = vmax.f32 %v4462_v44, 0.0 }
 0x948   : > { %5638 = vrot.lane.b32.xlu0 %v4505_v47, %s6236_s21  ;;  %v5337_v47 = vmax.f32 %v5258_v15, 0.0 }
 0x94a   : > { %v5611_v51 = vpop.permute.xlu1 %5610 }
 0x94b   : > { %5694 = vst.msk [vmem:[%s6584_s22 + $0x60] sm:$0xff] %vm1050_vm9, %v5611_v51  ;;  %v4464_v57 = vpop.f32.mrf.mxu2 }
 0x94c   : > { %v4465_v38 = vadd.f32 %v10997_v61, %v4464_v57  ;;  %v11050_v10 = vpop.f32.mrf.mxu3  ;;  %v5341_v57 = vmax.f32 %v5270_v19, 0.0 }
 0x94d   : > { %v5297_v29 = vadd.f32 %v11061_v21, %v11050_v10 }
 0x94e   : > { %v4506_v58 = vmax.f32 %v4465_v38, 0.0  ;;  %v5279_v38 = vadd.f32 %v11061_v21, %v11014_v14 }
 0x950   : > { %5640 = vrot.lane.b32.xlu1 %v4506_v58, %s6236_s21 }
 0x952   : > { %v5619_v13 = vpop.permute.xlu2 %5618 }
 0x953   : > { %5698 = vst.msk [vmem:[%s6584_s22 + $0x80] sm:$0xff] %vm1050_vm9, %v5619_v13  ;;  %v4467_v20 = vpop.f32.mrf.mxu2  ;;  %v5340_v13 = vmax.f32 %v5267_v35, 0.0 }
 0x954   : > { %v4468_v37 = vadd.f32 %v10997_v61, %v4467_v20  ;;  %v11056_v6 = vpop.f32.mrf.mxu3 }
 0x956   : > { %v4507_v62 = vmax.f32 %v4468_v37, 0.0  ;;  %v5344_v37 = vmax.f32 %v5279_v38, 0.0 }
 0x958   : > { %5642 = vrot.lane.b32.xlu2 %v4507_v62, %s6236_s21  ;;  %v5288_v62 = vadd.f32 %v11061_v21, %v11032_v28 }
 0x95a   : > { %v5615_v39 = vpop.permute.xlu0 %5614 }
 0x95b   : > { %5696 = vst.msk [vmem:[%s6584_s22 + $0x70] sm:$0xff] %vm1050_vm9, %v5615_v39  ;;  %v4470_v12 = vpop.f32.mrf.mxu2  ;;  %v5343_v39 = vmax.f32 %v5276_v53, 0.0 }
 0x95c   : > { %v4471_v52 = vadd.f32 %v10997_v61, %v4470_v12  ;;  %v11069_v55 = vpop.f32.mrf.mxu3 }
 0x95e   : > { %v4508_v4 = vmax.f32 %v4471_v52, 0.0  ;;  %v5347_v52 = vmax.f32 %v5288_v62, 0.0 }
 0x960   : > { %5644 = vrot.lane.b32.xlu0 %v4508_v4, %s6236_s21 }
 0x962   : > { %v5617_v45 = vpop.permute.xlu1 %5616 }
 0x963   : > { %5697 = vst.msk [vmem:[%s6584_s22 + $0x78] sm:$0xff] %vm1050_vm9, %v5617_v45  ;;  %v4473_v8 = vpop.f32.mrf.mxu2  ;;  %v5346_v45 = vmax.f32 %v5285_v2, 0.0 }
 0x964   : > { %v4474_v50 = vadd.f32 %v10997_v61, %v4473_v8  ;;  %v11080_v30 = vpop.f32.mrf.mxu3 }
 0x966   : > { %v4509_v33 = vmax.f32 %v4474_v50, 0.0  ;;  %v5350_v50 = vmax.f32 %v5297_v29, 0.0 }
 0x968   : > { %5646 = vrot.lane.b32.xlu1 %v4509_v33, %s6236_s21  ;;  %5746 = vrot.lane.b32.xlu0 %v5329_v34, %s6235_s17  ;;  %v5300_v34 = vadd.f32 %v11061_v21, %v11056_v6  ;;  %v5306_v33 = vadd.f32 %v11061_v21, %v11080_v30 }
 0x96a   : > { %v5625_v46 = vpop.permute.xlu2 %5624  ;;  %v5353_v43 = vmax.f32 %v5306_v33, 0.0 }
 0x96b   : > { %5701 = vst.msk [vmem:[%s6584_s22 + $0x98] sm:$0xff] %vm1050_vm9, %v5625_v46  ;;  %v4476_v24 = vpop.f32.mrf.mxu2  ;;  %v5351_v46 = vmax.f32 %v5300_v34, 0.0 }
 0x96c   : > { %v4477_v31 = vadd.f32 %v10997_v61, %v4476_v24  ;;  %v5252_v61 = vadd.f32 %v11061_v21, %v10941_v17  ;;  %v11096_v49 = vpop.f32.mrf.mxu3  ;;  %v5255_v17 = vadd.f32 %v11061_v21, %v10947_v11  ;;  %v5264_v11 = vadd.f32 %v11061_v21, %v10973_v56 }
 0x96d   : > { %v5273_v56 = vadd.f32 %v11061_v21, %v11000_v23  ;;  %v5282_v23 = vadd.f32 %v11061_v21, %v11020_v3  ;;  %v5291_v3 = vadd.f32 %v11061_v21, %v11038_v59  ;;  %v5294_v59 = vadd.f32 %v11061_v21, %v11044_v16 }
 0x96e   : > { %v4510_v27 = vmax.f32 %v4477_v31, 0.0  ;;  %v5335_v54 = vmax.f32 %v5252_v61, 0.0  ;;  %v5336_v9 = vmax.f32 %v5255_v17, 0.0  ;;  %v5339_v51 = vmax.f32 %v5264_v11, 0.0 }
 0x96f   : > { %v5342_v20 = vmax.f32 %v5273_v56, 0.0  ;;  %v5345_v12 = vmax.f32 %v5282_v23, 0.0  ;;  %v5348_v8 = vmax.f32 %v5291_v3, 0.0  ;;  %v5349_v18 = vmax.f32 %v5294_v59, 0.0 }
 0x970   : > { %5648 = vrot.lane.b32.xlu2 %v4510_v27, %s6236_s21  ;;  %5748 = vrot.lane.b32.xlu1 %v5330_v42, %s6235_s17  ;;  %v5303_v16 = vadd.f32 %v11061_v21, %v11069_v55  ;;  %v5309_v6 = vadd.f32 %v11061_v21, %v11096_v49 }
 0x971   : > { %5752 = vrot.lane.b32.xlu0 %v5332_v1, %s6235_s17 }
 0x972   : > { %v5621_v0 = vpop.permute.xlu0 %5620  ;;  %v5352_v27 = vmax.f32 %v5303_v16, 0.0  ;;  %v5354_v1 = vmax.f32 %v5309_v6, 0.0 }
 0x973   : > { %5699 = vst.msk [vmem:[%s6584_s22 + $0x88] sm:$0xff] %vm1050_vm9, %v5621_v0 }
 0x974   : > { %v11117_v44 = vpop.f32.mrf.mxu3 }
 0x975   : > { %v5312_v40 = vadd.f32 %v11061_v21, %v11117_v44 }
 0x978   : > { %5750 = vrot.lane.b32.xlu2 %v5331_v26, %s6235_s17  ;;  %5754 = vrot.lane.b32.xlu1 %v5333_v32, %s6235_s17  ;;  %v5355_v32 = vmax.f32 %v5312_v40, 0.0 }
 0x979   : > { %5758 = vrot.lane.b32.xlu0 %v5335_v54, %s6235_s17 }
 0x97a   : > { %v5623_v36 = vpop.permute.xlu1 %5622 }
 0x97b   : > { %5700 = vst.msk [vmem:[%s6584_s22 + $0x90] sm:$0xff] %vm1050_vm9, %v5623_v36 }
 0x97c   : > { %v5314_v58 = vpop.f32.mrf.mxu3 }
 0x97d   : > { %v5315_v31 = vadd.f32 %v11061_v21, %v5314_v58 }
 0x97f   : > { %v5356_v30 = vmax.f32 %v5315_v31, 0.0 }
 0x980   : > { %5756 = vrot.lane.b32.xlu2 %v5334_v5, %s6235_s17  ;;  %5760 = vrot.lane.b32.xlu1 %v5336_v9, %s6235_s17 }
 0x981   : > { %5764 = vrot.lane.b32.xlu0 %v5338_v41, %s6235_s17 }
 0x982   : > { %v5631_v60 = vpop.permute.xlu2 %5630 }
 0x983   : > { %5704 = vst.msk [vmem:[%s6584_s22 + $0xb0] sm:$0xff] %vm1050_vm9, %v5631_v60 }
 0x984   : > { %v5317_v4 = vpop.f32.mrf.mxu3 }
 0x985   : > { %v5318_v25 = vadd.f32 %v11061_v21, %v5317_v4 }
 0x987   : > { %v5357_v54 = vmax.f32 %v5318_v25, 0.0 }
 0x988   : > { %5762 = vrot.lane.b32.xlu2 %v5337_v47, %s6235_s17  ;;  %5766 = vrot.lane.b32.xlu1 %v5339_v51, %s6235_s17 }
 0x989   : > { %5770 = vrot.lane.b32.xlu0 %v5341_v57, %s6235_s17 }
 0x98a   : > { %v5627_v63 = vpop.permute.xlu0 %5626 }
 0x98b   : > { %5702 = vst.msk [vmem:[%s6584_s22 + $0xa0] sm:$0xff] %vm1050_vm9, %v5627_v63 }
 0x98c   : > { %v5320_v48 = vpop.f32.mrf.mxu3 }
 0x98d   : > { %v5321_v7 = vadd.f32 %v11061_v21, %v5320_v48 }
 0x98f   : > { %v5358_v22 = vmax.f32 %v5321_v7, 0.0 }
 0x990   : > { %5768 = vrot.lane.b32.xlu2 %v5340_v13, %s6235_s17  ;;  %5772 = vrot.lane.b32.xlu1 %v5342_v20, %s6235_s17 }
 0x991   : > { %5776 = vrot.lane.b32.xlu0 %v5344_v37, %s6235_s17 }
 0x992   : > { %v5629_v14 = vpop.permute.xlu1 %5628 }
 0x993   : > { %5703 = vst.msk [vmem:[%s6584_s22 + $0xa8] sm:$0xff] %vm1050_vm9, %v5629_v14 }
 0x994   : > { %v5323_v42 = vpop.f32.mrf.mxu3 }
 0x995   : > { %v5324_v55 = vadd.f32 %v11061_v21, %v5323_v42 }
 0x997   : > { %v5359_v61 = vmax.f32 %v5324_v55, 0.0 }
 0x998   : > { %5774 = vrot.lane.b32.xlu2 %v5343_v39, %s6235_s17  ;;  %5778 = vrot.lane.b32.xlu1 %v5345_v12, %s6235_s17 }
 0x999   : > { %5782 = vrot.lane.b32.xlu0 %v5347_v52, %s6235_s17 }
 0x99a   : > { %v5637_v28 = vpop.permute.xlu2 %5636 }
 0x99b   : > { %5707 = vst.msk [vmem:[%s6584_s22 + $0xc8] sm:$0xff] %vm1050_vm9, %v5637_v28 }
 0x99c   : > { %v5326_v26 = vpop.f32.mrf.mxu3 }
 0x99d   : > { %v5327_v49 = vadd.f32 %v11061_v21, %v5326_v26 }
 0x99f   : > { %v5360_v36 = vmax.f32 %v5327_v49, 0.0 }
 0x9a0   : > { %5780 = vrot.lane.b32.xlu2 %v5346_v45, %s6235_s17  ;;  %5784 = vrot.lane.b32.xlu1 %v5348_v8, %s6235_s17 }
 0x9a1   : > { %5788 = vrot.lane.b32.xlu0 %v5350_v50, %s6235_s17 }
 0x9a2   : > { %v5633_v10 = vpop.permute.xlu0 %5632 }
 0x9a3   : > { %5705 = vst.msk [vmem:[%s6584_s22 + $0xb8] sm:$0xff] %vm1050_vm9, %v5633_v10 }
 0x9a8   : > { %5786 = vrot.lane.b32.xlu2 %v5349_v18, %s6235_s17  ;;  %5790 = vrot.lane.b32.xlu1 %v5351_v46, %s6235_s17 }
 0x9a9   : > { %5794 = vrot.lane.b32.xlu0 %v5353_v43, %s6235_s17 }
 0x9aa   : > { %v5635_v24 = vpop.permute.xlu1 %5634 }
 0x9ab   : > { %5706 = vst.msk [vmem:[%s6584_s22 + $0xc0] sm:$0xff] %vm1050_vm9, %v5635_v24 }
 0x9b0   : > { %5792 = vrot.lane.b32.xlu2 %v5352_v27, %s6235_s17  ;;  %5796 = vrot.lane.b32.xlu1 %v5354_v1, %s6235_s17 }
 0x9b1   : > { %5800 = vrot.lane.b32.xlu0 %v5356_v30, %s6235_s17 }
 0x9b2   : > { %v5643_v0 = vpop.permute.xlu2 %5642 }
 0x9b3   : > { %5710 = vst.msk [vmem:[%s6584_s22 + $0xe0] sm:$0xff] %vm1050_vm9, %v5643_v0 }
 0x9b8   : > { %5798 = vrot.lane.b32.xlu2 %v5355_v32, %s6235_s17  ;;  %5802 = vrot.lane.b32.xlu1 %v5357_v54, %s6235_s17 }
 0x9b9   : > { %5806 = vrot.lane.b32.xlu0 %v5359_v61, %s6235_s17 }
 0x9ba   : > { %v5639_v17 = vpop.permute.xlu0 %5638 }
 0x9bb   : > { %5708 = vst.msk [vmem:[%s6584_s22 + $0xd0] sm:$0xff] %vm1050_vm9, %v5639_v17 }
 0x9c0   : > { %5804 = vrot.lane.b32.xlu2 %v5358_v22, %s6235_s17  ;;  %5808 = vrot.lane.b32.xlu1 %v5360_v36, %s6235_s17  ;;  %s6097_s17 = sshll.u32 %s6332_s13, 8  ;;  %s5875_s13 = scalar_lea.sflag [#allocation6], %s12051_s26 }
 0x9c1   : > { %s5886_s16 = scalar_lea.hbm %s11307_s9, %s6097_s17  ;;  %s6190_s17 = scalar_lea.hbm %s11307_s9, 512 }
 0x9c2   : > { %v5641_v5 = vpop.permute.xlu1 %5640  ;;  %s5889_s24 = sshll.u32 %s5886_s16, 4  ;;  %s5890_s24 = int_to_ptr.hbm [resolvable:$true] %s5889_s24 }
 0x9c3   : > { %5709 = vst.msk [vmem:[%s6584_s22 + $0xd8] sm:$0xff] %vm1050_vm9, %v5641_v5  ;;  %s6184_s27 = sshra.s32 %s5890_s24, 4  ;;  %s6185_s27 = int_to_ptr.hbm [resolvable:$true] %s6184_s27 }
 0x9c4   : > { %s6186_s29 = scalar_lea.hbm %s6185_s27, 256  ;;  %p6191_p0 = scmp.lt.s32.totalorder %s6185_s27, %s11307_s9 }
 0x9c5   : > { %p6187_p11 = scmp.ne.s32.totalorder %s6185_s27, %s6186_s29  ;;  %p6192_p1 = scmp.lt.s32.totalorder %s6190_s17, %s6186_s29 }
 0x9c7   : > { %p6188_p12 = pnand %p6187_p11, %p6349_p5  ;;  %p6193_p2 = por %p6192_p1, %p6191_p0 }
 0x9c9   : > { %p6189_p13 = pneg %p6188_p12 }
 0x9ca   : > { %v5649_v9 = vpop.permute.xlu2 %5648 }
 0x9cb   : > { %5713 = vst.msk [vmem:[%s6584_s22 + $0xf8] sm:$0xff] %vm1050_vm9, %v5649_v9  ;;  %p6194_p3 = pnand %p6193_p2, %p6189_p13 }
 0x9d2   : > { %v5751_v21 = vpop.permute.xlu2 %5750  ;;  %v5645_v41 = vpop.permute.xlu0 %5644 }
 0x9d3   : > { %5844 = vst.msk [vmem:[%s6584_s22 + $0x10] sm:$0xff] %vm1180_vm10, %v5751_v21 }
 0x9d4   : > { %5711 = vst.msk [vmem:[%s6584_s22 + $0xe8] sm:$0xff] %vm1050_vm9, %v5645_v41 }
 0x9da   : > { %v5757_v15 = vpop.permute.xlu2 %5756  ;;  %v5647_v11 = vpop.permute.xlu1 %5646 }
 0x9db   : > { %5847 = vst.msk [vmem:[%s6584_s22 + $0x28] sm:$0xff] %vm1180_vm10, %v5757_v15  ;;  %v5747_v60 = vpop.permute.xlu0 %5746 }
 0x9dc   : > { %5712 = vst.msk [vmem:[%s6584_s22 + $0xf0] sm:$0xff] %vm1050_vm9, %v5647_v11 }
 0x9dd   : > { %5842 = vst.msk [vmem:[%s6584_s22] sm:$0xff] %vm1180_vm10, %v5747_v60 }
 0x9e2   : > { %v5763_v19 = vpop.permute.xlu2 %5762  ;;  %v5749_v44 = vpop.permute.xlu1 %5748 }
 0x9e3   : > { %5850 = vst.msk [vmem:[%s6584_s22 + $0x40] sm:$0xff] %vm1180_vm10, %v5763_v19  ;;  %v5753_v47 = vpop.permute.xlu0 %5752 }
 0x9e4   : > { %5843 = vst.msk [vmem:[%s6584_s22 + $0x8] sm:$0xff] %vm1180_vm10, %v5749_v44 }
 0x9e5   : > { %5845 = vst.msk [vmem:[%s6584_s22 + $0x18] sm:$0xff] %vm1180_vm10, %v5753_v47 }
 0x9ea   : > { %v5769_v51 = vpop.permute.xlu2 %5768  ;;  %v5755_v57 = vpop.permute.xlu1 %5754 }
 0x9eb   : > { %5853 = vst.msk [vmem:[%s6584_s22 + $0x58] sm:$0xff] %vm1180_vm10, %v5769_v51  ;;  %v5759_v35 = vpop.permute.xlu0 %5758 }
 0x9ec   : > { %5846 = vst.msk [vmem:[%s6584_s22 + $0x20] sm:$0xff] %vm1180_vm10, %v5755_v57 }
 0x9ed   : > { %5848 = vst.msk [vmem:[%s6584_s22 + $0x30] sm:$0xff] %vm1180_vm10, %v5759_v35 }
 0x9f2   : > { %v5775_v56 = vpop.permute.xlu2 %5774  ;;  %v5761_v63 = vpop.permute.xlu1 %5760 }
 0x9f3   : > { %5856 = vst.msk [vmem:[%s6584_s22 + $0x70] sm:$0xff] %vm1180_vm10, %v5775_v56  ;;  %v5765_v38 = vpop.permute.xlu0 %5764 }
 0x9f4   : > { %5849 = vst.msk [vmem:[%s6584_s22 + $0x38] sm:$0xff] %vm1180_vm10, %v5761_v63 }
 0x9f5   : > { %5851 = vst.msk [vmem:[%s6584_s22 + $0x48] sm:$0xff] %vm1180_vm10, %v5765_v38 }
 0x9fa   : > { %v5781_v58 = vpop.permute.xlu2 %5780  ;;  %v5767_v13 = vpop.permute.xlu1 %5766 }
 0x9fb   : > { %5859 = vst.msk [vmem:[%s6584_s22 + $0x88] sm:$0xff] %vm1180_vm10, %v5781_v58  ;;  %v5771_v20 = vpop.permute.xlu0 %5770 }
 0x9fc   : > { %5852 = vst.msk [vmem:[%s6584_s22 + $0x50] sm:$0xff] %vm1180_vm10, %v5767_v13 }
 0x9fd   : > { %5854 = vst.msk [vmem:[%s6584_s22 + $0x60] sm:$0xff] %vm1180_vm10, %v5771_v20 }
 0xa02   : > { %v5787_v37 = vpop.permute.xlu2 %5786  ;;  %v5773_v53 = vpop.permute.xlu1 %5772 }
 0xa03   : > { %5862 = vst.msk [vmem:[%s6584_s22 + $0xa0] sm:$0xff] %vm1180_vm10, %v5787_v37  ;;  %v5777_v23 = vpop.permute.xlu0 %5776 }
 0xa04   : > { %5855 = vst.msk [vmem:[%s6584_s22 + $0x68] sm:$0xff] %vm1180_vm10, %v5773_v53 }
 0xa05   : > { %5857 = vst.msk [vmem:[%s6584_s22 + $0x78] sm:$0xff] %vm1180_vm10, %v5777_v23 }
 0xa0a   : > { %v5793_v14 = vpop.permute.xlu2 %5792  ;;  %v5779_v62 = vpop.permute.xlu1 %5778 }
 0xa0b   : > { %5865 = vst.msk [vmem:[%s6584_s22 + $0xb8] sm:$0xff] %vm1180_vm10, %v5793_v14  ;;  %v5783_v39 = vpop.permute.xlu0 %5782 }
 0xa0c   : > { %5858 = vst.msk [vmem:[%s6584_s22 + $0x80] sm:$0xff] %vm1180_vm10, %v5779_v62 }
 0xa0d   : > { %5860 = vst.msk [vmem:[%s6584_s22 + $0x90] sm:$0xff] %vm1180_vm10, %v5783_v39 }
 0xa12   : > { %v5799_v12 = vpop.permute.xlu2 %5798  ;;  %v5785_v52 = vpop.permute.xlu1 %5784 }
 0xa13   : > { %5868 = vst.msk [vmem:[%s6584_s22 + $0xd0] sm:$0xff] %vm1180_vm10, %v5799_v12  ;;  %v5789_v4 = vpop.permute.xlu0 %5788 }
 0xa14   : > { %5861 = vst.msk [vmem:[%s6584_s22 + $0x98] sm:$0xff] %vm1180_vm10, %v5785_v52 }
 0xa15   : > { %5863 = vst.msk [vmem:[%s6584_s22 + $0xa8] sm:$0xff] %vm1180_vm10, %v5789_v4 }
 0xa1a   : > { %v5805_v2 = vpop.permute.xlu2 %5804  ;;  %v5791_v3 = vpop.permute.xlu1 %5790 }
 0xa1b   : > { %5871 = vst.msk [vmem:[%s6584_s22 + $0xe8] sm:$0xff] %vm1180_vm10, %v5805_v2  ;;  %v5795_v28 = vpop.permute.xlu0 %5794 }
 0xa1c   : > { %5864 = vst.msk [vmem:[%s6584_s22 + $0xb0] sm:$0xff] %vm1180_vm10, %v5791_v3 }
 0xa1d   : > { %5866 = vst.msk [vmem:[%s6584_s22 + $0xc0] sm:$0xff] %vm1180_vm10, %v5795_v28 }
 0xa22   : > { %v5797_v29 = vpop.permute.xlu1 %5796 }
 0xa23   : > { %5867 = vst.msk [vmem:[%s6584_s22 + $0xc8] sm:$0xff] %vm1180_vm10, %v5797_v29  ;;  %v5801_v45 = vpop.permute.xlu0 %5800 }
 0xa24   : > { %5869 = vst.msk [vmem:[%s6584_s22 + $0xd8] sm:$0xff] %vm1180_vm10, %v5801_v45 }
 0xa2a   : > { %v5803_v8 = vpop.permute.xlu1 %5802 }
 0xa2b   : > { %5870 = vst.msk [vmem:[%s6584_s22 + $0xe0] sm:$0xff] %vm1180_vm10, %v5803_v8  ;;  %v5807_v50 = vpop.permute.xlu0 %5806 }
 0xa2c   : > { %5872 = vst.msk [vmem:[%s6584_s22 + $0xf0] sm:$0xff] %vm1180_vm10, %v5807_v50 }
 0xa32   : > { %v5809_v48 = vpop.permute.xlu1 %5808 }
 0xa33   : > { %5873 = vst.msk [vmem:[%s6584_s22 + $0xf8] sm:$0xff] %vm1180_vm10, %v5809_v48 }
 0xa34   : > { %6197 = shalt.err (!%p6194_p3)
}
 0xa35   : > { %s6260_s22 = smov 128   ;;  %s12052_s16 = smov 8  }
 0xa36   : > { %6098 = dma.vmem_to_hbm [thread:$0]  (%p6349_p5), %s5888_s23, 4096, %s5890_s24, %s5875_s13, %s6260_s22, %s6260_s22, %s12052_s16  }
 0xa37 PF: > { %p6104_p4 = scmp.ge.s32.totalorder %s6232_s12, 2  ;;  %s5904_s26 = sand.u32 1, %s6220_s30  }
 0xa38   : > { %s5905_s28 = scalar_lea.sflag [#allocation6], %s5904_s26 }
 0xa39   : > { %p6101_p7 = pnand %p6104_p4, %p6353_p6 }
 0xa3b   : > { %p6102_p8 = pneg %p6101_p7 }
 0xa3d   : > { %6215 = dma.done.wait (%p6102_p8), %s5905_s28, 4096  }
 0xa3e   : > { %6217 = vsyncadd (%p6102_p8), %s5905_s28, 4294963200  ;;  %p19_p9 = scmp.ge.s32.totalorder %s6336_s15, 4   ;;  %s12053_s30 = smov %s6224_s10 }
 0xa3f   : > { %s12054_s10 = smov %s6228_s11  ;;  %s12055_s11 = smov %s6347_s18 }
 0xa40   : > { %s12056_s12 = smov %s6336_s15  ;;  %21 = sbr.rel (!%p19_p9) target bundleno = 3 (0x3), region = 96 }
 0xa45   :  { %5911 = vsyncpa [#allocation6], 1 }
 0xa46   :  { %5913 = vsyncpa [#allocation6 + $0x1], 1 }

</bundles_post_ra>
